<compile_context>
chip_gen: v6e
topology: v6e:2x2x1
jax: 0.10.0
libtpu: 0.0.40
codegen_flags: <defaults>
</compile_context>

<pallas_src>
import jax
import jax.numpy as jnp
from jax import lax
from jax.experimental import pallas as pl
from jax.experimental.pallas import tpu as pltpu


_BATCH_TILE = 128  # MXU-row-sized batch tile (sublane- and MXU-aligned)

_COMPILER_PARAMS = pltpu.CompilerParams(
    dimension_semantics=("parallel", "arbitrary"),
    vmem_limit_bytes=32 * 1024 * 1024,  # safe on v5e/v6e/v7x for this footprint
)


def _ddpm_step(coeff_ref, x0_ref, z_ref, w_ref, b_ref, xout_ref):
    """One reverse-diffusion step.

    grid = (batch_tiles, T); grid step s corresponds to time_step = T-1-s.
    xout_ref has a constant block index over s, so it is the VMEM-resident
    carry x_t across all T steps and is flushed to HBM once per batch tile.
    """
    s = pl.program_id(1)

    @pl.when(s == 0)
    def _():
        xout_ref[...] = x0_ref[...]          # x_T seeds the carry

    c1 = coeff_ref[0, s]
    c2 = coeff_ref[1, s]
    sqrt_var = coeff_ref[2, s]               # == 0 on the final step (t == 0)
    t_f = coeff_ref[3, s]

    x = xout_ref[...]

    # epsilon_theta = model(x_t, t): synthetic dense predictor on the MXU
    # (bf16 operands, f32 accumulation).
    eps = jnp.dot(x.astype(jnp.bfloat16), w_ref[...],
                  preferred_element_type=jnp.float32)

    # Time-dependent bias on a single (1, D) row, broadcast to the tile.
    d = eps.shape[-1]
    phase = lax.broadcasted_iota(jnp.int32, (1, d), 1).astype(jnp.float32)
    bias_row = b_ref[...] + 0.01 * jnp.sin(phase * ((t_f + 1.0) / d))
    eps = eps + bias_row

    # mean of q(x_{t-1} | x_t, x_0); elementwise math kept in f32.
    mean = c1 * x - c2 * eps
    z = z_ref[0].astype(jnp.float32)
    xout_ref[...] = mean + sqrt_var * z


def _ddpm_kernel_x0(coeff_ref, x0_ref, z_ref, w_ref, b_ref, xout_ref):
    _ddpm_step(coeff_ref, x0_ref, z_ref, w_ref, b_ref, xout_ref)


def _ddpm_kernel_traj(coeff_ref, x0_ref, z_ref, w_ref, b_ref,
                      xout_ref, traj_ref):
    _ddpm_step(coeff_ref, x0_ref, z_ref, w_ref, b_ref, xout_ref)
    traj_ref[0] = xout_ref[...].astype(traj_ref.dtype)   # bf16 frame


def _common_in_specs(d):
    return [
        pl.BlockSpec((_BATCH_TILE, d), lambda bt, s, cf: (bt, 0)),        # x_T
        pl.BlockSpec((1, _BATCH_TILE, d), lambda bt, s, cf: (s, bt, 0)),  # noise
        pl.BlockSpec((d, d), lambda bt, s, cf: (0, 0)),   # W (resident, bf16)
        pl.BlockSpec((1, d), lambda bt, s, cf: (0, 0)),   # bias (resident)
    ]


@jax.jit
def _sample_x0(coeffs, x_pad, z, w_bf16, bias):
    t_steps = coeffs.shape[1]
    b_pad, d = x_pad.shape
    n_bt = b_pad // _BATCH_TILE
    grid_spec = pltpu.PrefetchScalarGridSpec(
        num_scalar_prefetch=1,                      # (4, T) coeff table -> SMEM
        grid=(n_bt, t_steps),
        in_specs=_common_in_specs(d),
        out_specs=pl.BlockSpec((_BATCH_TILE, d), lambda bt, s, cf: (bt, 0)),
    )
    return pl.pallas_call(
        _ddpm_kernel_x0,
        out_shape=jax.ShapeDtypeStruct((b_pad, d), jnp.float32),
        grid_spec=grid_spec,
        compiler_params=_COMPILER_PARAMS,
    )(coeffs, x_pad, z, w_bf16, bias)


@jax.jit
def _sample_traj(coeffs, x_pad, z, w_bf16, bias):
    t_steps = coeffs.shape[1]
    b_pad, d = x_pad.shape
    n_bt = b_pad // _BATCH_TILE
    grid_spec = pltpu.PrefetchScalarGridSpec(
        num_scalar_prefetch=1,
        grid=(n_bt, t_steps),
        in_specs=_common_in_specs(d),
        out_specs=[
            pl.BlockSpec((_BATCH_TILE, d), lambda bt, s, cf: (bt, 0)),        # x_0
            pl.BlockSpec((1, _BATCH_TILE, d), lambda bt, s, cf: (s, bt, 0)),  # traj
        ],
    )
    return pl.pallas_call(
        _ddpm_kernel_traj,
        out_shape=(
            jax.ShapeDtypeStruct((b_pad, d), jnp.float32),
            jax.ShapeDtypeStruct((t_steps, b_pad, d), jnp.bfloat16),
        ),
        grid_spec=grid_spec,
        compiler_params=_COMPILER_PARAMS,
    )(coeffs, x_pad, z, w_bf16, bias)


def _padded_noise(key, t_steps, b_pad, d):
    """Host-generated gaussian noise, streamed to the kernel in bf16."""
    return jax.random.normal(key, (t_steps, b_pad, d)).astype(jnp.bfloat16)


class DDPMSampler:
    """JAX/Pallas port of the PyTorch DDPMSampler with a fused T-step kernel."""

    def __init__(self, model_w, model_b, beta, T):
        self.T = T
        # Synthetic noise-predictor parameters: W stored bf16, bias f32.
        self.model_w = model_w.astype(jnp.bfloat16)
        self.model_b = model_b.astype(jnp.float32).reshape(1, -1)

        # Same buffer math as the PyTorch __init__ (plain-JAX glue).
        beta_t = jnp.linspace(beta[0], beta[1], T, dtype=jnp.float32)
        alpha_t = 1.0 - beta_t
        alpha_t_bar = jnp.cumprod(alpha_t)
        alpha_t_bar_prev = jnp.concatenate(
            [jnp.ones((1,), jnp.float32), alpha_t_bar[:-1]])
        self.beta_t = beta_t
        self.coeff_1 = jnp.sqrt(1.0 / alpha_t)
        self.coeff_2 = self.coeff_1 * (1.0 - alpha_t) / jnp.sqrt(1.0 - alpha_t_bar)
        self.posterior_variance = (
            beta_t * (1.0 - alpha_t_bar_prev) / (1.0 - alpha_t_bar))

        # (4, T) per-step coefficient table in grid-step order s, where
        # time_step = T-1-s (the reversed(range(T)) loop of the reference).
        t_idx = jnp.arange(T - 1, -1, -1)
        self._coeff_table = jnp.stack(
            [self.coeff_1[t_idx],
             self.coeff_2[t_idx],
             jnp.sqrt(self.posterior_variance[t_idx]),
             t_idx.astype(jnp.float32)], axis=0).astype(jnp.float32)

    def forward(self, x_t, key, only_return_x_0=True, interval=1):
        B, C, H, W = x_t.shape
        D = C * H * W
        # TODO(synk): on v7x pad to an even number of batch tiles so the
        #             "parallel" axis shards across both TensorCores.
        b_pad = ((B + _BATCH_TILE - 1) // _BATCH_TILE) * _BATCH_TILE

        x_flat = x_t.reshape(B, D).astype(jnp.float32)
        x_pad = jnp.zeros((b_pad, D), jnp.float32).at[:B].set(x_flat)
        z = _padded_noise(key, self.T, b_pad, D)

        if only_return_x_0:
            x0_pad = _sample_x0(self._coeff_table, x_pad, z,
                                self.model_w, self.model_b)
            # Reference returns x_0 unclipped in this branch.
            return x0_pad[:B].reshape(B, C, H, W)

        x0_pad, traj_pad = _sample_traj(self._coeff_table, x_pad, z,
                                        self.model_w, self.model_b)
        del x0_pad  # last saved trajectory frame already holds x_0

        frames = [x_t.astype(jnp.float32)]
        for s in range(self.T):
            time_step = self.T - 1 - s
            if (self.T - time_step) % interval == 0 or time_step == 0:
                frames.append(
                    jnp.clip(traj_pad[s, :B].astype(jnp.float32),
                             -1.0, 1.0).reshape(B, C, H, W))
        return jnp.stack(frames, axis=1)


def _reference_sample(sampler, x_t, z_bf16):
    """Pure-JAX reference of the same synthetic sampler (for validation)."""
    B = x_t.shape[0]
    D = x_t.reshape(B, -1).shape[1]
    x = x_t.reshape(B, D).astype(jnp.float32)
    phase = jnp.arange(D, dtype=jnp.float32)[None, :]
    for s in range(sampler.T):
        t = sampler.T - 1 - s
        eps = jnp.dot(x.astype(jnp.bfloat16), sampler.model_w,
                      preferred_element_type=jnp.float32)
        eps = eps + sampler.model_b + 0.01 * jnp.sin(phase * ((t + 1.0) / D))
        mean = sampler.coeff_1[t] * x - sampler.coeff_2[t] * eps
        z = z_bf16[s, :B].astype(jnp.float32) if t > 0 else 0.0
        x = mean + jnp.sqrt(sampler.posterior_variance[t]) * z
    return x.reshape(x_t.shape)


if __name__ == "__main__":
    # Small, deterministic example consistent with the module's forward.
    B, C, H, W = 2, 4, 16, 16
    D = C * H * W
    T = 8
    beta = (1e-4, 0.02)

    root = jax.random.PRNGKey(0)
    k_x, k_w, k_b, k_noise = jax.random.split(root, 4)

    x_t = jax.random.normal(k_x, (B, C, H, W), dtype=jnp.float32)
    model_w = 0.02 * jax.random.normal(k_w, (D, D), dtype=jnp.float32)
    model_b = 0.01 * jax.random.normal(k_b, (1, D), dtype=jnp.float32)

    sampler = DDPMSampler(model_w, model_b, beta, T)

    # Main path: only x_0 (no trajectory output compiled / written).
    x_0 = sampler.forward(x_t, k_noise, only_return_x_0=True)
    x_0 = jax.block_until_ready(x_0)
    assert x_0.shape == (B, C, H, W)
    if bool(jnp.isnan(x_0).sum() != 0):     # mirrors the PyTorch nan guard
        raise ValueError("nan in tensor!")

    # Validate against the pure-JAX reference using the identical noise.
    b_pad = ((B + _BATCH_TILE - 1) // _BATCH_TILE) * _BATCH_TILE
    z_same = _padded_noise(k_noise, T, b_pad, D)
    ref_x0 = _reference_sample(sampler, x_t, z_same)
    err = float(jnp.max(jnp.abs(x_0 - ref_x0)))
    assert err < 5e-2, f"mismatch vs reference: {err}"

    # Optional trajectory path (separate kernel variant, bf16 frames).
    x_seq = sampler.forward(x_t, k_noise, only_return_x_0=False, interval=2)
    x_seq = jax.block_until_ready(x_seq)
    assert x_seq.ndim == 5 and x_seq.shape[0] == B and x_seq.shape[2:] == (C, H, W)
    if bool(jnp.isnan(x_seq).sum() != 0):
        raise ValueError("nan in tensor!")

    print("KERNEL_OK")
</pallas_src>

<mosaic_0001>
module attributes {stable_mosaic.version = 11 : i64} {
  func.func @_ddpm_kernel_x0(%arg0: i32, %arg1: i32, %arg2: memref<4x8xf32, #tpu.memory_space<smem>>, %arg3: memref<128x1024xf32, #tpu.memory_space<vmem>>, %arg4: memref<1x128x1024xbf16, #tpu.memory_space<vmem>>, %arg5: memref<1024x1024xbf16, #tpu.memory_space<vmem>>, %arg6: memref<1x1024xf32, #tpu.memory_space<vmem>>, %arg7: memref<128x1024xf32, #tpu.memory_space<vmem>>) attributes {dimension_semantics = [#tpu.dimension_semantics<parallel>, #tpu.dimension_semantics<arbitrary>], iteration_bounds = array<i64: 1, 8>, scalar_prefetch = 1 : i64, scratch_operands = 0 : i64, tpu.core_type = #tpu.core_type<tc>, window_params = [{transform_indices = @transform_0, window_bounds = array<i64: 128, 1024>}, {transform_indices = @transform_1, window_bounds = array<i64: 1, 128, 1024>}, {pipeline_mode = #tpu.pipeline_mode<synchronous>, transform_indices = @transform_2, window_bounds = array<i64: 1024, 1024>}, {pipeline_mode = #tpu.pipeline_mode<synchronous>, transform_indices = @transform_3, window_bounds = array<i64: 1, 1024>}, {transform_indices = @transform_4, window_bounds = array<i64: 128, 1024>}]} {
    %c0_i32 = arith.constant 0 : i32
    %0 = arith.cmpi eq, %arg1, %c0_i32 : i32
    %1 = arith.extui %0 : i1 to i32
    %c0_i32_0 = arith.constant 0 : i32
    %2 = arith.cmpi ne, %1, %c0_i32_0 : i32
    scf.if %2 {
      %c0_15 = arith.constant 0 : index
      %c0_16 = arith.constant 0 : index
      %40 = vector.load %arg3[%c0_15, %c0_16] : memref<128x1024xf32, #tpu.memory_space<vmem>>, vector<128x1024xf32>
      %c0_17 = arith.constant 0 : index
      %c0_18 = arith.constant 0 : index
      %41 = vector.load %arg7[%c0_17, %c0_18] : memref<128x1024xf32, #tpu.memory_space<vmem>>, vector<128x1024xf32>
      tpu.vector_store %arg7[%c0_17, %c0_18], %40 {strides = array<i32>} : memref<128x1024xf32, #tpu.memory_space<vmem>>, vector<128x1024xf32>,
    } else {
    }
    %c0 = arith.constant 0 : index
    %3 = arith.index_cast %arg1 : i32 to index
    %4 = memref.load %arg2[%c0, %3] : memref<4x8xf32, #tpu.memory_space<smem>>
    %c1 = arith.constant 1 : index
    %5 = arith.index_cast %arg1 : i32 to index
    %6 = memref.load %arg2[%c1, %5] : memref<4x8xf32, #tpu.memory_space<smem>>
    %c2 = arith.constant 2 : index
    %7 = arith.index_cast %arg1 : i32 to index
    %8 = memref.load %arg2[%c2, %7] : memref<4x8xf32, #tpu.memory_space<smem>>
    %c3 = arith.constant 3 : index
    %9 = arith.index_cast %arg1 : i32 to index
    %10 = memref.load %arg2[%c3, %9] : memref<4x8xf32, #tpu.memory_space<smem>>
    %c0_1 = arith.constant 0 : index
    %c0_2 = arith.constant 0 : index
    %11 = vector.load %arg7[%c0_1, %c0_2] : memref<128x1024xf32, #tpu.memory_space<vmem>>, vector<128x1024xf32>
    %12 = arith.truncf %11 : vector<128x1024xf32> to vector<128x1024xbf16>
    %c0_3 = arith.constant 0 : index
    %c0_4 = arith.constant 0 : index
    %13 = vector.load %arg5[%c0_3, %c0_4] : memref<1024x1024xbf16, #tpu.memory_space<vmem>>, vector<1024x1024xbf16>
    %cst = arith.constant dense<0.000000e+00> : vector<128x1024xf32>
    %14 = tpu.matmul %12, %13, %cst {dimension_numbers = #tpu.dot_dimension_numbers<[1], [0], [0], [1], [0, 0, 1, 1], [], []>} : vector<128x1024xbf16>, vector<1024x1024xbf16>, vector<128x1024xf32> -> vector<128x1024xf32>
    %15 = tpu.iota {dimensions = array<i32: 1>} : vector<1x1024xi32>
    %16 = arith.sitofp %15 : vector<1x1024xi32> to vector<1x1024xf32>
    %c0_5 = arith.constant 0 : index
    %c0_6 = arith.constant 0 : index
    %17 = vector.load %arg6[%c0_5, %c0_6] : memref<1x1024xf32, #tpu.memory_space<vmem>>, vector<1x1024xf32>
    %cst_7 = arith.constant 1.000000e+00 : f32
    %18 = arith.addf %10, %cst_7 : f32
    %cst_8 = arith.constant 1.024000e+03 : f32
    %19 = arith.divf %18, %cst_8 : f32
    %20 = vector.broadcast %19 : f32 to vector<1x1024xf32>
    %21 = arith.mulf %16, %20 : vector<1x1024xf32>
    %22 = math.sin %21 : vector<1x1024xf32>
    %cst_9 = arith.constant 0.00999999977 : f32
    %23 = vector.broadcast %cst_9 : f32 to vector<1x1024xf32>
    %24 = arith.mulf %23, %22 : vector<1x1024xf32>
    %25 = arith.addf %17, %24 : vector<1x1024xf32>
    %26 = vector.broadcast %25 : vector<1x1024xf32> to vector<128x1024xf32>
    %27 = arith.addf %14, %26 : vector<128x1024xf32>
    %28 = vector.broadcast %4 : f32 to vector<128x1024xf32>
    %29 = arith.mulf %28, %11 : vector<128x1024xf32>
    %30 = vector.broadcast %6 : f32 to vector<128x1024xf32>
    %31 = arith.mulf %30, %27 : vector<128x1024xf32>
    %32 = arith.subf %29, %31 : vector<128x1024xf32>
    %c0_10 = arith.constant 0 : index
    %c0_11 = arith.constant 0 : index
    %c0_12 = arith.constant 0 : index
    %33 = vector.load %arg4[%c0_10, %c0_11, %c0_12] : memref<1x128x1024xbf16, #tpu.memory_space<vmem>>, vector<1x128x1024xbf16>
    %34 = vector.shape_cast %33 : vector<1x128x1024xbf16> to vector<128x1024xbf16>
    %35 = arith.extf %34 : vector<128x1024xbf16> to vector<128x1024xf32>
    %36 = vector.broadcast %8 : f32 to vector<128x1024xf32>
    %37 = arith.mulf %36, %35 : vector<128x1024xf32>
    %38 = arith.addf %32, %37 : vector<128x1024xf32>
    %c0_13 = arith.constant 0 : index
    %c0_14 = arith.constant 0 : index
    %39 = vector.load %arg7[%c0_13, %c0_14] : memref<128x1024xf32, #tpu.memory_space<vmem>>, vector<128x1024xf32>
    tpu.vector_store %arg7[%c0_13, %c0_14], %38 {strides = array<i32>} : memref<128x1024xf32, #tpu.memory_space<vmem>>, vector<128x1024xf32>,
    return
  }
  func.func @transform_0(%arg0: i32, %arg1: i32, %arg2: memref<4x8xf32, #tpu.memory_space<smem>>) -> (i32, i32) {
    %c0_i32 = arith.constant 0 : i32
    %c0_i32_0 = arith.constant 0 : i32
    return %arg0, %c0_i32 : i32, i32
  }
  func.func @transform_1(%arg0: i32, %arg1: i32, %arg2: memref<4x8xf32, #tpu.memory_space<smem>>) -> (i32, i32, i32) {
    %c0_i32 = arith.constant 0 : i32
    %c0_i32_0 = arith.constant 0 : i32
    return %arg1, %arg0, %c0_i32 : i32, i32, i32
  }
  func.func @transform_2(%arg0: i32, %arg1: i32, %arg2: memref<4x8xf32, #tpu.memory_space<smem>>) -> (i32, i32) {
    %c0_i32 = arith.constant 0 : i32
    %c0_i32_0 = arith.constant 0 : i32
    %c0_i32_1 = arith.constant 0 : i32
    return %c0_i32, %c0_i32_0 : i32, i32
  }
  func.func @transform_3(%arg0: i32, %arg1: i32, %arg2: memref<4x8xf32, #tpu.memory_space<smem>>) -> (i32, i32) {
    %c0_i32 = arith.constant 0 : i32
    %c0_i32_0 = arith.constant 0 : i32
    %c0_i32_1 = arith.constant 0 : i32
    return %c0_i32, %c0_i32_0 : i32, i32
  }
  func.func @transform_4(%arg0: i32, %arg1: i32, %arg2: memref<4x8xf32, #tpu.memory_space<smem>>) -> (i32, i32) {
    %c0_i32 = arith.constant 0 : i32
    %c0_i32_0 = arith.constant 0 : i32
    return %arg0, %c0_i32 : i32, i32
  }
}

</mosaic_0001>

<bundles_post_ra>
// kernel: _sample_x0.1
= control target key start
LH: loop header
LB: loop body
LE: loop exit
PB: predicated region body
PF: predicated region fallthrough
CT: control target
= control target key end

     0   :  { %s8758_s18 = smov [#allocation3]   ;;  %s16025_s0 = inlined_call_operand.hbm [shape: f32[4,8], index: 0, kind: input, shape index: {}]   ;;  %s16026_s1 = inlined_call_operand.hbm [shape: f32[128,1024], index: 1, kind: input, shape index: {}]   ;;  %s16027_s2 = inlined_call_operand.hbm [shape: bf16[8,128,1024], index: 2, kind: input, shape index: {}]   ;;  %s16028_s3 = inlined_call_operand.hbm [shape: bf16[1024,1024], index: 3, kind: input, shape index: {}]   ;;  %s16029_s4 = inlined_call_operand.hbm [shape: f32[1,1024], index: 4, kind: input, shape index: {}]   ;;  %s16030_s5 = inlined_call_operand.hbm [shape: f32[128,1024], index: 5, kind: output, shape index: {}]  }
   0x1   :  { %11 = dma.hbm_to_smem %s16025_s0, 64, %s8758_s18, [#allocation2] }
   0x2   :  { %8712 = dma.done.wait [#allocation2], 64 }
   0x3   :  { %8713 = vsyncadd [#allocation2], 4294967232 }
   0x4   :  { %13 = sfence }
   0x5   :  { %14 = vsyncpa [#allocation5], 0 }
   0x6   :  { %15 = vsyncpa [#allocation8], 0 }
   0x7   :  { %17 = vsyncpa [#allocation8 + $0x1], 0 }
   0x8   :  { %18 = vsyncpa [#allocation11], 0 }
   0x9   :  { %19 = vsyncpa [#allocation6], 0  ;;  %s8810_s21 = smov 0   ;;  %s8812_s22 = smov 0  }
   0xa   :  { %s8814_s23 = smov 0   ;;  %s8816_s24 = smov 0  }
   0xb   :  { %s8818_s25 = smov 0   ;;  %s8820_s26 = smov 0  }
   0xc LB: > { %s8839_s0 = sadd.s32 4294967295, %s8756_s26   ;;  %p79_p0 = scmp.ne.s32.totalorder %s8744_s23, %s8740_s22  ;;  %s8756_s26 = sphi %s8820_s26, %s25_s26   ;;  %s8752_s25 = sphi %s8818_s25, %s18224_s25   ;;  %s8748_s24 = sphi %s8816_s24, %s18223_s24   ;;  %s8744_s23 = sphi %s8814_s23, %s18222_s23   ;;  %s8740_s22 = sphi %s8812_s22, %s18221_s22   ;;  %s8736_s21 = sphi %s8810_s21, %s18220_s21  }
   0xd   : > { %p80_p1 = scmp.eq.s32.totalorder %s8756_s26, 0  ;;  %p85_p2 = scmp.ne.s32.totalorder %s8740_s22, %s8736_s21 }
   0xe   : > { %p16031_p3 = scmp.eq.s32.totalorder %s8839_s0, 0  ;;  %p7679_p4 = scmp.ge.s32.totalorder %s8756_s26, 1 }
   0xf   : > { %p81_p5 = por %p80_p1, %p79_p0  ;;  %p164_p6 = scmp.lt.s32.totalorder %s8756_s26, 9 }
  0x10   : > { %p8850_p7 = por %p16031_p3, %p85_p2  ;;  %s8759_s29 = smov [#allocation9]  }
  0x11   : > { %p8854_p8 = pnand %p7679_p4, %p164_p6  ;;  %s193_s30 = sshll.u32 %s8759_s29, 4  ;;  %s194_s30 = int_to_ptr.vmem [resolvable:$true] %s193_s30 }
  0x12   : > { %p8318_p11 = scmp.lt.s32.totalorder %s8756_s26, 8  ;;  %s8569_s8 = scalar_lea.vmem %s194_s30, 65536 }
  0x13   : > { %p8301_p9 = pneg %p8854_p8  ;;  %p8570_p0 = scmp.ne.s32.totalorder %s194_s30, %s8569_s8 }
  0x14   : > { %p8867_p12 = pnand %p8318_p11, %p81_p5  ;;  %p8577_p4 = scmp.lt.s32.totalorder %s194_s30, %s194_s30 }
  0x15   : > { %p8862_p10 = pnand %p8301_p9, %p16031_p3  ;;  %p8578_p6 = scmp.lt.s32.totalorder %s8569_s8, %s8569_s8 }
  0x17   : > { %p8560_p13 = pneg %p8862_p10  ;;  %p8579_p9 = por %p8578_p6, %p8577_p4 }
  0x19   : > { %p8572_p1 = pnand %p8570_p0, %p8560_p13 }
  0x1b   : > { %p8573_p2 = pneg %p8572_p1 }
  0x1d   : > { %p8580_p3 = pnand %p8579_p9, %p8573_p2 }
  0x1f   : > { %8583 = shalt.err (!%p8580_p3)
}
  0x20   : > { %s16032_s9 = smov 512   ;;  %s8761_s10 = smov 32  }
  0x21   : > { %8307 = dma.hbm_to_vmem [thread:$0]  (!%p8862_p10), %s16028_s3, 65536, %s194_s30, [#allocation8], %s16032_s9, %s16032_s9, %s8761_s10  }
  0x22   : > { %s8762_s13 = smov [#allocation4]  }
  0x23   : > { %s180_s14 = sshll.u32 %s8762_s13, 4  ;;  %s181_s14 = int_to_ptr.vmem [resolvable:$true] %s180_s14 }
  0x24   : > { %s8595_s15 = scalar_lea.vmem %s181_s14, 16384  ;;  %p8603_p0 = scmp.lt.s32.totalorder %s181_s14, %s181_s14 }
  0x25   : > { %p8596_p5 = scmp.ne.s32.totalorder %s181_s14, %s8595_s15  ;;  %p8604_p1 = scmp.lt.s32.totalorder %s8595_s15, %s8595_s15 }
  0x27   : > { %p8598_p3 = pnand %p8596_p5, %p8560_p13  ;;  %p8605_p2 = por %p8604_p1, %p8603_p0 }
  0x29   : > { %p8599_p11 = pneg %p8598_p3 }
  0x2b   : > { %p8606_p4 = pnand %p8605_p2, %p8599_p11 }
  0x2d   : > { %8609 = shalt.err (!%p8606_p4)
}
  0x2e   : > { %s8763_s16 = smov 1024   ;;  %s8764_s17 = smov 64  }
  0x2f   : > { %8304 = dma.hbm_to_vmem [thread:$0]  (!%p8862_p10), %s16026_s1, 16384, %s181_s14, [#allocation5], %s8763_s16, %s8763_s16, %s8764_s17  }
  0x30   : > { %s8765_s20 = smov [#allocation10]   ;;  %s34_s29 = sadd.s32 1, %s8752_s25 }
  0x31   : > { %s207_s21 = sshll.u32 %s8765_s20, 4  ;;  %s208_s21 = int_to_ptr.vmem [resolvable:$true] %s207_s21 }
  0x32   : > { %s8621_s30 = scalar_lea.vmem %s208_s21, 128  ;;  %p8629_p3 = scmp.lt.s32.totalorder %s208_s21, %s208_s21 }
  0x33   : > { %p8622_p6 = scmp.ne.s32.totalorder %s208_s21, %s8621_s30  ;;  %p8630_p11 = scmp.lt.s32.totalorder %s8621_s30, %s8621_s30 }
  0x35   : > { %p8624_p9 = pnand %p8622_p6, %p8560_p13  ;;  %p8631_p0 = por %p8630_p11, %p8629_p3 }
  0x37   : > { %p8625_p5 = pneg %p8624_p9 }
  0x39   : > { %p8632_p1 = pnand %p8631_p0, %p8625_p5 }
  0x3b   : > { %8635 = shalt.err (!%p8632_p1)
}
  0x3c   : > { %8310 = dma.hbm_to_vmem [thread:$0]  (!%p8862_p10), %s16029_s4, 128, %s208_s21, [#allocation11]  }
  0x3d   : > { %p35_p13 = scmp.ge.s32.totalorder %s34_s29, 8  ;;  %s72_s12 = sadd.s32 1, %s8744_s23 }
  0x3e   : > { %s218_s13 = sand.u32 1, %s8756_s26   ;;  %s220_s14 = sand.u32 1, %s8744_s23  }
  0x3f   : > { %s18226_s29 = smov (%p35_p13, %s34_s29), 0  ;;  %s7684_s15 = sshll.u32 %s220_s14, 9 }
  0x40   : > { %s67_s6 = ssub.s32 %s8752_s25, %s18226_s29  ;;  %s8244_s16 = sshll.u32 %s8752_s25, 13 }
  0x41   : > { %p70_p2 = scmp.eq.s32.totalorder %s67_s6, 0  ;;  %s231_s19 = scalar_lea.hbm %s16027_s2, %s8244_s16 }
  0x42   : > { %s222_s20 = scalar_lea.vmem [#allocation7], %s7684_s15  ;;  %s219_s21 = scalar_lea.sflag [#allocation8], %s218_s13 }
  0x43   : > { %s232_s30 = sshll.u32 %s222_s20, 4  ;;  %p8638_p10 = pneg %p8867_p12  ;;  %s233_s30 = int_to_ptr.vmem [resolvable:$true] %s232_s30 }
  0x44   : > { %s8913_s8 = scalar_select %p70_p2, %s8744_s23, %s72_s12  }
  0x45   : > { %s8649_s11 = scalar_lea.vmem %s233_s30, 8192  ;;  %s8766_s14 = smov [#allocation7]  }
  0x46   : > { %p8650_p4 = scmp.ne.s32.totalorder %s233_s30, %s8649_s11  ;;  %s8654_s9 = sshll.u32 %s8766_s14, 4  ;;  %s8655_s9 = int_to_ptr.vmem [resolvable:$false] %s8654_s9 }
  0x47   : > { %s8656_s6 = scalar_lea.vmem %s8655_s9, 16384  ;;  %p8657_p5 = scmp.lt.s32.totalorder %s233_s30, %s8655_s9 }
  0x48   : > { %p8652_p6 = pnand %p8650_p4, %p8638_p10  ;;  %p8658_p3 = scmp.lt.s32.totalorder %s8656_s6, %s8649_s11 }
  0x4a   : > { %p8653_p9 = pneg %p8652_p6  ;;  %p8659_p11 = por %p8658_p3, %p8657_p5 }
  0x4c   : > { %p8660_p0 = pnand %p8659_p11, %p8653_p9 }
  0x4e   : > { %8663 = shalt.err (!%p8660_p0)
}
  0x4f   : > { %s16517_s12 = smov 512   ;;  %244 = sbr.rel (%p8854_p8) target bundleno = 1284 (0x504), region = 36 }
  0x50   : > { %8314 = dma.hbm_to_vmem [thread:$0]  (!%p8867_p12), %s231_s19, 8192, %s233_s30, %s219_s21, %s16517_s12, %s16517_s12, %s8761_s10  }
  0x54   : > { %p16518_p1 = scmp.eq.s32.totalorder %s8839_s0, 0 }
  0x56   : > { %8715 = dma.done.wait (%p16518_p1), [#allocation5], 16384   ;;  %p16519_p13 = pmov %p16518_p1 }
  0x57   : > { %s250_s9 = sand.u32 1, %s8839_s0   ;;  %s252_s13 = sand.u32 1, %s8740_s22  }
  0x58   : > { %8717 = vsyncadd (%p16519_p13), [#allocation5], 4294950912  ;;  %s7689_s15 = sshll.u32 %s252_s13, 9  ;;  %s251_s7 = scalar_lea.sflag [#allocation8], %s250_s9 }
  0x59   : > { %s8930_s16 = scalar_lea.vmem [#allocation7], %s7689_s15 }
  0x5a   : > { %8719 = dma.done.wait (%p8850_p7), %s251_s7, 8192  }
  0x5b   : > { %8721 = vsyncadd (%p8850_p7), %s251_s7, 4294959104  ;;  %p16520_p8 = pmov %p16518_p1 }
  0x5c   : > { %p16521_p12 = pmov %p16518_p1 }
  0x5d   : > { %8723 = dma.done.wait (%p16520_p8), [#allocation8], 65536  }
  0x5e   : > { %8725 = vsyncadd (%p16521_p12), [#allocation8], 4294901760  ;;  %p16522_p2 = pmov %p16518_p1 }
  0x5f   : > { %p16523_p10 = pmov %p16518_p1 }
  0x60   : > { %8727 = dma.done.wait (%p16522_p2), [#allocation11], 128  }
  0x61   : > { %8729 = vsyncadd (%p16523_p10), [#allocation11], 4294967168  ;;  %p7692_p4 = scmp.ne.s32.totalorder %s8748_s24, 0 }
  0x63   : > { %288 = sbr.rel (%p7692_p4) target bundleno = 169 (0xa9), region = 56 }
  0x68   : > { %v289_v0 = vld [vmem:[#allocation4] sm:$0xff]  ;;  %v290_v1 = vld [vmem:[#allocation4 + $0x8] sm:$0xff]  ;;  %v291_v2 = vld [vmem:[#allocation4 + $0x10] sm:$0xff] }
  0x69   : > { %417 = vst [vmem:[#allocation12] sm:$0xff] %v289_v0  ;;  %418 = vst [vmem:[#allocation12 + $0x8] sm:$0xff] %v290_v1  ;;  %v292_v3 = vld [vmem:[#allocation4 + $0x18] sm:$0xff]  ;;  %v293_v4 = vld [vmem:[#allocation4 + $0x20] sm:$0xff] }
  0x6a   : > { %419 = vst [vmem:[#allocation12 + $0x10] sm:$0xff] %v291_v2  ;;  %v294_v5 = vld [vmem:[#allocation4 + $0x28] sm:$0xff]  ;;  %420 = vst [vmem:[#allocation12 + $0x18] sm:$0xff] %v292_v3  ;;  %v295_v6 = vld [vmem:[#allocation4 + $0x30] sm:$0xff] }
  0x6b   : > { %421 = vst [vmem:[#allocation12 + $0x20] sm:$0xff] %v293_v4  ;;  %422 = vst [vmem:[#allocation12 + $0x28] sm:$0xff] %v294_v5  ;;  %v296_v7 = vld [vmem:[#allocation4 + $0x38] sm:$0xff]  ;;  %v297_v8 = vld [vmem:[#allocation4 + $0x40] sm:$0xff] }
  0x6c   : > { %423 = vst [vmem:[#allocation12 + $0x30] sm:$0xff] %v295_v6  ;;  %424 = vst [vmem:[#allocation12 + $0x38] sm:$0xff] %v296_v7  ;;  %v298_v9 = vld [vmem:[#allocation4 + $0x48] sm:$0xff]  ;;  %v299_v10 = vld [vmem:[#allocation4 + $0x50] sm:$0xff] }
  0x6d   : > { %425 = vst [vmem:[#allocation12 + $0x40] sm:$0xff] %v297_v8  ;;  %v300_v11 = vld [vmem:[#allocation4 + $0x58] sm:$0xff]  ;;  %426 = vst [vmem:[#allocation12 + $0x48] sm:$0xff] %v298_v9  ;;  %v301_v12 = vld [vmem:[#allocation4 + $0x60] sm:$0xff] }
  0x6e   : > { %427 = vst [vmem:[#allocation12 + $0x50] sm:$0xff] %v299_v10  ;;  %428 = vst [vmem:[#allocation12 + $0x58] sm:$0xff] %v300_v11  ;;  %v302_v13 = vld [vmem:[#allocation4 + $0x68] sm:$0xff]  ;;  %v303_v14 = vld [vmem:[#allocation4 + $0x70] sm:$0xff] }
  0x6f   : > { %429 = vst [vmem:[#allocation12 + $0x60] sm:$0xff] %v301_v12  ;;  %430 = vst [vmem:[#allocation12 + $0x68] sm:$0xff] %v302_v13  ;;  %v304_v15 = vld [vmem:[#allocation4 + $0x78] sm:$0xff]  ;;  %v305_v16 = vld [vmem:[#allocation4 + $0x80] sm:$0xff] }
  0x70   : > { %431 = vst [vmem:[#allocation12 + $0x70] sm:$0xff] %v303_v14  ;;  %v306_v17 = vld [vmem:[#allocation4 + $0x88] sm:$0xff]  ;;  %432 = vst [vmem:[#allocation12 + $0x78] sm:$0xff] %v304_v15  ;;  %v307_v18 = vld [vmem:[#allocation4 + $0x90] sm:$0xff] }
  0x71   : > { %433 = vst [vmem:[#allocation12 + $0x80] sm:$0xff] %v305_v16  ;;  %434 = vst [vmem:[#allocation12 + $0x88] sm:$0xff] %v306_v17  ;;  %v308_v19 = vld [vmem:[#allocation4 + $0x98] sm:$0xff]  ;;  %v309_v20 = vld [vmem:[#allocation4 + $0xa0] sm:$0xff] }
  0x72   : > { %435 = vst [vmem:[#allocation12 + $0x90] sm:$0xff] %v307_v18  ;;  %436 = vst [vmem:[#allocation12 + $0x98] sm:$0xff] %v308_v19  ;;  %v310_v21 = vld [vmem:[#allocation4 + $0xa8] sm:$0xff]  ;;  %v311_v22 = vld [vmem:[#allocation4 + $0xb0] sm:$0xff] }
  0x73   : > { %437 = vst [vmem:[#allocation12 + $0xa0] sm:$0xff] %v309_v20  ;;  %v312_v23 = vld [vmem:[#allocation4 + $0xb8] sm:$0xff]  ;;  %438 = vst [vmem:[#allocation12 + $0xa8] sm:$0xff] %v310_v21  ;;  %v313_v24 = vld [vmem:[#allocation4 + $0xc0] sm:$0xff] }
  0x74   : > { %439 = vst [vmem:[#allocation12 + $0xb0] sm:$0xff] %v311_v22  ;;  %440 = vst [vmem:[#allocation12 + $0xb8] sm:$0xff] %v312_v23  ;;  %v314_v25 = vld [vmem:[#allocation4 + $0xc8] sm:$0xff]  ;;  %v315_v26 = vld [vmem:[#allocation4 + $0xd0] sm:$0xff] }
  0x75   : > { %441 = vst [vmem:[#allocation12 + $0xc0] sm:$0xff] %v313_v24  ;;  %442 = vst [vmem:[#allocation12 + $0xc8] sm:$0xff] %v314_v25  ;;  %v316_v27 = vld [vmem:[#allocation4 + $0xd8] sm:$0xff]  ;;  %v317_v28 = vld [vmem:[#allocation4 + $0xe0] sm:$0xff] }
  0x76   : > { %443 = vst [vmem:[#allocation12 + $0xd0] sm:$0xff] %v315_v26  ;;  %v318_v29 = vld [vmem:[#allocation4 + $0xe8] sm:$0xff]  ;;  %444 = vst [vmem:[#allocation12 + $0xd8] sm:$0xff] %v316_v27  ;;  %v319_v30 = vld [vmem:[#allocation4 + $0xf0] sm:$0xff] }
  0x77   : > { %445 = vst [vmem:[#allocation12 + $0xe0] sm:$0xff] %v317_v28  ;;  %446 = vst [vmem:[#allocation12 + $0xe8] sm:$0xff] %v318_v29  ;;  %v320_v31 = vld [vmem:[#allocation4 + $0xf8] sm:$0xff]  ;;  %v321_v32 = vld [vmem:[#allocation4 + $0x100] sm:$0xff] }
  0x78   : > { %447 = vst [vmem:[#allocation12 + $0xf0] sm:$0xff] %v319_v30  ;;  %448 = vst [vmem:[#allocation12 + $0xf8] sm:$0xff] %v320_v31  ;;  %v322_v33 = vld [vmem:[#allocation4 + $0x108] sm:$0xff]  ;;  %v323_v34 = vld [vmem:[#allocation4 + $0x110] sm:$0xff] }
  0x79   : > { %449 = vst [vmem:[#allocation12 + $0x100] sm:$0xff] %v321_v32  ;;  %v324_v35 = vld [vmem:[#allocation4 + $0x118] sm:$0xff]  ;;  %450 = vst [vmem:[#allocation12 + $0x108] sm:$0xff] %v322_v33  ;;  %v325_v36 = vld [vmem:[#allocation4 + $0x120] sm:$0xff] }
  0x7a   : > { %451 = vst [vmem:[#allocation12 + $0x110] sm:$0xff] %v323_v34  ;;  %452 = vst [vmem:[#allocation12 + $0x118] sm:$0xff] %v324_v35  ;;  %v326_v37 = vld [vmem:[#allocation4 + $0x128] sm:$0xff]  ;;  %v327_v38 = vld [vmem:[#allocation4 + $0x130] sm:$0xff] }
  0x7b   : > { %453 = vst [vmem:[#allocation12 + $0x120] sm:$0xff] %v325_v36  ;;  %454 = vst [vmem:[#allocation12 + $0x128] sm:$0xff] %v326_v37  ;;  %v328_v39 = vld [vmem:[#allocation4 + $0x138] sm:$0xff]  ;;  %v329_v40 = vld [vmem:[#allocation4 + $0x140] sm:$0xff] }
  0x7c   : > { %455 = vst [vmem:[#allocation12 + $0x130] sm:$0xff] %v327_v38  ;;  %v330_v41 = vld [vmem:[#allocation4 + $0x148] sm:$0xff]  ;;  %456 = vst [vmem:[#allocation12 + $0x138] sm:$0xff] %v328_v39  ;;  %v331_v42 = vld [vmem:[#allocation4 + $0x150] sm:$0xff] }
  0x7d   : > { %457 = vst [vmem:[#allocation12 + $0x140] sm:$0xff] %v329_v40  ;;  %458 = vst [vmem:[#allocation12 + $0x148] sm:$0xff] %v330_v41  ;;  %v332_v43 = vld [vmem:[#allocation4 + $0x158] sm:$0xff]  ;;  %v333_v44 = vld [vmem:[#allocation4 + $0x160] sm:$0xff] }
  0x7e   : > { %459 = vst [vmem:[#allocation12 + $0x150] sm:$0xff] %v331_v42  ;;  %460 = vst [vmem:[#allocation12 + $0x158] sm:$0xff] %v332_v43  ;;  %v334_v45 = vld [vmem:[#allocation4 + $0x168] sm:$0xff]  ;;  %v335_v46 = vld [vmem:[#allocation4 + $0x170] sm:$0xff] }
  0x7f   : > { %461 = vst [vmem:[#allocation12 + $0x160] sm:$0xff] %v333_v44  ;;  %v336_v47 = vld [vmem:[#allocation4 + $0x178] sm:$0xff]  ;;  %462 = vst [vmem:[#allocation12 + $0x168] sm:$0xff] %v334_v45  ;;  %v337_v48 = vld [vmem:[#allocation4 + $0x180] sm:$0xff] }
  0x80   : > { %463 = vst [vmem:[#allocation12 + $0x170] sm:$0xff] %v335_v46  ;;  %464 = vst [vmem:[#allocation12 + $0x178] sm:$0xff] %v336_v47  ;;  %v338_v49 = vld [vmem:[#allocation4 + $0x188] sm:$0xff]  ;;  %v339_v50 = vld [vmem:[#allocation4 + $0x190] sm:$0xff] }
  0x81   : > { %465 = vst [vmem:[#allocation12 + $0x180] sm:$0xff] %v337_v48  ;;  %466 = vst [vmem:[#allocation12 + $0x188] sm:$0xff] %v338_v49  ;;  %v340_v51 = vld [vmem:[#allocation4 + $0x198] sm:$0xff]  ;;  %v341_v52 = vld [vmem:[#allocation4 + $0x1a0] sm:$0xff] }
  0x82   : > { %467 = vst [vmem:[#allocation12 + $0x190] sm:$0xff] %v339_v50  ;;  %v342_v53 = vld [vmem:[#allocation4 + $0x1a8] sm:$0xff]  ;;  %468 = vst [vmem:[#allocation12 + $0x198] sm:$0xff] %v340_v51  ;;  %v343_v54 = vld [vmem:[#allocation4 + $0x1b0] sm:$0xff] }
  0x83   : > { %469 = vst [vmem:[#allocation12 + $0x1a0] sm:$0xff] %v341_v52  ;;  %470 = vst [vmem:[#allocation12 + $0x1a8] sm:$0xff] %v342_v53  ;;  %v344_v55 = vld [vmem:[#allocation4 + $0x1b8] sm:$0xff]  ;;  %v345_v56 = vld [vmem:[#allocation4 + $0x1c0] sm:$0xff] }
  0x84   : > { %471 = vst [vmem:[#allocation12 + $0x1b0] sm:$0xff] %v343_v54  ;;  %472 = vst [vmem:[#allocation12 + $0x1b8] sm:$0xff] %v344_v55  ;;  %v346_v57 = vld [vmem:[#allocation4 + $0x1c8] sm:$0xff]  ;;  %v347_v58 = vld [vmem:[#allocation4 + $0x1d0] sm:$0xff] }
  0x85   : > { %473 = vst [vmem:[#allocation12 + $0x1c0] sm:$0xff] %v345_v56  ;;  %v348_v59 = vld [vmem:[#allocation4 + $0x1d8] sm:$0xff]  ;;  %474 = vst [vmem:[#allocation12 + $0x1c8] sm:$0xff] %v346_v57  ;;  %v349_v60 = vld [vmem:[#allocation4 + $0x1e0] sm:$0xff] }
  0x86   : > { %475 = vst [vmem:[#allocation12 + $0x1d0] sm:$0xff] %v347_v58  ;;  %476 = vst [vmem:[#allocation12 + $0x1d8] sm:$0xff] %v348_v59  ;;  %v350_v61 = vld [vmem:[#allocation4 + $0x1e8] sm:$0xff]  ;;  %v351_v62 = vld [vmem:[#allocation4 + $0x1f0] sm:$0xff] }
  0x87   : > { %477 = vst [vmem:[#allocation12 + $0x1e0] sm:$0xff] %v349_v60  ;;  %478 = vst [vmem:[#allocation12 + $0x1e8] sm:$0xff] %v350_v61  ;;  %v352_v63 = vld [vmem:[#allocation4 + $0x1f8] sm:$0xff]  ;;  %v353_v0 = vld [vmem:[#allocation4 + $0x200] sm:$0xff] }
  0x88   : > { %479 = vst [vmem:[#allocation12 + $0x1f0] sm:$0xff] %v351_v62  ;;  %v354_v1 = vld [vmem:[#allocation4 + $0x208] sm:$0xff]  ;;  %480 = vst [vmem:[#allocation12 + $0x1f8] sm:$0xff] %v352_v63  ;;  %v355_v2 = vld [vmem:[#allocation4 + $0x210] sm:$0xff] }
  0x89   : > { %481 = vst [vmem:[#allocation12 + $0x200] sm:$0xff] %v353_v0  ;;  %482 = vst [vmem:[#allocation12 + $0x208] sm:$0xff] %v354_v1  ;;  %v356_v3 = vld [vmem:[#allocation4 + $0x218] sm:$0xff]  ;;  %v357_v4 = vld [vmem:[#allocation4 + $0x220] sm:$0xff] }
  0x8a   : > { %483 = vst [vmem:[#allocation12 + $0x210] sm:$0xff] %v355_v2  ;;  %484 = vst [vmem:[#allocation12 + $0x218] sm:$0xff] %v356_v3  ;;  %v358_v5 = vld [vmem:[#allocation4 + $0x228] sm:$0xff]  ;;  %v359_v6 = vld [vmem:[#allocation4 + $0x230] sm:$0xff] }
  0x8b   : > { %485 = vst [vmem:[#allocation12 + $0x220] sm:$0xff] %v357_v4  ;;  %v360_v7 = vld [vmem:[#allocation4 + $0x238] sm:$0xff]  ;;  %486 = vst [vmem:[#allocation12 + $0x228] sm:$0xff] %v358_v5  ;;  %v361_v8 = vld [vmem:[#allocation4 + $0x240] sm:$0xff] }
  0x8c   : > { %487 = vst [vmem:[#allocation12 + $0x230] sm:$0xff] %v359_v6  ;;  %488 = vst [vmem:[#allocation12 + $0x238] sm:$0xff] %v360_v7  ;;  %v362_v9 = vld [vmem:[#allocation4 + $0x248] sm:$0xff]  ;;  %v363_v10 = vld [vmem:[#allocation4 + $0x250] sm:$0xff] }
  0x8d   : > { %489 = vst [vmem:[#allocation12 + $0x240] sm:$0xff] %v361_v8  ;;  %490 = vst [vmem:[#allocation12 + $0x248] sm:$0xff] %v362_v9  ;;  %v364_v11 = vld [vmem:[#allocation4 + $0x258] sm:$0xff]  ;;  %v365_v12 = vld [vmem:[#allocation4 + $0x260] sm:$0xff] }
  0x8e   : > { %491 = vst [vmem:[#allocation12 + $0x250] sm:$0xff] %v363_v10  ;;  %v366_v13 = vld [vmem:[#allocation4 + $0x268] sm:$0xff]  ;;  %492 = vst [vmem:[#allocation12 + $0x258] sm:$0xff] %v364_v11  ;;  %v367_v14 = vld [vmem:[#allocation4 + $0x270] sm:$0xff] }
  0x8f   : > { %493 = vst [vmem:[#allocation12 + $0x260] sm:$0xff] %v365_v12  ;;  %494 = vst [vmem:[#allocation12 + $0x268] sm:$0xff] %v366_v13  ;;  %v368_v15 = vld [vmem:[#allocation4 + $0x278] sm:$0xff]  ;;  %v369_v16 = vld [vmem:[#allocation4 + $0x280] sm:$0xff] }
  0x90   : > { %495 = vst [vmem:[#allocation12 + $0x270] sm:$0xff] %v367_v14  ;;  %496 = vst [vmem:[#allocation12 + $0x278] sm:$0xff] %v368_v15  ;;  %v370_v17 = vld [vmem:[#allocation4 + $0x288] sm:$0xff]  ;;  %v371_v18 = vld [vmem:[#allocation4 + $0x290] sm:$0xff] }
  0x91   : > { %497 = vst [vmem:[#allocation12 + $0x280] sm:$0xff] %v369_v16  ;;  %v372_v19 = vld [vmem:[#allocation4 + $0x298] sm:$0xff]  ;;  %498 = vst [vmem:[#allocation12 + $0x288] sm:$0xff] %v370_v17  ;;  %v373_v20 = vld [vmem:[#allocation4 + $0x2a0] sm:$0xff] }
  0x92   : > { %499 = vst [vmem:[#allocation12 + $0x290] sm:$0xff] %v371_v18  ;;  %500 = vst [vmem:[#allocation12 + $0x298] sm:$0xff] %v372_v19  ;;  %v374_v21 = vld [vmem:[#allocation4 + $0x2a8] sm:$0xff]  ;;  %v375_v22 = vld [vmem:[#allocation4 + $0x2b0] sm:$0xff] }
  0x93   : > { %501 = vst [vmem:[#allocation12 + $0x2a0] sm:$0xff] %v373_v20  ;;  %502 = vst [vmem:[#allocation12 + $0x2a8] sm:$0xff] %v374_v21  ;;  %v376_v23 = vld [vmem:[#allocation4 + $0x2b8] sm:$0xff]  ;;  %v377_v24 = vld [vmem:[#allocation4 + $0x2c0] sm:$0xff] }
  0x94   : > { %503 = vst [vmem:[#allocation12 + $0x2b0] sm:$0xff] %v375_v22  ;;  %v378_v25 = vld [vmem:[#allocation4 + $0x2c8] sm:$0xff]  ;;  %504 = vst [vmem:[#allocation12 + $0x2b8] sm:$0xff] %v376_v23  ;;  %v379_v26 = vld [vmem:[#allocation4 + $0x2d0] sm:$0xff] }
  0x95   : > { %505 = vst [vmem:[#allocation12 + $0x2c0] sm:$0xff] %v377_v24  ;;  %506 = vst [vmem:[#allocation12 + $0x2c8] sm:$0xff] %v378_v25  ;;  %v380_v27 = vld [vmem:[#allocation4 + $0x2d8] sm:$0xff]  ;;  %v381_v28 = vld [vmem:[#allocation4 + $0x2e0] sm:$0xff] }
  0x96   : > { %507 = vst [vmem:[#allocation12 + $0x2d0] sm:$0xff] %v379_v26  ;;  %508 = vst [vmem:[#allocation12 + $0x2d8] sm:$0xff] %v380_v27  ;;  %v382_v29 = vld [vmem:[#allocation4 + $0x2e8] sm:$0xff]  ;;  %v383_v30 = vld [vmem:[#allocation4 + $0x2f0] sm:$0xff] }
  0x97   : > { %509 = vst [vmem:[#allocation12 + $0x2e0] sm:$0xff] %v381_v28  ;;  %v384_v31 = vld [vmem:[#allocation4 + $0x2f8] sm:$0xff]  ;;  %510 = vst [vmem:[#allocation12 + $0x2e8] sm:$0xff] %v382_v29  ;;  %v385_v32 = vld [vmem:[#allocation4 + $0x300] sm:$0xff] }
  0x98   : > { %511 = vst [vmem:[#allocation12 + $0x2f0] sm:$0xff] %v383_v30  ;;  %512 = vst [vmem:[#allocation12 + $0x2f8] sm:$0xff] %v384_v31  ;;  %v386_v33 = vld [vmem:[#allocation4 + $0x308] sm:$0xff]  ;;  %v387_v34 = vld [vmem:[#allocation4 + $0x310] sm:$0xff] }
  0x99   : > { %513 = vst [vmem:[#allocation12 + $0x300] sm:$0xff] %v385_v32  ;;  %514 = vst [vmem:[#allocation12 + $0x308] sm:$0xff] %v386_v33  ;;  %v388_v35 = vld [vmem:[#allocation4 + $0x318] sm:$0xff]  ;;  %v389_v36 = vld [vmem:[#allocation4 + $0x320] sm:$0xff] }
  0x9a   : > { %515 = vst [vmem:[#allocation12 + $0x310] sm:$0xff] %v387_v34  ;;  %v390_v37 = vld [vmem:[#allocation4 + $0x328] sm:$0xff]  ;;  %516 = vst [vmem:[#allocation12 + $0x318] sm:$0xff] %v388_v35  ;;  %v391_v38 = vld [vmem:[#allocation4 + $0x330] sm:$0xff] }
  0x9b   : > { %517 = vst [vmem:[#allocation12 + $0x320] sm:$0xff] %v389_v36  ;;  %518 = vst [vmem:[#allocation12 + $0x328] sm:$0xff] %v390_v37  ;;  %v392_v39 = vld [vmem:[#allocation4 + $0x338] sm:$0xff]  ;;  %v393_v40 = vld [vmem:[#allocation4 + $0x340] sm:$0xff] }
  0x9c   : > { %519 = vst [vmem:[#allocation12 + $0x330] sm:$0xff] %v391_v38  ;;  %520 = vst [vmem:[#allocation12 + $0x338] sm:$0xff] %v392_v39  ;;  %v394_v41 = vld [vmem:[#allocation4 + $0x348] sm:$0xff]  ;;  %v395_v42 = vld [vmem:[#allocation4 + $0x350] sm:$0xff] }
  0x9d   : > { %521 = vst [vmem:[#allocation12 + $0x340] sm:$0xff] %v393_v40  ;;  %v396_v43 = vld [vmem:[#allocation4 + $0x358] sm:$0xff]  ;;  %522 = vst [vmem:[#allocation12 + $0x348] sm:$0xff] %v394_v41  ;;  %v397_v44 = vld [vmem:[#allocation4 + $0x360] sm:$0xff] }
  0x9e   : > { %523 = vst [vmem:[#allocation12 + $0x350] sm:$0xff] %v395_v42  ;;  %524 = vst [vmem:[#allocation12 + $0x358] sm:$0xff] %v396_v43  ;;  %v398_v45 = vld [vmem:[#allocation4 + $0x368] sm:$0xff]  ;;  %v399_v46 = vld [vmem:[#allocation4 + $0x370] sm:$0xff] }
  0x9f   : > { %525 = vst [vmem:[#allocation12 + $0x360] sm:$0xff] %v397_v44  ;;  %526 = vst [vmem:[#allocation12 + $0x368] sm:$0xff] %v398_v45  ;;  %v400_v47 = vld [vmem:[#allocation4 + $0x378] sm:$0xff]  ;;  %v401_v48 = vld [vmem:[#allocation4 + $0x380] sm:$0xff] }
  0xa0   : > { %527 = vst [vmem:[#allocation12 + $0x370] sm:$0xff] %v399_v46  ;;  %v402_v49 = vld [vmem:[#allocation4 + $0x388] sm:$0xff]  ;;  %528 = vst [vmem:[#allocation12 + $0x378] sm:$0xff] %v400_v47  ;;  %v403_v50 = vld [vmem:[#allocation4 + $0x390] sm:$0xff] }
  0xa1   : > { %529 = vst [vmem:[#allocation12 + $0x380] sm:$0xff] %v401_v48  ;;  %530 = vst [vmem:[#allocation12 + $0x388] sm:$0xff] %v402_v49  ;;  %v404_v51 = vld [vmem:[#allocation4 + $0x398] sm:$0xff]  ;;  %v405_v52 = vld [vmem:[#allocation4 + $0x3a0] sm:$0xff] }
  0xa2   : > { %531 = vst [vmem:[#allocation12 + $0x390] sm:$0xff] %v403_v50  ;;  %532 = vst [vmem:[#allocation12 + $0x398] sm:$0xff] %v404_v51  ;;  %v406_v53 = vld [vmem:[#allocation4 + $0x3a8] sm:$0xff]  ;;  %v407_v54 = vld [vmem:[#allocation4 + $0x3b0] sm:$0xff] }
  0xa3   : > { %533 = vst [vmem:[#allocation12 + $0x3a0] sm:$0xff] %v405_v52  ;;  %v408_v55 = vld [vmem:[#allocation4 + $0x3b8] sm:$0xff]  ;;  %534 = vst [vmem:[#allocation12 + $0x3a8] sm:$0xff] %v406_v53  ;;  %v409_v56 = vld [vmem:[#allocation4 + $0x3c0] sm:$0xff] }
  0xa4   : > { %535 = vst [vmem:[#allocation12 + $0x3b0] sm:$0xff] %v407_v54  ;;  %536 = vst [vmem:[#allocation12 + $0x3b8] sm:$0xff] %v408_v55  ;;  %v410_v57 = vld [vmem:[#allocation4 + $0x3c8] sm:$0xff]  ;;  %v411_v58 = vld [vmem:[#allocation4 + $0x3d0] sm:$0xff] }
  0xa5   : > { %537 = vst [vmem:[#allocation12 + $0x3c0] sm:$0xff] %v409_v56  ;;  %538 = vst [vmem:[#allocation12 + $0x3c8] sm:$0xff] %v410_v57  ;;  %v412_v59 = vld [vmem:[#allocation4 + $0x3d8] sm:$0xff]  ;;  %v413_v60 = vld [vmem:[#allocation4 + $0x3e0] sm:$0xff] }
  0xa6   : > { %539 = vst [vmem:[#allocation12 + $0x3d0] sm:$0xff] %v411_v58  ;;  %v414_v61 = vld [vmem:[#allocation4 + $0x3e8] sm:$0xff]  ;;  %540 = vst [vmem:[#allocation12 + $0x3d8] sm:$0xff] %v412_v59  ;;  %v415_v62 = vld [vmem:[#allocation4 + $0x3f0] sm:$0xff] }
  0xa7   : > { %541 = vst [vmem:[#allocation12 + $0x3e0] sm:$0xff] %v413_v60  ;;  %542 = vst [vmem:[#allocation12 + $0x3e8] sm:$0xff] %v414_v61  ;;  %v416_v63 = vld [vmem:[#allocation4 + $0x3f8] sm:$0xff] }
  0xa8   : > { %543 = vst [vmem:[#allocation12 + $0x3f0] sm:$0xff] %v415_v62  ;;  %544 = vst [vmem:[#allocation12 + $0x3f8] sm:$0xff] %v416_v63 }
  0xa9 PF: > { %v810_v0 = vld [vmem:[#allocation9 + $0x1c0] sm:$0xff]  ;;  %s546_s27 = sshra.s32 %s8748_s24, 7  ;;  %s8949_s10 = sand.u32 127, %s8748_s24  ;;  %v563_v56 = vld [vmem:[#allocation12 + $0x8] sm:$0xff] }
  0xaa   : > { %v814_v1 = vld [vmem:[#allocation9 + $0x1e0] sm:$0xff]  ;;  %s8946_s28 = sshll.u32 %s546_s27, 7  ;;  %v571_v57 = vld [vmem:[#allocation12 + $0x48] sm:$0xff]  ;;  %s12124_s14 = sld [smem:[#allocation3 + %s8748_s24]] }
  0xab   : > { %v938_v2 = vld [vmem:[#allocation9 + $0x5c0] sm:$0xff]  ;;  %v7785_v3 = vcombine.high %v810_v0, %v814_v1  ;;  %v7784_v5 = vcombine.low %v810_v0, %v814_v1  ;;  %s8250_s17 = sadd.s32 384, %s8946_s28  ;;  %v8963_v60 = vpack.c.bf16 %v571_v57, %v563_v56  ;;  %v562_v57 = vld [vmem:[#allocation12] sm:$0xff]  ;;  %s8248_s21 = sadd.s32 256, %s8946_s28 }
  0xac   : > { %v942_v4 = vld [vmem:[#allocation9 + $0x5e0] sm:$0xff]  ;;  %s560_s18 = sadd.s32 %s8250_s17, %s8949_s10  ;;  %s12109_s11 = sadd.s32 %s8248_s21, %s8949_s10 }
  0xad   : > { %v802_v6 = vld [vmem:[#allocation9 + $0x180] sm:$0xff]  ;;  %v7913_v8 = vcombine.high %v938_v2, %v942_v4  ;;  %v7912_v9 = vcombine.low %v938_v2, %v942_v4  ;;  %4797 = vmatprep.subr.bf16.mxu0 %v7785_v3  ;;  %s8959_s19 = sld [smem:[#allocation3 + %s560_s18]]  ;;  %16524 = vst [vmem:[#allocation19_spill] sm:$0xff] %v8963_v60  ;;  %4829 = vmatprep.mubr.bf16.mxu0 %v8963_v60  ;;  %s8246_s6 = sadd.s32 128, %s8946_s28 }
  0xae   : > { %v806_v7 = vld [vmem:[#allocation9 + $0x1a0] sm:$0xff]  ;;  %4798 = vmatpush1.bf16.msra.mxu0 %v7784_v5  ;;  %s12157_s24 = sld [smem:[#allocation3 + %s12109_s11]]  ;;  %s552_s12 = sadd.s32 %s8246_s6, %s8949_s10 }
  0xaf   : > { %v7777_v10 = vcombine.high %v802_v6, %v806_v7  ;;  %v930_v11 = vld [vmem:[#allocation9 + $0x580] sm:$0xff]  ;;  %4910 = vmatprep.subr.bf16.mxu1 %v7913_v8  ;;  %v7776_v18 = vcombine.low %v802_v6, %v806_v7  ;;  %s12806_s9 = sld [smem:[#allocation3 + %s552_s12]]  ;;  %s8774_s13 = smov [#allocation12]  }
  0xb0   : > { %v934_v12 = vld [vmem:[#allocation9 + $0x5a0] sm:$0xff]  ;;  %4911 = vmatpush1.bf16.msra.mxu1 %v7912_v9  ;;  %s7578_s15 = sshll.u32 %s8774_s13, 4  ;;  %p8322_p7 = scmp.eq.s32.totalorder %s8839_s0, 7  ;;  %s7579_s15 = int_to_ptr.vmem [resolvable:$true] %s7578_s15 }
  0xb1   : > { %v794_v13 = vld [vmem:[#allocation9 + $0x140] sm:$0xff]  ;;  %v7905_v14 = vcombine.high %v930_v11, %v934_v12  ;;  %4799 = vmatprep.subr.bf16.mxu0 %v7777_v10  ;;  %v7904_v19 = vcombine.low %v930_v11, %v934_v12  ;;  %s8664_s7 = scalar_lea.vmem %s7579_s15, 16384  ;;  %p8671_p3 = scmp.lt.s32.totalorder %s7579_s15, %s7579_s15 }
  0xb2   : > { %v798_v15 = vld [vmem:[#allocation9 + $0x160] sm:$0xff]  ;;  %4800 = vmatpush1.bf16.msra.mxu0 %v7776_v18  ;;  %p8665_p6 = scmp.ne.s32.totalorder %s7579_s15, %s8664_s7  ;;  %p8672_p11 = scmp.lt.s32.totalorder %s8664_s7, %s8664_s7 }
  0xb3   : > { %v922_v16 = vld [vmem:[#allocation9 + $0x540] sm:$0xff]  ;;  %v7769_v20 = vcombine.high %v794_v13, %v798_v15  ;;  %4912 = vmatprep.subr.bf16.mxu1 %v7905_v14  ;;  %v7768_v26 = vcombine.low %v794_v13, %v798_v15  ;;  %s1284_s20 = sadd.f32 1.0, %s8959_s19 }
  0xb4   : > { %v926_v17 = vld [vmem:[#allocation9 + $0x560] sm:$0xff]  ;;  %4913 = vmatpush1.bf16.msra.mxu1 %v7904_v19  ;;  %p8666_p9 = pnand %p8665_p6, %p8322_p7  ;;  %p8673_p0 = por %p8672_p11, %p8671_p3 }
  0xb5   : > { %v7897_v21 = vcombine.high %v922_v16, %v926_v17  ;;  %v786_v22 = vld [vmem:[#allocation9 + $0x100] sm:$0xff]  ;;  %4801 = vmatprep.subr.bf16.mxu0 %v7769_v20  ;;  %v7896_v27 = vcombine.low %v922_v16, %v926_v17  ;;  %s9071_s30 = smul.f32 0.0009765625, %s1284_s20 }
  0xb6   : > { %v790_v23 = vld [vmem:[#allocation9 + $0x120] sm:$0xff]  ;;  %4802 = vmatpush1.bf16.msra.mxu0 %v7768_v26  ;;  %p8667_p5 = pneg %p8666_p9 }
  0xb7   : > { %v914_v24 = vld [vmem:[#allocation9 + $0x500] sm:$0xff]  ;;  %v7761_v28 = vcombine.high %v786_v22, %v790_v23  ;;  %4914 = vmatprep.subr.bf16.mxu1 %v7897_v21  ;;  %v7760_v34 = vcombine.low %v786_v22, %v790_v23  ;;  %v16033_v22 = vlaneseq }
  0xb8   : > { %v918_v25 = vld [vmem:[#allocation9 + $0x520] sm:$0xff]  ;;  %4915 = vmatpush1.bf16.msra.mxu1 %v7896_v27  ;;  %p8674_p1 = pnand %p8673_p0, %p8667_p5 }
  0xb9   : > { %v7889_v29 = vcombine.high %v914_v24, %v918_v25  ;;  %v778_v30 = vld [vmem:[#allocation9 + $0xc0] sm:$0xff]  ;;  %4803 = vmatprep.subr.bf16.mxu0 %v7761_v28  ;;  %v7888_v35 = vcombine.low %v914_v24, %v918_v25 }
  0xba   : > { %v782_v31 = vld [vmem:[#allocation9 + $0xe0] sm:$0xff]  ;;  %4804 = vmatpush1.bf16.msra.mxu0 %v7760_v34 }
  0xbb   : > { %v906_v32 = vld [vmem:[#allocation9 + $0x4c0] sm:$0xff]  ;;  %v7753_v36 = vcombine.high %v778_v30, %v782_v31  ;;  %4916 = vmatprep.subr.bf16.mxu1 %v7889_v29  ;;  %v7752_v42 = vcombine.low %v778_v30, %v782_v31 }
  0xbc   : > { %v910_v33 = vld [vmem:[#allocation9 + $0x4e0] sm:$0xff]  ;;  %4917 = vmatpush1.bf16.msra.mxu1 %v7888_v35 }
  0xbd   : > { %v7881_v37 = vcombine.high %v906_v32, %v910_v33  ;;  %v770_v38 = vld [vmem:[#allocation9 + $0x80] sm:$0xff]  ;;  %4805 = vmatprep.subr.bf16.mxu0 %v7753_v36  ;;  %v7880_v43 = vcombine.low %v906_v32, %v910_v33 }
  0xbe   : > { %v774_v39 = vld [vmem:[#allocation9 + $0xa0] sm:$0xff]  ;;  %4806 = vmatpush1.bf16.msra.mxu0 %v7752_v42 }
  0xbf   : > { %v898_v40 = vld [vmem:[#allocation9 + $0x480] sm:$0xff]  ;;  %v7745_v44 = vcombine.high %v770_v38, %v774_v39  ;;  %4918 = vmatprep.subr.bf16.mxu1 %v7881_v37  ;;  %v7744_v50 = vcombine.low %v770_v38, %v774_v39 }
  0xc0   : > { %v902_v41 = vld [vmem:[#allocation9 + $0x4a0] sm:$0xff]  ;;  %4919 = vmatpush1.bf16.msra.mxu1 %v7880_v43 }
  0xc1   : > { %v7873_v45 = vcombine.high %v898_v40, %v902_v41  ;;  %v762_v46 = vld [vmem:[#allocation9 + $0x40] sm:$0xff]  ;;  %4807 = vmatprep.subr.bf16.mxu0 %v7745_v44  ;;  %v7872_v53 = vcombine.low %v898_v40, %v902_v41 }
  0xc2   : > { %v766_v47 = vld [vmem:[#allocation9 + $0x60] sm:$0xff]  ;;  %4808 = vmatpush1.bf16.msra.mxu0 %v7744_v50 }
  0xc3   : > { %v890_v48 = vld [vmem:[#allocation9 + $0x440] sm:$0xff]  ;;  %v7737_v54 = vcombine.high %v762_v46, %v766_v47  ;;  %4920 = vmatprep.subr.bf16.mxu1 %v7873_v45  ;;  %v7736_v3 = vcombine.low %v762_v46, %v766_v47  ;;  %v586_v46 = vld [vmem:[#allocation12 + $0xc0] sm:$0xff] }
  0xc4   : > { %v894_v49 = vld [vmem:[#allocation9 + $0x460] sm:$0xff]  ;;  %4921 = vmatpush1.bf16.msra.mxu1 %v7872_v53  ;;  %v579_v53 = vld [vmem:[#allocation12 + $0x88] sm:$0xff] }
  0xc5   : > { %v8952_v51 = vld [vmem:[#allocation9] sm:$0xff]  ;;  %v7865_v58 = vcombine.high %v890_v48, %v894_v49  ;;  %4809 = vmatprep.subr.bf16.mxu0 %v7737_v54  ;;  %v7864_v7 = vcombine.low %v890_v48, %v894_v49  ;;  %v578_v54 = vld [vmem:[#allocation12 + $0x80] sm:$0xff] }
  0xc6   : > { %v8954_v52 = vld [vmem:[#allocation9 + $0x20] sm:$0xff]  ;;  %4810 = vmatpush1.bf16.msra.mxu0 %v7736_v3 }
  0xc7   : > { %v8957_v55 = vld [vmem:[#allocation9 + $0x400] sm:$0xff]  ;;  %v7729_v8 = vcombine.high %v8952_v51, %v8954_v52  ;;  %4922 = vmatprep.subr.bf16.mxu1 %v7865_v58  ;;  %v7728_v18 = vcombine.low %v8952_v51, %v8954_v52  ;;  %v9067_v51 = vand.u32 127, %v16033_v22  ;;  %v570_v58 = vld [vmem:[#allocation12 + $0x40] sm:$0xff]  ;;  %v587_v52 = vld [vmem:[#allocation12 + $0xc8] sm:$0xff] }
  0xc8   : > { %v8961_v59 = vld [vmem:[#allocation9 + $0x420] sm:$0xff]  ;;  %4923 = vmatpush1.bf16.msra.mxu1 %v7864_v7 }
  0xc9   : > { %v565_v61 = vld [vmem:[#allocation12 + $0x18] sm:$0xff]  ;;  %v7857_v13 = vcombine.high %v8957_v55, %v8961_v59  ;;  %v7856_v23 = vcombine.low %v8957_v55, %v8961_v59  ;;  %4811 = vmatprep.subr.bf16.mxu0 %v7729_v8  ;;  %v1275_v8 = vcvt.s32.f32 %v9067_v51  ;;  %v9121_v55 = vstv %s9071_s30 }
  0xca   : > { %v573_v62 = vld [vmem:[#allocation12 + $0x58] sm:$0xff]  ;;  %4812 = vmatpush1.bf16.msra.mxu0 %v7728_v18  ;;  %v9187_v39 = vadd.s32 128, %v9067_v51  ;;  %v9217_v60 = vadd.s32 640, %v9067_v51 }
  0xcb   : > { %v8965_v63 = vld [vmem:[#allocation9 + $0x3c0] sm:$0xff]  ;;  %v8971_v2 = vpack.c.bf16 %v573_v62, %v565_v61  ;;  %4924 = vmatprep.subr.bf16.mxu1 %v7857_v13  ;;  %v9142_v18 = vmul.f32 %v9121_v55, %v1275_v8 }
  0xcc   : > { %v8967_v0 = vld [vmem:[#allocation9 + $0x3e0] sm:$0xff]  ;;  %4925 = vmatpush1.bf16.msra.mxu1 %v7856_v23 }
  0xcd   : > { %v8969_v1 = vld [vmem:[#allocation9 + $0x7c0] sm:$0xff]  ;;  %16525 = vst [vmem:[#allocation20_spill] sm:$0xff] %v8971_v2  ;;  %4942 = vmatprep.mubr.bf16.mxu1 %v8971_v2  ;;  %v7849_v24 = vcombine.high %v8965_v63, %v8967_v0  ;;  %v7848_v26 = vcombine.low %v8965_v63, %v8967_v0  ;;  %v564_v63 = vld [vmem:[#allocation12 + $0x10] sm:$0xff]  ;;  %16529 = vst [vmem:[#allocation24_spill] sm:$0xff] %v9142_v18  ;;  %v1300_v8 = vand.u32 2139095040, %v9142_v18  ;;  %v9214_v2 = vadd.s32 512, %v9067_v51 }
  0xce   : > { %v8973_v4 = vld [vmem:[#allocation9 + $0x7e0] sm:$0xff]  ;;  %v572_v0 = vld [vmem:[#allocation12 + $0x50] sm:$0xff] }
  0xcf   : > { %v8975_v5 = vld [vmem:[#allocation9 + $0x380] sm:$0xff]  ;;  %v7977_v25 = vcombine.high %v8969_v1, %v8973_v4  ;;  %v7976_v30 = vcombine.low %v8969_v1, %v8973_v4  ;;  %4813 = vmatprep.subr.bf16.mxu0 %v7849_v24  ;;  %v9147_v1 = vpack.c.bf16 %v572_v0, %v564_v63 }
  0xd0   : > { %v8977_v6 = vld [vmem:[#allocation9 + $0x3a0] sm:$0xff]  ;;  %4814 = vmatpush2.bf16.msra.mxu0 %v7848_v26 }
  0xd1   : > { %v8982_v9 = vld [vmem:[#allocation9 + $0x780] sm:$0xff]  ;;  %v7841_v31 = vcombine.high %v8975_v5, %v8977_v6  ;;  %v7840_v32 = vcombine.low %v8975_v5, %v8977_v6  ;;  %4926 = vmatprep.subr.bf16.mxu1 %v7977_v25  ;;  %v9139_v25 = vpack.c.bf16 %v570_v58, %v562_v57  ;;  %16530 = vst [vmem:[#allocation25_spill] sm:$0xff] %v9147_v1  ;;  %v580_v57 = vld [vmem:[#allocation12 + $0x90] sm:$0xff] }
  0xd2   : > { %v8984_v10 = vld [vmem:[#allocation9 + $0x7a0] sm:$0xff]  ;;  %4927 = vmatpush2.bf16.msra.mxu1 %v7976_v30  ;;  %v588_v58 = vld [vmem:[#allocation12 + $0xd0] sm:$0xff]  ;;  %v9195_v6 = vpack.c.bf16 %v586_v46, %v578_v54 }
  0xd3   : > { %v8986_v11 = vld [vmem:[#allocation9 + $0x340] sm:$0xff]  ;;  %v7969_v37 = vcombine.high %v8982_v9, %v8984_v10  ;;  %v7968_v38 = vcombine.low %v8982_v9, %v8984_v10  ;;  %4815 = vmatprep.subr.bf16.mxu0 %v7841_v31  ;;  %16528 = vst [vmem:[#allocation23_spill] sm:$0xff] %v9139_v25  ;;  %v9209_v10 = vpack.c.bf16 %v588_v58, %v580_v57  ;;  %v602_v57 = vld [vmem:[#allocation12 + $0x140] sm:$0xff]  ;;  %v596_v58 = vld [vmem:[#allocation12 + $0x110] sm:$0xff] }
  0xd4   : > { %v8988_v12 = vld [vmem:[#allocation9 + $0x360] sm:$0xff]  ;;  %4816 = vmatpush2.bf16.msra.mxu0 %v7840_v32  ;;  %16540 = vst [vmem:[#allocation34_spill] sm:$0xff] %v9195_v6  ;;  %v611_v6 = vld [vmem:[#allocation12 + $0x188] sm:$0xff] }
  0xd5   : > { %v8992_v14 = vld [vmem:[#allocation9 + $0x740] sm:$0xff]  ;;  %4928 = vmatprep.subr.bf16.mxu1 %v7969_v37  ;;  %v9176_v37 = vpack.c.bf16 %v587_v52, %v579_v53  ;;  %v16539_v5 = vcombine.high %v8986_v11, %v8988_v12  ;;  %v603_v52 = vld [vmem:[#allocation12 + $0x148] sm:$0xff]  ;;  %v9200_v53 = vadd.s32 256, %v9067_v51  ;;  %16543 = vst [vmem:[#allocation36_spill] sm:$0xff] %v9209_v10  ;;  %v604_v10 = vld [vmem:[#allocation12 + $0x150] sm:$0xff] }
  0xd6   : > { %v8994_v15 = vld [vmem:[#allocation9 + $0x760] sm:$0xff]  ;;  %4929 = vmatpush2.bf16.msra.mxu1 %v7968_v38  ;;  %v9224_v38 = vadd.s32 768, %v9067_v51 }
  0xd7   : > { %v8996_v16 = vld [vmem:[#allocation9 + $0x300] sm:$0xff]  ;;  %16534 = vst [vmem:[#allocation29_spill] sm:$0xff] %v9176_v37  ;;  %4817 = vmatprep.subr.bf16.mxu0 %v16539_v5  ;;  %v16542_v9 = vcombine.high %v8992_v14, %v8994_v15  ;;  %v594_v5 = vld [vmem:[#allocation12 + $0x100] sm:$0xff]  ;;  %v16544_v37 = vcombine.low %v8986_v11, %v8988_v12  ;;  %v16545_v11 = vcombine.low %v8992_v14, %v8994_v15 }
  0xd8   : > { %v8998_v17 = vld [vmem:[#allocation9 + $0x320] sm:$0xff] }
  0xd9   : > { %v9003_v19 = vld [vmem:[#allocation9 + $0x700] sm:$0xff]  ;;  %4930 = vmatprep.subr.bf16.mxu1 %v16542_v9  ;;  %4818 = vmatpush2.bf16.msra.mxu0 %v16544_v37  ;;  %v16546_v12 = vcombine.high %v8996_v16, %v8998_v17 }
  0xda   : > { %v9005_v20 = vld [vmem:[#allocation9 + $0x720] sm:$0xff]  ;;  %4931 = vmatpush2.bf16.msra.mxu1 %v16545_v11 }
  0xdb   : > { %v9007_v21 = vld [vmem:[#allocation9 + $0x2c0] sm:$0xff]  ;;  %4819 = vmatprep.subr.bf16.mxu0 %v16546_v12  ;;  %v16548_v15 = vcombine.high %v9003_v19, %v9005_v20 }
  0xdc   : > { %v9018_v27 = vld [vmem:[#allocation9 + $0x2e0] sm:$0xff] }
  0xdd   : > { %v9020_v28 = vld [vmem:[#allocation9 + $0x6c0] sm:$0xff]  ;;  %4932 = vmatprep.subr.bf16.mxu1 %v16548_v15  ;;  %v1279_v15 = vcvt.s32.f32 %v9214_v2  ;;  %v16555_v2 = vcombine.high %v9007_v21, %v9018_v27 }
  0xde   : > { %v9022_v29 = vld [vmem:[#allocation9 + $0x6e0] sm:$0xff] }
  0xdf   : > { %v9030_v33 = vld [vmem:[#allocation9 + $0x280] sm:$0xff] }
  0xe0   : > { %v9032_v34 = vld [vmem:[#allocation9 + $0x2a0] sm:$0xff] }
  0xe1   : > { %v9034_v35 = vld [vmem:[#allocation9 + $0x680] sm:$0xff] }
  0xe2   : > { %v9036_v36 = vld [vmem:[#allocation9 + $0x6a0] sm:$0xff] }
  0xe3   : > { %v9046_v41 = vld [vmem:[#allocation9 + $0x240] sm:$0xff] }
  0xe4   : > { %v9048_v42 = vld [vmem:[#allocation9 + $0x260] sm:$0xff] }
  0xe5   : > { %v9050_v43 = vld [vmem:[#allocation9 + $0x640] sm:$0xff] }
  0xe6   : > { %v9052_v44 = vld [vmem:[#allocation9 + $0x660] sm:$0xff] }
  0xe7   : > { %v9060_v48 = vld [vmem:[#allocation9 + $0x200] sm:$0xff] }
  0xe8   : > { %v9062_v49 = vld [vmem:[#allocation9 + $0x220] sm:$0xff] }
  0xe9   : > { %v9064_v50 = vld [vmem:[#allocation9 + $0x600] sm:$0xff] }
  0xea   : > { %v9081_v56 = vld [vmem:[#allocation9 + $0x620] sm:$0xff] }
  0xeb   : > { %v9089_v3 = vld [vmem:[#allocation9 + $0x9c0] sm:$0xff] }
  0xec   : > { %v9091_v7 = vld [vmem:[#allocation9 + $0x9e0] sm:$0xff] }
  0xed   : > { %v9102_v22 = vld [vmem:[#allocation9 + $0xdc0] sm:$0xff] }
  0xee   : > { %v9104_v62 = vld [vmem:[#allocation9 + $0xde0] sm:$0xff] }
  0xef   : > { %v9106_v61 = vld [vmem:[#allocation9 + $0x980] sm:$0xff] }
  0xf0   : > { %v9114_v59 = vld [vmem:[#allocation9 + $0x9a0] sm:$0xff] }
  0xf1   : > { %v9116_v23 = vld [vmem:[#allocation9 + $0xd80] sm:$0xff] }
  0xf2   : > { %16526 = vst [vmem:[#allocation21_spill] sm:$0xff] %v9116_v23  ;;  %v9118_v24 = vld [vmem:[#allocation9 + $0xda0] sm:$0xff] }
  0xf3   : > { %16527 = vst [vmem:[#allocation22_spill] sm:$0xff] %v9118_v24  ;;  %v581_v47 = vld [vmem:[#allocation12 + $0x98] sm:$0xff] }
  0xf4   : > { %v589_v13 = vld [vmem:[#allocation12 + $0xd8] sm:$0xff] }
  0xf5   : > { %v9155_v26 = vld [vmem:[#allocation9 + $0x940] sm:$0xff]  ;;  %v9178_v40 = vpack.c.bf16 %v589_v13, %v581_v47  ;;  %v595_v47 = vld [vmem:[#allocation12 + $0x108] sm:$0xff]  ;;  %v9203_v13 = vadd.s32 384, %v9067_v51 }
  0xf6   : > { %16531 = vst [vmem:[#allocation26_spill] sm:$0xff] %v9155_v26  ;;  %v9165_v4 = vld [vmem:[#allocation9 + $0x960] sm:$0xff]  ;;  %v9254_v9 = vpack.c.bf16 %v603_v52, %v595_v47  ;;  %v1276_v47 = vcvt.s32.f32 %v9187_v39  ;;  %v1277_v52 = vcvt.s32.f32 %v9200_v53  ;;  %v610_v53 = vld [vmem:[#allocation12 + $0x180] sm:$0xff] }
  0xf7   : > { %16532 = vst [vmem:[#allocation27_spill] sm:$0xff] %v9165_v4  ;;  %v9167_v30 = vld [vmem:[#allocation9 + $0xd40] sm:$0xff]  ;;  %16535 = vst [vmem:[#allocation30_spill] sm:$0xff] %v9178_v40  ;;  %v1301_v40 = vshrl.u32 %v1300_v8, 23  ;;  %v9242_v8 = vadd.s32 896, %v9067_v51 }
  0xf8   : > { %v9169_v31 = vld [vmem:[#allocation9 + $0xd60] sm:$0xff]  ;;  %16547 = vst [vmem:[#allocation37_spill] sm:$0xff] %v9254_v9  ;;  %v1278_v9 = vcvt.s32.f32 %v9203_v13  ;;  %v618_v13 = vld [vmem:[#allocation12 + $0x1c0] sm:$0xff] }
  0xf9   : > { %16533 = vst [vmem:[#allocation28_spill] sm:$0xff] %v9169_v31  ;;  %v9180_v63 = vld [vmem:[#allocation9 + $0x900] sm:$0xff]  ;;  %v7696_v14 = vadd.s32 4294967169, %v1301_v40  ;;  %v619_v40 = vld [vmem:[#allocation12 + $0x1c8] sm:$0xff]  ;;  %v9281_v31 = vpack.c.bf16 %v604_v10, %v596_v58 }
  0xfa   : > { %16536 = vst [vmem:[#allocation31_spill] sm:$0xff] %v9180_v63  ;;  %v9182_v0 = vld [vmem:[#allocation9 + $0x920] sm:$0xff]  ;;  %v9320_v10 = vpack.c.bf16 %v619_v40, %v611_v6  ;;  %v9339_v6 = vpack.c.bf16 %v618_v13, %v610_v53  ;;  %v626_v53 = vld [vmem:[#allocation12 + $0x200] sm:$0xff] }
  0xfb   : > { %16537 = vst [vmem:[#allocation32_spill] sm:$0xff] %v9182_v0  ;;  %v9184_v45 = vld [vmem:[#allocation9 + $0xd00] sm:$0xff]  ;;  %16553 = vst [vmem:[#allocation41_spill] sm:$0xff] %v9281_v31 }
  0xfc   : > { %16538 = vst [vmem:[#allocation33_spill] sm:$0xff] %v9184_v45  ;;  %v9197_v32 = vld [vmem:[#allocation9 + $0xd20] sm:$0xff]  ;;  %16557 = vst [vmem:[#allocation42_spill] sm:$0xff] %v9320_v10  ;;  %v9345_v10 = vmul.f32 %v9121_v55, %v1279_v15 }
  0xfd   : > { %16541 = vst [vmem:[#allocation35_spill] sm:$0xff] %v9197_v32  ;;  %v597_v46 = vld [vmem:[#allocation12 + $0x118] sm:$0xff]  ;;  %v9274_v32 = vpack.c.bf16 %v602_v57, %v594_v5  ;;  %v612_v5 = vld [vmem:[#allocation12 + $0x190] sm:$0xff]  ;;  %v1281_v57 = vcvt.s32.f32 %v9224_v38  ;;  %16562 = vst [vmem:[#allocation46_spill] sm:$0xff] %v9339_v6 }
  0xfe   : > { %v605_v54 = vld [vmem:[#allocation12 + $0x158] sm:$0xff]  ;;  %v620_v38 = vld [vmem:[#allocation12 + $0x1d0] sm:$0xff]  ;;  %16564 = vst [vmem:[#allocation48_spill] sm:$0xff] %v9345_v10 }
  0xff   : > { %v9235_v4 = vld [vmem:[#allocation9 + $0x8c0] sm:$0xff]  ;;  %v9265_v11 = vpack.c.bf16 %v605_v54, %v597_v46  ;;  %16551 = vst [vmem:[#allocation40_spill] sm:$0xff] %v9274_v32  ;;  %v1280_v46 = vcvt.s32.f32 %v9217_v60  ;;  %v1307_v54 = vadd.s32 1, %v7696_v14  ;;  %v1282_v32 = vcvt.s32.f32 %v9242_v8 }
 0x100   : > { %v9237_v26 = vld [vmem:[#allocation9 + $0x8e0] sm:$0xff]  ;;  %v16554_v60 = vcombine.low %v9003_v19, %v9005_v20  ;;  %v16556_v19 = vcombine.high %v9020_v28, %v9022_v29  ;;  %v9362_v15 = vmul.f32 %v9121_v55, %v1281_v57 }
 0x101   : > { %v9239_v23 = vld [vmem:[#allocation9 + $0xcc0] sm:$0xff]  ;;  %16549 = vst [vmem:[#allocation38_spill] sm:$0xff] %v9265_v11  ;;  %v16552_v11 = vcombine.low %v8996_v16, %v8998_v17  ;;  %vm1308_vm0 = vcmp.gt.s32.totalorder %v1307_v54, 0  ;;  %v9359_v13 = vmul.f32 %v9121_v55, %v1280_v46  ;;  %v9376_v57 = vmul.f32 %v9121_v55, %v1282_v32 }
 0x102   : > { %v9256_v24 = vld [vmem:[#allocation9 + $0xce0] sm:$0xff]  ;;  %4933 = vmatpush2.bf16.msra.mxu1 %v16554_v60  ;;  %v9334_v60 = vmul.f32 %v9121_v55, %v1277_v52  ;;  %v16565_v52 = vcombine.low %v9020_v28, %v9022_v29  ;;  %16569 = vst [vmem:[#allocation51_spill] sm:$0xff] %v9362_v15 }
 0x103   : > { %v9258_v51 = vld [vmem:[#allocation9 + $0x880] sm:$0xff]  ;;  %4820 = vmatpush2.bf16.msra.mxu0 %v16552_v11  ;;  %4934 = vmatprep.subr.bf16.mxu1 %v16556_v19  ;;  %v9331_v11 = vmul.f32 %v9121_v55, %v1276_v47  ;;  %v9348_v47 = vsel %vm1308_vm0, %v1307_v54, 0  ;;  %16568 = vst [vmem:[#allocation50_spill] sm:$0xff] %v9359_v13  ;;  %v16570_v54 = vcombine.high %v9034_v35, %v9036_v36  ;;  %16571 = vst [vmem:[#allocation52_spill] sm:$0xff] %v9376_v57 }
 0x104   : > { %v9260_v0 = vld [vmem:[#allocation9 + $0x8a0] sm:$0xff]  ;;  %4821 = vmatprep.subr.bf16.mxu0 %v16555_v2  ;;  %v9391_v13 = vand.u32 31, %v9348_v47 }
 0x105   : > { %v9267_v12 = vld [vmem:[#allocation9 + $0xc80] sm:$0xff]  ;;  %16560 = vst [vmem:[#allocation45_spill] sm:$0xff] %v9331_v11 }
 0x106   : > { %v9269_v37 = vld [vmem:[#allocation9 + $0xca0] sm:$0xff]  ;;  %4935 = vmatpush2.bf16.msra.mxu1 %v16565_v52  ;;  %v636_v52 = vld [vmem:[#allocation12 + $0x250] sm:$0xff] }
 0x107   : > { %16550 = vst [vmem:[#allocation39_spill] sm:$0xff] %v9269_v37  ;;  %v613_v45 = vld [vmem:[#allocation12 + $0x198] sm:$0xff]  ;;  %v16561_v37 = vcombine.low %v9007_v21, %v9018_v27  ;;  %v16566_v21 = vcombine.high %v9030_v33, %v9032_v34  ;;  %v9356_v27 = vpack.c.bf16 %v620_v38, %v612_v5  ;;  %4936 = vmatprep.subr.bf16.mxu1 %v16570_v54  ;;  %v628_v38 = vld [vmem:[#allocation12 + $0x210] sm:$0xff]  ;;  %v643_v54 = vld [vmem:[#allocation12 + $0x288] sm:$0xff] }
 0x108   : > { %v621_v63 = vld [vmem:[#allocation12 + $0x1d8] sm:$0xff] }
 0x109   : > { %v9299_v58 = vld [vmem:[#allocation9 + $0x840] sm:$0xff]  ;;  %v9322_v19 = vpack.c.bf16 %v621_v63, %v613_v45  ;;  %4822 = vmatpush2.bf16.msra.mxu0 %v16561_v37  ;;  %v627_v45 = vld [vmem:[#allocation12 + $0x208] sm:$0xff]  ;;  %16567 = vst [vmem:[#allocation49_spill] sm:$0xff] %v9356_v27 }
 0x10a   : > { %v9301_v8 = vld [vmem:[#allocation9 + $0x860] sm:$0xff]  ;;  %v635_v63 = vld [vmem:[#allocation12 + $0x248] sm:$0xff]  ;;  %4823 = vmatprep.subr.bf16.mxu0 %v16566_v21 }
 0x10b   : > { %v9314_v2 = vld [vmem:[#allocation9 + $0xc40] sm:$0xff]  ;;  %16558 = vst [vmem:[#allocation43_spill] sm:$0xff] %v9322_v19  ;;  %v9342_v19 = vmul.f32 %v9121_v55, %v1278_v9  ;;  %v634_v9 = vld [vmem:[#allocation12 + $0x240] sm:$0xff]  ;;  %v16573_v55 = vcombine.low %v9030_v33, %v9032_v34  ;;  %v9400_v28 = vpack.c.bf16 %v635_v63, %v627_v45  ;;  %v16578_v33 = vcombine.low %v9034_v35, %v9036_v36  ;;  %v644_v36 = vld [vmem:[#allocation12 + $0x290] sm:$0xff] }
 0x10c   : > { %v9316_v17 = vld [vmem:[#allocation9 + $0xc60] sm:$0xff]  ;;  %v16579_v34 = vcombine.high %v9046_v41, %v9048_v42  ;;  %v9417_v45 = vpack.c.bf16 %v634_v9, %v626_v53  ;;  %v9419_v63 = vpack.c.bf16 %v636_v52, %v628_v38  ;;  %v16584_v35 = vcombine.high %v9050_v43, %v9052_v44  ;;  %v642_v52 = vld [vmem:[#allocation12 + $0x280] sm:$0xff] }
 0x10d   : > { %v9318_v39 = vld [vmem:[#allocation9 + $0x800] sm:$0xff]  ;;  %16563 = vst [vmem:[#allocation47_spill] sm:$0xff] %v9342_v19  ;;  %4824 = vmatpush2.bf16.msra.mxu0 %v16573_v55  ;;  %16574 = vst [vmem:[#allocation54_spill] sm:$0xff] %v9400_v28  ;;  %4937 = vmatpush2.bf16.msra.mxu1 %v16578_v33  ;;  %v651_v28 = vld [vmem:[#allocation12 + $0x2c8] sm:$0xff] }
 0x10e   : > { %v9324_v20 = vld [vmem:[#allocation9 + $0x820] sm:$0xff]  ;;  %4825 = vmatprep.subr.bf16.mxu0 %v16579_v34  ;;  %16581 = vst [vmem:[#allocation59_spill] sm:$0xff] %v9417_v45  ;;  %16582 = vst [vmem:[#allocation60_spill] sm:$0xff] %v9419_v63  ;;  %4938 = vmatprep.subr.bf16.mxu1 %v16584_v35  ;;  %v650_v35 = vld [vmem:[#allocation12 + $0x2c0] sm:$0xff]  ;;  %v16588_v34 = vand.u32 2147483647, %v9142_v18 }
 0x10f   : > { %16559 = vst [vmem:[#allocation44_spill] sm:$0xff] %v9324_v20  ;;  %v9326_v16 = vld [vmem:[#allocation9 + $0xc00] sm:$0xff]  ;;  %v652_v20 = vld [vmem:[#allocation12 + $0x2d0] sm:$0xff]  ;;  %v9470_v63 = vpack.c.bf16 %v650_v35, %v642_v52  ;;  %v16600_v35 = vcombine.low %v9060_v48, %v9062_v49  ;;  %v615_v19 = vld [vmem:[#allocation12 + $0x1a8] sm:$0xff] }
 0x110   : > { %v9328_v14 = vld [vmem:[#allocation9 + $0xc20] sm:$0xff] }
 0x111   : > { %v629_v40 = vld [vmem:[#allocation12 + $0x218] sm:$0xff]  ;;  %16594 = vst [vmem:[#allocation66_spill] sm:$0xff] %v9470_v63  ;;  %v659_v63 = vld [vmem:[#allocation12 + $0x308] sm:$0xff] }
 0x112   : > { %v637_v37 = vld [vmem:[#allocation12 + $0x258] sm:$0xff] }
 0x113   : > { %v9373_v46 = vld [vmem:[#allocation9 + $0xbc0] sm:$0xff]  ;;  %v9415_v55 = vpack.c.bf16 %v637_v37, %v629_v40  ;;  %v9440_v40 = vsub.s32 32, %v9391_v13  ;;  %v16585_v37 = vcombine.low %v9046_v41, %v9048_v42  ;;  %v16590_v41 = vcombine.high %v9060_v48, %v9062_v49 }
 0x114   : > { %v9384_v29 = vld [vmem:[#allocation9 + $0xbe0] sm:$0xff]  ;;  %v9463_v42 = vpack.c.bf16 %v651_v28, %v643_v54  ;;  %v16087_v28 = vmov 683565275   ;;  %v16603_v49 = vcombine.low %v9064_v50, %v9081_v56 }
 0x115   : > { %v9386_v15 = vld [vmem:[#allocation9 + $0xfc0] sm:$0xff]  ;;  %16580 = vst [vmem:[#allocation58_spill] sm:$0xff] %v9415_v55  ;;  %4826 = vmatpush2.bf16.msra.mxu0 %v16585_v37  ;;  %v16592_v37 = vcombine.high %v9064_v50, %v9081_v56  ;;  %v1314_v54 = vshll.u32 %v16087_v28, %v9391_v13  ;;  %v16607_v50 = vmov 920167782   ;;  %v16110_v56 = vmov 1326507024  }
 0x116   : > { %v9388_v5 = vld [vmem:[#allocation9 + $0xfe0] sm:$0xff]  ;;  %4827 = vmatprep.subr.bf16.mxu0 %v16590_v41  ;;  %16591 = vst [vmem:[#allocation64_spill] sm:$0xff] %v9463_v42  ;;  %v16606_v42 = vcombine.high %v9102_v22, %v9104_v62 }
 0x117   : > { %16572 = vst [vmem:[#allocation53_spill] sm:$0xff] %v9388_v5  ;;  %v9402_v21 = vld [vmem:[#allocation9 + $0xb80] sm:$0xff]  ;;  %v668_v5 = vld [vmem:[#allocation12 + $0x350] sm:$0xff] }
 0x118   : > { %16575 = vst [vmem:[#allocation55_spill] sm:$0xff] %v9402_v21  ;;  %v9404_v57 = vld [vmem:[#allocation9 + $0xba0] sm:$0xff]  ;;  %v16589_v21 = vcombine.low %v9050_v43, %v9052_v44  ;;  %v16082_v44 = vmov 2102212464  }
 0x119   : > { %16576 = vst [vmem:[#allocation56_spill] sm:$0xff] %v9404_v57  ;;  %v9406_v10 = vld [vmem:[#allocation9 + $0xf80] sm:$0xff]  ;;  %v9455_v57 = vand.u32 8388607, %v16588_v34  ;;  %v9472_v34 = vpack.c.bf16 %v652_v20, %v644_v36  ;;  %v9489_v20 = vshrl.u32 %v9348_v47, 5  ;;  %4828 = vmatpush2.bf16.msra.mxu0 %v16600_v35  ;;  %v16604_v35 = vcombine.high %v9089_v3, %v9091_v7 }
 0x11a   : > { %16577 = vst [vmem:[#allocation57_spill] sm:$0xff] %v9406_v10  ;;  %v9421_v32 = vld [vmem:[#allocation9 + $0xfa0] sm:$0xff]  ;;  %4939 = vmatpush2.bf16.msra.mxu1 %v16589_v21  ;;  %v1323_v21 = vshll.u32 %v16082_v44, %v9391_v13  ;;  %v16085_v36 = vmov 920167782   ;;  %v16092_v44 = vmov 2475754826  }
 0x11b   : > { %16583 = vst [vmem:[#allocation61_spill] sm:$0xff] %v9421_v32  ;;  %v645_v9 = vld [vmem:[#allocation12 + $0x298] sm:$0xff]  ;;  %4940 = vmatprep.subr.bf16.mxu1 %v16592_v37  ;;  %16595 = vst [vmem:[#allocation67_spill] sm:$0xff] %v9472_v34  ;;  %v1324_v52 = vshrl.u32 %v16085_v36, %v9440_v40  ;;  %v1315_v47 = vshrl.u32 %v16092_v44, %v9440_v40  ;;  %v1317_v34 = vshll.u32 %v16092_v44, %v9391_v13  ;;  %v16100_v36 = vmov 2131351028   ;;  %v658_v32 = vld [vmem:[#allocation12 + $0x300] sm:$0xff] }
 0x11c   : > { %v653_v38 = vld [vmem:[#allocation12 + $0x2d8] sm:$0xff]  ;;  %v1318_v48 = vshrl.u32 %v16100_v36, %v9440_v40  ;;  %5023 = vmatprep.subr.bf16.mxu0 %v16604_v35  ;;  %v1320_v44 = vshll.u32 %v16100_v36, %v9391_v13  ;;  %4830 = vmatmul.mubr.bf16.vlgmr.msra.gmra.mxu0 %v9139_v25  ;;  %v660_v10 = vld [vmem:[#allocation12 + $0x310] sm:$0xff]  ;;  %vm1332_vm1 = vcmp.lt.s32.totalorder %v9489_v20, 4  ;;  %vm1329_vm2 = vcmp.lt.s32.totalorder %v9489_v20, 1 }
 0x11d   : > { %v9449_v33 = vld [vmem:[#allocation9 + $0xb40] sm:$0xff]  ;;  %v9468_v53 = vpack.c.bf16 %v653_v38, %v645_v9  ;;  %v9529_v36 = vor.u32 %v1324_v52, %v1323_v21  ;;  %v16608_v21 = vcombine.low %v9089_v3, %v9091_v7  ;;  %v16612_v3 = vcombine.high %v9106_v61, %v9114_v59 }
 0x11e   : > { %16586 = vst [vmem:[#allocation62_spill] sm:$0xff] %v9449_v33  ;;  %v9451_v45 = vld [vmem:[#allocation9 + $0xb60] sm:$0xff]  ;;  %4941 = vmatpush2.bf16.msra.mxu1 %v16603_v49  ;;  %v16605_v33 = vmov 2102212464   ;;  %v1327_v49 = vshrl.u32 %v16110_v56, %v9440_v40  ;;  %v9552_v56 = vor.u32 %v1318_v48, %v1317_v34  ;;  %vm1331_vm3 = vcmp.lt.s32.totalorder %v9489_v20, 3 }
 0x11f   : > { %16587 = vst [vmem:[#allocation63_spill] sm:$0xff] %v9451_v45  ;;  %16593 = vst [vmem:[#allocation65_spill] sm:$0xff] %v9468_v53  ;;  %v9474_v18 = vld [vmem:[#allocation9 + $0xf40] sm:$0xff]  ;;  %v667_v45 = vld [vmem:[#allocation12 + $0x348] sm:$0xff]  ;;  %v1321_v53 = vshrl.u32 %v16605_v33, %v9440_v40  ;;  %5136 = vmatprep.subr.bf16.mxu1 %v16606_v42  ;;  %5024 = vmatpush1.bf16.msra.mxu0 %v16608_v21  ;;  %vm1330_vm4 = vcmp.lt.s32.totalorder %v9489_v20, 2 }
 0x120   : > { %16596 = vst [vmem:[#allocation68_spill] sm:$0xff] %v9474_v18  ;;  %v9476_v43 = vld [vmem:[#allocation9 + $0xf60] sm:$0xff]  ;;  %v666_v42 = vld [vmem:[#allocation12 + $0x340] sm:$0xff]  ;;  %5025 = vmatprep.subr.bf16.mxu0 %v16612_v3  ;;  %v9560_v7 = vpack.c.bf16 %v667_v45, %v659_v63  ;;  %v9577_v45 = vpack.c.bf16 %v668_v5, %v660_v10  ;;  %v675_v5 = vld [vmem:[#allocation12 + $0x388] sm:$0xff]  ;;  %v16628_v3 = vmov 683565275  }
 0x121   : > { %16597 = vst [vmem:[#allocation69_spill] sm:$0xff] %v9476_v43  ;;  %v9484_v9 = vld [vmem:[#allocation9 + $0xb00] sm:$0xff]  ;;  %v1326_v43 = vshll.u32 %v16607_v50, %v9391_v13  ;;  %4943 = vmatmul.mubr.bf16.vlgmr.msra.gmra.mxu1 %v9147_v1  ;;  %v1305_v13 = vor.u32 8388608, %v9455_v57  ;;  %v9550_v50 = vor.u32 %v1315_v47, %v1314_v54  ;;  %v16611_v1 = vcombine.low %v9102_v22, %v9104_v62  ;;  %v16618_v54 = vld [vmem:[#allocation21_spill] sm:$0xff]  ;;  %v682_v10 = vld [vmem:[#allocation12 + $0x3c0] sm:$0xff] }
 0x122   : > { %16598 = vst [vmem:[#allocation70_spill] sm:$0xff] %v9484_v9  ;;  %v9486_v38 = vld [vmem:[#allocation9 + $0xb20] sm:$0xff]  ;;  %16613 = vst [vmem:[#allocation76_spill] sm:$0xff] %v9560_v7  ;;  %v1322_v34 = vor.u32 %v1321_v53, %v1320_v44  ;;  %v9575_v47 = vpack.c.bf16 %v666_v42, %v658_v32  ;;  %v1338_v53 = vsel %vm1332_vm1, %v9529_v36, 920167782  ;;  %v591_v18 = vld [vmem:[#allocation12 + $0xe8] sm:$0xff] }
 0x123   : > { %16599 = vst [vmem:[#allocation71_spill] sm:$0xff] %v9486_v38  ;;  %v9496_v41 = vld [vmem:[#allocation9 + $0xf00] sm:$0xff]  ;;  %5137 = vmatpush1.bf16.msra.mxu1 %v16611_v1  ;;  %v16621_v1 = vld [vmem:[#allocation29_spill] sm:$0xff]  ;;  %v9762_v20 = vld [vmem:[#allocation9 + $0x168] sm:$0xff] }
 0x124   : > { %16601 = vst [vmem:[#allocation72_spill] sm:$0xff] %v9496_v41  ;;  %v9498_v37 = vld [vmem:[#allocation9 + $0xf20] sm:$0xff]  ;;  %4839 = vmatprep.mubr.bf16.mxu0 %v16621_v1  ;;  %16622 = vst [vmem:[#allocation21_spill] sm:$0xff] %v9575_v47  ;;  %v1328_v1 = vor.u32 %v1327_v49, %v1326_v43  ;;  %v16632_v43 = vld [vmem:[#allocation27_spill] sm:$0xff]  ;;  %v1334_v7 = vsel %vm1332_vm1, %v1322_v34, 2102212464 }
 0x125   : > { %16602 = vst [vmem:[#allocation73_spill] sm:$0xff] %v9498_v37  ;;  %v661_v35 = vld [vmem:[#allocation12 + $0x318] sm:$0xff] }
 0x126   : > { %v669_v28 = vld [vmem:[#allocation12 + $0x358] sm:$0xff] }
 0x127   : > { %v9545_v33 = vld [vmem:[#allocation9 + $0xac0] sm:$0xff]  ;;  %v9562_v21 = vpack.c.bf16 %v669_v28, %v661_v35  ;;  %v683_v35 = vld [vmem:[#allocation12 + $0x3c8] sm:$0xff] }
 0x128   : > { %16609 = vst [vmem:[#allocation74_spill] sm:$0xff] %v9545_v33  ;;  %v9547_v25 = vld [vmem:[#allocation9 + $0xae0] sm:$0xff] }
 0x129   : > { %16610 = vst [vmem:[#allocation75_spill] sm:$0xff] %v9547_v25  ;;  %16614 = vst [vmem:[#allocation77_spill] sm:$0xff] %v9562_v21  ;;  %v9564_v52 = vld [vmem:[#allocation9 + $0xec0] sm:$0xff]  ;;  %v674_v21 = vld [vmem:[#allocation12 + $0x380] sm:$0xff]  ;;  %v1342_v25 = vsel %vm1332_vm1, %v1328_v1, 1326507024 }
 0x12a   : > { %16615 = vst [vmem:[#allocation78_spill] sm:$0xff] %v9564_v52  ;;  %v9566_v37 = vld [vmem:[#allocation9 + $0xee0] sm:$0xff]  ;;  %v1341_v52 = vsel %vm1329_vm2, %v9552_v56, %v1322_v34 }
 0x12b   : > { %16616 = vst [vmem:[#allocation79_spill] sm:$0xff] %v9566_v37  ;;  %v9568_v57 = vld [vmem:[#allocation9 + $0xa80] sm:$0xff]  ;;  %v1339_v37 = vsel %vm1331_vm3, %v1322_v34, %v1338_v53 }
 0x12c   : > { %16617 = vst [vmem:[#allocation80_spill] sm:$0xff] %v9568_v57  ;;  %v16619_v22 = vld [vmem:[#allocation22_spill] sm:$0xff]  ;;  %v16656_v57 = vld [vmem:[#allocation33_spill] sm:$0xff] }
 0x12d   : > { %v16620_v62 = vcombine.high %v16618_v54, %v16619_v22  ;;  %16623 = vst [vmem:[#allocation22_spill] sm:$0xff] %v9577_v45  ;;  %v9579_v63 = vld [vmem:[#allocation9 + $0xaa0] sm:$0xff]  ;;  %v16629_v45 = vcombine.low %v9106_v61, %v9114_v59  ;;  %v16630_v59 = vcombine.low %v16618_v54, %v16619_v22  ;;  %v9623_v54 = vshll.u32 %v1305_v13, 8  ;;  %v16635_v22 = vld [vmem:[#allocation28_spill] sm:$0xff] }
 0x12e   : > { %16624 = vst [vmem:[#allocation81_spill] sm:$0xff] %v9579_v63  ;;  %v9581_v28 = vld [vmem:[#allocation9 + $0xe80] sm:$0xff] }
 0x12f   : > { %5138 = vmatprep.subr.bf16.mxu1 %v16620_v62  ;;  %16625 = vst [vmem:[#allocation82_spill] sm:$0xff] %v9581_v28  ;;  %v9583_v48 = vld [vmem:[#allocation9 + $0xea0] sm:$0xff]  ;;  %v1313_v62 = vshrl.u32 %v16628_v3, %v9440_v40  ;;  %5026 = vmatpush1.bf16.msra.mxu0 %v16629_v45  ;;  %v1337_v40 = vsel %vm1329_vm2, %v9550_v50, %v9552_v56  ;;  %v676_v45 = vld [vmem:[#allocation12 + $0x390] sm:$0xff] }
 0x130   : > { %16626 = vst [vmem:[#allocation83_spill] sm:$0xff] %v9583_v48  ;;  %v16627_v44 = vld [vmem:[#allocation30_spill] sm:$0xff]  ;;  %5139 = vmatpush1.bf16.msra.mxu1 %v16630_v59  ;;  %v16636_v59 = vcombine.high %v9167_v30, %v16635_v22  ;;  %v1343_v48 = vsel %vm1331_vm3, %v9529_v36, %v1342_v25  ;;  %v1340_v28 = vsel %vm1330_vm4, %v1337_v40, %v1339_v37  ;;  %v16650_v25 = vand.u32 2139095040, %v9331_v11  ;;  %v566_v37 = vld [vmem:[#allocation12 + $0x20] sm:$0xff] }
 0x131   : > { %4952 = vmatprep.mubr.bf16.mxu1 %v16627_v44  ;;  %v677_v42 = vld [vmem:[#allocation12 + $0x398] sm:$0xff]  ;;  %v684_v44 = vld [vmem:[#allocation12 + $0x3d0] sm:$0xff]  ;;  %v1344_v34 = vsel %vm1330_vm4, %v1341_v52, %v1343_v48  ;;  %v574_v40 = vld [vmem:[#allocation12 + $0x60] sm:$0xff] }
 0x132   : > { %v685_v47 = vld [vmem:[#allocation12 + $0x3d8] sm:$0xff]  ;;  %5140 = vmatprep.subr.bf16.mxu1 %v16636_v59  ;;  %v9643_v59 = vpack.c.bf16 %v683_v35, %v675_v5  ;;  %v9664_v5 = vpack.c.bf16 %v682_v10, %v674_v21  ;;  %v567_v35 = vld [vmem:[#allocation12 + $0x28] sm:$0xff]  ;;  %v1405_v36 = vshrl.u32 %v16650_v25, 23  ;;  %v576_v52 = vld [vmem:[#allocation12 + $0x70] sm:$0xff] }
 0x133   : > { %v16631_v61 = vld [vmem:[#allocation26_spill] sm:$0xff]  ;;  %v16653_v21 = vld [vmem:[#allocation32_spill] sm:$0xff]  ;;  %v9683_v48 = vmul.u32.u64.low %v9623_v54, %v1344_v34  ;;  %v9684_v25 = vmul.u32.u64.high %v9623_v54, %v1344_v34, %v9683_v48  ;;  %v1333_v34 = vsel %vm1329_vm2, %v1313_v62, %v9550_v50 }
 0x134   : > { %v16633_v49 = vcombine.high %v16631_v61, %v16632_v43  ;;  %v9614_v32 = vld [vmem:[#allocation9 + $0xa40] sm:$0xff]  ;;  %16641 = vst [vmem:[#allocation85_spill] sm:$0xff] %v9643_v59  ;;  %16649 = vst [vmem:[#allocation91_spill] sm:$0xff] %v9664_v5  ;;  %v568_v5 = vld [vmem:[#allocation12 + $0x30] sm:$0xff]  ;;  %v1335_v48 = vsel %vm1331_vm3, %v9552_v56, %v1334_v7  ;;  %v9716_v50 = vmul.u32.u64.low %v9623_v54, %v1340_v28  ;;  %v9717_v62 = vmul.u32.u64.high %v9623_v54, %v1340_v28, %v9716_v50 }
 0x135   : > { %16634 = vst [vmem:[#allocation26_spill] sm:$0xff] %v9614_v32  ;;  %v9636_v41 = vld [vmem:[#allocation9 + $0xa60] sm:$0xff]  ;;  %v9713_v32 = vld [vmem:[#allocation9 + $0x1a8] sm:$0xff] }
 0x136   : > { %5027 = vmatprep.subr.bf16.mxu0 %v16633_v49  ;;  %16637 = vst [vmem:[#allocation27_spill] sm:$0xff] %v9636_v41  ;;  %v9638_v13 = vld [vmem:[#allocation9 + $0xe40] sm:$0xff]  ;;  %v9645_v49 = vpack.c.bf16 %v685_v47, %v677_v42  ;;  %v16648_v47 = vcombine.low %v16631_v61, %v16632_v43  ;;  %v575_v42 = vld [vmem:[#allocation12 + $0x68] sm:$0xff]  ;;  %v16652_v61 = vld [vmem:[#allocation31_spill] sm:$0xff]  ;;  %v9678_v43 = vpack.c.bf16 %v684_v44, %v676_v45 }
 0x137   : > { %16638 = vst [vmem:[#allocation28_spill] sm:$0xff] %v9638_v13  ;;  %v9640_v1 = vld [vmem:[#allocation9 + $0xe60] sm:$0xff]  ;;  %v16654_v10 = vcombine.high %v16652_v61, %v16653_v21  ;;  %v9692_v45 = vld [vmem:[#allocation9 + $0x1c8] sm:$0xff]  ;;  %16664 = vst [vmem:[#allocation92_spill] sm:$0xff] %v9713_v32  ;;  %v16665_v56 = vcombine.low %v16652_v61, %v16653_v21  ;;  %v16668_v21 = vcombine.high %v9235_v4, %v9237_v26 }
 0x138   : > { %16639 = vst [vmem:[#allocation84_spill] sm:$0xff] %v9640_v1  ;;  %v16640_v38 = vld [vmem:[#allocation34_spill] sm:$0xff]  ;;  %16642 = vst [vmem:[#allocation86_spill] sm:$0xff] %v9645_v49  ;;  %5028 = vmatpush1.bf16.msra.mxu0 %v16648_v47  ;;  %v9696_v47 = vld [vmem:[#allocation9 + $0x5c8] sm:$0xff]  ;;  %vm1354_vm5 = vc.u32 %v9684_v25, %v9716_v50 }
 0x139   : > { %4840 = vmatmul.mubr.bf16.gmra.mxu0 %v16640_v38  ;;  %v9647_v9 = vld [vmem:[#allocation9 + $0xa00] sm:$0xff]  ;;  %v16647_v38 = vld [vmem:[#allocation36_spill] sm:$0xff]  ;;  %5029 = vmatprep.subr.bf16.mxu0 %v16654_v10  ;;  %16655 = vst [vmem:[#allocation31_spill] sm:$0xff] %v9678_v43  ;;  %v9694_v10 = vld [vmem:[#allocation9 + $0x1e8] sm:$0xff] }
 0x13a   : > { %16643 = vst [vmem:[#allocation87_spill] sm:$0xff] %v9647_v9  ;;  %v9649_v33 = vld [vmem:[#allocation9 + $0xa20] sm:$0xff]  ;;  %4953 = vmatmul.mubr.bf16.gmra.mxu1 %v16647_v38  ;;  %v16651_v38 = vcombine.low %v9167_v30, %v16635_v22  ;;  %v16657_v30 = vld [vmem:[#allocation35_spill] sm:$0xff]  ;;  %v16659_v22 = vld [vmem:[#allocation37_spill] sm:$0xff]  ;;  %v9747_v9 = vsel %vm1330_vm4, %v1333_v34, %v1335_v48 }
 0x13b   : > { %16644 = vst [vmem:[#allocation88_spill] sm:$0xff] %v9649_v33  ;;  %v9651_v53 = vld [vmem:[#allocation9 + $0xe00] sm:$0xff]  ;;  %4849 = vmatprep.mubr.bf16.mxu0 %v16659_v22  ;;  %16660 = vst [vmem:[#allocation32_spill] sm:$0xff] %v9696_v47  ;;  %v9709_v43 = vld [vmem:[#allocation9 + $0x5e8] sm:$0xff]  ;;  %v16667_v61 = vcombine.low %v16656_v57, %v16657_v30 }
 0x13c   : > { %16645 = vst [vmem:[#allocation89_spill] sm:$0xff] %v9651_v53  ;;  %v9653_v63 = vld [vmem:[#allocation9 + $0xe20] sm:$0xff]  ;;  %5141 = vmatpush1.bf16.msra.mxu1 %v16651_v38  ;;  %v16658_v38 = vcombine.high %v16656_v57, %v16657_v30  ;;  %16662 = vst [vmem:[#allocation33_spill] sm:$0xff] %v9709_v43  ;;  %v9711_v41 = vld [vmem:[#allocation9 + $0x188] sm:$0xff]  ;;  %5030 = vmatpush1.bf16.msra.mxu0 %v16665_v56  ;;  %v9741_v56 = vpack.c.bf16 %v575_v42, %v567_v35  ;;  %v7700_v57 = vadd.s32 4294967169, %v1405_v36 }
 0x13d   : > { %16646 = vst [vmem:[#allocation90_spill] sm:$0xff] %v9653_v63  ;;  %v569_v49 = vld [vmem:[#allocation12 + $0x38] sm:$0xff]  ;;  %16663 = vst [vmem:[#allocation35_spill] sm:$0xff] %v9711_v41  ;;  %v9731_v1 = vld [vmem:[#allocation9 + $0x588] sm:$0xff]  ;;  %5031 = vmatprep.subr.bf16.mxu0 %v16668_v21  ;;  %v16671_v30 = vcombine.high %v9239_v23, %v9256_v24  ;;  %v9754_v35 = vpack.c.bf16 %v576_v52, %v568_v5 }
 0x13e   : > { %v577_v59 = vld [vmem:[#allocation12 + $0x78] sm:$0xff]  ;;  %5142 = vmatprep.subr.bf16.mxu1 %v16658_v38  ;;  %v9733_v28 = vld [vmem:[#allocation9 + $0x5a8] sm:$0xff]  ;;  %v583_v13 = vld [vmem:[#allocation12 + $0xa8] sm:$0xff]  ;;  %16669 = vst [vmem:[#allocation94_spill] sm:$0xff] %v9741_v56 }
 0x13f   : > { %v16661_v38 = vld [vmem:[#allocation38_spill] sm:$0xff]  ;;  %16666 = vst [vmem:[#allocation93_spill] sm:$0xff] %v9733_v28  ;;  %v9743_v44 = vpack.c.bf16 %v577_v59, %v569_v49  ;;  %v582_v22 = vld [vmem:[#allocation12 + $0xa0] sm:$0xff]  ;;  %v584_v53 = vld [vmem:[#allocation12 + $0xb0] sm:$0xff]  ;;  %v16676_v49 = vcombine.low %v9235_v4, %v9237_v26  ;;  %v16677_v26 = vcombine.low %v9239_v23, %v9256_v24  ;;  %v16678_v4 = vcombine.high %v9258_v51, %v9260_v0 }
 0x140   : > { %4962 = vmatprep.mubr.bf16.mxu1 %v16661_v38  ;;  %5143 = vmatpush1.bf16.msra.mxu1 %v16667_v61  ;;  %v585_v7 = vld [vmem:[#allocation12 + $0xb8] sm:$0xff]  ;;  %v590_v63 = vld [vmem:[#allocation12 + $0xe0] sm:$0xff]  ;;  %v592_v33 = vld [vmem:[#allocation12 + $0xf0] sm:$0xff]  ;;  %v9752_v61 = vpack.c.bf16 %v574_v40, %v566_v37  ;;  %16673 = vst [vmem:[#allocation97_spill] sm:$0xff] %v9754_v35  ;;  %v1352_v35 = vmul.u32 %v9623_v54, %v9747_v9  ;;  %v1411_v23 = vadd.s32 1, %v7700_v57 }
 0x141   : > { %16670 = vst [vmem:[#allocation95_spill] sm:$0xff] %v9743_v44  ;;  %v593_v38 = vld [vmem:[#allocation12 + $0xf8] sm:$0xff]  ;;  %5144 = vmatprep.subr.bf16.mxu1 %v16671_v30  ;;  %v9760_v42 = vld [vmem:[#allocation9 + $0x148] sm:$0xff]  ;;  %v16674_v36 = vld [vmem:[#allocation40_spill] sm:$0xff]  ;;  %v1355_v30 = vadd.s32 1, %v9717_v62  ;;  %5032 = vmatpush1.bf16.msra.mxu0 %v16676_v49  ;;  %v9805_v9 = vpack.c.bf16 %v591_v18, %v583_v13  ;;  %v9813_v49 = vpack.c.bf16 %v590_v63, %v582_v22 }
 0x142   : > { %16672 = vst [vmem:[#allocation96_spill] sm:$0xff] %v9752_v61  ;;  %v9764_v34 = vld [vmem:[#allocation9 + $0x548] sm:$0xff]  ;;  %4850 = vmatmul.mubr.bf16.gmra.mxu0 %v16674_v36  ;;  %4963 = vmatmul.mubr.bf16.gmra.mxu1 %v9281_v31  ;;  %v599_v59 = vld [vmem:[#allocation12 + $0x128] sm:$0xff]  ;;  %v601_v54 = vld [vmem:[#allocation12 + $0x138] sm:$0xff]  ;;  %v9811_v47 = vpack.c.bf16 %v593_v38, %v585_v7  ;;  %v9815_v37 = vpack.c.bf16 %v592_v33, %v584_v53  ;;  %vm1412_vm6 = vcmp.gt.s32.totalorder %v1411_v23, 0 }
 0x143   : > { %v9773_v52 = vld [vmem:[#allocation9 + $0x568] sm:$0xff]  ;;  %v607_v36 = vld [vmem:[#allocation12 + $0x168] sm:$0xff]  ;;  %5033 = vmatprep.subr.bf16.mxu0 %v16678_v4  ;;  %16679 = vst [vmem:[#allocation99_spill] sm:$0xff] %v9805_v9  ;;  %v609_v32 = vld [vmem:[#allocation12 + $0x178] sm:$0xff]  ;;  %v1356_v7 = vsel %vm1354_vm5, %v1355_v30, %v9717_v62  ;;  %v16693_v57 = vcombine.low %v9258_v51, %v9260_v0  ;;  %v16697_v51 = vcombine.high %v9299_v58, %v9301_v8 }
 0x144   : > { %v9775_v48 = vld [vmem:[#allocation9 + $0x108] sm:$0xff]  ;;  %5145 = vmatpush1.bf16.msra.mxu1 %v16677_v26  ;;  %v600_v61 = vld [vmem:[#allocation12 + $0x130] sm:$0xff]  ;;  %v16682_v4 = vld [vmem:[#allocation42_spill] sm:$0xff]  ;;  %16684 = vst [vmem:[#allocation100_spill] sm:$0xff] %v9813_v49  ;;  %v9854_v62 = vadd.s32 %v1356_v7, %v1352_v35  ;;  %v9866_v33 = vpack.c.bf16 %v607_v36, %v599_v59 }
 0x145   : > { %v9777_v21 = vld [vmem:[#allocation9 + $0x128] sm:$0xff]  ;;  %v608_v43 = vld [vmem:[#allocation12 + $0x170] sm:$0xff]  ;;  %4859 = vmatprep.mubr.bf16.mxu0 %v16682_v4  ;;  %16685 = vst [vmem:[#allocation101_spill] sm:$0xff] %v9815_v37  ;;  %5034 = vmatpush1.bf16.msra.mxu0 %v16693_v57  ;;  %v623_v37 = vld [vmem:[#allocation12 + $0x1e8] sm:$0xff] }
 0x146   : > { %16675 = vst [vmem:[#allocation98_spill] sm:$0xff] %v9777_v21  ;;  %v9786_v5 = vld [vmem:[#allocation9 + $0x508] sm:$0xff]  ;;  %5035 = vmatprep.subr.bf16.mxu0 %v16697_v51  ;;  %16698 = vst [vmem:[#allocation110_spill] sm:$0xff] %v9866_v33  ;;  %v617_v38 = vld [vmem:[#allocation12 + $0x1b8] sm:$0xff]  ;;  %v9875_v51 = vpack.c.bf16 %v608_v43, %v600_v61  ;;  %v9925_v33 = vpack.c.bf16 %v623_v37, %v615_v19 }
 0x147   : > { %v9788_v40 = vld [vmem:[#allocation9 + $0x528] sm:$0xff]  ;;  %v616_v21 = vld [vmem:[#allocation12 + $0x1b0] sm:$0xff] }
 0x148   : > { %v598_v41 = vld [vmem:[#allocation12 + $0x120] sm:$0xff]  ;;  %16702 = vst [vmem:[#allocation113_spill] sm:$0xff] %v9875_v51  ;;  %v624_v30 = vld [vmem:[#allocation12 + $0x1f0] sm:$0xff] }
 0x149   : > { %v606_v31 = vld [vmem:[#allocation12 + $0x160] sm:$0xff] }
 0x14a   : > { %v16680_v24 = vld [vmem:[#allocation39_spill] sm:$0xff]  ;;  %4860 = vmatmul.mubr.bf16.gmra.mxu0 %v9339_v6 }
 0x14b   : > { %v16681_v26 = vcombine.high %v9267_v12, %v16680_v24  ;;  %16683 = vst [vmem:[#allocation39_spill] sm:$0xff] %v9811_v47  ;;  %v9817_v18 = vld [vmem:[#allocation9 + $0xc8] sm:$0xff]  ;;  %v16696_v0 = vcombine.low %v9267_v12, %v16680_v24  ;;  %v16699_v12 = vcombine.high %v9314_v2, %v9316_v17  ;;  %v9871_v24 = vpack.c.bf16 %v609_v32, %v601_v54  ;;  %v632_v32 = vld [vmem:[#allocation12 + $0x230] sm:$0xff] }
 0x14c   : > { %16686 = vst [vmem:[#allocation102_spill] sm:$0xff] %v9817_v18  ;;  %v9819_v13 = vld [vmem:[#allocation9 + $0xe8] sm:$0xff]  ;;  %v1358_v54 = vadd.s32 536870912, %v9854_v62  ;;  %v16828_v18 = vld [vmem:[#allocation22_spill] sm:$0xff] }
 0x14d   : > { %5146 = vmatprep.subr.bf16.mxu1 %v16681_v26  ;;  %16687 = vst [vmem:[#allocation103_spill] sm:$0xff] %v9819_v13  ;;  %v9821_v9 = vld [vmem:[#allocation9 + $0x4c8] sm:$0xff]  ;;  %v625_v26 = vld [vmem:[#allocation12 + $0x1f8] sm:$0xff]  ;;  %16700 = vst [vmem:[#allocation111_spill] sm:$0xff] %v9871_v24 }
 0x14e   : > { %16688 = vst [vmem:[#allocation104_spill] sm:$0xff] %v9821_v9  ;;  %v16689_v28 = vld [vmem:[#allocation43_spill] sm:$0xff]  ;;  %5147 = vmatpush1.bf16.msra.mxu1 %v16696_v0  ;;  %v9873_v0 = vpack.c.bf16 %v606_v31, %v598_v41  ;;  %v9937_v31 = vpack.c.bf16 %v624_v30, %v616_v21 }
 0x14f   : > { %4972 = vmatprep.mubr.bf16.mxu1 %v16689_v28  ;;  %v9831_v63 = vld [vmem:[#allocation9 + $0x4e8] sm:$0xff]  ;;  %5148 = vmatprep.subr.bf16.mxu1 %v16699_v12  ;;  %v16708_v12 = vcombine.low %v9299_v58, %v9301_v8  ;;  %v16712_v58 = vcombine.low %v9314_v2, %v9316_v17  ;;  %v16713_v8 = vld [vmem:[#allocation44_spill] sm:$0xff]  ;;  %v16716_v17 = vcombine.high %v9326_v16, %v9328_v14  ;;  %v16717_v2 = vld [vmem:[#allocation54_spill] sm:$0xff] }
 0x150   : > { %16690 = vst [vmem:[#allocation105_spill] sm:$0xff] %v9831_v63  ;;  %v9833_v53 = vld [vmem:[#allocation9 + $0x88] sm:$0xff]  ;;  %16701 = vst [vmem:[#allocation112_spill] sm:$0xff] %v9873_v0  ;;  %4973 = vmatmul.mubr.bf16.gmra.mxu1 %v9356_v27  ;;  %v9913_v27 = vsel %vm1412_vm6, %v1411_v23, 0  ;;  %v633_v23 = vld [vmem:[#allocation12 + $0x238] sm:$0xff]  ;;  %v9927_v63 = vshrl.u32 %v1358_v54, 30  ;;  %4869 = vmatprep.mubr.bf16.mxu0 %v16717_v2 }
 0x151   : > { %16691 = vst [vmem:[#allocation106_spill] sm:$0xff] %v9833_v53  ;;  %v9835_v22 = vld [vmem:[#allocation9 + $0xa8] sm:$0xff]  ;;  %5036 = vmatpush1.bf16.msra.mxu0 %v16708_v12  ;;  %v16714_v12 = vcombine.high %v9318_v39, %v16713_v8  ;;  %16715 = vst [vmem:[#allocation44_spill] sm:$0xff] %v9925_v33  ;;  %v639_v53 = vld [vmem:[#allocation12 + $0x268] sm:$0xff]  ;;  %4982 = vmatprep.mubr.bf16.mxu1 %v9415_v55  ;;  %v9951_v30 = vand.u32 31, %v9913_v27 }
 0x152   : > { %16692 = vst [vmem:[#allocation107_spill] sm:$0xff] %v9835_v22  ;;  %v9850_v28 = vld [vmem:[#allocation9 + $0x488] sm:$0xff]  ;;  %5149 = vmatpush1.bf16.msra.mxu1 %v16712_v58  ;;  %v631_v22 = vld [vmem:[#allocation12 + $0x228] sm:$0xff]  ;;  %v641_v0 = vld [vmem:[#allocation12 + $0x278] sm:$0xff]  ;;  %v9933_v58 = vpack.c.bf16 %v625_v26, %v617_v38  ;;  %v1360_v21 = vshll.u32 %v9927_v63, 30 }
 0x153   : > { %16694 = vst [vmem:[#allocation108_spill] sm:$0xff] %v9850_v28  ;;  %v9852_v4 = vld [vmem:[#allocation9 + $0x4a8] sm:$0xff]  ;;  %5037 = vmatprep.subr.bf16.mxu0 %v16714_v12  ;;  %5150 = vmatprep.subr.bf16.mxu1 %v16716_v17  ;;  %16720 = vst [vmem:[#allocation124_spill] sm:$0xff] %v9937_v31  ;;  %v640_v2 = vld [vmem:[#allocation12 + $0x270] sm:$0xff]  ;;  %v9998_v54 = vpack.c.bf16 %v641_v0, %v633_v23 }
 0x154   : > { %16695 = vst [vmem:[#allocation109_spill] sm:$0xff] %v9852_v4  ;;  %v614_v35 = vld [vmem:[#allocation12 + $0x1a0] sm:$0xff]  ;;  %16718 = vst [vmem:[#allocation122_spill] sm:$0xff] %v9933_v58  ;;  %v648_v23 = vld [vmem:[#allocation12 + $0x2b0] sm:$0xff] }
 0x155   : > { %v622_v7 = vld [vmem:[#allocation12 + $0x1e0] sm:$0xff]  ;;  %16737 = vst [vmem:[#allocation133_spill] sm:$0xff] %v9998_v54  ;;  %v16779_v28 = vld [vmem:[#allocation66_spill] sm:$0xff] }
 0x156   : > { %v9877_v57 = vld [vmem:[#allocation9 + $0x48] sm:$0xff]  ;;  %v9935_v12 = vpack.c.bf16 %v622_v7, %v614_v35  ;;  %v16724_v35 = vcombine.low %v9318_v39, %v16713_v8  ;;  %v16728_v39 = vcombine.low %v9326_v16, %v9328_v14  ;;  %v16729_v8 = vcombine.high %v9373_v46, %v9384_v29 }
 0x157   : > { %16703 = vst [vmem:[#allocation114_spill] sm:$0xff] %v9877_v57  ;;  %v9879_v59 = vld [vmem:[#allocation9 + $0x68] sm:$0xff]  ;;  %v16733_v16 = vand.u32 2147483647, %v9331_v11  ;;  %v10029_v11 = vshll.u32 %v16628_v3, %v9951_v30 }
 0x158   : > { %16704 = vst [vmem:[#allocation115_spill] sm:$0xff] %v9879_v59  ;;  %v9889_v41 = vld [vmem:[#allocation9 + $0x448] sm:$0xff]  ;;  %16719 = vst [vmem:[#allocation123_spill] sm:$0xff] %v9935_v12  ;;  %5038 = vmatpush1.bf16.msra.mxu0 %v16724_v35  ;;  %5151 = vmatpush1.bf16.msra.mxu1 %v16728_v39  ;;  %v16734_v39 = vld [vmem:[#allocation53_spill] sm:$0xff]  ;;  %v9996_v35 = vpack.c.bf16 %v639_v53, %v631_v22 }
 0x159   : > { %16705 = vst [vmem:[#allocation116_spill] sm:$0xff] %v9889_v41  ;;  %v9891_v43 = vld [vmem:[#allocation9 + $0x468] sm:$0xff]  ;;  %5039 = vmatprep.subr.bf16.mxu0 %v16729_v8  ;;  %v9991_v14 = vand.u32 8388607, %v16733_v16  ;;  %v16735_v8 = vcombine.high %v9386_v15, %v16734_v39  ;;  %v649_v12 = vld [vmem:[#allocation12 + $0x2b8] sm:$0xff]  ;;  %v10007_v16 = vpack.c.bf16 %v640_v2, %v632_v32  ;;  %v656_v2 = vld [vmem:[#allocation12 + $0x2f0] sm:$0xff] }
 0x15a   : > { %16706 = vst [vmem:[#allocation117_spill] sm:$0xff] %v9891_v43  ;;  %v9893_v61 = vld [vmem:[#allocation9 + $0x8] sm:$0xff]  ;;  %16736 = vst [vmem:[#allocation53_spill] sm:$0xff] %v9996_v35  ;;  %v657_v43 = vld [vmem:[#allocation12 + $0x2f8] sm:$0xff]  ;;  %v16763_v41 = vmov 2475754826  }
 0x15b   : > { %16707 = vst [vmem:[#allocation118_spill] sm:$0xff] %v9893_v61  ;;  %v9906_v36 = vld [vmem:[#allocation9 + $0x28] sm:$0xff]  ;;  %5152 = vmatprep.subr.bf16.mxu1 %v16735_v8  ;;  %v655_v61 = vld [vmem:[#allocation12 + $0x2e8] sm:$0xff]  ;;  %16740 = vst [vmem:[#allocation135_spill] sm:$0xff] %v10007_v16 }
 0x15c   : > { %16709 = vst [vmem:[#allocation119_spill] sm:$0xff] %v9906_v36  ;;  %v9908_v6 = vld [vmem:[#allocation9 + $0x408] sm:$0xff]  ;;  %v9987_v36 = vsub.s32 %v9854_v62, %v1360_v21  ;;  %v10004_v62 = vadd.s32 %v9716_v50, %v9684_v25  ;;  %v16741_v8 = vld [vmem:[#allocation60_spill] sm:$0xff]  ;;  %v16742_v25 = vcombine.low %v9373_v46, %v9384_v29  ;;  %v16746_v29 = vcombine.low %v9386_v15, %v16734_v39  ;;  %v16753_v39 = vld [vmem:[#allocation57_spill] sm:$0xff] }
 0x15d   : > { %16710 = vst [vmem:[#allocation120_spill] sm:$0xff] %v9908_v6  ;;  %v9910_v51 = vld [vmem:[#allocation9 + $0x428] sm:$0xff]  ;;  %v647_v6 = vld [vmem:[#allocation12 + $0x2a8] sm:$0xff]  ;;  %4983 = vmatmul.mubr.bf16.gmra.mxu1 %v16741_v8  ;;  %v16745_v8 = vand.u32 2139095040, %v9334_v60 }
 0x15e   : > { %16711 = vst [vmem:[#allocation121_spill] sm:$0xff] %v9910_v51  ;;  %v630_v19 = vld [vmem:[#allocation12 + $0x220] sm:$0xff]  ;;  %5040 = vmatpush2.bf16.msra.mxu0 %v16742_v25  ;;  %5153 = vmatpush2.bf16.msra.mxu1 %v16746_v29  ;;  %v16748_v25 = vld [vmem:[#allocation56_spill] sm:$0xff]  ;;  %v16754_v29 = vld [vmem:[#allocation61_spill] sm:$0xff] }
 0x15f   : > { %v638_v37 = vld [vmem:[#allocation12 + $0x260] sm:$0xff]  ;;  %v10033_v16 = vshrl.u32 %v16745_v8, 23  ;;  %v16756_v35 = vld [vmem:[#allocation64_spill] sm:$0xff] }
 0x160   : > { %v9945_v26 = vld [vmem:[#allocation9 + $0x3c8] sm:$0xff]  ;;  %v10000_v51 = vpack.c.bf16 %v638_v37, %v630_v19  ;;  %v1363_v19 = vsub.s32 0, %v9987_v36  ;;  %v10013_v37 = vsub.s32 32, %v9951_v30 }
 0x161   : > { %16722 = vst [vmem:[#allocation125_spill] sm:$0xff] %v9945_v26  ;;  %v9947_v38 = vld [vmem:[#allocation9 + $0x3e8] sm:$0xff] }
 0x162   : > { %16723 = vst [vmem:[#allocation126_spill] sm:$0xff] %v9947_v38  ;;  %v9964_v55 = vld [vmem:[#allocation9 + $0x7c8] sm:$0xff]  ;;  %16738 = vst [vmem:[#allocation134_spill] sm:$0xff] %v10000_v51  ;;  %v10070_v15 = vshrl.u32 %v16628_v3, %v10013_v37  ;;  %v10076_v51 = vpack.c.bf16 %v657_v43, %v649_v12  ;;  %v671_v38 = vld [vmem:[#allocation12 + $0x368] sm:$0xff]  ;;  %v1419_v59 = vshrl.u32 %v16763_v41, %v10013_v37 }
 0x163   : > { %16725 = vst [vmem:[#allocation127_spill] sm:$0xff] %v9964_v55  ;;  %v9966_v33 = vld [vmem:[#allocation9 + $0x7e8] sm:$0xff]  ;;  %v663_v55 = vld [vmem:[#allocation12 + $0x328] sm:$0xff]  ;;  %v1421_v12 = vshll.u32 %v16763_v41, %v9951_v30 }
 0x164   : > { %16726 = vst [vmem:[#allocation128_spill] sm:$0xff] %v9966_v33  ;;  %v9968_v31 = vld [vmem:[#allocation9 + $0x388] sm:$0xff]  ;;  %v16760_v33 = vld [vmem:[#allocation65_spill] sm:$0xff]  ;;  %16762 = vst [vmem:[#allocation141_spill] sm:$0xff] %v10076_v51  ;;  %v16768_v51 = vcombine.low %v16753_v39, %v16754_v29 }
 0x165   : > { %16727 = vst [vmem:[#allocation129_spill] sm:$0xff] %v9968_v31  ;;  %v9980_v17 = vld [vmem:[#allocation9 + $0x3a8] sm:$0xff]  ;;  %4992 = vmatprep.mubr.bf16.mxu1 %v16760_v33  ;;  %v16767_v33 = vmov 2131351028  }
 0x166   : > { %16730 = vst [vmem:[#allocation130_spill] sm:$0xff] %v9980_v17  ;;  %v9982_v7 = vld [vmem:[#allocation9 + $0x788] sm:$0xff] }
 0x167   : > { %16731 = vst [vmem:[#allocation131_spill] sm:$0xff] %v9982_v7  ;;  %v9984_v4 = vld [vmem:[#allocation9 + $0x7a8] sm:$0xff]  ;;  %v7697_v7 = vmin.u32 %v1363_v19, %v9987_v36  ;;  %v1422_v19 = vshrl.u32 %v16767_v33, %v10013_v37 }
 0x168   : > { %16732 = vst [vmem:[#allocation132_spill] sm:$0xff] %v9984_v4  ;;  %v16739_v21 = vld [vmem:[#allocation59_spill] sm:$0xff]  ;;  %v665_v4 = vld [vmem:[#allocation12 + $0x338] sm:$0xff] }
 0x169   : > { %4870 = vmatmul.mubr.bf16.gmra.mxu0 %v16739_v21  ;;  %v646_v22 = vld [vmem:[#allocation12 + $0x2a0] sm:$0xff] }
 0x16a   : > { %v654_v0 = vld [vmem:[#allocation12 + $0x2e0] sm:$0xff]  ;;  %4879 = vmatprep.mubr.bf16.mxu0 %v16756_v35  ;;  %v10074_v35 = vpack.c.bf16 %v655_v61, %v647_v6  ;;  %v673_v6 = vld [vmem:[#allocation12 + $0x378] sm:$0xff] }
 0x16b   : > { %v10023_v53 = vld [vmem:[#allocation9 + $0x348] sm:$0xff]  ;;  %v10084_v58 = vpack.c.bf16 %v654_v0, %v646_v22  ;;  %v10128_v22 = vpack.c.bf16 %v673_v6, %v665_v4  ;;  %v679_v4 = vld [vmem:[#allocation12 + $0x3a8] sm:$0xff]  ;;  %v10147_v6 = vor.u32 %v1419_v59, %v10029_v11  ;;  %v10160_v11 = vor.u32 %v1422_v19, %v1421_v12 }
 0x16c   : > { %16743 = vst [vmem:[#allocation136_spill] sm:$0xff] %v10023_v53  ;;  %v10025_v21 = vld [vmem:[#allocation9 + $0x368] sm:$0xff]  ;;  %16761 = vst [vmem:[#allocation140_spill] sm:$0xff] %v10074_v35  ;;  %v16769_v35 = vld [vmem:[#allocation62_spill] sm:$0xff]  ;;  %v10164_v59 = vshll.u32 %v16767_v33, %v9951_v30 }
 0x16d   : > { %16744 = vst [vmem:[#allocation137_spill] sm:$0xff] %v10025_v21  ;;  %v16747_v46 = vld [vmem:[#allocation55_spill] sm:$0xff]  ;;  %16765 = vst [vmem:[#allocation142_spill] sm:$0xff] %v10084_v58  ;;  %v1365_v58 = vclz %v7697_v7 }
 0x16e   : > { %v16749_v32 = vcombine.high %v16747_v46, %v16748_v25  ;;  %v10047_v26 = vld [vmem:[#allocation9 + $0x748] sm:$0xff]  ;;  %v16764_v57 = vcombine.low %v16747_v46, %v16748_v25  ;;  %v672_v25 = vld [vmem:[#allocation12 + $0x370] sm:$0xff]  ;;  %16781 = vst [vmem:[#allocation145_spill] sm:$0xff] %v10128_v22  ;;  %v10150_v22 = vadd.s32 4294967169, %v10033_v16  ;;  %v16794_v16 = vld [vmem:[#allocation72_spill] sm:$0xff] }
 0x16f   : > { %16750 = vst [vmem:[#allocation55_spill] sm:$0xff] %v10047_v26  ;;  %v10049_v8 = vld [vmem:[#allocation9 + $0x768] sm:$0xff] }
 0x170   : > { %5041 = vmatprep.subr.bf16.mxu0 %v16749_v32  ;;  %16751 = vst [vmem:[#allocation56_spill] sm:$0xff] %v10049_v8  ;;  %v10051_v54 = vld [vmem:[#allocation9 + $0x308] sm:$0xff]  ;;  %v16755_v32 = vcombine.high %v16753_v39, %v16754_v29  ;;  %v16773_v39 = vld [vmem:[#allocation68_spill] sm:$0xff] }
 0x171   : > { %16752 = vst [vmem:[#allocation138_spill] sm:$0xff] %v10051_v54  ;;  %v10062_v50 = vld [vmem:[#allocation9 + $0x328] sm:$0xff]  ;;  %5042 = vmatpush2.bf16.msra.mxu0 %v16764_v57 }
 0x172   : > { %5154 = vmatprep.subr.bf16.mxu1 %v16755_v32  ;;  %16757 = vst [vmem:[#allocation57_spill] sm:$0xff] %v10062_v50  ;;  %v10064_v17 = vld [vmem:[#allocation9 + $0x708] sm:$0xff]  ;;  %v10086_v32 = vpack.c.bf16 %v656_v2, %v648_v23  ;;  %v664_v2 = vld [vmem:[#allocation12 + $0x330] sm:$0xff]  ;;  %4880 = vmatmul.mubr.bf16.gmra.mxu0 %v16779_v28  ;;  %v7698_v50 = vadd.s32 4294967294, %v1365_v58 }
 0x173   : > { %16758 = vst [vmem:[#allocation61_spill] sm:$0xff] %v10064_v17  ;;  %v10066_v31 = vld [vmem:[#allocation9 + $0x728] sm:$0xff]  ;;  %5155 = vmatpush2.bf16.msra.mxu1 %v16768_v51  ;;  %v16774_v51 = vld [vmem:[#allocation69_spill] sm:$0xff] }
 0x174   : > { %16759 = vst [vmem:[#allocation139_spill] sm:$0xff] %v10066_v31  ;;  %16766 = vst [vmem:[#allocation143_spill] sm:$0xff] %v10086_v32  ;;  %v662_v61 = vld [vmem:[#allocation12 + $0x320] sm:$0xff]  ;;  %v16775_v29 = vcombine.high %v16773_v39, %v16774_v51  ;;  %v16790_v58 = vcombine.low %v16773_v39, %v16774_v51  ;;  %vm7699_vm7 = vcmp.lt.s32.totalorder %v7698_v50, 0  ;;  %v16795_v39 = vld [vmem:[#allocation73_spill] sm:$0xff] }
 0x175   : > { %v670_v43 = vld [vmem:[#allocation12 + $0x360] sm:$0xff]  ;;  %v16796_v51 = vcombine.high %v16794_v16, %v16795_v39  ;;  %v16845_v17 = vld [vmem:[#allocation85_spill] sm:$0xff] }
 0x176   : > { %v16770_v46 = vld [vmem:[#allocation63_spill] sm:$0xff]  ;;  %5156 = vmatprep.subr.bf16.mxu1 %v16775_v29  ;;  %v10140_v28 = vpack.c.bf16 %v670_v43, %v662_v61  ;;  %v10142_v29 = vpack.c.bf16 %v672_v25, %v664_v2  ;;  %v689_v2 = vld [vmem:[#allocation12 + $0x3f8] sm:$0xff] }
 0x177   : > { %v16771_v57 = vcombine.high %v16769_v35, %v16770_v46  ;;  %v10104_v32 = vld [vmem:[#allocation9 + $0x2c8] sm:$0xff]  ;;  %v16786_v26 = vcombine.low %v16769_v35, %v16770_v46  ;;  %5157 = vmatpush2.bf16.msra.mxu1 %v16790_v58  ;;  %v16791_v35 = vld [vmem:[#allocation70_spill] sm:$0xff]  ;;  %v16797_v58 = vld [vmem:[#allocation76_spill] sm:$0xff] }
 0x178   : > { %16772 = vst [vmem:[#allocation62_spill] sm:$0xff] %v10104_v32  ;;  %v10117_v21 = vld [vmem:[#allocation9 + $0x2e8] sm:$0xff]  ;;  %16787 = vst [vmem:[#allocation149_spill] sm:$0xff] %v10140_v28  ;;  %v681_v46 = vld [vmem:[#allocation12 + $0x3b8] sm:$0xff]  ;;  %5158 = vmatprep.subr.bf16.mxu1 %v16796_v51  ;;  %4889 = vmatprep.mubr.bf16.mxu0 %v16797_v58  ;;  %v10177_v28 = vshrl.u32 %v9913_v27, 5  ;;  %v10193_v27 = vsel %vm7699_vm7, 0, %v7698_v50 }
 0x179   : > { %5043 = vmatprep.subr.bf16.mxu0 %v16771_v57  ;;  %16776 = vst [vmem:[#allocation63_spill] sm:$0xff] %v10117_v21  ;;  %v10119_v53 = vld [vmem:[#allocation9 + $0x6c8] sm:$0xff]  ;;  %v10126_v57 = vpack.c.bf16 %v671_v38, %v663_v55  ;;  %16788 = vst [vmem:[#allocation150_spill] sm:$0xff] %v10142_v29  ;;  %v687_v38 = vld [vmem:[#allocation12 + $0x3e8] sm:$0xff]  ;;  %v16808_v50 = vmov 2102212464  }
 0x17a   : > { %16777 = vst [vmem:[#allocation68_spill] sm:$0xff] %v10119_v53  ;;  %v10121_v7 = vld [vmem:[#allocation9 + $0x6e8] sm:$0xff]  ;;  %5044 = vmatpush2.bf16.msra.mxu0 %v16786_v26  ;;  %v688_v29 = vld [vmem:[#allocation12 + $0x3f0] sm:$0xff]  ;;  %v10212_v21 = vshrl.u32 %v16808_v50, %v10013_v37  ;;  %vm1433_vm9 = vcmp.lt.s32.totalorder %v10177_v28, 1  ;;  %vm1436_vm10 = vcmp.lt.s32.totalorder %v10177_v28, 4  ;;  %vm1435_vm11 = vcmp.lt.s32.totalorder %v10177_v28, 3 }
 0x17b   : > { %16778 = vst [vmem:[#allocation69_spill] sm:$0xff] %v10121_v7  ;;  %16780 = vst [vmem:[#allocation144_spill] sm:$0xff] %v10126_v57  ;;  %v10130_v8 = vld [vmem:[#allocation9 + $0x288] sm:$0xff]  ;;  %v16798_v57 = vld [vmem:[#allocation77_spill] sm:$0xff]  ;;  %vm1434_vm12 = vcmp.lt.s32.totalorder %v10177_v28, 2  ;;  %v16910_v28 = vcombine.high %v9764_v34, %v9773_v52 }
 0x17c   : > { %16782 = vst [vmem:[#allocation146_spill] sm:$0xff] %v10130_v8  ;;  %v10132_v0 = vld [vmem:[#allocation9 + $0x2a8] sm:$0xff] }
 0x17d   : > { %16783 = vst [vmem:[#allocation147_spill] sm:$0xff] %v10132_v0  ;;  %v10134_v23 = vld [vmem:[#allocation9 + $0x688] sm:$0xff]  ;;  %v10202_v0 = vpack.c.bf16 %v689_v2, %v681_v46 }
 0x17e   : > { %16784 = vst [vmem:[#allocation148_spill] sm:$0xff] %v10134_v23  ;;  %v16785_v54 = vld [vmem:[#allocation67_spill] sm:$0xff] }
 0x17f   : > { %4993 = vmatmul.mubr.bf16.gmra.mxu1 %v16785_v54  ;;  %v10144_v55 = vld [vmem:[#allocation9 + $0x6a8] sm:$0xff]  ;;  %v680_v54 = vld [vmem:[#allocation12 + $0x3b0] sm:$0xff]  ;;  %16804 = vst [vmem:[#allocation152_spill] sm:$0xff] %v10202_v0 }
 0x180   : > { %16789 = vst [vmem:[#allocation151_spill] sm:$0xff] %v10144_v55  ;;  %v16792_v26 = vld [vmem:[#allocation71_spill] sm:$0xff]  ;;  %5002 = vmatprep.mubr.bf16.mxu1 %v16798_v57  ;;  %v10222_v46 = vpack.c.bf16 %v688_v29, %v680_v54 }
 0x181   : > { %v16793_v61 = vcombine.high %v16791_v35, %v16792_v26  ;;  %v678_v25 = vld [vmem:[#allocation12 + $0x3a0] sm:$0xff]  ;;  %v16802_v57 = vcombine.low %v16791_v35, %v16792_v26  ;;  %v16810_v35 = vld [vmem:[#allocation74_spill] sm:$0xff] }
 0x182   : > { %v686_v19 = vld [vmem:[#allocation12 + $0x3e0] sm:$0xff] }
 0x183   : > { %5045 = vmatprep.subr.bf16.mxu0 %v16793_v61  ;;  %v10186_v58 = vld [vmem:[#allocation9 + $0x248] sm:$0xff]  ;;  %v10200_v61 = vpack.c.bf16 %v687_v38, %v679_v4  ;;  %v10220_v38 = vpack.c.bf16 %v686_v19, %v678_v25 }
 0x184   : > { %16799 = vst [vmem:[#allocation70_spill] sm:$0xff] %v10186_v58  ;;  %v10188_v12 = vld [vmem:[#allocation9 + $0x268] sm:$0xff]  ;;  %5046 = vmatpush2.bf16.msra.mxu0 %v16802_v57  ;;  %v16809_v57 = vcombine.low %v16794_v16, %v16795_v39  ;;  %v10233_v16 = vshll.u32 %v16808_v50, %v9951_v30  ;;  %v16818_v39 = vld [vmem:[#allocation78_spill] sm:$0xff] }
 0x185   : > { %16800 = vst [vmem:[#allocation71_spill] sm:$0xff] %v10188_v12  ;;  %v10190_v7 = vld [vmem:[#allocation9 + $0x648] sm:$0xff]  ;;  %16803 = vst [vmem:[#allocation73_spill] sm:$0xff] %v10200_v61  ;;  %v1383_v61 = vsub.s32 4, %v9927_v63  ;;  %v16849_v58 = vld [vmem:[#allocation86_spill] sm:$0xff] }
 0x186   : > { %16801 = vst [vmem:[#allocation72_spill] sm:$0xff] %v10190_v7  ;;  %v10204_v43 = vld [vmem:[#allocation9 + $0x668] sm:$0xff]  ;;  %5159 = vmatpush2.bf16.msra.mxu1 %v16809_v57  ;;  %16813 = vst [vmem:[#allocation74_spill] sm:$0xff] %v10220_v38 }
 0x187   : > { %16805 = vst [vmem:[#allocation153_spill] sm:$0xff] %v10204_v43  ;;  %v10206_v8 = vld [vmem:[#allocation9 + $0x208] sm:$0xff]  ;;  %5003 = vmatmul.mubr.bf16.gmra.mxu1 %v16828_v18  ;;  %v16833_v18 = vld [vmem:[#allocation24_spill] sm:$0xff] }
 0x188   : > { %16806 = vst [vmem:[#allocation154_spill] sm:$0xff] %v10206_v8  ;;  %v10208_v53 = vld [vmem:[#allocation9 + $0x228] sm:$0xff]  ;;  %vm1299_vm8 = vcmp.lt.s32.totalorder %v16833_v18, 0  ;;  %5012 = vmatprep.mubr.bf16.mxu1 %v16849_v58 }
 0x189   : > { %16807 = vst [vmem:[#allocation155_spill] sm:$0xff] %v10208_v53  ;;  %v16811_v26 = vld [vmem:[#allocation75_spill] sm:$0xff] }
 0x18a   : > { %v16812_v4 = vcombine.high %v16810_v35, %v16811_v26  ;;  %16814 = vst [vmem:[#allocation75_spill] sm:$0xff] %v10222_v46  ;;  %v10224_v2 = vld [vmem:[#allocation9 + $0x608] sm:$0xff]  ;;  %v16824_v46 = vmov 920167782   ;;  %v16829_v54 = vcombine.low %v16810_v35, %v16811_v26  ;;  %v16835_v26 = vld [vmem:[#allocation80_spill] sm:$0xff] }
 0x18b   : > { %16815 = vst [vmem:[#allocation156_spill] sm:$0xff] %v10224_v2  ;;  %v10226_v51 = vld [vmem:[#allocation9 + $0x628] sm:$0xff]  ;;  %v10249_v38 = vshrl.u32 %v16824_v46, %v10013_v37  ;;  %v10253_v23 = vshll.u32 %v16824_v46, %v9951_v30 }
 0x18c   : > { %5047 = vmatprep.subr.bf16.mxu0 %v16812_v4  ;;  %16816 = vst [vmem:[#allocation157_spill] sm:$0xff] %v10226_v51  ;;  %v10228_v0 = vld [vmem:[#allocation9 + $0x9c8] sm:$0xff]  ;;  %v1373_v4 = vsub.s32 4294967266, %v10193_v27 }
 0x18d   : > { %16817 = vst [vmem:[#allocation158_spill] sm:$0xff] %v10228_v0  ;;  %v16819_v57 = vld [vmem:[#allocation79_spill] sm:$0xff]  ;;  %5048 = vmatpush2.bf16.msra.mxu0 %v16829_v54  ;;  %v16836_v54 = vld [vmem:[#allocation81_spill] sm:$0xff] }
 0x18e   : > { %v16820_v55 = vcombine.high %v16818_v39, %v16819_v57  ;;  %v10240_v29 = vld [vmem:[#allocation9 + $0x9e8] sm:$0xff]  ;;  %v16834_v35 = vcombine.low %v16818_v39, %v16819_v57  ;;  %v16837_v32 = vcombine.high %v16835_v26, %v16836_v54  ;;  %v10306_v39 = vsel %vm1299_vm8, %v1383_v61, %v9927_v63 }
 0x18f   : > { %16821 = vst [vmem:[#allocation78_spill] sm:$0xff] %v10240_v29  ;;  %v10242_v25 = vld [vmem:[#allocation9 + $0xdc8] sm:$0xff]  ;;  %v16841_v57 = vor.u32 8388608, %v9991_v14  ;;  %v1369_v14 = vsub.s32 32, %v10193_v27 }
 0x190   : > { %5160 = vmatprep.subr.bf16.mxu1 %v16820_v55  ;;  %16822 = vst [vmem:[#allocation79_spill] sm:$0xff] %v10242_v25  ;;  %v10244_v19 = vld [vmem:[#allocation9 + $0xde8] sm:$0xff]  ;;  %v16825_v55 = vld [vmem:[#allocation21_spill] sm:$0xff]  ;;  %5049 = vmatprep.subr.bf16.mxu0 %v16837_v32 }
 0x191   : > { %16823 = vst [vmem:[#allocation159_spill] sm:$0xff] %v10244_v19  ;;  %4890 = vmatmul.mubr.bf16.gmra.mxu0 %v16825_v55  ;;  %v10264_v9 = vld [vmem:[#allocation9 + $0x988] sm:$0xff]  ;;  %5161 = vmatpush2.bf16.msra.mxu1 %v16834_v35  ;;  %v10310_v32 = vshll.u32 %v16841_v57, 8  ;;  %v16842_v35 = vld [vmem:[#allocation82_spill] sm:$0xff]  ;;  %v10327_v57 = vadd.s32 127, %v1373_v4  ;;  %v16852_v4 = vcombine.low %v16835_v26, %v16836_v54 }
 0x192   : > { %v10266_v13 = vld [vmem:[#allocation9 + $0x9a8] sm:$0xff]  ;;  %4899 = vmatprep.mubr.bf16.mxu0 %v16845_v17  ;;  %v16857_v54 = vld [vmem:[#allocation26_spill] sm:$0xff] }
 0x193   : > { %16826 = vst [vmem:[#allocation160_spill] sm:$0xff] %v10266_v13  ;;  %v10268_v30 = vld [vmem:[#allocation9 + $0xd88] sm:$0xff]  ;;  %5050 = vmatpush2.bf16.msra.mxu0 %v16852_v4 }
 0x194   : > { %16827 = vst [vmem:[#allocation161_spill] sm:$0xff] %v10268_v30  ;;  %v10280_v55 = vld [vmem:[#allocation9 + $0xda8] sm:$0xff] }
 0x195   : > { %16830 = vst [vmem:[#allocation162_spill] sm:$0xff] %v10280_v55  ;;  %v10282_v43 = vld [vmem:[#allocation9 + $0x948] sm:$0xff] }
 0x196   : > { %16831 = vst [vmem:[#allocation163_spill] sm:$0xff] %v10282_v43  ;;  %v10284_v7 = vld [vmem:[#allocation9 + $0x968] sm:$0xff]  ;;  %v1375_v43 = vshll.u32 %v10327_v57, 23 }
 0x197   : > { %16832 = vst [vmem:[#allocation164_spill] sm:$0xff] %v10284_v7  ;;  %v10297_v51 = vld [vmem:[#allocation9 + $0xd48] sm:$0xff] }
 0x198   : > { %16838 = vst [vmem:[#allocation80_spill] sm:$0xff] %v10297_v51  ;;  %v10299_v2 = vld [vmem:[#allocation9 + $0xd68] sm:$0xff] }
 0x199   : > { %16839 = vst [vmem:[#allocation81_spill] sm:$0xff] %v10299_v2  ;;  %v10301_v53 = vld [vmem:[#allocation9 + $0x908] sm:$0xff] }
 0x19a   : > { %16840 = vst [vmem:[#allocation165_spill] sm:$0xff] %v10301_v53  ;;  %v16843_v31 = vld [vmem:[#allocation83_spill] sm:$0xff]  ;;  %v1371_v53 = vshrl.u32 %v10004_v62, %v1369_v14 }
 0x19b   : > { %v16844_v8 = vcombine.high %v16842_v35, %v16843_v31  ;;  %v10320_v12 = vld [vmem:[#allocation9 + $0x928] sm:$0xff]  ;;  %v16856_v26 = vcombine.low %v16842_v35, %v16843_v31  ;;  %v16862_v31 = vld [vmem:[#allocation28_spill] sm:$0xff] }
 0x19c   : > { %16846 = vst [vmem:[#allocation82_spill] sm:$0xff] %v10320_v12  ;;  %v10322_v63 = vld [vmem:[#allocation9 + $0xd08] sm:$0xff]  ;;  %v16863_v35 = vld [vmem:[#allocation84_spill] sm:$0xff]  ;;  %v1370_v12 = vshll.u32 %v9987_v36, %v10193_v27 }
 0x19d   : > { %5162 = vmatprep.subr.bf16.mxu1 %v16844_v8  ;;  %16847 = vst [vmem:[#allocation83_spill] sm:$0xff] %v10322_v63  ;;  %v10324_v61 = vld [vmem:[#allocation9 + $0xd28] sm:$0xff] }
 0x19e   : > { %16848 = vst [vmem:[#allocation166_spill] sm:$0xff] %v10324_v61  ;;  %v10338_v19 = vld [vmem:[#allocation9 + $0x8c8] sm:$0xff]  ;;  %5163 = vmatpush2.bf16.msra.mxu1 %v16856_v26  ;;  %v16875_v61 = vld [vmem:[#allocation88_spill] sm:$0xff] }
 0x19f   : > { %16850 = vst [vmem:[#allocation167_spill] sm:$0xff] %v10338_v19  ;;  %v10340_v25 = vld [vmem:[#allocation9 + $0x8e8] sm:$0xff] }
 0x1a0   : > { %16851 = vst [vmem:[#allocation168_spill] sm:$0xff] %v10340_v25  ;;  %v10353_v58 = vld [vmem:[#allocation9 + $0xcc8] sm:$0xff] }
 0x1a1   : > { %16853 = vst [vmem:[#allocation169_spill] sm:$0xff] %v10353_v58  ;;  %v10355_v55 = vld [vmem:[#allocation9 + $0xce8] sm:$0xff] }
 0x1a2   : > { %16854 = vst [vmem:[#allocation170_spill] sm:$0xff] %v10355_v55  ;;  %v10357_v30 = vld [vmem:[#allocation9 + $0x888] sm:$0xff] }
 0x1a3   : > { %16855 = vst [vmem:[#allocation171_spill] sm:$0xff] %v10357_v30  ;;  %v16858_v4 = vld [vmem:[#allocation27_spill] sm:$0xff] }
 0x1a4   : > { %v16859_v8 = vcombine.high %v16857_v54, %v16858_v4  ;;  %v10372_v2 = vld [vmem:[#allocation9 + $0x8a8] sm:$0xff] }
 0x1a5   : > { %16860 = vst [vmem:[#allocation26_spill] sm:$0xff] %v10372_v2  ;;  %v10374_v51 = vld [vmem:[#allocation9 + $0xc88] sm:$0xff] }
 0x1a6   : > { %5051 = vmatprep.subr.bf16.mxu0 %v16859_v8  ;;  %v10376_v7 = vld [vmem:[#allocation9 + $0xca8] sm:$0xff]  ;;  %v16864_v8 = vcombine.high %v16862_v31, %v16863_v35 }
 0x1a7   : > { %16861 = vst [vmem:[#allocation27_spill] sm:$0xff] %v10376_v7  ;;  %v10384_v0 = vld [vmem:[#allocation9 + $0x848] sm:$0xff]  ;;  %v1376_v7 = vor.u32 4788187, %v1375_v43  ;;  %v16887_v43 = vld [vmem:[#allocation32_spill] sm:$0xff] }
 0x1a8   : > { %5164 = vmatprep.subr.bf16.mxu1 %v16864_v8  ;;  %16865 = vst [vmem:[#allocation28_spill] sm:$0xff] %v10384_v0  ;;  %v10386_v17 = vld [vmem:[#allocation9 + $0x868] sm:$0xff]  ;;  %v16869_v8 = vcombine.low %v16857_v54, %v16858_v4  ;;  %v16873_v4 = vcombine.low %v16862_v31, %v16863_v35  ;;  %v16878_v31 = vand.u32 2147483647, %v9334_v60  ;;  %v1372_v0 = vor.u32 %v1371_v53, %v1370_v12 }
 0x1a9   : > { %16866 = vst [vmem:[#allocation84_spill] sm:$0xff] %v10386_v17  ;;  %v10388_v29 = vld [vmem:[#allocation9 + $0xc48] sm:$0xff]  ;;  %v1426_v53 = vor.u32 %v10212_v21, %v10164_v59 }
 0x1aa   : > { %v16867_v13 = vld [vmem:[#allocation91_spill] sm:$0xff]  ;;  %5052 = vmatpush2.bf16.msra.mxu0 %v16869_v8  ;;  %5165 = vmatpush2.bf16.msra.mxu1 %v16873_v4  ;;  %v10453_v35 = vand.u32 8388607, %v16878_v31  ;;  %v16880_v4 = vld [vmem:[#allocation90_spill] sm:$0xff]  ;;  %v1429_v31 = vor.u32 %v10249_v38, %v10233_v16 }
 0x1ab   : > { %4900 = vmatmul.mubr.bf16.gmra.mxu0 %v16867_v13  ;;  %v10404_v27 = vld [vmem:[#allocation9 + $0xc68] sm:$0xff]  ;;  %v1438_v16 = vsel %vm1436_vm10, %v1426_v53, 2102212464 }
 0x1ac   : > { %v10406_v62 = vld [vmem:[#allocation9 + $0x808] sm:$0xff]  ;;  %5055 = vmatprep.mubr.bf16.mxu0 %v9741_v56 }
 0x1ad   : > { %v10408_v14 = vld [vmem:[#allocation9 + $0x828] sm:$0xff] }
 0x1ae   : > { %v16868_v57 = vld [vmem:[#allocation31_spill] sm:$0xff] }
 0x1af   : > { %5013 = vmatmul.mubr.bf16.gmra.mxu1 %v16868_v57  ;;  %v10421_v13 = vld [vmem:[#allocation9 + $0xc08] sm:$0xff]  ;;  %v16870_v57 = vand.u32 2147483647, %v16833_v18 }
 0x1b0   : > { %v10423_v55 = vld [vmem:[#allocation9 + $0xc28] sm:$0xff]  ;;  %5168 = vmatprep.mubr.bf16.mxu1 %v9743_v44 }
 0x1b1   : > { %v10425_v58 = vld [vmem:[#allocation9 + $0xbc8] sm:$0xff]  ;;  %vm10429_vm13 = vcmp.le.f32.partialorder %v16870_v57, 0.7853982  ;;  %v1379_v57 = vcvt.s32.f32 %v1372_v0  ;;  %v1441_v0 = vsel %vm1433_vm9, %v10147_v6, %v10160_v11 }
 0x1b2   : > { %v16874_v8 = vld [vmem:[#allocation87_spill] sm:$0xff]  ;;  %v1386_v12 = vsel %vm10429_vm13, 0, %v10306_v39  ;;  %v16895_v39 = vcombine.low %v9692_v45, %v9694_v10 }
 0x1b3   : > { %v16876_v36 = vcombine.high %v16874_v8, %v16875_v61  ;;  %v10445_v30 = vld [vmem:[#allocation9 + $0xbe8] sm:$0xff]  ;;  %v16884_v56 = vcombine.low %v16874_v8, %v16875_v61  ;;  %v16890_v8 = vmov 1326507024  }
 0x1b4   : > { %v10447_v25 = vld [vmem:[#allocation9 + $0xfc8] sm:$0xff]  ;;  %v1431_v44 = vshrl.u32 %v16890_v8, %v10013_v37  ;;  %v1442_v37 = vsel %vm1436_vm10, %v1429_v31, 920167782 }
 0x1b5   : > { %5053 = vmatprep.subr.bf16.mxu0 %v16876_v36  ;;  %v10449_v19 = vld [vmem:[#allocation9 + $0xfe8] sm:$0xff]  ;;  %v16879_v36 = vld [vmem:[#allocation89_spill] sm:$0xff] }
 0x1b6   : > { %16877 = vst [vmem:[#allocation87_spill] sm:$0xff] %v10449_v19  ;;  %v16881_v63 = vcombine.high %v16879_v36, %v16880_v4  ;;  %v10463_v26 = vld [vmem:[#allocation9 + $0xb88] sm:$0xff]  ;;  %5054 = vmatpush2.bf16.msra.mxu0 %v16884_v56  ;;  %v16885_v61 = vcombine.low %v16879_v36, %v16880_v4  ;;  %v16886_v56 = vcombine.high %v9692_v45, %v9694_v10  ;;  %v16888_v36 = vld [vmem:[#allocation33_spill] sm:$0xff]  ;;  %v16891_v19 = vld [vmem:[#allocation96_spill] sm:$0xff]  ;;  %v10546_v10 = vadd.s32 3, %v1386_v12 }
 0x1b7   : > { %16882 = vst [vmem:[#allocation88_spill] sm:$0xff] %v10463_v26  ;;  %v10465_v17 = vld [vmem:[#allocation9 + $0xba8] sm:$0xff]  ;;  %v16889_v4 = vcombine.high %v16887_v43, %v16888_v36  ;;  %v1432_v21 = vor.u32 %v1431_v44, %v10253_v23  ;;  %v16898_v26 = vld [vmem:[#allocation92_spill] sm:$0xff]  ;;  %v1439_v44 = vsel %vm1435_vm11, %v10160_v11, %v1438_v16  ;;  %v1443_v23 = vsel %vm1435_vm11, %v1426_v53, %v1442_v37 }
 0x1b8   : > { %5166 = vmatprep.subr.bf16.mxu1 %v16881_v63  ;;  %16883 = vst [vmem:[#allocation89_spill] sm:$0xff] %v10465_v17  ;;  %v10487_v2 = vld [vmem:[#allocation9 + $0xf88] sm:$0xff]  ;;  %5249 = vmatprep.subr.bf16.mxu0 %v16886_v56  ;;  %v1377_v56 = vand.u32 2147483647, %v1376_v7  ;;  %v16894_v7 = vld [vmem:[#allocation97_spill] sm:$0xff]  ;;  %v16896_v17 = vcombine.low %v16887_v43, %v16888_v36  ;;  %v1444_v37 = vsel %vm1434_vm12, %v1441_v0, %v1443_v23 }
 0x1b9   : > { %v10489_v63 = vld [vmem:[#allocation9 + $0xfa8] sm:$0xff]  ;;  %5167 = vmatpush2.bf16.msra.mxu1 %v16885_v61  ;;  %5056 = vmatmul.mubr.bf16.vlgmr.msra.gmra.mxu0 %v16891_v19  ;;  %v1437_v61 = vsel %vm1433_vm9, %v10070_v15, %v10147_v6  ;;  %v1515_v19 = vadd.s32 1, %v10150_v22  ;;  %v1445_v15 = vsel %vm1433_vm9, %v10160_v11, %v1426_v53  ;;  %v16900_v22 = vld [vmem:[#allocation93_spill] sm:$0xff]  ;;  %v1446_v11 = vsel %vm1436_vm10, %v1432_v21, 1326507024 }
 0x1ba   : > { %5362 = vmatprep.subr.bf16.mxu1 %v16889_v4  ;;  %v10516_v59 = vld [vmem:[#allocation9 + $0xb48] sm:$0xff]  ;;  %5250 = vmatpush1.bf16.msra.mxu0 %v16895_v39  ;;  %v10566_v16 = vmul.f32 %v1379_v57, %v1377_v56  ;;  %v1440_v21 = vsel %vm1434_vm12, %v1437_v61, %v1439_v44  ;;  %v16908_v23 = vcombine.low %v9731_v1, %v16900_v22  ;;  %v16919_v56 = vld [vmem:[#allocation110_spill] sm:$0xff] }
 0x1bb   : > { %16892 = vst [vmem:[#allocation90_spill] sm:$0xff] %v10516_v59  ;;  %v10518_v38 = vld [vmem:[#allocation9 + $0xb68] sm:$0xff]  ;;  %vm1516_vm14 = vcmp.gt.s32.totalorder %v1515_v19, 0 }
 0x1bc   : > { %16893 = vst [vmem:[#allocation32_spill] sm:$0xff] %v10518_v38  ;;  %5169 = vmatmul.mubr.bf16.vlgmr.msra.gmra.mxu1 %v16894_v7  ;;  %v16897_v7 = vld [vmem:[#allocation35_spill] sm:$0xff] }
 0x1bd   : > { %5363 = vmatpush1.bf16.msra.mxu1 %v16896_v17  ;;  %v16899_v45 = vcombine.high %v16897_v7, %v16898_v26  ;;  %v16901_v17 = vcombine.high %v9731_v1, %v16900_v22  ;;  %v16902_v6 = vld [vmem:[#allocation99_spill] sm:$0xff]  ;;  %5178 = vmatprep.mubr.bf16.mxu1 %v9811_v47  ;;  %v16907_v57 = vcombine.low %v16897_v7, %v16898_v26 }
 0x1be   : > { %5065 = vmatprep.mubr.bf16.mxu0 %v16902_v6  ;;  %v10562_v12 = vld [vmem:[#allocation9 + $0xf48] sm:$0xff] }
 0x1bf   : > { %5251 = vmatprep.subr.bf16.mxu0 %v16899_v45  ;;  %5364 = vmatprep.subr.bf16.mxu1 %v16901_v17  ;;  %16903 = vst [vmem:[#allocation33_spill] sm:$0xff] %v10562_v12  ;;  %v10564_v36 = vld [vmem:[#allocation9 + $0xf68] sm:$0xff]  ;;  %v1447_v45 = vsel %vm1435_vm11, %v1429_v31, %v1446_v11  ;;  %v10580_v17 = vmul.u32.u64.low %v10310_v32, %v1444_v37  ;;  %v10581_v43 = vmul.u32.u64.high %v10310_v32, %v1444_v37, %v10580_v17  ;;  %v1517_v31 = vsel %vm1516_vm14, %v1515_v19, 0 }
 0x1c0   : > { %16904 = vst [vmem:[#allocation35_spill] sm:$0xff] %v10564_v36  ;;  %v10573_v53 = vld [vmem:[#allocation9 + $0xb08] sm:$0xff]  ;;  %5252 = vmatpush1.bf16.msra.mxu0 %v16907_v57  ;;  %v1448_v0 = vsel %vm1434_vm12, %v1445_v15, %v1447_v45  ;;  %v16909_v37 = vcombine.high %v9760_v42, %v9762_v20  ;;  %v1519_v61 = vand.u32 31, %v1517_v31  ;;  %v10614_v15 = vshrl.u32 %v1517_v31, 5 }
 0x1c1   : > { %16905 = vst [vmem:[#allocation92_spill] sm:$0xff] %v10573_v53  ;;  %v10575_v39 = vld [vmem:[#allocation9 + $0xb28] sm:$0xff]  ;;  %5365 = vmatpush1.bf16.msra.mxu1 %v16908_v23  ;;  %v10602_v7 = vmul.u32.u64.low %v10310_v32, %v1448_v0  ;;  %v10603_v11 = vmul.u32.u64.high %v10310_v32, %v1448_v0, %v10602_v7  ;;  %5066 = vmatmul.mubr.bf16.gmra.mxu0 %v9813_v49  ;;  %v1456_v45 = vmul.u32 %v10310_v32, %v1440_v21  ;;  %v1459_v57 = vadd.s32 1, %v10581_v43  ;;  %v16911_v23 = vld [vmem:[#allocation101_spill] sm:$0xff]  ;;  %v16916_v21 = vld [vmem:[#allocation98_spill] sm:$0xff] }
 0x1c2   : > { %16906 = vst [vmem:[#allocation93_spill] sm:$0xff] %v10575_v39  ;;  %5253 = vmatprep.subr.bf16.mxu0 %v16909_v37  ;;  %5366 = vmatprep.subr.bf16.mxu1 %v16910_v28  ;;  %v1520_v0 = vsub.s32 32, %v1519_v61  ;;  %v16912_v37 = vcombine.low %v9760_v42, %v9762_v20  ;;  %v1522_v7 = vshll.u32 %v16628_v3, %v1519_v61  ;;  %v16913_v19 = vld [vmem:[#allocation47_spill] sm:$0xff]  ;;  %v1513_v42 = vor.u32 8388608, %v10453_v35 }
 0x1c3   : > { %v1525_v31 = vshll.u32 %v16763_v41, %v1519_v61  ;;  %v1528_v28 = vshll.u32 %v16767_v33, %v1519_v61  ;;  %v16914_v44 = vand.u32 2139095040, %v16913_v19  ;;  %v16915_v32 = vcombine.low %v9764_v34, %v9773_v52  ;;  %5075 = vmatprep.mubr.bf16.mxu0 %v16919_v56  ;;  %v10649_v35 = vld [vmem:[#allocation9 + $0xf08] sm:$0xff] }
 0x1c4   : > { %5179 = vmatmul.mubr.bf16.gmra.mxu1 %v16911_v23  ;;  %5254 = vmatpush1.bf16.msra.mxu0 %v16912_v37  ;;  %v16917_v1 = vcombine.high %v9775_v48, %v16916_v21  ;;  %vm1458_vm15 = vc.u32 %v10603_v11, %v10580_v17  ;;  %v1531_v20 = vshll.u32 %v16808_v50, %v1519_v61  ;;  %vm1537_vm0 = vcmp.lt.s32.totalorder %v10614_v15, 1  ;;  %v17009_v12 = vld [vmem:[#allocation143_spill] sm:$0xff] }
 0x1c5   : > { %v1613_v26 = vshrl.u32 %v16914_v44, 23  ;;  %5367 = vmatpush1.bf16.msra.mxu1 %v16915_v32  ;;  %v1534_v37 = vshll.u32 %v16824_v46, %v1519_v61  ;;  %v16918_v44 = vcombine.high %v9786_v5, %v9788_v40  ;;  %v1460_v34 = vsel %vm1458_vm15, %v1459_v57, %v10581_v43  ;;  %5188 = vmatprep.mubr.bf16.mxu1 %v9871_v24  ;;  %v10651_v32 = vld [vmem:[#allocation9 + $0xf28] sm:$0xff] }
 0x1c6   : > { %5255 = vmatprep.subr.bf16.mxu0 %v16917_v1  ;;  %v1523_v52 = vshrl.u32 %v16763_v41, %v1520_v0  ;;  %v1526_v1 = vshrl.u32 %v16767_v33, %v1520_v0  ;;  %16920 = vst [vmem:[#allocation47_spill] sm:$0xff] %v10649_v35  ;;  %16921 = vst [vmem:[#allocation98_spill] sm:$0xff] %v10651_v32  ;;  %v1461_v61 = vadd.s32 %v1460_v34, %v1456_v45  ;;  %v16924_v45 = vld [vmem:[#allocation102_spill] sm:$0xff]  ;;  %v16925_v34 = vld [vmem:[#allocation103_spill] sm:$0xff] }
 0x1c7   : > { %5368 = vmatprep.subr.bf16.mxu1 %v16918_v44  ;;  %v1529_v4 = vshrl.u32 %v16808_v50, %v1520_v0  ;;  %v1532_v44 = vshrl.u32 %v16824_v46, %v1520_v0  ;;  %v1535_v22 = vshrl.u32 %v16890_v8, %v1520_v0  ;;  %v16922_v43 = vcombine.low %v9775_v48, %v16916_v21  ;;  %v16927_v48 = vld [vmem:[#allocation104_spill] sm:$0xff]  ;;  %v16928_v21 = vld [vmem:[#allocation105_spill] sm:$0xff]  ;;  %v17076_v38 = vld [vmem:[#allocation159_spill] sm:$0xff] }
 0x1c8   : > { %v1524_v57 = vor.u32 %v1523_v52, %v1522_v7  ;;  %v1527_v56 = vor.u32 %v1526_v1, %v1525_v31  ;;  %vm1540_vm1 = vcmp.lt.s32.totalorder %v10614_v15, 4  ;;  %v7708_v24 = vadd.s32 4294967169, %v1613_v26  ;;  %v16931_v31 = vld [vmem:[#allocation112_spill] sm:$0xff]  ;;  %v16933_v1 = vld [vmem:[#allocation113_spill] sm:$0xff] }
 0x1c9   : > { %5256 = vmatpush1.bf16.msra.mxu0 %v16922_v43  ;;  %v16923_v23 = vcombine.low %v9786_v5, %v9788_v40  ;;  %v16926_v49 = vcombine.high %v16924_v45, %v16925_v34  ;;  %v1462_v47 = vadd.s32 536870912, %v1461_v61  ;;  %v1530_v6 = vor.u32 %v1529_v4, %v1528_v28  ;;  %v10674_v40 = vld [vmem:[#allocation9 + $0xac8] sm:$0xff]  ;;  %v16936_v43 = vld [vmem:[#allocation106_spill] sm:$0xff] }
 0x1ca   : > { %v1533_v39 = vor.u32 %v1532_v44, %v1531_v20  ;;  %vm1539_vm2 = vcmp.lt.s32.totalorder %v10614_v15, 3  ;;  %v16929_v7 = vcombine.high %v16927_v48, %v16928_v21  ;;  %16930 = vst [vmem:[#allocation102_spill] sm:$0xff] %v10674_v40  ;;  %5076 = vmatmul.mubr.bf16.gmra.mxu0 %v16931_v31  ;;  %v10678_v4 = vld [vmem:[#allocation9 + $0xae8] sm:$0xff]  ;;  %v10681_v28 = vand.u32 3, %v10546_v10  ;;  %v16986_v40 = vld [vmem:[#allocation129_spill] sm:$0xff] }
 0x1cb   : > { %5369 = vmatpush1.bf16.msra.mxu1 %v16923_v23  ;;  %5257 = vmatprep.subr.bf16.mxu0 %v16926_v49  ;;  %v1521_v23 = vshrl.u32 %v16628_v3, %v1520_v0  ;;  %v1536_v49 = vor.u32 %v1535_v22, %v1534_v37  ;;  %16932 = vst [vmem:[#allocation103_spill] sm:$0xff] %v10678_v4  ;;  %v10683_v20 = vshrl.u32 %v1462_v47, 30  ;;  %vm1538_vm3 = vcmp.lt.s32.totalorder %v10614_v15, 2  ;;  %v16962_v4 = vld [vmem:[#allocation124_spill] sm:$0xff] }
 0x1cc   : > { %5370 = vmatprep.subr.bf16.mxu1 %v16929_v7  ;;  %v1546_v52 = vsel %vm1540_vm1, %v1533_v39, 920167782  ;;  %5189 = vmatmul.mubr.bf16.gmra.mxu1 %v16933_v1  ;;  %v16934_v0 = vcombine.low %v16924_v45, %v16925_v34  ;;  %v1542_v22 = vsel %vm1540_vm1, %v1530_v6, 2102212464  ;;  %v1545_v10 = vsel %vm1537_vm0, %v1524_v57, %v1527_v56  ;;  %v16937_v7 = vld [vmem:[#allocation107_spill] sm:$0xff]  ;;  %v16945_v1 = vld [vmem:[#allocation44_spill] sm:$0xff] }
 0x1cd   : > { %v1547_v47 = vsel %vm1539_vm2, %v1530_v6, %v1546_v52  ;;  %v1619_v37 = vadd.s32 1, %v7708_v24  ;;  %v16935_v44 = vcombine.low %v16927_v48, %v16928_v21  ;;  %v16938_v26 = vcombine.high %v16936_v43, %v16937_v7  ;;  %v10704_v45 = vld [vmem:[#allocation9 + $0xec8] sm:$0xff]  ;;  %v16942_v52 = vld [vmem:[#allocation108_spill] sm:$0xff]  ;;  %5085 = vmatprep.mubr.bf16.mxu0 %v16945_v1 }
 0x1ce   : > { %5258 = vmatpush1.bf16.msra.mxu0 %v16934_v0  ;;  %16939 = vst [vmem:[#allocation104_spill] sm:$0xff] %v10704_v45  ;;  %v10706_v34 = vld [vmem:[#allocation9 + $0xee8] sm:$0xff]  ;;  %v16941_v0 = vxor.u32 2147483648, %v10566_v16  ;;  %v1464_v24 = vshll.u32 %v10683_v20, 30  ;;  %v1549_v48 = vsel %vm1537_vm0, %v1527_v56, %v1530_v6  ;;  %v10716_v21 = vshll.u32 %v1513_v42, 8  ;;  %v16946_v42 = vld [vmem:[#allocation122_spill] sm:$0xff] }
 0x1cf   : > { %5371 = vmatpush1.bf16.msra.mxu1 %v16935_v44  ;;  %5259 = vmatprep.subr.bf16.mxu0 %v16938_v26  ;;  %16940 = vst [vmem:[#allocation105_spill] sm:$0xff] %v10706_v34  ;;  %v16943_v44 = vld [vmem:[#allocation109_spill] sm:$0xff]  ;;  %v1550_v6 = vsel %vm1540_vm1, %v1536_v49, 1326507024  ;;  %v1548_v1 = vsel %vm1538_vm3, %v1545_v10, %v1547_v47  ;;  %v16947_v32 = vcombine.low %v16936_v43, %v16937_v7  ;;  %vm1620_vm4 = vcmp.gt.s32.totalorder %v1619_v37, 0  ;;  %v10759_v47 = vld [vmem:[#allocation9 + $0xe88] sm:$0xff] }
 0x1d0   : > { %v1382_v5 = vsel %vm1299_vm8, %v16941_v0, %v10566_v16  ;;  %v16944_v26 = vcombine.high %v16942_v52, %v16943_v44  ;;  %v1541_v16 = vsel %vm1537_vm0, %v1521_v23, %v1524_v57  ;;  %5198 = vmatprep.mubr.bf16.mxu1 %v16946_v42  ;;  %v10731_v0 = vsub.s32 %v1461_v61, %v1464_v24  ;;  %v10744_v23 = vld [vmem:[#allocation9 + $0xa88] sm:$0xff]  ;;  %v16956_v24 = vld [vmem:[#allocation116_spill] sm:$0xff] }
 0x1d1   : > { %v1551_v31 = vsel %vm1539_vm2, %v1533_v39, %v1550_v6  ;;  %16948 = vst [vmem:[#allocation106_spill] sm:$0xff] %v10744_v23  ;;  %v10746_v61 = vld [vmem:[#allocation9 + $0xaa8] sm:$0xff]  ;;  %v16950_v39 = vcombine.low %v16942_v52, %v16943_v44  ;;  %16954 = vst [vmem:[#allocation108_spill] sm:$0xff] %v10759_v47  ;;  %vm1393_vm14 = vcmp.eq.s32.totalorder %v10681_v28, 0  ;;  %vm1396_vm15 = vcmp.eq.s32.totalorder %v10681_v28, 2 }
 0x1d2   : > { %5372 = vmatprep.subr.bf16.mxu1 %v16944_v26  ;;  %v1543_v26 = vsel %vm1539_vm2, %v1527_v56, %v1542_v22  ;;  %5260 = vmatpush1.bf16.msra.mxu0 %v16947_v32  ;;  %16949 = vst [vmem:[#allocation107_spill] sm:$0xff] %v10746_v61  ;;  %v1385_v56 = vsel %vm10429_vm13, %v16833_v18, %v1382_v5  ;;  %v16951_v32 = vld [vmem:[#allocation114_spill] sm:$0xff]  ;;  %v16952_v22 = vld [vmem:[#allocation115_spill] sm:$0xff]  ;;  %v1467_v7 = vsub.s32 0, %v10731_v0  ;;  %vm1507_vm13 = vcmp.lt.s32.totalorder %v9334_v60, 0 }
 0x1d3   : > { %v1552_v49 = vsel %vm1538_vm3, %v1549_v48, %v1551_v31  ;;  %5373 = vmatpush1.bf16.msra.mxu1 %v16950_v39  ;;  %v16953_v10 = vcombine.high %v16951_v32, %v16952_v22  ;;  %v10761_v43 = vld [vmem:[#allocation9 + $0xea8] sm:$0xff]  ;;  %v16957_v48 = vld [vmem:[#allocation117_spill] sm:$0xff]  ;;  %v1544_v39 = vsel %vm1538_vm3, %v1541_v16, %v1543_v26  ;;  %v16963_v15 = vcombine.low %v16951_v32, %v16952_v22 }
 0x1d4   : > { %16955 = vst [vmem:[#allocation109_spill] sm:$0xff] %v10761_v43  ;;  %v10765_v54 = vmul.u32.u64.low %v10716_v21, %v1552_v49  ;;  %v10766_v5 = vmul.u32.u64.high %v10716_v21, %v1552_v49, %v10765_v54  ;;  %v16958_v52 = vcombine.high %v16956_v24, %v16957_v48  ;;  %v10772_v44 = vld [vmem:[#allocation9 + $0xa48] sm:$0xff]  ;;  %v1621_v49 = vsel %vm1620_vm4, %v1619_v37, 0  ;;  %5199 = vmatmul.mubr.bf16.gmra.mxu1 %v16962_v4  ;;  %v16968_v37 = vld [vmem:[#allocation120_spill] sm:$0xff]  ;;  %v16971_v16 = vld [vmem:[#allocation53_spill] sm:$0xff] }
 0x1d5   : > { %5261 = vmatprep.subr.bf16.mxu0 %v16953_v10  ;;  %16959 = vst [vmem:[#allocation114_spill] sm:$0xff] %v10772_v44  ;;  %v10774_v6 = vld [vmem:[#allocation9 + $0xa68] sm:$0xff]  ;;  %v10779_v10 = vmul.u32.u64.low %v10716_v21, %v1548_v1  ;;  %v10780_v57 = vmul.u32.u64.high %v10716_v21, %v1548_v1, %v10779_v10  ;;  %v7701_v42 = vmin.u32 %v1467_v7, %v10731_v0  ;;  %v1623_v18 = vand.u32 31, %v1621_v49  ;;  %v16965_v7 = vld [vmem:[#allocation118_spill] sm:$0xff]  ;;  %v16969_v1 = vld [vmem:[#allocation121_spill] sm:$0xff] }
 0x1d6   : > { %5374 = vmatprep.subr.bf16.mxu1 %v16958_v52  ;;  %16960 = vst [vmem:[#allocation115_spill] sm:$0xff] %v10774_v6  ;;  %v16961_v54 = vld [vmem:[#allocation123_spill] sm:$0xff]  ;;  %5262 = vmatpush1.bf16.msra.mxu0 %v16963_v15  ;;  %8390 = vcosq.f32 %v1385_v56  ;;  %v16964_v26 = vcombine.low %v16956_v24, %v16957_v48  ;;  %v1560_v15 = vmul.u32 %v10716_v21, %v1544_v39  ;;  %v10822_v39 = vshrl.u32 %v1621_v49, 5  ;;  %v16977_v49 = vld [vmem:[#allocation126_spill] sm:$0xff] }
 0x1d7   : > { %5086 = vmatmul.mubr.bf16.gmra.mxu0 %v16961_v54  ;;  %v16966_v52 = vld [vmem:[#allocation119_spill] sm:$0xff]  ;;  %8392 = vsinq.f32 %v1385_v56  ;;  %v1469_v22 = vclz %v7701_v42  ;;  %v16970_v4 = vcombine.high %v16968_v37, %v16969_v1  ;;  %vm1562_vm5 = vc.u32 %v10766_v5, %v10779_v10  ;;  %v16973_v56 = vld [vmem:[#allocation133_spill] sm:$0xff]  ;;  %v17073_v6 = vld [vmem:[#allocation78_spill] sm:$0xff] }
 0x1d8   : > { %5375 = vmatpush1.bf16.msra.mxu1 %v16964_v26  ;;  %v16967_v31 = vcombine.high %v16965_v7, %v16966_v52  ;;  %5095 = vmatprep.mubr.bf16.mxu0 %v16971_v16  ;;  %v1563_v24 = vadd.s32 1, %v10780_v57  ;;  %v1624_v26 = vsub.s32 32, %v1623_v18  ;;  %v1457_v21 = vadd.s32 %v10580_v17, %v10603_v11  ;;  %v16976_v11 = vld [vmem:[#allocation125_spill] sm:$0xff]  ;;  %v16983_v34 = vld [vmem:[#allocation135_spill] sm:$0xff] }
 0x1d9   : > { %5376 = vmatprep.subr.bf16.mxu1 %v16970_v4  ;;  %5208 = vmatprep.mubr.bf16.mxu1 %v16973_v56  ;;  %v7702_v42 = vadd.s32 4294967294, %v1469_v22  ;;  %v1626_v4 = vshll.u32 %v16628_v3, %v1623_v18  ;;  %v16974_v32 = vcombine.low %v16965_v7, %v16966_v52  ;;  %v1629_v54 = vshll.u32 %v16763_v41, %v1623_v18  ;;  %v16979_v7 = vld [vmem:[#allocation127_spill] sm:$0xff] }
 0x1da   : > { %5263 = vmatprep.subr.bf16.mxu0 %v16967_v31  ;;  %v16972_v31 = vand.u32 2147483647, %v16913_v19  ;;  %v1564_v16 = vsel %vm1562_vm5, %v1563_v24, %v10780_v57  ;;  %v1630_v56 = vshrl.u32 %v16767_v33, %v1624_v26  ;;  %v16975_v17 = vcombine.low %v16968_v37, %v16969_v1  ;;  %v16982_v37 = vld [vmem:[#allocation134_spill] sm:$0xff] }
 0x1db   : > { %5264 = vmatpush1.bf16.msra.mxu0 %v16974_v32  ;;  %v16978_v22 = vcombine.high %v16976_v11, %v16977_v49  ;;  %vm7703_vm6 = vcmp.lt.s32.totalorder %v7702_v42, 0  ;;  %v1565_v43 = vadd.s32 %v1564_v16, %v1560_v15  ;;  %v1632_v52 = vshll.u32 %v16767_v33, %v1623_v18  ;;  %v16980_v32 = vld [vmem:[#allocation128_spill] sm:$0xff] }
 0x1dc   : > { %v10817_v48 = vand.u32 8388607, %v16972_v31  ;;  %v1627_v31 = vshrl.u32 %v16763_v41, %v1624_v26  ;;  %5377 = vmatpush1.bf16.msra.mxu1 %v16975_v17  ;;  %v1635_v57 = vshll.u32 %v16808_v50, %v1623_v18  ;;  %v16981_v24 = vcombine.high %v16979_v7, %v16980_v32 }
 0x1dd   : > { %5265 = vmatprep.subr.bf16.mxu0 %v16978_v22  ;;  %v1472_v47 = vsel %vm7703_vm6, 0, %v7702_v42  ;;  %v1633_v23 = vshrl.u32 %v16808_v50, %v1624_v26  ;;  %v1636_v1 = vshrl.u32 %v16824_v46, %v1624_v26  ;;  %v1566_v15 = vadd.s32 536870912, %v1565_v43  ;;  %5209 = vmatmul.mubr.bf16.gmra.mxu1 %v16983_v34 }
 0x1de   : > { %5378 = vmatprep.subr.bf16.mxu1 %v16981_v24  ;;  %v1628_v61 = vor.u32 %v1627_v31, %v1626_v4  ;;  %v1473_v17 = vsub.s32 32, %v1472_v47  ;;  %v1474_v22 = vshll.u32 %v10731_v0, %v1472_v47  ;;  %v1477_v16 = vsub.s32 4294967266, %v1472_v47  ;;  %v16987_v0 = vld [vmem:[#allocation130_spill] sm:$0xff] }
 0x1df   : > { %5096 = vmatmul.mubr.bf16.gmra.mxu0 %v16982_v37  ;;  %v16984_v45 = vcombine.low %v16976_v11, %v16977_v49  ;;  %v1617_v42 = vor.u32 8388608, %v10817_v48  ;;  %v1631_v4 = vor.u32 %v1630_v56, %v1629_v54  ;;  %v1637_v31 = vor.u32 %v1636_v1, %v1635_v57  ;;  %v16989_v11 = vld [vmem:[#allocation131_spill] sm:$0xff]  ;;  %v16990_v48 = vld [vmem:[#allocation132_spill] sm:$0xff] }
 0x1e0   : > { %v1638_v24 = vshll.u32 %v16824_v46, %v1623_v18  ;;  %v16985_v37 = vcombine.low %v16979_v7, %v16980_v32  ;;  %v16988_v47 = vcombine.high %v16986_v40, %v16987_v0  ;;  %v1475_v35 = vshrl.u32 %v1457_v21, %v1473_v17  ;;  %v16992_v56 = vld [vmem:[#allocation140_spill] sm:$0xff]  ;;  %v16993_v18 = vld [vmem:[#allocation45_spill] sm:$0xff] }
 0x1e1   : > { %5266 = vmatpush2.bf16.msra.mxu0 %v16984_v45  ;;  %v1478_v34 = vadd.s32 127, %v1477_v16  ;;  %v10859_v53 = vshrl.u32 %v1566_v15, 30  ;;  %v1639_v45 = vshrl.u32 %v16890_v8, %v1624_v26  ;;  %v16991_v54 = vcombine.high %v16989_v11, %v16990_v48  ;;  %5105 = vmatprep.mubr.bf16.mxu0 %v16992_v56  ;;  %v16994_v21 = vld [vmem:[#allocation141_spill] sm:$0xff] }
 0x1e2   : > { %5379 = vmatpush2.bf16.msra.mxu1 %v16985_v37  ;;  %5267 = vmatprep.subr.bf16.mxu0 %v16988_v47  ;;  %vm1403_vm7 = vcmp.lt.s32.totalorder %v16993_v18, 0  ;;  %v1625_v49 = vshrl.u32 %v16628_v3, %v1624_v26  ;;  %v1634_v57 = vor.u32 %v1633_v23, %v1632_v52  ;;  %vm1641_vm8 = vcmp.lt.s32.totalorder %v10822_v39, 1 }
 0x1e3   : > { %5380 = vmatprep.subr.bf16.mxu1 %v16991_v54  ;;  %vm1644_vm9 = vcmp.lt.s32.totalorder %v10822_v39, 4  ;;  %5218 = vmatprep.mubr.bf16.mxu1 %v16994_v21  ;;  %v16995_v7 = vand.u32 2147483647, %v16993_v18  ;;  %v1476_v1 = vor.u32 %v1475_v35, %v1474_v22  ;;  %v1479_v37 = vshll.u32 %v1478_v34, 23  ;;  %v10887_v15 = vpop.eup %8390  ;;  %v17000_v34 = vld [vmem:[#allocation136_spill] sm:$0xff]  ;;  %v17001_v22 = vld [vmem:[#allocation137_spill] sm:$0xff] }
 0x1e4   : > { %v1568_v17 = vshll.u32 %v10859_v53, 30  ;;  %vm1643_vm11 = vcmp.lt.s32.totalorder %v10822_v39, 3  ;;  %v16998_v23 = vcombine.low %v16986_v40, %v16987_v0  ;;  %v1640_v26 = vor.u32 %v1639_v45, %v1638_v24  ;;  %v10899_v54 = vpop.eup %8392 }
 0x1e5   : > { %vm10873_vm10 = vcmp.le.f32.partialorder %v16995_v7, 0.7853982  ;;  %vm1642_vm12 = vcmp.lt.s32.totalorder %v10822_v39, 2  ;;  %v1646_v52 = vsel %vm1644_vm9, %v1634_v57, 2102212464  ;;  %v16999_v35 = vcombine.low %v16989_v11, %v16990_v48  ;;  %v17003_v7 = vld [vmem:[#allocation55_spill] sm:$0xff]  ;;  %5219 = vmatmul.mubr.bf16.gmra.mxu1 %v17009_v12 }
 0x1e6   : > { %5268 = vmatpush2.bf16.msra.mxu0 %v16998_v23  ;;  %v1650_v16 = vsel %vm1644_vm9, %v1637_v31, 920167782  ;;  %v17002_v47 = vcombine.high %v17000_v34, %v17001_v22  ;;  %v1480_v40 = vor.u32 4788187, %v1479_v37  ;;  %v1483_v24 = vcvt.s32.f32 %v1476_v1  ;;  %v17004_v23 = vld [vmem:[#allocation56_spill] sm:$0xff]  ;;  %v17012_v12 = vld [vmem:[#allocation138_spill] sm:$0xff] }
 0x1e7   : > { %5381 = vmatpush2.bf16.msra.mxu1 %v16999_v35  ;;  %v10895_v0 = vsub.s32 %v1565_v43, %v1568_v17  ;;  %v1649_v45 = vsel %vm1641_vm8, %v1628_v61, %v1631_v4  ;;  %v17005_v21 = vcombine.high %v17003_v7, %v17004_v23  ;;  %v1651_v48 = vsel %vm1643_vm11, %v1634_v57, %v1650_v16  ;;  %v17006_v1 = vld [vmem:[#allocation48_spill] sm:$0xff]  ;;  %v17008_v17 = vld [vmem:[#allocation142_spill] sm:$0xff] }
 0x1e8   : > { %5269 = vmatprep.subr.bf16.mxu0 %v17002_v47  ;;  %v10908_v35 = vshll.u32 %v1617_v42, 8  ;;  %v17007_v43 = vand.u32 2139095040, %v17006_v1  ;;  %5106 = vmatmul.mubr.bf16.gmra.mxu0 %v17008_v17  ;;  %v1481_v47 = vand.u32 2147483647, %v1480_v40  ;;  %v1487_v56 = vsub.s32 4, %v10683_v20  ;;  %v17013_v17 = vld [vmem:[#allocation57_spill] sm:$0xff] }
 0x1e9   : > { %5382 = vmatprep.subr.bf16.mxu1 %v17005_v21  ;;  %v1571_v36 = vsub.s32 0, %v10895_v0  ;;  %v1653_v21 = vsel %vm1641_vm8, %v1631_v4, %v1634_v57  ;;  %v17010_v16 = vcombine.low %v17000_v34, %v17001_v22  ;;  %v1645_v42 = vsel %vm1641_vm8, %v1625_v49, %v1628_v61  ;;  %v17015_v49 = vld [vmem:[#allocation61_spill] sm:$0xff] }
 0x1ea   : > { %v1717_v37 = vshrl.u32 %v17007_v43, 23  ;;  %v1647_v43 = vsel %vm1643_vm11, %v1631_v4, %v1646_v52  ;;  %v1652_v40 = vsel %vm1642_vm12, %v1649_v45, %v1651_v48  ;;  %v1654_v11 = vsel %vm1644_vm9, %v1640_v26, 1326507024  ;;  %v17016_v52 = vld [vmem:[#allocation139_spill] sm:$0xff]  ;;  %v17018_v26 = vld [vmem:[#allocation144_spill] sm:$0xff] }
 0x1eb   : > { %5270 = vmatpush2.bf16.msra.mxu0 %v17010_v16  ;;  %v17011_v57 = vcombine.low %v17003_v7, %v17004_v23  ;;  %v17014_v34 = vcombine.high %v17012_v12, %v17013_v17  ;;  %v1484_v22 = vmul.f32 %v1483_v24, %v1481_v47  ;;  %v7705_v61 = vmin.u32 %v1571_v36, %v10895_v0  ;;  %v17019_v47 = vld [vmem:[#allocation145_spill] sm:$0xff] }
 0x1ec   : > { %v1655_v4 = vsel %vm1643_vm11, %v1637_v31, %v1654_v11  ;;  %v17017_v45 = vcombine.high %v17015_v49, %v17016_v52  ;;  %5115 = vmatprep.mubr.bf16.mxu0 %v17018_v26  ;;  %v10946_v23 = vmul.u32.u64.low %v10908_v35, %v1652_v40  ;;  %v10947_v48 = vmul.u32.u64.high %v10908_v35, %v1652_v40, %v10946_v23  ;;  %5228 = vmatprep.mubr.bf16.mxu1 %v17019_v47 }
 0x1ed   : > { %5383 = vmatpush2.bf16.msra.mxu1 %v17011_v57  ;;  %5271 = vmatprep.subr.bf16.mxu0 %v17014_v34  ;;  %v1656_v7 = vsel %vm1642_vm12, %v1653_v21, %v1655_v4  ;;  %v7712_v24 = vadd.s32 4294967169, %v1717_v37  ;;  %v1485_v36 = vxor.u32 2147483648, %v1484_v22  ;;  %v1488_v31 = vsel %vm1403_vm7, %v1487_v56, %v10683_v20  ;;  %v17084_v21 = vld [vmem:[#allocation161_spill] sm:$0xff] }
 0x1ee   : > { %5384 = vmatprep.subr.bf16.mxu1 %v17017_v45  ;;  %v17020_v11 = vand.u32 2147483647, %v9334_v60  ;;  %v1573_v16 = vclz %v7705_v61  ;;  %v1648_v37 = vsel %vm1642_vm12, %v1645_v42, %v1647_v43  ;;  %v17023_v40 = vcombine.low %v17012_v12, %v17013_v17  ;;  %v17025_v61 = vld [vmem:[#allocation62_spill] sm:$0xff]  ;;  %v17026_v45 = vld [vmem:[#allocation63_spill] sm:$0xff] }
 0x1ef   : > { %v1397_v57 = vxor.u32 2147483648, %v10887_v15  ;;  %v1591_v34 = vsub.s32 4, %v10859_v53  ;;  %v10970_v20 = vmul.u32.u64.low %v10908_v35, %v1656_v7  ;;  %v10971_v56 = vmul.u32.u64.high %v10908_v35, %v1656_v7, %v10970_v20 }
 0x1f0   : > { %vm10958_vm0 = vcmp.le.f32.partialorder %v17020_v11, 0.7853982  ;;  %5272 = vmatpush2.bf16.msra.mxu0 %v17023_v40  ;;  %v17024_v4 = vcombine.low %v17015_v49, %v17016_v52  ;;  %v17027_v39 = vcombine.high %v17025_v61, %v17026_v45  ;;  %v1394_v42 = vxor.u32 2147483648, %v10899_v54  ;;  %v17028_v11 = vld [vmem:[#allocation68_spill] sm:$0xff]  ;;  %v17029_v40 = vld [vmem:[#allocation69_spill] sm:$0xff] }
 0x1f1   : > { %v1486_v12 = vsel %vm1403_vm7, %v1485_v36, %v1484_v22  ;;  %v7706_v17 = vadd.s32 4294967294, %v1573_v16  ;;  %v1723_v43 = vadd.s32 1, %v7712_v24  ;;  %v17030_v47 = vcombine.high %v17028_v11, %v17029_v40  ;;  %v17044_v24 = vld [vmem:[#allocation152_spill] sm:$0xff] }
 0x1f2   : > { %5385 = vmatpush2.bf16.msra.mxu1 %v17024_v4  ;;  %5273 = vmatprep.subr.bf16.mxu0 %v17027_v39  ;;  %v1489_v49 = vsel %vm10873_vm10, %v16993_v18, %v1486_v12  ;;  %v1490_v52 = vsel %vm10873_vm10, 0, %v1488_v31  ;;  %v1664_v7 = vmul.u32 %v10908_v35, %v1648_v37  ;;  %v1667_v20 = vadd.s32 1, %v10947_v48  ;;  %v17031_v4 = vld [vmem:[#allocation149_spill] sm:$0xff]  ;;  %v17036_v31 = vld [vmem:[#allocation147_spill] sm:$0xff] }
 0x1f3   : > { %5386 = vmatprep.subr.bf16.mxu1 %v17030_v47  ;;  %5116 = vmatmul.mubr.bf16.gmra.mxu0 %v17031_v4  ;;  %v1561_v22 = vadd.s32 %v10779_v10, %v10766_v5  ;;  %vm7707_vm1 = vcmp.lt.s32.totalorder %v7706_v17, 0  ;;  %vm1724_vm2 = vcmp.gt.s32.totalorder %v1723_v43, 0  ;;  %v17032_v47 = vld [vmem:[#allocation150_spill] sm:$0xff]  ;;  %v17033_v36 = vcombine.low %v17025_v61, %v17026_v45  ;;  %v11011_v37 = vld [vmem:[#allocation9 + $0xe48] sm:$0xff] }
 0x1f4   : > { %5229 = vmatmul.mubr.bf16.gmra.mxu1 %v17032_v47  ;;  %8394 = vcosq.f32 %v1489_v49  ;;  %v1576_v32 = vsel %vm7707_vm1, 0, %v7706_v17  ;;  %v1592_v35 = vsel %vm1507_vm13, %v1591_v34, %v10859_v53  ;;  %vm1666_vm3 = vc.u32 %v10971_v56, %v10946_v23  ;;  %v17035_v10 = vld [vmem:[#allocation146_spill] sm:$0xff]  ;;  %17038 = vst [vmem:[#allocation116_spill] sm:$0xff] %v11011_v37  ;;  %v11013_v61 = vld [vmem:[#allocation9 + $0xe68] sm:$0xff]  ;;  %v17040_v34 = vld [vmem:[#allocation148_spill] sm:$0xff] }
 0x1f5   : > { %5274 = vmatpush2.bf16.msra.mxu0 %v17033_v36  ;;  %v17034_v5 = vcombine.low %v17028_v11, %v17029_v40  ;;  %v17037_v16 = vcombine.high %v17035_v10, %v17036_v31  ;;  %17039 = vst [vmem:[#allocation117_spill] sm:$0xff] %v11013_v61  ;;  %v1577_v45 = vsub.s32 32, %v1576_v32  ;;  %v1578_v39 = vshll.u32 %v10895_v0, %v1576_v32  ;;  %v17041_v17 = vld [vmem:[#allocation151_spill] sm:$0xff]  ;;  %v17043_v11 = vld [vmem:[#allocation73_spill] sm:$0xff] }
 0x1f6   : > { %v1581_v12 = vsub.s32 4294967266, %v1576_v32  ;;  %v1668_v53 = vsel %vm1666_vm3, %v1667_v20, %v10947_v48  ;;  %v17042_v36 = vcombine.high %v17040_v34, %v17041_v17  ;;  %5125 = vmatprep.mubr.bf16.mxu0 %v17043_v11  ;;  %8396 = vsinq.f32 %v1489_v49  ;;  %5238 = vmatprep.mubr.bf16.mxu1 %v17044_v24  ;;  %v17055_v20 = vld [vmem:[#allocation75_spill] sm:$0xff] }
 0x1f7   : > { %5387 = vmatpush2.bf16.msra.mxu1 %v17034_v5  ;;  %5275 = vmatprep.subr.bf16.mxu0 %v17037_v16  ;;  %v1494_v40 = vadd.s32 3, %v1490_v52  ;;  %v1669_v5 = vadd.s32 %v1668_v53, %v1664_v7  ;;  %v1725_v16 = vsel %vm1724_vm2, %v1723_v43, 0  ;;  %v1579_v47 = vshrl.u32 %v1561_v22, %v1577_v45  ;;  %v17048_v22 = vld [vmem:[#allocation70_spill] sm:$0xff]  ;;  %v17049_v45 = vld [vmem:[#allocation71_spill] sm:$0xff] }
 0x1f8   : > { %5388 = vmatprep.subr.bf16.mxu1 %v17042_v36  ;;  %v1582_v4 = vadd.s32 127, %v1581_v12  ;;  %v17045_v0 = vand.u32 2147483647, %v17006_v1  ;;  %v1727_v26 = vand.u32 31, %v1725_v16  ;;  %v17046_v48 = vcombine.low %v17035_v10, %v17036_v31  ;;  %v17051_v36 = vld [vmem:[#allocation72_spill] sm:$0xff]  ;;  %v17075_v18 = vld [vmem:[#allocation79_spill] sm:$0xff] }
 0x1f9   : > { %v1594_v43 = vsel %vm10958_vm0, 0, %v1592_v35  ;;  %v1670_v52 = vadd.s32 536870912, %v1669_v5  ;;  %v17047_v7 = vcombine.low %v17040_v34, %v17041_v17  ;;  %v17050_v12 = vcombine.high %v17048_v22, %v17049_v45 }
 0x1fa   : > { %v1720_v32 = vand.u32 8388607, %v17045_v0  ;;  %5276 = vmatpush2.bf16.msra.mxu0 %v17046_v48  ;;  %v1580_v10 = vor.u32 %v1579_v47, %v1578_v39  ;;  %v1583_v31 = vshll.u32 %v1582_v4, 23  ;;  %vm1611_vm4 = vcmp.lt.s32.totalorder %v16913_v19, 0  ;;  %v17052_v0 = vld [vmem:[#allocation153_spill] sm:$0xff]  ;;  %v17054_v47 = vld [vmem:[#allocation74_spill] sm:$0xff] }
 0x1fb   : > { %5389 = vmatpush2.bf16.msra.mxu1 %v17047_v7  ;;  %5277 = vmatprep.subr.bf16.mxu0 %v17050_v12  ;;  %v1728_v53 = vsub.s32 32, %v1727_v26  ;;  %v17053_v48 = vcombine.high %v17051_v36, %v17052_v0  ;;  %v11047_v35 = vsel %vm1393_vm14, %v10887_v15, %v1394_v42  ;;  %v11052_v34 = vsel %vm1396_vm15, %v1397_v57, %v10899_v54  ;;  %v17137_v54 = vld [vmem:[#allocation46_spill] sm:$0xff] }
 0x1fc   : > { %v11054_v17 = vand.u32 3, %v1494_v40  ;;  %v1671_v4 = vshrl.u32 %v1670_v52, 30  ;;  %5126 = vmatmul.mubr.bf16.gmra.mxu0 %v17054_v47  ;;  %v1584_v39 = vor.u32 4788187, %v1583_v31  ;;  %v1587_v7 = vcvt.s32.f32 %v1580_v10  ;;  %5239 = vmatmul.mubr.bf16.gmra.mxu1 %v17055_v20  ;;  %v17068_v52 = vld [vmem:[#allocation19_spill] sm:$0xff] }
 0x1fd   : > { %5390 = vmatprep.subr.bf16.mxu1 %v17053_v48  ;;  %v11057_v12 = vadd.s32 3, %v1594_v43  ;;  %v1721_v48 = vor.u32 8388608, %v1720_v32  ;;  %v17056_v15 = vcombine.low %v17048_v22, %v17049_v45  ;;  %v17057_v42 = vand.u32 2147483647, %v16913_v19  ;;  %v17060_v32 = vld [vmem:[#allocation50_spill] sm:$0xff]  ;;  %v17063_v45 = vld [vmem:[#allocation155_spill] sm:$0xff]  ;;  %5281 = vmatprep.mubr.bf16.mxu0 %v17068_v52 }
 0x1fe   : > { %v11071_v57 = vadd.s32 %v10946_v23, %v10971_v56  ;;  %v1672_v40 = vshll.u32 %v1671_v4, 30  ;;  %v11073_v43 = vshrl.u32 %v1725_v16, 5  ;;  %v17061_v10 = vcombine.low %v17051_v36, %v17052_v0  ;;  %v17062_v22 = vld [vmem:[#allocation154_spill] sm:$0xff]  ;;  %v17065_v56 = vld [vmem:[#allocation156_spill] sm:$0xff]  ;;  %v17066_v16 = vld [vmem:[#allocation157_spill] sm:$0xff] }
 0x1ff   : > { %5278 = vmatpush2.bf16.msra.mxu0 %v17056_v15  ;;  %vm11065_vm5 = vcmp.le.f32.partialorder %v17057_v42, 0.7853982  ;;  %v17064_v31 = vcombine.high %v17062_v22, %v17063_v45  ;;  %v1585_v15 = vand.u32 2147483647, %v1584_v39  ;;  %v1730_v42 = vshll.u32 %v16628_v3, %v1727_v26  ;;  %v17069_v39 = vld [vmem:[#allocation20_spill] sm:$0xff] }
 0x200   : > { %5391 = vmatpush2.bf16.msra.mxu1 %v17061_v10  ;;  %v1736_v49 = vshll.u32 %v16767_v33, %v1727_v26  ;;  %v1737_v23 = vshrl.u32 %v16808_v50, %v1728_v53  ;;  %v17067_v20 = vcombine.high %v17065_v56, %v17066_v16  ;;  %v11089_v47 = vsub.s32 %v1669_v5, %v1672_v40 }
 0x201   : > { %5279 = vmatprep.subr.bf16.mxu0 %v17064_v31  ;;  %v1695_v36 = vsub.s32 4, %v1671_v4  ;;  %v1731_v0 = vshrl.u32 %v16763_v41, %v1728_v53  ;;  %v1733_v10 = vshll.u32 %v16763_v41, %v1727_v26  ;;  %5394 = vmatprep.mubr.bf16.mxu1 %v17069_v39  ;;  %v1588_v31 = vmul.f32 %v1587_v7, %v1585_v15  ;;  %v11105_v39 = vpop.eup %8394  ;;  %v17072_v15 = vld [vmem:[#allocation158_spill] sm:$0xff] }
 0x202   : > { %5392 = vmatprep.subr.bf16.mxu1 %v17067_v20  ;;  %v1734_v24 = vshrl.u32 %v16767_v33, %v1728_v53  ;;  %v1739_v11 = vshll.u32 %v16808_v50, %v1727_v26  ;;  %v1740_v61 = vshrl.u32 %v16824_v46, %v1728_v53  ;;  %v17070_v20 = vcombine.low %v17062_v22, %v17063_v45 }
 0x203   : > { %v1675_v5 = vsub.s32 0, %v11089_v47  ;;  %v1742_v40 = vshll.u32 %v16824_v46, %v1727_v26  ;;  %v1743_v52 = vshrl.u32 %v16890_v8, %v1728_v53  ;;  %v11103_v37 = vshll.u32 %v1721_v48, 8 }
 0x204   : > { %5280 = vmatpush2.bf16.msra.mxu0 %v17070_v20  ;;  %v17071_v7 = vcombine.low %v17065_v56, %v17066_v16  ;;  %v17074_v44 = vcombine.high %v17072_v15, %v17073_v6  ;;  %v1589_v22 = vxor.u32 2147483648, %v1588_v31  ;;  %v1729_v45 = vshrl.u32 %v16628_v3, %v1728_v53 }
 0x205   : > { %v1738_v20 = vor.u32 %v1737_v23, %v1736_v49  ;;  %v1820_v26 = vand.u32 2139095040, %v17060_v32  ;;  %v17077_v48 = vcombine.high %v17075_v18, %v17076_v38  ;;  %v7709_v59 = vmin.u32 %v1675_v5, %v11089_v47  ;;  %v17079_v5 = vld [vmem:[#allocation25_spill] sm:$0xff] }
 0x206   : > { %5393 = vmatpush2.bf16.msra.mxu1 %v17071_v7  ;;  %5475 = vmatprep.subr.bf16.mxu0 %v17074_v44  ;;  %v11121_v56 = vsel %vm1611_vm4, %v1695_v36, %v1671_v4  ;;  %v1732_v16 = vor.u32 %v1731_v0, %v1730_v42  ;;  %vm1748_vm6 = vcmp.lt.s32.totalorder %v11073_v43, 4  ;;  %v11124_v44 = vpop.eup %8396  ;;  %v17078_v7 = vld [vmem:[#allocation23_spill] sm:$0xff]  ;;  %v1590_v49 = vsel %vm1507_vm13, %v1589_v22, %v1588_v31  ;;  %v17088_v22 = vld [vmem:[#allocation30_spill] sm:$0xff] }
 0x207   : > { %5588 = vmatprep.subr.bf16.mxu1 %v17077_v48  ;;  %5282 = vmatmul.mubr.bf16.vlgmr.msra.gmra.mxu0 %v17078_v7  ;;  %v1735_v53 = vor.u32 %v1734_v24, %v1733_v10  ;;  %v1741_v23 = vor.u32 %v1740_v61, %v1739_v11  ;;  %v1750_v48 = vsel %vm1748_vm6, %v1738_v20, 2102212464  ;;  %v17080_v4 = vcombine.low %v17072_v15, %v17073_v6  ;;  %v17082_v61 = vld [vmem:[#allocation160_spill] sm:$0xff] }
 0x208   : > { %vm1497_vm7 = vcmp.eq.s32.totalorder %v11054_v17, 0  ;;  %v11139_v42 = vsel %vm10958_vm0, %v9334_v60, %v1590_v49  ;;  %v1677_v36 = vclz %v7709_v59  ;;  %v1744_v0 = vor.u32 %v1743_v52, %v1742_v40  ;;  %v17085_v52 = vld [vmem:[#allocation162_spill] sm:$0xff] }
 0x209   : > { %5395 = vmatmul.mubr.bf16.vlgmr.msra.gmra.mxu1 %v17079_v5  ;;  %5476 = vmatpush1.bf16.msra.mxu0 %v17080_v4  ;;  %vm1745_vm8 = vcmp.lt.s32.totalorder %v11073_v43, 1  ;;  %v17081_v24 = vcombine.low %v17075_v18, %v17076_v38  ;;  %v17083_v11 = vcombine.high %v10264_v9, %v17082_v61  ;;  %v1698_v6 = vsel %vm11065_vm5, 0, %v11121_v56  ;;  %v17087_v38 = vld [vmem:[#allocation29_spill] sm:$0xff] }
 0x20a   : > { %vm1746_vm9 = vcmp.lt.s32.totalorder %v11073_v43, 2  ;;  %vm1747_vm10 = vcmp.lt.s32.totalorder %v11073_v43, 3  ;;  %v1749_v59 = vsel %vm1745_vm8, %v1729_v45, %v1732_v16  ;;  %v17086_v10 = vcombine.high %v17084_v21, %v17085_v52  ;;  %5291 = vmatprep.mubr.bf16.mxu0 %v17087_v38  ;;  %5404 = vmatprep.mubr.bf16.mxu1 %v17088_v22 }
 0x20b   : > { %5589 = vmatpush1.bf16.msra.mxu1 %v17081_v24  ;;  %5477 = vmatprep.subr.bf16.mxu0 %v17083_v11  ;;  %v1498_v18 = vxor.u32 2147483648, %v11124_v44  ;;  %v1501_v31 = vxor.u32 2147483648, %v11105_v39  ;;  %v7710_v40 = vadd.s32 4294967294, %v1677_v36  ;;  %v1751_v15 = vsel %vm1747_vm10, %v1735_v53, %v1750_v48  ;;  %v17091_v11 = vld [vmem:[#allocation163_spill] sm:$0xff] }
 0x20c   : > { %5590 = vmatprep.subr.bf16.mxu1 %v17086_v10  ;;  %8398 = vcosq.f32 %v11139_v42  ;;  %v1753_v45 = vsel %vm1745_vm8, %v1732_v16, %v1735_v53  ;;  %v1754_v56 = vsel %vm1748_vm6, %v1741_v23, 920167782  ;;  %v1757_v49 = vsel %vm1745_vm8, %v1735_v53, %v1738_v20  ;;  %v17092_v53 = vld [vmem:[#allocation164_spill] sm:$0xff] }
 0x20d   : > { %v17089_v4 = vcombine.low %v10264_v9, %v17082_v61  ;;  %vm7711_vm11 = vcmp.lt.s32.totalorder %v7710_v40, 0  ;;  %v1752_v48 = vsel %vm1746_vm9, %v1749_v59, %v1751_v15  ;;  %v1755_v36 = vsel %vm1747_vm10, %v1738_v20, %v1754_v56  ;;  %v17094_v15 = vld [vmem:[#allocation80_spill] sm:$0xff] }
 0x20e   : > { %v1758_v16 = vsel %vm1748_vm6, %v1744_v0, 1326507024  ;;  %v17090_v24 = vcombine.low %v17084_v21, %v17085_v52  ;;  %v17093_v10 = vcombine.high %v17091_v11, %v17092_v53  ;;  %vm1392_vm12 = vcmp.lt.s32.totalorder %v10681_v28, 2  ;;  %v17095_v0 = vld [vmem:[#allocation81_spill] sm:$0xff] }
 0x20f   : > { %5478 = vmatpush1.bf16.msra.mxu0 %v17089_v4  ;;  %v1680_v9 = vsel %vm7711_vm11, 0, %v7710_v40  ;;  %v1756_v61 = vsel %vm1746_vm9, %v1753_v45, %v1755_v36  ;;  %v1759_v20 = vsel %vm1747_vm10, %v1741_v23, %v1758_v16  ;;  %v1821_v59 = vshrl.u32 %v1820_v26, 23  ;;  %v17098_v36 = vld [vmem:[#allocation36_spill] sm:$0xff] }
 0x210   : > { %5591 = vmatpush1.bf16.msra.mxu1 %v17090_v24  ;;  %5479 = vmatprep.subr.bf16.mxu0 %v17093_v10  ;;  %v17096_v56 = vcombine.high %v17094_v15, %v17095_v0  ;;  %v1681_v21 = vsub.s32 32, %v1680_v9  ;;  %v1682_v52 = vshll.u32 %v11089_v47, %v1680_v9  ;;  %v1685_v4 = vsub.s32 4294967266, %v1680_v9  ;;  %v17097_v10 = vld [vmem:[#allocation34_spill] sm:$0xff] }
 0x211   : > { %v1760_v24 = vsel %vm1746_vm9, %v1757_v49, %v1759_v20  ;;  %5292 = vmatmul.mubr.bf16.gmra.mxu0 %v17097_v10  ;;  %v11203_v23 = vmul.u32.u64.low %v11103_v37, %v1756_v61  ;;  %v11204_v26 = vmul.u32.u64.high %v11103_v37, %v1756_v61, %v11203_v23  ;;  %5405 = vmatmul.mubr.bf16.gmra.mxu1 %v17098_v36  ;;  %v17099_v47 = vcombine.low %v17091_v11, %v17092_v53  ;;  %v17101_v20 = vld [vmem:[#allocation165_spill] sm:$0xff]  ;;  %v17102_v61 = vld [vmem:[#allocation82_spill] sm:$0xff]  ;;  %v11231_v36 = vld [vmem:[#allocation9 + $0xa08] sm:$0xff] }
 0x212   : > { %5592 = vmatprep.subr.bf16.mxu1 %v17096_v56  ;;  %v11199_v40 = vmul.u32.u64.low %v11103_v37, %v1760_v24  ;;  %v11200_v45 = vmul.u32.u64.high %v11103_v37, %v1760_v24, %v11199_v40  ;;  %vm1500_vm13 = vcmp.eq.s32.totalorder %v11054_v17, 2  ;;  %v1683_v43 = vshrl.u32 %v11071_v57, %v1681_v21  ;;  %v17105_v57 = vld [vmem:[#allocation83_spill] sm:$0xff]  ;;  %v17106_v21 = vld [vmem:[#allocation166_spill] sm:$0xff] }
 0x213   : > { %5480 = vmatpush1.bf16.msra.mxu0 %v17099_v47  ;;  %v1686_v49 = vadd.s32 127, %v1685_v4  ;;  %v7716_v16 = vadd.s32 4294967169, %v1821_v59  ;;  %v17100_v9 = vcombine.low %v17094_v15, %v17095_v0  ;;  %v17103_v56 = vcombine.high %v17101_v20, %v17102_v61  ;;  %v17108_v4 = vld [vmem:[#allocation37_spill] sm:$0xff] }
 0x214   : > { %vm1496_vm14 = vcmp.lt.s32.totalorder %v11054_v17, 2  ;;  %v11221_v24 = vand.u32 3, %v11057_v12  ;;  %v1702_v11 = vadd.s32 3, %v1698_v6  ;;  %v17104_v53 = vand.u32 2147483647, %v17060_v32  ;;  %5301 = vmatprep.mubr.bf16.mxu0 %v17108_v4  ;;  %v17116_v4 = vld [vmem:[#allocation169_spill] sm:$0xff] }
 0x215   : > { %5593 = vmatpush1.bf16.msra.mxu1 %v17100_v9  ;;  %5481 = vmatprep.subr.bf16.mxu0 %v17103_v56  ;;  %v17107_v59 = vcombine.high %v17105_v57, %v17106_v21  ;;  %v1684_v15 = vor.u32 %v1683_v43, %v1682_v52  ;;  %v1687_v0 = vshll.u32 %v1686_v49, 23  ;;  %v1768_v47 = vmul.u32 %v11103_v37, %v1752_v48  ;;  %v17109_v56 = vld [vmem:[#allocation38_spill] sm:$0xff]  ;;  %v11245_v48 = vld [vmem:[#allocation9 + $0xa28] sm:$0xff] }
 0x216   : > { %v1824_v40 = vand.u32 8388607, %v17104_v53  ;;  %v1827_v9 = vadd.s32 1, %v7716_v16  ;;  %5414 = vmatprep.mubr.bf16.mxu1 %v17109_v56  ;;  %v1499_v12 = vsel %vm1497_vm7, %v11105_v39, %v1498_v18  ;;  %v1502_v6 = vsel %vm1500_vm13, %v1501_v31, %v11124_v44  ;;  %v11247_v43 = vld [vmem:[#allocation9 + $0xe08] sm:$0xff]  ;;  %v17113_v16 = vld [vmem:[#allocation168_spill] sm:$0xff] }
 0x217   : > { %5594 = vmatprep.subr.bf16.mxu1 %v17107_v59  ;;  %vm1770_vm15 = vc.u32 %v11200_v45, %v11203_v23  ;;  %v1771_v52 = vadd.s32 1, %v11204_v26  ;;  %v17110_v37 = vcombine.low %v17101_v20, %v17102_v61  ;;  %v11249_v49 = vld [vmem:[#allocation9 + $0xe28] sm:$0xff]  ;;  %8400 = vsinq.f32 %v11139_v42  ;;  %v17117_v42 = vld [vmem:[#allocation170_spill] sm:$0xff] }
 0x218   : > { %v1688_v39 = vor.u32 4788187, %v1687_v0  ;;  %v1691_v18 = vcvt.s32.f32 %v1684_v15  ;;  %vm1828_vm0 = vcmp.gt.s32.totalorder %v1827_v9, 0  ;;  %v17111_v44 = vcombine.low %v17105_v57, %v17106_v21  ;;  %v17112_v31 = vld [vmem:[#allocation167_spill] sm:$0xff]  ;;  %v17119_v21 = vld [vmem:[#allocation40_spill] sm:$0xff] }
 0x219   : > { %5482 = vmatpush1.bf16.msra.mxu0 %v17110_v37  ;;  %v17114_v53 = vcombine.high %v17112_v31, %v17113_v16  ;;  %v1772_v20 = vsel %vm1770_vm15, %v1771_v52, %v11204_v26  ;;  %v1829_v61 = vsel %vm1828_vm0, %v1827_v9, 0  ;;  %v17115_v59 = vld [vmem:[#allocation51_spill] sm:$0xff]  ;;  %v17118_v0 = vcombine.high %v17116_v4, %v17117_v42  ;;  %v17124_v26 = vld [vmem:[#allocation26_spill] sm:$0xff] }
 0x21a   : > { %5595 = vmatpush1.bf16.msra.mxu1 %v17111_v44  ;;  %v1924_v56 = vand.u32 2139095040, %v17115_v59  ;;  %v1689_v15 = vand.u32 2147483647, %v1688_v39  ;;  %v1773_v10 = vadd.s32 %v1772_v20, %v1768_v47  ;;  %v1825_v22 = vor.u32 8388608, %v1824_v40  ;;  %5302 = vmatmul.mubr.bf16.gmra.mxu0 %v17119_v21  ;;  %v17120_v39 = vld [vmem:[#allocation41_spill] sm:$0xff]  ;;  %v17123_v52 = vld [vmem:[#allocation171_spill] sm:$0xff] }
 0x21b   : > { %5483 = vmatprep.subr.bf16.mxu0 %v17114_v53  ;;  %5596 = vmatprep.subr.bf16.mxu1 %v17118_v0  ;;  %v1831_v57 = vand.u32 31, %v1829_v61  ;;  %v11273_v53 = vpop.eup %8398  ;;  %v17121_v40 = vcombine.low %v17112_v31, %v17113_v16  ;;  %v11283_v47 = vsel %vm1392_vm12, %v11047_v35, %v11052_v34  ;;  %v17122_v44 = vcombine.low %v17116_v4, %v17117_v42  ;;  %v17127_v4 = vld [vmem:[#allocation27_spill] sm:$0xff]  ;;  %v17129_v42 = vld [vmem:[#allocation42_spill] sm:$0xff] }
 0x21c   : > { %5415 = vmatmul.mubr.bf16.gmra.mxu1 %v17120_v39  ;;  %v1692_v20 = vmul.f32 %v1691_v18, %v1689_v15  ;;  %v1774_v0 = vadd.s32 536870912, %v1773_v10  ;;  %v17125_v37 = vcombine.high %v17123_v52, %v17124_v26  ;;  %v11293_v31 = vsel %vm1496_vm14, %v1499_v12, %v1502_v6  ;;  %5311 = vmatprep.mubr.bf16.mxu0 %v17129_v42  ;;  %v17133_v42 = vld [vmem:[#allocation28_spill] sm:$0xff] }
 0x21d   : > { %5484 = vmatpush1.bf16.msra.mxu0 %v17121_v40  ;;  %v1832_v9 = vsub.s32 32, %v1831_v57  ;;  %vm1604_vm1 = vcmp.eq.s32.totalorder %v11221_v24, 2  ;;  %v11296_v28 = vand.u32 3, %v1702_v11  ;;  %v1925_v35 = vshrl.u32 %v1924_v56, 23  ;;  %v17130_v11 = vld [vmem:[#allocation43_spill] sm:$0xff]  ;;  %v17134_v39 = vld [vmem:[#allocation84_spill] sm:$0xff] }
 0x21e   : > { %5597 = vmatpush1.bf16.msra.mxu1 %v17122_v44  ;;  %5485 = vmatprep.subr.bf16.mxu0 %v17125_v37  ;;  %v17126_v34 = vand.u32 2147483647, %v17115_v59  ;;  %v17128_v16 = vcombine.high %v10374_v51, %v17127_v4  ;;  %v1693_v37 = vxor.u32 2147483648, %v1692_v20  ;;  %v11306_v15 = vshrl.u32 %v1774_v0, 30 }
 0x21f   : > { %v11308_v17 = vshrl.u32 %v1829_v61, 5  ;;  %v11310_v12 = vshll.u32 %v1825_v22, 8  ;;  %5424 = vmatprep.mubr.bf16.mxu1 %v17130_v11  ;;  %v1834_v56 = vshll.u32 %v16628_v3, %v1831_v57  ;;  %v1835_v6 = vshrl.u32 %v16763_v41, %v1832_v9 }
 0x220   : > { %v11300_v18 = vand.u32 8388607, %v17126_v34  ;;  %5598 = vmatprep.subr.bf16.mxu1 %v17128_v16  ;;  %v1837_v44 = vshll.u32 %v16763_v41, %v1831_v57  ;;  %v1838_v40 = vshrl.u32 %v16767_v33, %v1832_v9  ;;  %v17131_v34 = vcombine.low %v17123_v52, %v17124_v26 }
 0x221   : > { %v1694_v61 = vsel %vm1611_vm4, %v1693_v37, %v1692_v20  ;;  %v11324_v22 = vadd.s32 %v11203_v23, %v11200_v45  ;;  %v1776_v0 = vshll.u32 %v11306_v15, 30  ;;  %v1840_v16 = vshll.u32 %v16767_v33, %v1831_v57 }
 0x222   : > { %5486 = vmatpush1.bf16.msra.mxu0 %v17131_v34  ;;  %v17132_v11 = vcombine.low %v10374_v51, %v17127_v4  ;;  %v17135_v21 = vcombine.high %v17133_v42, %v17134_v39  ;;  %v1605_v26 = vxor.u32 2147483648, %v11273_v53  ;;  %v1697_v52 = vsel %vm11065_vm5, %v16913_v19, %v1694_v61  ;;  %v17138_v61 = vld [vmem:[#allocation49_spill] sm:$0xff] }
 0x223   : > { %vm1715_vm2 = vcmp.lt.s32.totalorder %v17006_v1, 0  ;;  %v7720_v45 = vadd.s32 4294967169, %v1925_v35  ;;  %v17136_v20 = vcombine.high %v10388_v29, %v10404_v27  ;;  %vm1601_vm3 = vcmp.eq.s32.totalorder %v11221_v24, 0  ;;  %5312 = vmatmul.mubr.bf16.gmra.mxu0 %v17137_v54 }
 0x224   : > { %5599 = vmatpush1.bf16.msra.mxu1 %v17132_v11  ;;  %5487 = vmatprep.subr.bf16.mxu0 %v17135_v21  ;;  %v11344_v51 = vsub.s32 %v1773_v10, %v1776_v0  ;;  %v1833_v21 = vshrl.u32 %v16628_v3, %v1832_v9  ;;  %v1841_v4 = vshrl.u32 %v16808_v50, %v1832_v9  ;;  %vm1849_vm4 = vcmp.lt.s32.totalorder %v11308_v17, 1 }
 0x225   : > { %5600 = vmatprep.subr.bf16.mxu1 %v17136_v20  ;;  %v1836_v37 = vor.u32 %v1835_v6, %v1834_v56  ;;  %v1839_v35 = vor.u32 %v1838_v40, %v1837_v44  ;;  %v1843_v11 = vshll.u32 %v16808_v50, %v1831_v57  ;;  %v1844_v34 = vshrl.u32 %v16824_v46, %v1832_v9  ;;  %v8401_v40 = vpop.eup %8400 }
 0x226   : > { %5425 = vmatmul.mubr.bf16.gmra.mxu1 %v17138_v61  ;;  %v17139_v10 = vcombine.low %v17133_v42, %v17134_v39  ;;  %8402 = vcosq.f32 %v1697_v52  ;;  %v17140_v0 = vand.u32 2147483647, %v17006_v1  ;;  %v1779_v56 = vsub.s32 0, %v11344_v51  ;;  %v17191_v61 = vld [vmem:[#allocation103_spill] sm:$0xff] }
 0x227   : > { %v1842_v6 = vor.u32 %v1841_v4, %v1840_v16  ;;  %v1846_v44 = vshll.u32 %v16824_v46, %v1831_v57  ;;  %v17143_v23 = vcombine.low %v10388_v29, %v10404_v27  ;;  %v17144_v39 = vcombine.high %v10406_v62, %v10408_v14  ;;  %v17146_v57 = vld [vmem:[#allocation54_spill] sm:$0xff] }
 0x228   : > { %5488 = vmatpush1.bf16.msra.mxu0 %v17139_v10  ;;  %vm11358_vm5 = vcmp.le.f32.partialorder %v17140_v0, 0.7853982  ;;  %8404 = vsinq.f32 %v1697_v52  ;;  %v1845_v42 = vor.u32 %v1844_v34, %v1843_v11  ;;  %v1847_v10 = vshrl.u32 %v16890_v8, %v1832_v9  ;;  %5321 = vmatprep.mubr.bf16.mxu0 %v17146_v57  ;;  %v17147_v9 = vld [vmem:[#allocation58_spill] sm:$0xff] }
 0x229   : > { %5601 = vmatpush1.bf16.msra.mxu1 %v17143_v23  ;;  %5489 = vmatprep.subr.bf16.mxu0 %v17144_v39  ;;  %vm1852_vm6 = vcmp.lt.s32.totalorder %v11308_v17, 4  ;;  %v17145_v16 = vcombine.high %v10421_v13, %v10423_v55  ;;  %vm1600_vm7 = vcmp.lt.s32.totalorder %v11221_v24, 2  ;;  %v7713_v29 = vmin.u32 %v1779_v56, %v11344_v51 }
 0x22a   : > { %v1799_v27 = vsub.s32 4, %v11306_v15  ;;  %vm1851_vm8 = vcmp.lt.s32.totalorder %v11308_v17, 3  ;;  %v1854_v52 = vsel %vm1852_vm6, %v1842_v6, 2102212464  ;;  %5434 = vmatprep.mubr.bf16.mxu1 %v17147_v9  ;;  %v1848_v23 = vor.u32 %v1847_v10, %v1846_v44 }
 0x22b   : > { %5602 = vmatprep.subr.bf16.mxu1 %v17145_v16  ;;  %vm1850_vm9 = vcmp.lt.s32.totalorder %v11308_v17, 2  ;;  %v1857_v4 = vsel %vm1849_vm4, %v1836_v37, %v1839_v35  ;;  %v1858_v11 = vsel %vm1852_vm6, %v1845_v42, 920167782  ;;  %v17148_v34 = vcombine.low %v10406_v62, %v10408_v14 }
 0x22c   : > { %v1602_v0 = vxor.u32 2147483648, %v8401_v40  ;;  %v1606_v56 = vsel %vm1604_vm1, %v1605_v26, %v8401_v40  ;;  %v1781_v39 = vclz %v7713_v29  ;;  %v1853_v44 = vsel %vm1849_vm4, %v1833_v21, %v1836_v37  ;;  %v17151_v37 = vld [vmem:[#allocation87_spill] sm:$0xff] }
 0x22d   : > { %5490 = vmatpush1.bf16.msra.mxu0 %v17148_v34  ;;  %v17149_v10 = vcombine.low %v10421_v13, %v10423_v55  ;;  %v17150_v16 = vcombine.high %v10425_v58, %v10445_v30  ;;  %v1855_v62 = vsel %vm1851_vm8, %v1839_v35, %v1854_v52  ;;  %v1859_v14 = vsel %vm1851_vm8, %v1842_v6, %v1858_v11  ;;  %v17153_v11 = vld [vmem:[#allocation59_spill] sm:$0xff] }
 0x22e   : > { %v1861_v26 = vsel %vm1849_vm4, %v1839_v35, %v1842_v6  ;;  %v1862_v21 = vsel %vm1852_vm6, %v1848_v23, 1326507024  ;;  %v17152_v13 = vcombine.high %v10447_v25, %v17151_v37  ;;  %v7714_v55 = vadd.s32 4294967294, %v1781_v39  ;;  %5322 = vmatmul.mubr.bf16.gmra.mxu0 %v17153_v11  ;;  %v17154_v39 = vld [vmem:[#allocation60_spill] sm:$0xff] }
 0x22f   : > { %5603 = vmatpush1.bf16.msra.mxu1 %v17149_v10  ;;  %5491 = vmatprep.subr.bf16.mxu0 %v17150_v16  ;;  %v1800_v40 = vsel %vm1715_vm2, %v1799_v27, %v11306_v15  ;;  %v1860_v29 = vsel %vm1850_vm9, %v1857_v4, %v1859_v14  ;;  %v1863_v52 = vsel %vm1851_vm8, %v1845_v42, %v1862_v21  ;;  %v1931_v34 = vadd.s32 1, %v7720_v45  ;;  %v17157_v16 = vld [vmem:[#allocation88_spill] sm:$0xff]  ;;  %v17158_v45 = vld [vmem:[#allocation89_spill] sm:$0xff] }
 0x230   : > { %5604 = vmatprep.subr.bf16.mxu1 %v17152_v13  ;;  %v1864_v35 = vsel %vm1850_vm9, %v1861_v26, %v1863_v52  ;;  %v11423_v6 = vmul.u32.u64.low %v11310_v12, %v1860_v29  ;;  %v11424_v23 = vmul.u32.u64.high %v11310_v12, %v1860_v29, %v11423_v6  ;;  %5435 = vmatmul.mubr.bf16.gmra.mxu1 %v17154_v39  ;;  %v17155_v15 = vcombine.low %v10425_v58, %v10445_v30  ;;  %v17162_v13 = vld [vmem:[#allocation65_spill] sm:$0xff] }
 0x231   : > { %vm7715_vm10 = vcmp.lt.s32.totalorder %v7714_v55, 0  ;;  %v1856_v42 = vsel %vm1850_vm9, %v1853_v44, %v1855_v62  ;;  %v11434_v27 = vmul.u32.u64.low %v11310_v12, %v1864_v35  ;;  %v11435_v4 = vmul.u32.u64.high %v11310_v12, %v1864_v35, %v11434_v27  ;;  %v17161_v62 = vld [vmem:[#allocation64_spill] sm:$0xff]  ;;  %5444 = vmatprep.mubr.bf16.mxu1 %v17162_v13 }
 0x232   : > { %5492 = vmatpush2.bf16.msra.mxu0 %v17155_v15  ;;  %v17156_v10 = vcombine.low %v10447_v25, %v17151_v37  ;;  %v17159_v14 = vcombine.high %v17157_v16, %v17158_v45  ;;  %v1603_v58 = vsel %vm1601_vm3, %v11273_v53, %v1602_v0  ;;  %v1784_v30 = vsel %vm7715_vm10, 0, %v7714_v55  ;;  %5331 = vmatprep.mubr.bf16.mxu0 %v17161_v62  ;;  %v17167_v27 = vld [vmem:[#allocation32_spill] sm:$0xff] }
 0x233   : > { %v1802_v17 = vsel %vm11358_vm5, 0, %v1800_v40  ;;  %vm1932_vm11 = vcmp.gt.s32.totalorder %v1931_v34, 0  ;;  %v17160_v44 = vcombine.high %v10487_v2, %v10489_v63  ;;  %v1785_v25 = vsub.s32 32, %v1784_v30  ;;  %v17163_v40 = vld [vmem:[#allocation52_spill] sm:$0xff]  ;;  %v11464_v15 = vpop.eup %8402 }
 0x234   : > { %5605 = vmatpush2.bf16.msra.mxu1 %v17156_v10  ;;  %5493 = vmatprep.subr.bf16.mxu0 %v17159_v14  ;;  %v1786_v26 = vshll.u32 %v11344_v51, %v1784_v30  ;;  %v1789_v21 = vsub.s32 4294967266, %v1784_v30  ;;  %v1933_v37 = vsel %vm1932_vm11, %v1931_v34, 0  ;;  %v1872_v53 = vmul.u32 %v11310_v12, %v1856_v42  ;;  %v17166_v42 = vld [vmem:[#allocation90_spill] sm:$0xff]  ;;  %v17169_v30 = vld [vmem:[#allocation33_spill] sm:$0xff] }
 0x235   : > { %5606 = vmatprep.subr.bf16.mxu1 %v17160_v44  ;;  %v1875_v0 = vadd.s32 1, %v11424_v23  ;;  %v1935_v55 = vand.u32 31, %v1933_v37  ;;  %v2028_v29 = vand.u32 2139095040, %v17163_v40  ;;  %v17164_v52 = vcombine.low %v17157_v16, %v17158_v45  ;;  %v8405_v14 = vpop.eup %8404  ;;  %v17170_v44 = vld [vmem:[#allocation35_spill] sm:$0xff] }
 0x236   : > { %vm1705_vm12 = vcmp.eq.s32.totalorder %v11296_v28, 0  ;;  %vm1708_vm13 = vcmp.eq.s32.totalorder %v11296_v28, 2  ;;  %v1787_v51 = vshrl.u32 %v11324_v22, %v1785_v25  ;;  %v1790_v35 = vadd.s32 127, %v1789_v21 }
 0x237   : > { %5494 = vmatpush2.bf16.msra.mxu0 %v17164_v52  ;;  %v17165_v12 = vcombine.low %v10487_v2, %v10489_v63  ;;  %v17168_v10 = vcombine.high %v17166_v42, %v17167_v27  ;;  %v11474_v16 = vsel %vm1600_vm7, %v1603_v58, %v1606_v56  ;;  %v11476_v45 = vadd.s32 3, %v1802_v17  ;;  %v17173_v56 = vld [vmem:[#allocation66_spill] sm:$0xff] }
 0x238   : > { %vm1874_vm14 = vc.u32 %v11435_v4, %v11423_v6  ;;  %v1936_v22 = vsub.s32 32, %v1935_v55  ;;  %v17171_v25 = vcombine.high %v17169_v30, %v17170_v44  ;;  %v1788_v2 = vor.u32 %v1787_v51, %v1786_v26  ;;  %5332 = vmatmul.mubr.bf16.gmra.mxu0 %v17173_v56 }
 0x239   : > { %5607 = vmatpush2.bf16.msra.mxu1 %v17165_v12  ;;  %5495 = vmatprep.subr.bf16.mxu0 %v17168_v10  ;;  %v1791_v63 = vshll.u32 %v1790_v35, 23  ;;  %v1876_v21 = vsel %vm1874_vm14, %v1875_v0, %v11424_v23  ;;  %v17172_v52 = vor.u32 8388608, %v11300_v18  ;;  %vm1819_vm15 = vcmp.lt.s32.totalorder %v17060_v32, 0  ;;  %v17178_v35 = vld [vmem:[#allocation93_spill] sm:$0xff] }
 0x23a   : > { %5608 = vmatprep.subr.bf16.mxu1 %v17171_v25  ;;  %v1877_v58 = vadd.s32 %v1876_v21, %v1872_v53  ;;  %v11490_v17 = vshrl.u32 %v1933_v37, 5  ;;  %v1938_v12 = vshll.u32 %v16628_v3, %v1935_v55  ;;  %v11493_v10 = vshrl.u32 %v2028_v29, 23  ;;  %v17174_v25 = vld [vmem:[#allocation67_spill] sm:$0xff]  ;;  %v17177_v53 = vld [vmem:[#allocation92_spill] sm:$0xff] }
 0x23b   : > { %v11486_v24 = vshll.u32 %v17172_v52, 8  ;;  %5445 = vmatmul.mubr.bf16.gmra.mxu1 %v17174_v25  ;;  %v17175_v23 = vcombine.low %v17166_v42, %v17167_v27  ;;  %v1792_v18 = vor.u32 4788187, %v1791_v63  ;;  %v1795_v26 = vcvt.s32.f32 %v1788_v2  ;;  %v17180_v27 = vld [vmem:[#allocation47_spill] sm:$0xff]  ;;  %v17181_v2 = vld [vmem:[#allocation98_spill] sm:$0xff]  ;;  %v17184_v25 = vld [vmem:[#allocation77_spill] sm:$0xff] }
 0x23c   : > { %v1939_v0 = vshrl.u32 %v16763_v41, %v1936_v22  ;;  %v1941_v51 = vshll.u32 %v16763_v41, %v1935_v55  ;;  %v17176_v37 = vcombine.low %v17169_v30, %v17170_v44  ;;  %v17179_v29 = vcombine.high %v17177_v53, %v17178_v35  ;;  %5454 = vmatprep.mubr.bf16.mxu1 %v17184_v25 }
 0x23d   : > { %5496 = vmatpush2.bf16.msra.mxu0 %v17175_v23  ;;  %v1706_v21 = vxor.u32 2147483648, %v8405_v14  ;;  %v1709_v52 = vxor.u32 2147483648, %v11464_v15  ;;  %v1878_v34 = vadd.s32 536870912, %v1877_v58  ;;  %v1942_v42 = vshrl.u32 %v16767_v33, %v1936_v22  ;;  %v17183_v23 = vld [vmem:[#allocation76_spill] sm:$0xff] }
 0x23e   : > { %5609 = vmatpush2.bf16.msra.mxu1 %v17176_v37  ;;  %5497 = vmatprep.subr.bf16.mxu0 %v17179_v29  ;;  %v17182_v63 = vcombine.high %v17180_v27, %v17181_v2  ;;  %vm1704_vm0 = vcmp.lt.s32.totalorder %v11296_v28, 2  ;;  %v1793_v30 = vand.u32 2147483647, %v1792_v18  ;;  %v1944_v44 = vshll.u32 %v16767_v33, %v1935_v55 }
 0x23f   : > { %5341 = vmatprep.mubr.bf16.mxu0 %v17183_v23  ;;  %v1945_v37 = vshrl.u32 %v16808_v50, %v1936_v22  ;;  %v1947_v29 = vshll.u32 %v16808_v50, %v1935_v55  ;;  %v1879_v56 = vshrl.u32 %v1878_v34, 30  ;;  %v1937_v13 = vshrl.u32 %v16628_v3, %v1936_v22 }
 0x240   : > { %5610 = vmatprep.subr.bf16.mxu1 %v17182_v63  ;;  %v1948_v62 = vshrl.u32 %v16824_v46, %v1936_v22  ;;  %v1950_v63 = vshll.u32 %v16824_v46, %v1935_v55  ;;  %v17185_v23 = vcombine.low %v17177_v53, %v17178_v35  ;;  %v1796_v18 = vmul.f32 %v1795_v26, %v1793_v30  ;;  %v17190_v55 = vld [vmem:[#allocation102_spill] sm:$0xff]  ;;  %v17193_v53 = vld [vmem:[#allocation24_spill] sm:$0xff]  ;;  %v17194_v26 = vld [vmem:[#allocation45_spill] sm:$0xff] }
 0x241   : > { %v17186_v39 = vand.u32 2147483647, %v17060_v32  ;;  %v1940_v9 = vor.u32 %v1939_v0, %v1938_v12  ;;  %v1943_v25 = vor.u32 %v1942_v42, %v1941_v51  ;;  %v1951_v34 = vshrl.u32 %v16890_v8, %v1936_v22  ;;  %v17195_v22 = vld [vmem:[#allocation104_spill] sm:$0xff]  ;;  %v17196_v0 = vld [vmem:[#allocation105_spill] sm:$0xff] }
 0x242   : > { %5498 = vmatpush2.bf16.msra.mxu0 %v17185_v23  ;;  %v17189_v57 = vcombine.low %v17180_v27, %v17181_v2  ;;  %v17192_v54 = vcombine.high %v17190_v55, %v17191_v61  ;;  %vm1389_vm3 = vweird.f32 %v17193_v53  ;;  %vm1493_vm4 = vweird.f32 %v17194_v26  ;;  %v17198_v27 = vld [vmem:[#allocation21_spill] sm:$0xff] }
 0x243   : > { %vm11526_vm1 = vcmp.le.f32.partialorder %v17186_v39, 0.7853982  ;;  %vm1597_vm6 = vweird.f32 %v9334_v60  ;;  %v1880_v39 = vshll.u32 %v1879_v56, 30  ;;  %v1903_v35 = vsub.s32 4, %v1879_v56  ;;  %5342 = vmatmul.mubr.bf16.gmra.mxu0 %v17198_v27 }
 0x244   : > { %5611 = vmatpush2.bf16.msra.mxu1 %v17189_v57  ;;  %5499 = vmatprep.subr.bf16.mxu0 %v17192_v54  ;;  %v1946_v12 = vor.u32 %v1945_v37, %v1944_v44  ;;  %vm1953_vm7 = vcmp.lt.s32.totalorder %v11490_v17, 1  ;;  %v17197_v51 = vcombine.high %v17195_v22, %v17196_v0  ;;  %vm1701_vm8 = vweird.f32 %v16913_v19  ;;  %v17199_v37 = vld [vmem:[#allocation22_spill] sm:$0xff] }
 0x245   : > { %v1797_v57 = vxor.u32 2147483648, %v1796_v18  ;;  %v1949_v42 = vor.u32 %v1948_v62, %v1947_v29  ;;  %v1952_v54 = vor.u32 %v1951_v34, %v1950_v63  ;;  %vm1956_vm9 = vcmp.lt.s32.totalorder %v11490_v17, 4  ;;  %5455 = vmatmul.mubr.bf16.gmra.mxu1 %v17199_v37  ;;  %v17205_v34 = vld [vmem:[#allocation108_spill] sm:$0xff] }
 0x246   : > { %5612 = vmatprep.subr.bf16.mxu1 %v17197_v51  ;;  %v1707_v2 = vsel %vm1705_vm12, %v11464_v15, %v1706_v21  ;;  %v1710_v23 = vsel %vm1708_vm13, %v1709_v52, %v8405_v14  ;;  %v11552_v30 = vsub.s32 %v1877_v58, %v1880_v39  ;;  %v1958_v44 = vsel %vm1956_vm9, %v1946_v12, 2102212464  ;;  %v17202_v58 = vld [vmem:[#allocation106_spill] sm:$0xff]  ;;  %v17203_v21 = vld [vmem:[#allocation107_spill] sm:$0xff] }
 0x247   : > { %v17200_v62 = vcombine.low %v17190_v55, %v17191_v61  ;;  %v1798_v29 = vsel %vm1715_vm2, %v1797_v57, %v1796_v18  ;;  %v1904_v15 = vsel %vm1819_vm15, %v1903_v35, %v1879_v56  ;;  %vm1954_vm10 = vcmp.lt.s32.totalorder %v11490_v17, 2  ;;  %v17206_v55 = vld [vmem:[#allocation109_spill] sm:$0xff] }
 0x248   : > { %vm1955_vm11 = vcmp.lt.s32.totalorder %v11490_v17, 3  ;;  %v17201_v14 = vcombine.low %v17195_v22, %v17196_v0  ;;  %v17204_v52 = vcombine.high %v17202_v58, %v17203_v21  ;;  %v1801_v61 = vsel %vm11358_vm5, %v17006_v1, %v1798_v29  ;;  %v17208_v35 = vld [vmem:[#allocation85_spill] sm:$0xff] }
 0x249   : > { %5500 = vmatpush2.bf16.msra.mxu0 %v17200_v62  ;;  %v1883_v63 = vsub.s32 0, %v11552_v30  ;;  %v1957_v56 = vsel %vm1953_vm7, %v1937_v13, %v1940_v9  ;;  %v1961_v18 = vsel %vm1953_vm7, %v1940_v9, %v1943_v25  ;;  %v17207_v39 = vcombine.high %v17205_v34, %v17206_v55  ;;  %5351 = vmatprep.mubr.bf16.mxu0 %v17208_v35  ;;  %v17209_v13 = vld [vmem:[#allocation86_spill] sm:$0xff] }
 0x24a   : > { %5613 = vmatpush2.bf16.msra.mxu1 %v17201_v14  ;;  %5501 = vmatprep.subr.bf16.mxu0 %v17204_v52  ;;  %8406 = vcosq.f32 %v1801_v61  ;;  %v1959_v22 = vsel %vm1955_vm11, %v1943_v25, %v1958_v44  ;;  %v1962_v20 = vsel %vm1956_vm9, %v1949_v42, 920167782  ;;  %v1966_v0 = vsel %vm1956_vm9, %v1952_v54, 1326507024 }
 0x24b   : > { %5614 = vmatprep.subr.bf16.mxu1 %v17207_v39  ;;  %5464 = vmatprep.mubr.bf16.mxu1 %v17209_v13  ;;  %8408 = vsinq.f32 %v1801_v61  ;;  %v7717_v9 = vmin.u32 %v1883_v63, %v11552_v30  ;;  %v1963_v51 = vsel %vm1955_vm11, %v1946_v12, %v1962_v20  ;;  %v1965_v57 = vsel %vm1953_vm7, %v1943_v25, %v1946_v12  ;;  %v17212_v25 = vld [vmem:[#allocation114_spill] sm:$0xff]  ;;  %v17213_v12 = vld [vmem:[#allocation115_spill] sm:$0xff]  ;;  %v17215_v63 = vld [vmem:[#allocation116_spill] sm:$0xff] }
 0x24c   : > { %v17210_v44 = vcombine.low %v17202_v58, %v17203_v21  ;;  %v11600_v62 = vand.u32 3, %v11476_v45  ;;  %v1964_v54 = vsel %vm1954_vm10, %v1961_v18, %v1963_v51  ;;  %v1967_v29 = vsel %vm1955_vm11, %v1949_v42, %v1966_v0  ;;  %v17220_v0 = vld [vmem:[#allocation31_spill] sm:$0xff] }
 0x24d   : > { %v7724_v14 = vadd.s32 4294967169, %v11493_v10  ;;  %v17211_v52 = vcombine.low %v17205_v34, %v17206_v55  ;;  %v17214_v61 = vcombine.high %v17212_v25, %v17213_v12  ;;  %v1711_v45 = vsel %vm1704_vm0, %v1707_v2, %v1710_v23  ;;  %v17216_v10 = vld [vmem:[#allocation117_spill] sm:$0xff]  ;;  %v17219_v23 = vld [vmem:[#allocation91_spill] sm:$0xff]  ;;  %5465 = vmatmul.mubr.bf16.gmra.mxu1 %v17220_v0  ;;  %v932_v0 = vld [vmem:[#allocation9 + $0x590] sm:$0xff] }
 0x24e   : > { %5502 = vmatpush2.bf16.msra.mxu0 %v17210_v44  ;;  %v1885_v58 = vclz %v7717_v9  ;;  %v1906_v21 = vsel %vm11526_vm1, 0, %v1904_v15  ;;  %v1960_v42 = vsel %vm1954_vm10, %v1957_v56, %v1959_v22  ;;  %v17217_v18 = vcombine.high %v17215_v63, %v17216_v10 }
 0x24f   : > { %5615 = vmatpush2.bf16.msra.mxu1 %v17211_v52  ;;  %5503 = vmatprep.subr.bf16.mxu0 %v17214_v61  ;;  %v1968_v34 = vsel %vm1954_vm10, %v1965_v57, %v1967_v29  ;;  %v11625_v55 = vmul.u32.u64.low %v11486_v24, %v1964_v54  ;;  %v11626_v39 = vmul.u32.u64.high %v11486_v24, %v1964_v54, %v11625_v55  ;;  %v17218_v28 = vand.u32 2147483647, %v17163_v40  ;;  %v17226_v52 = vld [vmem:[#allocation95_spill] sm:$0xff] }
 0x250   : > { %5616 = vmatprep.subr.bf16.mxu1 %v17217_v18  ;;  %5352 = vmatmul.mubr.bf16.gmra.mxu0 %v17219_v23  ;;  %v7718_v15 = vadd.s32 4294967294, %v1885_v58  ;;  %v11632_v20 = vmul.u32.u64.low %v11486_v24, %v1968_v34  ;;  %v11633_v56 = vmul.u32.u64.high %v11486_v24, %v1968_v34, %v11632_v20  ;;  %v2035_v22 = vadd.s32 1, %v7724_v14  ;;  %v936_v23 = vld [vmem:[#allocation9 + $0x5b0] sm:$0xff] }
 0x251   : > { %v2032_v2 = vand.u32 8388607, %v17218_v28  ;;  %v17221_v17 = vcombine.low %v17212_v25, %v17213_v12  ;;  %v1400_v9 = vsel %vm1389_vm3, nan, %v11283_v47  ;;  %v1504_v51 = vsel %vm1493_vm4, nan, %v11293_v31  ;;  %5620 = vmatprep.mubr.bf16.mxu1 %v17226_v52  ;;  %v804_v52 = vld [vmem:[#allocation9 + $0x190] sm:$0xff] }
 0x252   : > { %v1608_v57 = vsel %vm1597_vm6, nan, %v11474_v16  ;;  %v1910_v44 = vadd.s32 3, %v1906_v21  ;;  %v17222_v54 = vcombine.low %v17215_v63, %v17216_v10  ;;  %v17223_v29 = vcombine.high %v11231_v36, %v11245_v48  ;;  %v17225_v16 = vld [vmem:[#allocation94_spill] sm:$0xff] }
 0x253   : > { %5504 = vmatpush2.bf16.msra.mxu0 %v17221_v17  ;;  %v1712_v47 = vsel %vm1701_vm8, nan, %v1711_v45  ;;  %vm1809_vm2 = vcmp.eq.s32.totalorder %v11600_v62, 0  ;;  %vm1812_vm5 = vcmp.eq.s32.totalorder %v11600_v62, 2  ;;  %v1873_v60 = vadd.s32 %v11423_v6, %v11435_v4  ;;  %5507 = vmatprep.mubr.bf16.mxu0 %v17225_v16  ;;  %v17233_v17 = vld [vmem:[#allocation96_spill] sm:$0xff] }
 0x254   : > { %5617 = vmatpush2.bf16.msra.mxu1 %v17222_v54  ;;  %5505 = vmatprep.subr.bf16.mxu0 %v17223_v29  ;;  %vm7719_vm12 = vcmp.lt.s32.totalorder %v7718_v15, 0  ;;  %vm2036_vm13 = vcmp.gt.s32.totalorder %v2035_v22, 0  ;;  %v17224_v31 = vcombine.high %v11247_v43, %v11249_v49  ;;  %v1976_v26 = vmul.u32 %v11486_v24, %v1960_v42  ;;  %v11705_v29 = vpop.f32.mrf.mxu1 }
 0x255   : > { %v1888_v53 = vsel %vm7719_vm12, 0, %v7718_v15  ;;  %v1979_v19 = vadd.s32 1, %v11626_v39  ;;  %v2037_v14 = vsel %vm2036_vm13, %v2035_v22, 0  ;;  %v2033_v4 = vor.u32 8388608, %v2032_v2  ;;  %v11699_v22 = vpop.f32.mrf.mxu0  ;;  %17234 = vst [vmem:[#allocation119_spill] sm:$0xff] %v11705_v29  ;;  %v12154_v29 = vld [vmem:[#allocation9 + $0x270] sm:$0xff] }
 0x256   : > { %5618 = vmatprep.subr.bf16.mxu1 %v17224_v31  ;;  %v1889_v25 = vsub.s32 32, %v1888_v53  ;;  %v1890_v12 = vshll.u32 %v11552_v30, %v1888_v53  ;;  %v1893_v6 = vsub.s32 4294967266, %v1888_v53  ;;  %v17227_v61 = vcombine.low %v11231_v36, %v11245_v48  ;;  %17232 = vst [vmem:[#allocation118_spill] sm:$0xff] %v11699_v22 }
 0x257   : > { %vm1808_vm14 = vcmp.lt.s32.totalorder %v11600_v62, 2  ;;  %v11672_v45 = vand.u32 3, %v1910_v44  ;;  %vm1978_vm0 = vc.u32 %v11633_v56, %v11625_v55  ;;  %v2039_v24 = vand.u32 31, %v2037_v14  ;;  %v8407_v28 = vpop.eup %8406  ;;  %v17247_v62 = vld [vmem:[#allocation101_spill] sm:$0xff] }
 0x258   : > { %5506 = vmatpush2.bf16.msra.mxu0 %v17227_v61  ;;  %v11675_v58 = vmul.f32 0.01, %v1400_v9  ;;  %v17228_v21 = vcombine.low %v11247_v43, %v11249_v49  ;;  %v1891_v30 = vshrl.u32 %v1873_v60, %v1889_v25  ;;  %v1894_v42 = vadd.s32 127, %v1893_v6  ;;  %v8409_v9 = vpop.eup %8408  ;;  %v17236_v60 = vld [vmem:[#allocation99_spill] sm:$0xff] }
 0x259   : > { %vm1923_vm3 = vcmp.lt.s32.totalorder %v17115_v59, 0  ;;  %v1980_v36 = vsel %vm1978_vm0, %v1979_v19, %v11626_v39  ;;  %v11682_v48 = vmul.f32 0.01, %v1504_v51  ;;  %v2040_v10 = vsub.s32 32, %v2039_v24  ;;  %v17238_v19 = vld [vmem:[#allocation39_spill] sm:$0xff] }
 0x25a   : > { %5619 = vmatpush2.bf16.msra.mxu1 %v17228_v21  ;;  %v1981_v63 = vadd.s32 %v1980_v36, %v1976_v26  ;;  %v11684_v18 = vmul.f32 0.01, %v1608_v57  ;;  %v11686_v34 = vmul.f32 0.01, %v1712_v47  ;;  %v1892_v2 = vor.u32 %v1891_v30, %v1890_v12  ;;  %v17235_v47 = vld [vmem:[#allocation97_spill] sm:$0xff]  ;;  %v11710_v26 = vpop.f32.mrf.mxu0 }
 0x25b   : > { %v1895_v15 = vshll.u32 %v1894_v42, 23  ;;  %v17229_v43 = vand.u32 2147483647, %v17115_v59  ;;  %v11695_v20 = vadd.s32 %v11625_v55, %v11633_v56  ;;  %v11697_v39 = vshll.u32 %v2033_v4, 8  ;;  %5508 = vmatmul.mubr.bf16.vlgmr.msra.gmra.mxu0 %v17233_v17  ;;  %17237 = vst [vmem:[#allocation120_spill] sm:$0xff] %v11710_v26  ;;  %v11717_v4 = vpop.f32.mrf.mxu1 }
 0x25c   : > { %v1813_v51 = vxor.u32 2147483648, %v8407_v28  ;;  %v1982_v57 = vadd.s32 536870912, %v1981_v63  ;;  %v11702_v44 = vshrl.u32 %v2037_v14, 5  ;;  %v2042_v54 = vshll.u32 %v16628_v3, %v2039_v24  ;;  %5517 = vmatprep.mubr.bf16.mxu0 %v17236_v60  ;;  %17239 = vst [vmem:[#allocation121_spill] sm:$0xff] %v11717_v4  ;;  %v11722_v36 = vpop.f32.mrf.mxu0  ;;  %v12152_v4 = vld [vmem:[#allocation9 + $0x250] sm:$0xff] }
 0x25d   : > { %vm11690_vm4 = vcmp.le.f32.partialorder %v17229_v43, 0.7853982  ;;  %5621 = vmatmul.mubr.bf16.vlgmr.msra.gmra.mxu1 %v17235_v47  ;;  %v1810_v55 = vxor.u32 2147483648, %v8409_v9  ;;  %v1896_v56 = vor.u32 4788187, %v1895_v15  ;;  %v1899_v31 = vcvt.s32.f32 %v1892_v2  ;;  %17240 = vst [vmem:[#allocation125_spill] sm:$0xff] %v11722_v36 }
 0x25e   : > { %v2043_v53 = vshrl.u32 %v16763_v41, %v2040_v10  ;;  %5630 = vmatprep.mubr.bf16.mxu1 %v17238_v19  ;;  %vm1805_vm6 = vweird.f32 %v17006_v1  ;;  %v1983_v14 = vshrl.u32 %v1982_v57, 30  ;;  %v2045_v25 = vshll.u32 %v16763_v41, %v2039_v24  ;;  %v11732_v60 = vpop.f32.mrf.mxu0 }
 0x25f   : > { %v2046_v12 = vshrl.u32 %v16767_v33, %v2040_v10  ;;  %v2048_v6 = vshll.u32 %v16767_v33, %v2039_v24  ;;  %v1897_v61 = vand.u32 2147483647, %v1896_v56  ;;  %v2049_v21 = vshrl.u32 %v16808_v50, %v2040_v10  ;;  %v11728_v33 = vpop.f32.mrf.mxu1  ;;  %17242 = vst [vmem:[#allocation127_spill] sm:$0xff] %v11732_v60  ;;  %v17317_v60 = vld [vmem:[#allocation150_spill] sm:$0xff] }
 0x260   : > { %v2051_v30 = vshll.u32 %v16808_v50, %v2039_v24  ;;  %v2052_v42 = vshrl.u32 %v16824_v46, %v2040_v10  ;;  %v1811_v2 = vsel %vm1809_vm2, %v8407_v28, %v1810_v55  ;;  %v1814_v41 = vsel %vm1812_vm5, %v1813_v51, %v8409_v9  ;;  %17241 = vst [vmem:[#allocation126_spill] sm:$0xff] %v11728_v33 }
 0x261   : > { %v1984_v15 = vshll.u32 %v1983_v14, 30  ;;  %v2007_v43 = vsub.s32 4, %v1983_v14  ;;  %v1900_v57 = vmul.f32 %v1899_v31, %v1897_v61  ;;  %v2041_v56 = vshrl.u32 %v16628_v3, %v2040_v10  ;;  %v11739_v51 = vpop.f32.mrf.mxu1 }
 0x262   : > { %v2044_v19 = vor.u32 %v2043_v53, %v2042_v54  ;;  %v2054_v50 = vshll.u32 %v16824_v46, %v2039_v24  ;;  %v2047_v55 = vor.u32 %v2046_v12, %v2045_v25  ;;  %v2055_v9 = vshrl.u32 %v16890_v8, %v2040_v10  ;;  %17243 = vst [vmem:[#allocation128_spill] sm:$0xff] %v11739_v51  ;;  %v11743_v53 = vpop.f32.mrf.mxu0  ;;  %v17245_v46 = vld [vmem:[#allocation100_spill] sm:$0xff]  ;;  %v17248_v10 = vld [vmem:[#allocation110_spill] sm:$0xff] }
 0x263   : > { %v11734_v47 = vsub.s32 %v1981_v63, %v1984_v15  ;;  %v2008_v28 = vsel %vm1923_vm3, %v2007_v43, %v1983_v14  ;;  %v1815_v31 = vsel %vm1808_vm14, %v1811_v2, %v1814_v41  ;;  %v1901_v61 = vxor.u32 2147483648, %v1900_v57  ;;  %17244 = vst [vmem:[#allocation129_spill] sm:$0xff] %v11743_v53  ;;  %5518 = vmatmul.mubr.bf16.gmra.mxu0 %v17245_v46  ;;  %v11751_v8 = vpop.f32.mrf.mxu1 }
 0x264   : > { %v2050_v3 = vor.u32 %v2049_v21, %v2048_v6  ;;  %v2053_v54 = vor.u32 %v2052_v42, %v2051_v30  ;;  %v2010_v63 = vsel %vm11690_vm4, 0, %v2008_v28  ;;  %vm2057_vm7 = vcmp.lt.s32.totalorder %v11702_v44, 1  ;;  %17246 = vst [vmem:[#allocation130_spill] sm:$0xff] %v11751_v8  ;;  %5527 = vmatprep.mubr.bf16.mxu0 %v17248_v10  ;;  %v11760_v6 = vpop.f32.mrf.mxu0  ;;  %v17250_v21 = vld [vmem:[#allocation111_spill] sm:$0xff]  ;;  %v12138_v8 = vld [vmem:[#allocation9 + $0x2b0] sm:$0xff] }
 0x265   : > { %v1987_v24 = vsub.s32 0, %v11734_v47  ;;  %vm2060_vm8 = vcmp.lt.s32.totalorder %v11702_v44, 4  ;;  %5631 = vmatmul.mubr.bf16.gmra.mxu1 %v17247_v62  ;;  %v1902_v14 = vsel %vm1819_vm15, %v1901_v61, %v1900_v57  ;;  %v2056_v25 = vor.u32 %v2055_v9, %v2054_v50  ;;  %17249 = vst [vmem:[#allocation131_spill] sm:$0xff] %v11760_v6  ;;  %v11770_v41 = vpop.f32.mrf.mxu1 }
 0x266   : > { %vm2058_vm9 = vcmp.lt.s32.totalorder %v11702_v44, 2  ;;  %v2062_v12 = vsel %vm2060_vm8, %v2050_v3, 2102212464  ;;  %5640 = vmatprep.mubr.bf16.mxu1 %v17250_v21  ;;  %v1905_v30 = vsel %vm11526_vm1, %v17060_v32, %v1902_v14  ;;  %vm2059_vm10 = vcmp.lt.s32.totalorder %v11702_v44, 3  ;;  %17251 = vst [vmem:[#allocation132_spill] sm:$0xff] %v11770_v41  ;;  %v11778_v57 = vpop.f32.mrf.mxu0  ;;  %v940_v44 = vld [vmem:[#allocation9 + $0x5d0] sm:$0xff] }
 0x267   : > { %v7721_v42 = vmin.u32 %v1987_v24, %v11734_v47  ;;  %v2061_v2 = vsel %vm2057_vm7, %v2041_v56, %v2044_v19  ;;  %8410 = vcosq.f32 %v1905_v30  ;;  %v2063_v15 = vsel %vm2059_vm10, %v2047_v55, %v2062_v12  ;;  %17252 = vst [vmem:[#allocation136_spill] sm:$0xff] %v11778_v57  ;;  %v11784_v9 = vpop.f32.mrf.mxu1  ;;  %v12121_v41 = vld [vmem:[#allocation9 + $0x6f0] sm:$0xff] }
 0x268   : > { %v2065_v43 = vsel %vm2057_vm7, %v2044_v19, %v2047_v55  ;;  %v2066_v11 = vsel %vm2060_vm8, %v2053_v54, 920167782  ;;  %8412 = vsinq.f32 %v1905_v30  ;;  %v2069_v28 = vsel %vm2057_vm7, %v2047_v55, %v2050_v3  ;;  %17253 = vst [vmem:[#allocation137_spill] sm:$0xff] %v11784_v9  ;;  %v11792_v12 = vpop.f32.mrf.mxu0  ;;  %v12117_v9 = vld [vmem:[#allocation9 + $0x2f0] sm:$0xff] }
 0x269   : > { %v1989_v50 = vclz %v7721_v42  ;;  %v1816_v61 = vsel %vm1805_vm6, nan, %v1815_v31  ;;  %v2014_v24 = vadd.s32 3, %v2010_v63  ;;  %v2067_v19 = vsel %vm2059_vm10, %v2050_v3, %v2066_v11  ;;  %17254 = vst [vmem:[#allocation55_spill] sm:$0xff] %v11792_v12  ;;  %v812_v31 = vld [vmem:[#allocation9 + $0x1d0] sm:$0xff]  ;;  %v11802_v56 = vpop.f32.mrf.mxu1 }
 0x26a   : > { %v2070_v14 = vsel %vm2060_vm8, %v2056_v25, 1326507024  ;;  %v11796_v55 = vsel %vm2058_vm9, %v2061_v2, %v2063_v15  ;;  %v2068_v42 = vsel %vm2058_vm9, %v2065_v43, %v2067_v19  ;;  %v816_v63 = vld [vmem:[#allocation9 + $0x1f0] sm:$0xff]  ;;  %17255 = vst [vmem:[#allocation56_spill] sm:$0xff] %v11802_v56  ;;  %v11811_v2 = vpop.f32.mrf.mxu0  ;;  %vm1916_vm15 = vcmp.eq.s32.totalorder %v11672_v45, 2 }
 0x26b   : > { %v7722_v30 = vadd.s32 4294967294, %v1989_v50  ;;  %v2071_v1 = vsel %vm2059_vm10, %v2053_v54, %v2070_v14  ;;  %v11807_v25 = vmul.u32.u64.low %v11697_v39, %v2068_v42  ;;  %v11808_v11 = vmul.u32.u64.high %v11697_v39, %v2068_v42, %v11807_v25  ;;  %17256 = vst [vmem:[#allocation48_spill] sm:$0xff] %v11811_v2  ;;  %v17257_v15 = vld [vmem:[#allocation112_spill] sm:$0xff]  ;;  %v11819_v14 = vpop.f32.mrf.mxu1  ;;  %v17259_v42 = vld [vmem:[#allocation113_spill] sm:$0xff] }
 0x26c   : > { %v2072_v3 = vsel %vm2058_vm9, %v2069_v28, %v2071_v1  ;;  %5528 = vmatmul.mubr.bf16.gmra.mxu0 %v17257_v15  ;;  %v8773_v50 = vmov 1966171168   ;;  %v944_v28 = vld [vmem:[#allocation9 + $0x5f0] sm:$0xff]  ;;  %17258 = vst [vmem:[#allocation138_spill] sm:$0xff] %v11819_v14  ;;  %vm1913_vm11 = vcmp.eq.s32.totalorder %v11672_v45, 0  ;;  %v2080_v21 = vmul.u32 %v11697_v39, %v11796_v55 }
 0x26d   : > { %vm7723_vm1 = vcmp.lt.s32.totalorder %v7722_v30, 0  ;;  %v11816_v54 = vmul.u32.u64.low %v11697_v39, %v2072_v3  ;;  %v11817_v43 = vmul.u32.u64.high %v11697_v39, %v2072_v3, %v11816_v54  ;;  %v2150_v19 = vunpack.c.l.s4 %v8773_v50  ;;  %5641 = vmatmul.mubr.bf16.gmra.mxu1 %v17259_v42  ;;  %v17260_v1 = vld [vmem:[#allocation44_spill] sm:$0xff]  ;;  %v11826_v3 = vpop.f32.mrf.mxu0  ;;  %v11834_v16 = vpop.f32.mrf.mxu1 }
 0x26e   : > { %5537 = vmatprep.mubr.bf16.mxu0 %v17260_v1  ;;  %v1992_v15 = vsel %vm7723_vm1, 0, %v7722_v30  ;;  %v7788_v10 = vcombine.low %v812_v31, %v816_v63  ;;  %v7789_v62 = vcombine.high %v812_v31, %v816_v63  ;;  %17261 = vst [vmem:[#allocation57_spill] sm:$0xff] %v11826_v3  ;;  %v17262_v54 = vld [vmem:[#allocation122_spill] sm:$0xff]  ;;  %vm1912_vm2 = vcmp.lt.s32.totalorder %v11672_v45, 2  ;;  %v808_v30 = vld [vmem:[#allocation9 + $0x1b0] sm:$0xff]  ;;  %17265 = vst [vmem:[#allocation139_spill] sm:$0xff] %v11834_v16 }
 0x26f   : > { %5650 = vmatprep.mubr.bf16.mxu1 %v17262_v54  ;;  %v1993_v50 = vsub.s32 32, %v1992_v15  ;;  %v1994_v46 = vshll.u32 %v11734_v47, %v1992_v15  ;;  %v1997_v42 = vsub.s32 4294967266, %v1992_v15  ;;  %v17263_v17 = vlaneseq  ;;  %v11838_v54 = vpop.f32.mrf.mxu0  ;;  %v11845_v13 = vpop.f32.mrf.mxu1  ;;  %v11894_v14 = vld [vmem:[#allocation9 + $0x510] sm:$0xff] }
 0x270   : > { %vm1909_vm5 = vweird.f32 %v17060_v32  ;;  %v2083_v39 = vadd.s32 1, %v11808_v11  ;;  %v2151_v55 = vunpack.c.0.s8 %v2150_v19  ;;  %5701 = vmatprep.subr.bf16.mxu0 %v7789_v62  ;;  %v7916_v31 = vcombine.low %v940_v44, %v944_v28  ;;  %17266 = vst [vmem:[#allocation62_spill] sm:$0xff] %v11838_v54  ;;  %17267 = vst [vmem:[#allocation63_spill] sm:$0xff] %v11845_v13  ;;  %v12057_v54 = vld [vmem:[#allocation9 + $0x370] sm:$0xff] }
 0x271   : > { %v11832_v1 = vshrl.u32 %v17263_v17, 7  ;;  %v7917_v63 = vcombine.high %v940_v44, %v944_v28  ;;  %v1995_v47 = vshrl.u32 %v11695_v20, %v1993_v50  ;;  %v1998_v15 = vadd.s32 127, %v1997_v42  ;;  %5702 = vmatpush1.bf16.msra.mxu0 %v7788_v10  ;;  %v796_v28 = vld [vmem:[#allocation9 + $0x150] sm:$0xff]  ;;  %v11853_v42 = vpop.f32.mrf.mxu0 }
 0x272   : > { %vm2082_vm12 = vc.u32 %v11817_v43, %v11807_v25  ;;  %v2146_v17 = vcombine.low %v11684_v18, %v11686_v34  ;;  %v11847_v19 = vand.u32 3, %v2014_v24  ;;  %vm2027_vm13 = vcmp.lt.s32.totalorder %v17163_v40, 0  ;;  %17268 = vst [vmem:[#allocation68_spill] sm:$0xff] %v11853_v42  ;;  %v12055_v42 = vld [vmem:[#allocation9 + $0x350] sm:$0xff] }
 0x273   : > { %17264 = vst [vmem:[#allocation61_spill] sm:$0xff] %v11832_v1  ;;  %v2084_v62 = vsel %vm2082_vm12, %v2083_v39, %v11808_v11  ;;  %v11851_v44 = vmul.f32 0.01, %v1816_v61  ;;  %5814 = vmatprep.subr.bf16.mxu1 %v7917_v63  ;;  %v7780_v20 = vcombine.low %v804_v52, %v808_v30  ;;  %v1996_v50 = vor.u32 %v1995_v47, %v1994_v46  ;;  %v800_v11 = vld [vmem:[#allocation9 + $0x170] sm:$0xff]  ;;  %v11867_v63 = vpop.f32.mrf.mxu1  ;;  %v11873_v37 = vpop.f32.mrf.mxu0 }
 0x274   : > { %v1999_v18 = vshll.u32 %v1998_v15, 23  ;;  %v17269_v34 = vand.u32 2147483647, %v17163_v40  ;;  %v11861_v24 = vadd.s32 %v2084_v62, %v2080_v21  ;;  %5815 = vmatpush1.bf16.msra.mxu1 %v7916_v31  ;;  %v7781_v35 = vcombine.high %v804_v52, %v808_v30  ;;  %v11863_v61 = vld [vmem:[#allocation9 + $0x550] sm:$0xff]  ;;  %17272 = vst [vmem:[#allocation69_spill] sm:$0xff] %v11867_v63  ;;  %17273 = vst [vmem:[#allocation146_spill] sm:$0xff] %v11873_v37  ;;  %v8411_v31 = vpop.eup %8410 }
 0x275   : > { %v11865_v39 = vld [vmem:[#allocation9 + $0x570] sm:$0xff]  ;;  %v11870_v46 = vsub.s32 %v2151_v55, %v11832_v1  ;;  %v7908_v15 = vcombine.low %v932_v0, %v936_v23  ;;  %v17274_v21 = vld [vmem:[#allocation123_spill] sm:$0xff]  ;;  %v2003_v30 = vcvt.s32.f32 %v1996_v50  ;;  %v11878_v62 = vadd.s32 %v11807_v25, %v11817_v43  ;;  %v11885_v47 = vpop.f32.mrf.mxu1  ;;  %v11890_v43 = vpop.f32.mrf.mxu0 }
 0x276   : > { %vm11857_vm14 = vcmp.le.f32.partialorder %v17269_v34, 0.7853982  ;;  %v7909_v34 = vcombine.high %v932_v0, %v936_v23  ;;  %5538 = vmatmul.mubr.bf16.gmra.mxu0 %v17274_v21  ;;  %v2000_v52 = vor.u32 4788187, %v1999_v18  ;;  %v2086_v27 = vadd.s32 536870912, %v11861_v24  ;;  %5703 = vmatprep.subr.bf16.mxu0 %v7781_v35  ;;  %v11881_v55 = vld [vmem:[#allocation9 + $0x110] sm:$0xff]  ;;  %v8413_v0 = vpop.eup %8412 }
 0x277   : > { %v11883_v63 = vld [vmem:[#allocation9 + $0x130] sm:$0xff]  ;;  %17275 = vst [vmem:[#allocation147_spill] sm:$0xff] %v11885_v47  ;;  %v1917_v21 = vxor.u32 2147483648, %v8411_v31  ;;  %5704 = vmatpush1.bf16.msra.mxu0 %v7780_v20  ;;  %v7772_v50 = vcombine.low %v796_v28, %v800_v11  ;;  %v7773_v18 = vcombine.high %v796_v28, %v800_v11  ;;  %v7900_v25 = vcombine.low %v11863_v61, %v11865_v39  ;;  %v11896_v37 = vpop.f32.mrf.mxu1  ;;  %v17279_v20 = vld [vmem:[#allocation53_spill] sm:$0xff] }
 0x278   : > { %v17276_v23 = vld [vmem:[#allocation124_spill] sm:$0xff]  ;;  %5816 = vmatprep.subr.bf16.mxu1 %v7909_v34  ;;  %17277 = vst [vmem:[#allocation148_spill] sm:$0xff] %v11890_v43  ;;  %v1914_v35 = vxor.u32 2147483648, %v8413_v0  ;;  %v2001_v13 = vand.u32 2147483647, %v2000_v52  ;;  %v2087_v16 = vshrl.u32 %v2086_v27, 30  ;;  %v7901_v47 = vcombine.high %v11863_v61, %v11865_v39  ;;  %5547 = vmatprep.mubr.bf16.mxu0 %v17279_v20  ;;  %v11912_v39 = vpop.f32.mrf.mxu0 }
 0x279   : > { %5651 = vmatmul.mubr.bf16.gmra.mxu1 %v17276_v23  ;;  %v920_v23 = vld [vmem:[#allocation9 + $0x530] sm:$0xff]  ;;  %17278 = vst [vmem:[#allocation151_spill] sm:$0xff] %v11896_v37  ;;  %v1918_v28 = vsel %vm1916_vm15, %v1917_v21, %v8413_v0  ;;  %v17280_v11 = vcombine.low %v11675_v58, %v11682_v48  ;;  %v11908_v27 = vrot.slane %v2146_v17, %v11870_v46  ;;  %17281 = vst [vmem:[#allocation70_spill] sm:$0xff] %v11912_v39  ;;  %v11920_v48 = vpop.f32.mrf.mxu1  ;;  %v17283_v17 = vld [vmem:[#allocation133_spill] sm:$0xff] }
 0x27a   : > { %5817 = vmatpush1.bf16.msra.mxu1 %v7908_v15  ;;  %5705 = vmatprep.subr.bf16.mxu0 %v7773_v18  ;;  %v7765_v61 = vcombine.high %v11881_v55, %v11883_v63  ;;  %v1915_v15 = vsel %vm1913_vm11, %v8411_v31, %v1914_v35  ;;  %v2004_v52 = vmul.f32 %v2003_v30, %v2001_v13  ;;  %v2088_v21 = vshll.u32 %v2087_v16, 30  ;;  %v11916_v20 = vld [vmem:[#allocation9 + $0xd0] sm:$0xff]  ;;  %v11933_v35 = vpop.f32.mrf.mxu0 }
 0x27b   : > { %v11905_v34 = vrot.slane %v17280_v11, %v11870_v46  ;;  %v2111_v0 = vsub.s32 4, %v2087_v16  ;;  %5818 = vmatprep.subr.bf16.mxu1 %v7901_v47  ;;  %v11918_v58 = vld [vmem:[#allocation9 + $0xf0] sm:$0xff]  ;;  %17282 = vst [vmem:[#allocation71_spill] sm:$0xff] %v11920_v48  ;;  %5660 = vmatprep.mubr.bf16.mxu1 %v17283_v17  ;;  %v1919_v18 = vsel %vm1912_vm2, %v1915_v15, %v1918_v28  ;;  %17284 = vst [vmem:[#allocation72_spill] sm:$0xff] %v11933_v35  ;;  %v17301_v35 = vld [vmem:[#allocation143_spill] sm:$0xff] }
 0x27c   : > { %5706 = vmatpush1.bf16.msra.mxu0 %v7772_v50  ;;  %v7764_v11 = vcombine.low %v11881_v55, %v11883_v63  ;;  %v7892_v13 = vcombine.low %v11894_v14, %v920_v23  ;;  %v7893_v31 = vcombine.high %v11894_v14, %v920_v23  ;;  %v11929_v47 = vld [vmem:[#allocation9 + $0x4d0] sm:$0xff]  ;;  %v1920_v17 = vsel %vm1909_vm5, nan, %v1919_v18  ;;  %v11942_v55 = vpop.f32.mrf.mxu1  ;;  %v17289_v18 = vld [vmem:[#allocation135_spill] sm:$0xff] }
 0x27d   : > { %v11931_v30 = vld [vmem:[#allocation9 + $0x4f0] sm:$0xff]  ;;  %v2005_v48 = vxor.u32 2147483648, %v2004_v52  ;;  %v11938_v45 = vsub.s32 %v11861_v24, %v2088_v21  ;;  %v2112_v63 = vsel %vm2027_vm13, %v2111_v0, %v2087_v16  ;;  %5707 = vmatprep.subr.bf16.mxu0 %v7765_v61  ;;  %17285 = vst [vmem:[#allocation153_spill] sm:$0xff] %v11942_v55  ;;  %v2134_v23 = vmul.f32 0.01, %v1920_v17  ;;  %v11954_v16 = vpop.f32.mrf.mxu0 }
 0x27e   : > { %5819 = vmatpush1.bf16.msra.mxu1 %v7900_v25  ;;  %v2114_v14 = vsel %vm11857_vm14, 0, %v2112_v63  ;;  %v2177_v50 = vcombine.low %v11905_v34, %v11908_v27  ;;  %v7757_v32 = vcombine.high %v11916_v20, %v11918_v58  ;;  %v11950_v24 = vld [vmem:[#allocation9 + $0x90] sm:$0xff]  ;;  %17286 = vst [vmem:[#allocation50_spill] sm:$0xff] %v11954_v16  ;;  %v17287_v25 = vld [vmem:[#allocation134_spill] sm:$0xff]  ;;  %v7885_v34 = vcombine.high %v11929_v47, %v11931_v30  ;;  %v11966_v17 = vpop.f32.mrf.mxu1 }
 0x27f   : > { %5820 = vmatprep.subr.bf16.mxu1 %v7893_v31  ;;  %v11952_v28 = vld [vmem:[#allocation9 + $0xb0] sm:$0xff]  ;;  %5548 = vmatmul.mubr.bf16.gmra.mxu0 %v17287_v25  ;;  %v2006_v61 = vsel %vm1923_vm3, %v2005_v48, %v2004_v52  ;;  %v2091_v15 = vsub.s32 0, %v11938_v45  ;;  %v2118_v21 = vadd.s32 3, %v2114_v14  ;;  %17288 = vst [vmem:[#allocation154_spill] sm:$0xff] %v11966_v17  ;;  %v2147_v48 = vcombine.low %v11851_v44, %v2134_v23 }
 0x280   : > { %v11962_v27 = vld [vmem:[#allocation9 + $0x490] sm:$0xff]  ;;  %v2009_v52 = vsel %vm11690_vm4, %v17115_v59, %v2006_v61  ;;  %5708 = vmatpush1.bf16.msra.mxu0 %v7764_v11  ;;  %v7756_v14 = vcombine.low %v11916_v20, %v11918_v58  ;;  %v7884_v44 = vcombine.low %v11929_v47, %v11931_v30  ;;  %v7749_v11 = vcombine.high %v11950_v24, %v11952_v28  ;;  %v11996_v61 = vpop.f32.mrf.mxu1 }
 0x281   : > { %v11964_v0 = vld [vmem:[#allocation9 + $0x4b0] sm:$0xff]  ;;  %5661 = vmatmul.mubr.bf16.gmra.mxu1 %v17289_v18  ;;  %v11983_v18 = vpop.f32.mrf.mxu0  ;;  %8414 = vcosq.f32 %v2009_v52  ;;  %v7725_v49 = vmin.u32 %v2091_v15, %v11938_v45  ;;  %5709 = vmatprep.subr.bf16.mxu0 %v7757_v32  ;;  %17292 = vst [vmem:[#allocation156_spill] sm:$0xff] %v11996_v61  ;;  %v11999_v63 = vrot.slane %v2177_v50, %v11870_v46  ;;  %v17294_v61 = vld [vmem:[#allocation141_spill] sm:$0xff]  ;;  %v12014_v50 = vand.u32 3, %v2118_v21 }
 0x282   : > { %v17290_v31 = vld [vmem:[#allocation140_spill] sm:$0xff]  ;;  %17291 = vst [vmem:[#allocation155_spill] sm:$0xff] %v11983_v18  ;;  %5821 = vmatpush1.bf16.msra.mxu1 %v7892_v13  ;;  %8416 = vsinq.f32 %v2009_v52  ;;  %v7748_v13 = vcombine.low %v11950_v24, %v11952_v28  ;;  %v7877_v47 = vcombine.high %v11962_v27, %v11964_v0  ;;  %5670 = vmatprep.mubr.bf16.mxu1 %v17294_v61  ;;  %v12027_v37 = vpop.f32.mrf.mxu1  ;;  %vm2020_vm0 = vcmp.eq.s32.totalorder %v11847_v19, 2 }
 0x283   : > { %5557 = vmatprep.mubr.bf16.mxu0 %v17290_v31  ;;  %v11977_v25 = vld [vmem:[#allocation9 + $0x50] sm:$0xff]  ;;  %5822 = vmatprep.subr.bf16.mxu1 %v7885_v34  ;;  %v12011_v31 = vpop.f32.mrf.mxu0  ;;  %v2093_v52 = vclz %v7725_v49  ;;  %v12017_v34 = vrot.slane %v2147_v48, %v11870_v46  ;;  %v7876_v24 = vcombine.low %v11962_v27, %v11964_v0  ;;  %17295 = vst [vmem:[#allocation158_spill] sm:$0xff] %v12027_v37  ;;  %vm2017_vm3 = vcmp.eq.s32.totalorder %v11847_v19, 0 }
 0x284   : > { %v11979_v16 = vld [vmem:[#allocation9 + $0x70] sm:$0xff]  ;;  %17293 = vst [vmem:[#allocation157_spill] sm:$0xff] %v12011_v31  ;;  %5710 = vmatpush1.bf16.msra.mxu0 %v7756_v14  ;;  %v12053_v43 = vpop.f32.mrf.mxu1  ;;  %vm2016_vm6 = vcmp.lt.s32.totalorder %v11847_v19, 2  ;;  %vm2013_vm7 = vweird.f32 %v17115_v59  ;;  %vm2124_vm8 = vcmp.eq.s32.totalorder %v12014_v50, 2  ;;  %vm2121_vm9 = vcmp.eq.s32.totalorder %v12014_v50, 0 }
 0x285   : > { %v11981_v17 = vld [vmem:[#allocation9 + $0x450] sm:$0xff]  ;;  %v7741_v21 = vcombine.high %v11977_v25, %v11979_v16  ;;  %v12043_v14 = vpop.f32.mrf.mxu0  ;;  %v7726_v37 = vadd.s32 4294967294, %v2093_v52  ;;  %5711 = vmatprep.subr.bf16.mxu0 %v7749_v11  ;;  %17297 = vst [vmem:[#allocation79_spill] sm:$0xff] %v12053_v43  ;;  %v17300_v43 = vld [vmem:[#allocation142_spill] sm:$0xff]  ;;  %vm2120_vm10 = vcmp.lt.s32.totalorder %v12014_v50, 2  ;;  %vm2117_vm15 = vweird.f32 %v17163_v40 }
 0x286   : > { %v11990_v20 = vld [vmem:[#allocation9 + $0x470] sm:$0xff]  ;;  %17296 = vst [vmem:[#allocation78_spill] sm:$0xff] %v12043_v14  ;;  %5823 = vmatpush1.bf16.msra.mxu1 %v7884_v44  ;;  %v12080_v52 = vpop.f32.mrf.mxu1 }
 0x287   : > { %v11992_v58 = vld [vmem:[#allocation9 + $0x10] sm:$0xff]  ;;  %v7869_v27 = vcombine.high %v11981_v17, %v11990_v20  ;;  %5824 = vmatprep.subr.bf16.mxu1 %v7877_v47  ;;  %v12069_v49 = vpop.f32.mrf.mxu0  ;;  %vm7727_vm4 = vcmp.lt.s32.totalorder %v7726_v37, 0  ;;  %17299 = vst [vmem:[#allocation160_spill] sm:$0xff] %v12080_v52  ;;  %5558 = vmatmul.mubr.bf16.gmra.mxu0 %v17300_v43 }
 0x288   : > { %v11994_v23 = vld [vmem:[#allocation9 + $0x30] sm:$0xff]  ;;  %17298 = vst [vmem:[#allocation159_spill] sm:$0xff] %v12069_v49  ;;  %v2096_v44 = vsel %vm7727_vm4, 0, %v7726_v37  ;;  %5712 = vmatpush1.bf16.msra.mxu0 %v7748_v13 }
 0x289   : > { %v12005_v30 = vld [vmem:[#allocation9 + $0x410] sm:$0xff]  ;;  %5671 = vmatmul.mubr.bf16.gmra.mxu1 %v17301_v35  ;;  %v12097_v35 = vpop.f32.mrf.mxu0  ;;  %v2097_v13 = vsub.s32 32, %v2096_v44  ;;  %v2098_v11 = vshll.u32 %v11938_v45, %v2096_v44  ;;  %v2101_v43 = vsub.s32 4294967266, %v2096_v44  ;;  %5713 = vmatprep.subr.bf16.mxu0 %v7741_v21  ;;  %v17318_v36 = vcombine.low %v11992_v58, %v11994_v23 }
 0x28a   : > { %v12007_v32 = vld [vmem:[#allocation9 + $0x430] sm:$0xff]  ;;  %17302 = vst [vmem:[#allocation161_spill] sm:$0xff] %v12097_v35  ;;  %5825 = vmatpush1.bf16.msra.mxu1 %v7876_v24  ;;  %v12115_v35 = vpop.f32.mrf.mxu1 }
 0x28b   : > { %v12009_v15 = vld [vmem:[#allocation9 + $0x3d0] sm:$0xff]  ;;  %17304 = vst [vmem:[#allocation162_spill] sm:$0xff] %v12115_v35  ;;  %5826 = vmatprep.subr.bf16.mxu1 %v7869_v27  ;;  %v12130_v21 = vpop.f32.mrf.mxu0  ;;  %v2099_v45 = vshrl.u32 %v11878_v62, %v2097_v13  ;;  %v2102_v51 = vadd.s32 127, %v2101_v43  ;;  %v17308_v62 = vcombine.low %v11977_v25, %v11979_v16  ;;  %v17311_v13 = vcombine.high %v11992_v58, %v11994_v23 }
 0x28c   : > { %v12021_v28 = vld [vmem:[#allocation9 + $0x3f0] sm:$0xff]  ;;  %17305 = vst [vmem:[#allocation163_spill] sm:$0xff] %v12130_v21  ;;  %v12143_v33 = vpop.f32.mrf.mxu1  ;;  %v17307_v21 = vld [vmem:[#allocation145_spill] sm:$0xff]  ;;  %v17321_v23 = vcombine.low %v12005_v30, %v12007_v32 }
 0x28d   : > { %v12023_v18 = vld [vmem:[#allocation9 + $0x7d0] sm:$0xff]  ;;  %17306 = vst [vmem:[#allocation164_spill] sm:$0xff] %v12143_v33  ;;  %5680 = vmatprep.mubr.bf16.mxu1 %v17307_v21  ;;  %5714 = vmatpush1.bf16.msra.mxu0 %v17308_v62  ;;  %v12162_v43 = vpop.f32.mrf.mxu0  ;;  %v2100_v16 = vor.u32 %v2099_v45, %v2098_v11  ;;  %v2103_v25 = vshll.u32 %v2102_v51, 23  ;;  %v17310_v62 = vcombine.low %v11981_v17, %v11990_v20  ;;  %v17316_v45 = vld [vmem:[#allocation149_spill] sm:$0xff] }
 0x28e   : > { %v12025_v55 = vld [vmem:[#allocation9 + $0x7f0] sm:$0xff]  ;;  %17309 = vst [vmem:[#allocation80_spill] sm:$0xff] %v12162_v43  ;;  %5715 = vmatprep.subr.bf16.mxu0 %v17311_v13  ;;  %v12182_v24 = vpop.f32.mrf.mxu1  ;;  %v8415_v51 = vpop.eup %8414  ;;  %v17313_v17 = vcombine.high %v12005_v30, %v12007_v32  ;;  %v12216_v13 = vld [vmem:[%s8930_s16] sm:$0xff]  ;;  %v17331_v19 = vcombine.low %v12009_v15, %v12021_v28 }
 0x28f   : > { %v12037_v0 = vld [vmem:[#allocation9 + $0x390] sm:$0xff]  ;;  %5827 = vmatpush1.bf16.msra.mxu1 %v17310_v62  ;;  %17312 = vst [vmem:[#allocation81_spill] sm:$0xff] %v12182_v24  ;;  %v12195_v20 = vpop.f32.mrf.mxu0  ;;  %v2021_v57 = vxor.u32 2147483648, %v8415_v51  ;;  %v2104_v6 = vor.u32 4788187, %v2103_v25  ;;  %v17322_v25 = vcombine.high %v12009_v15, %v12021_v28  ;;  %v17325_v30 = vcombine.high %v12023_v18, %v12025_v55 }
 0x290   : > { %v12039_v61 = vld [vmem:[#allocation9 + $0x3b0] sm:$0xff]  ;;  %5828 = vmatprep.subr.bf16.mxu1 %v17313_v17  ;;  %17314 = vst [vmem:[#allocation165_spill] sm:$0xff] %v12195_v20  ;;  %v8417_v17 = vpop.eup %8416  ;;  %v2107_v20 = vcvt.s32.f32 %v2100_v16  ;;  %v12209_v53 = vpop.f32.mrf.mxu1  ;;  %v17320_v16 = vld [vmem:[#allocation73_spill] sm:$0xff]  ;;  %v17334_v15 = vcombine.low %v12023_v18, %v12025_v55  ;;  %v7056_v18 = vunpack.c.h.bf16 %v12216_v13 }
 0x291   : > { %v12041_v31 = vld [vmem:[#allocation9 + $0x790] sm:$0xff]  ;;  %17315 = vst [vmem:[#allocation82_spill] sm:$0xff] %v12209_v53  ;;  %5681 = vmatmul.mubr.bf16.gmra.mxu1 %v17317_v60  ;;  %v2018_v44 = vxor.u32 2147483648, %v8417_v17  ;;  %5716 = vmatpush1.bf16.msra.mxu0 %v17318_v36  ;;  %v12221_v26 = vpop.f32.mrf.mxu0  ;;  %v2022_v36 = vsel %vm2020_vm0, %v2021_v57, %v8417_v17  ;;  %v2105_v58 = vand.u32 2147483647, %v2104_v6 }
 0x292   : > { %v12051_v39 = vld [vmem:[#allocation9 + $0x7b0] sm:$0xff]  ;;  %17319 = vst [vmem:[#allocation83_spill] sm:$0xff] %v12221_v26  ;;  %5717 = vmatprep.subr.bf16.mxu0 %v17322_v25  ;;  %v12242_v60 = vpop.f32.mrf.mxu1 }
 0x293   : > { %v12071_v48 = vld [vmem:[#allocation9 + $0x750] sm:$0xff]  ;;  %5829 = vmatpush1.bf16.msra.mxu1 %v17321_v23  ;;  %17323 = vst [vmem:[#allocation166_spill] sm:$0xff] %v12242_v60  ;;  %v2019_v57 = vsel %vm2017_vm3, %v8415_v51, %v2018_v44  ;;  %v12258_v32 = vpop.f32.mrf.mxu0  ;;  %v8422_v23 = vld [vmem:[#allocation12] sm:$0xff]  ;;  %v7055_v60 = vunpack.c.l.bf16 %v12216_v13  ;;  %v2108_v51 = vmul.f32 %v2107_v20, %v2105_v58 }
 0x294   : > { %v12084_v49 = vld [vmem:[#allocation9 + $0x770] sm:$0xff]  ;;  %5830 = vmatprep.subr.bf16.mxu1 %v17325_v30  ;;  %17326 = vst [vmem:[#allocation168_spill] sm:$0xff] %v12258_v32  ;;  %v2023_v44 = vsel %vm2016_vm6, %v2019_v57, %v2022_v36  ;;  %v12269_v22 = vpop.f32.mrf.mxu1  ;;  %v12272_v30 = vstv %s12157_s24  ;;  %v6995_v32 = vld [vmem:[%s8930_s16 + $0x20] sm:$0xff]  ;;  %v17346_v13 = vld [vmem:[#allocation19_spill] sm:$0xff] }
 0x295   : > { %v12086_v14 = vld [vmem:[#allocation9 + $0x310] sm:$0xff]  ;;  %17329 = vst [vmem:[#allocation169_spill] sm:$0xff] %v12269_v22  ;;  %17330 = vst [vmem:[#allocation170_spill] sm:$0xff] %v12272_v30  ;;  %5718 = vmatpush2.bf16.msra.mxu0 %v17331_v19  ;;  %v12286_v20 = vpop.f32.mrf.mxu0  ;;  %v12289_v36 = vmul.f32 %v12272_v30, %v7055_v60  ;;  %v17335_v60 = vcombine.high %v12037_v0, %v12039_v61  ;;  %v17342_v22 = vld [vmem:[#allocation74_spill] sm:$0xff] }
 0x296   : > { %v12088_v3 = vld [vmem:[#allocation9 + $0x330] sm:$0xff]  ;;  %17332 = vst [vmem:[#allocation171_spill] sm:$0xff] %v12286_v20  ;;  %v12307_v28 = vpop.f32.mrf.mxu1 }
 0x297   : > { %v12099_v52 = vld [vmem:[#allocation9 + $0x710] sm:$0xff]  ;;  %17333 = vst [vmem:[#allocation26_spill] sm:$0xff] %v12289_v36  ;;  %5831 = vmatpush2.bf16.msra.mxu1 %v17334_v15  ;;  %5719 = vmatprep.subr.bf16.mxu0 %v17335_v60  ;;  %17336 = vst [vmem:[#allocation27_spill] sm:$0xff] %v12307_v28  ;;  %v12315_v36 = vld [vmem:[%s8930_s16 + $0x40] sm:$0xff]  ;;  %v12320_v55 = vpop.f32.mrf.mxu0  ;;  %v7063_v28 = vunpack.c.l.bf16 %v6995_v32 }
 0x298   : > { %v12101_v2 = vld [vmem:[#allocation9 + $0x730] sm:$0xff]  ;;  %17339 = vst [vmem:[#allocation84_spill] sm:$0xff] %v12320_v55  ;;  %v8424_v15 = vld [vmem:[#allocation12 + $0x40] sm:$0xff] }
 0x299   : > { %v17303_v56 = vld [vmem:[#allocation144_spill] sm:$0xff]  ;;  %v12348_v19 = vpop.f32.mrf.mxu0 }
 0x29a   : > { %5567 = vmatprep.mubr.bf16.mxu0 %v17303_v56  ;;  %v12104_v37 = vld [vmem:[#allocation9 + $0x2d0] sm:$0xff]  ;;  %17345 = vst [vmem:[#allocation89_spill] sm:$0xff] %v12348_v19 }
 0x29b   : > { %v12119_v56 = vld [vmem:[#allocation9 + $0x6d0] sm:$0xff]  ;;  %5568 = vmatmul.mubr.bf16.gmra.mxu0 %v17316_v45 }
 0x29c   : > { %v12136_v35 = vld [vmem:[#allocation9 + $0x290] sm:$0xff]  ;;  %5577 = vmatprep.mubr.bf16.mxu0 %v17320_v16  ;;  %v12247_v16 = vstv %s12124_s14 }
 0x29d   : > { %v12140_v27 = vld [vmem:[#allocation9 + $0x690] sm:$0xff]  ;;  %17324 = vst [vmem:[#allocation167_spill] sm:$0xff] %v12247_v16  ;;  %v12264_v62 = vmul.f32 %v8422_v23, %v12247_v16  ;;  %v2024_v23 = vsel %vm2013_vm7, nan, %v2023_v44  ;;  %v2109_v44 = vxor.u32 2147483648, %v2108_v51  ;;  %v12324_v60 = vmul.f32 %v8424_v15, %v12247_v16 }
 0x29e   : > { %v12150_v47 = vld [vmem:[#allocation9 + $0x6b0] sm:$0xff]  ;;  %v12352_v15 = vmul.f32 %v12272_v30, %v7056_v18 }
 0x29f   : > { %v12172_v33 = vld [vmem:[#allocation9 + $0x650] sm:$0xff]  ;;  %17328 = vst [vmem:[#allocation51_spill] sm:$0xff] %v12264_v62  ;;  %v12299_v62 = vmul.f32 0.01, %v2024_v23  ;;  %v17338_v23 = vcombine.high %v12041_v31, %v12051_v39  ;;  %17340 = vst [vmem:[#allocation87_spill] sm:$0xff] %v12324_v60  ;;  %v7064_v60 = vunpack.c.h.bf16 %v6995_v32  ;;  %v12355_v32 = vmul.f32 %v12272_v30, %v7063_v28  ;;  %v8426_v28 = vld [vmem:[#allocation12 + $0x80] sm:$0xff] }
 0x2a0   : > { %v12174_v12 = vld [vmem:[#allocation9 + $0x670] sm:$0xff]  ;;  %17347 = vst [vmem:[#allocation52_spill] sm:$0xff] %v12352_v15 }
 0x2a1   : > { %v12188_v43 = vld [vmem:[#allocation9 + $0x210] sm:$0xff]  ;;  %5832 = vmatprep.subr.bf16.mxu1 %v17338_v23  ;;  %v17343_v23 = vld [vmem:[#allocation75_spill] sm:$0xff]  ;;  %17348 = vst [vmem:[#allocation90_spill] sm:$0xff] %v12355_v32  ;;  %v7003_v32 = vld [vmem:[%s8930_s16 + $0x60] sm:$0xff] }
 0x2a2   : > { %v12190_v11 = vld [vmem:[#allocation9 + $0x230] sm:$0xff] }
 0x2a3   : > { %v12205_v21 = vld [vmem:[#allocation9 + $0x610] sm:$0xff]  ;;  %5578 = vmatmul.mubr.bf16.gmra.mxu0 %v17342_v22 }
 0x2a4   : > { %v12207_v24 = vld [vmem:[#allocation9 + $0x630] sm:$0xff]  ;;  %5733 = vmatprep.mubr.bf16.mxu0 %v17346_v13  ;;  %v12376_v13 = vmul.f32 %v12272_v30, %v7064_v60 }
 0x2a5   : > { %v12230_v45 = vld [vmem:[#allocation9 + $0x9d0] sm:$0xff] }
 0x2a6   : > { %v12232_v53 = vld [vmem:[#allocation9 + $0x9f0] sm:$0xff]  ;;  %17353 = vst [vmem:[#allocation35_spill] sm:$0xff] %v12376_v13  ;;  %v17362_v13 = vcombine.low %v12055_v42, %v12057_v54 }
 0x2a7   : > { %v12249_v26 = vld [vmem:[#allocation9 + $0xdd0] sm:$0xff] }
 0x2a8   : > { %v12251_v6 = vld [vmem:[#allocation9 + $0xdf0] sm:$0xff] }
 0x2a9   : > { %v17327_v17 = vld [vmem:[#allocation152_spill] sm:$0xff] }
 0x2aa   : > { %5690 = vmatprep.mubr.bf16.mxu1 %v17327_v17  ;;  %v12277_v1 = vld [vmem:[#allocation9 + $0x990] sm:$0xff] }
 0x2ab   : > { %v12279_v25 = vld [vmem:[#allocation9 + $0x9b0] sm:$0xff]  ;;  %5691 = vmatmul.mubr.bf16.gmra.mxu1 %v17343_v23  ;;  %v7071_v23 = vunpack.c.l.bf16 %v12315_v36 }
 0x2ac   : > { %v12295_v17 = vld [vmem:[#allocation9 + $0xd90] sm:$0xff] }
 0x2ad   : > { %v12297_v59 = vld [vmem:[#allocation9 + $0xdb0] sm:$0xff]  ;;  %v12393_v60 = vmul.f32 %v12272_v30, %v7071_v23 }
 0x2ae   : > { %v8423_v57 = vld [vmem:[#allocation12 + $0x8] sm:$0xff] }
 0x2af   : > { %v12312_v58 = vmul.f32 %v8423_v57, %v12247_v16  ;;  %v2110_v57 = vsel %vm2027_vm13, %v2109_v44, %v2108_v51  ;;  %v12338_v55 = vld [vmem:[#allocation9 + $0x950] sm:$0xff]  ;;  %v17344_v44 = vcombine.low %v12037_v0, %v12039_v61  ;;  %v17349_v61 = vcombine.low %v12041_v31, %v12051_v39  ;;  %17358 = vst [vmem:[#allocation47_spill] sm:$0xff] %v12393_v60 }
 0x2b0   : > { %v12340_v20 = vld [vmem:[#allocation9 + $0x970] sm:$0xff]  ;;  %v2113_v51 = vsel %vm11857_vm14, %v17163_v40, %v2110_v57  ;;  %v17350_v0 = vcombine.high %v12055_v42, %v12057_v54  ;;  %v17354_v31 = vcombine.high %v12071_v48, %v12084_v49  ;;  %v17367_v54 = vcombine.low %v12071_v48, %v12084_v49 }
 0x2b1   : > { %17337 = vst [vmem:[#allocation28_spill] sm:$0xff] %v12312_v58  ;;  %v12330_v58 = vpop.f32.mrf.mxu1  ;;  %5720 = vmatpush2.bf16.msra.mxu0 %v17344_v44  ;;  %v12358_v22 = vld [vmem:[#allocation9 + $0xd50] sm:$0xff]  ;;  %8418 = vcosq.f32 %v2113_v51  ;;  %5833 = vmatpush2.bf16.msra.mxu1 %v17349_v61  ;;  %v12386_v61 = vpop.f32.mrf.mxu0  ;;  %v17368_v42 = vcombine.high %v12086_v14, %v12088_v3  ;;  %v17371_v48 = vcombine.high %v12099_v52, %v12101_v2 }
 0x2b2   : > { %17341 = vst [vmem:[#allocation88_spill] sm:$0xff] %v12330_v58  ;;  %v12360_v10 = vld [vmem:[#allocation9 + $0xd70] sm:$0xff]  ;;  %5721 = vmatprep.subr.bf16.mxu0 %v17350_v0  ;;  %8420 = vsinq.f32 %v2113_v51  ;;  %5834 = vmatprep.subr.bf16.mxu1 %v17354_v31  ;;  %17355 = vst [vmem:[#allocation92_spill] sm:$0xff] %v12386_v61  ;;  %v8428_v58 = vld [vmem:[#allocation12 + $0xc0] sm:$0xff] }
 0x2b3   : > { %v12368_v18 = vpop.f32.mrf.mxu1  ;;  %v8425_v57 = vld [vmem:[#allocation12 + $0x48] sm:$0xff]  ;;  %v7007_v61 = vld [vmem:[%s8930_s16 + $0x80] sm:$0xff] }
 0x2b4   : > { %17351 = vst [vmem:[#allocation32_spill] sm:$0xff] %v12368_v18  ;;  %v12373_v44 = vmul.f32 %v8425_v57, %v12247_v16  ;;  %v12379_v15 = vld [vmem:[#allocation9 + $0x910] sm:$0xff]  ;;  %v12390_v57 = vmul.f32 %v8426_v28, %v12247_v16  ;;  %v12415_v18 = vpop.f32.mrf.mxu0  ;;  %v7079_v28 = vunpack.c.l.bf16 %v7003_v32 }
 0x2b5   : > { %v12381_v39 = vld [vmem:[#allocation9 + $0x930] sm:$0xff]  ;;  %v12401_v31 = vpop.f32.mrf.mxu1  ;;  %5722 = vmatpush2.bf16.msra.mxu0 %v17362_v13  ;;  %17363 = vst [vmem:[#allocation24_spill] sm:$0xff] %v12415_v18  ;;  %5835 = vmatpush2.bf16.msra.mxu1 %v17367_v54  ;;  %v7011_v18 = vld [vmem:[%s8930_s16 + $0xa0] sm:$0xff] }
 0x2b6   : > { %17352 = vst [vmem:[#allocation33_spill] sm:$0xff] %v12373_v44  ;;  %v17356_v0 = vld [vmem:[#allocation20_spill] sm:$0xff]  ;;  %17357 = vst [vmem:[#allocation93_spill] sm:$0xff] %v12390_v57  ;;  %5723 = vmatprep.subr.bf16.mxu0 %v17368_v42  ;;  %5836 = vmatprep.subr.bf16.mxu1 %v17371_v48  ;;  %v12450_v54 = vpop.f32.mrf.mxu0  ;;  %v12456_v13 = vmul.f32 %v12272_v30, %v7079_v28 }
 0x2b7   : > { %5846 = vmatprep.mubr.bf16.mxu1 %v17356_v0  ;;  %v12397_v51 = vld [vmem:[#allocation9 + $0xd10] sm:$0xff]  ;;  %17360 = vst [vmem:[#allocation102_spill] sm:$0xff] %v12401_v31  ;;  %v7072_v31 = vunpack.c.h.bf16 %v12315_v36  ;;  %v12419_v0 = vmul.f32 %v8428_v58, %v12247_v16  ;;  %v12434_v36 = vpop.f32.mrf.mxu1  ;;  %17372 = vst [vmem:[#allocation108_spill] sm:$0xff] %v12450_v54  ;;  %v8430_v58 = vld [vmem:[#allocation12 + $0x100] sm:$0xff]  ;;  %v7088_v54 = vunpack.c.h.bf16 %v7007_v61 }
 0x2b8   : > { %v12399_v44 = vld [vmem:[#allocation9 + $0xd30] sm:$0xff]  ;;  %17369 = vst [vmem:[#allocation106_spill] sm:$0xff] %v12434_v36  ;;  %17374 = vst [vmem:[#allocation114_spill] sm:$0xff] %v12456_v13  ;;  %v12462_v36 = vmul.f32 %v8430_v58, %v12247_v16  ;;  %v7087_v13 = vunpack.c.l.bf16 %v7007_v61 }
 0x2b9   : > { %17359 = vst [vmem:[#allocation98_spill] sm:$0xff] %v12399_v44  ;;  %v8427_v60 = vld [vmem:[#allocation12 + $0x88] sm:$0xff]  ;;  %17364 = vst [vmem:[#allocation45_spill] sm:$0xff] %v12419_v0  ;;  %v7080_v0 = vunpack.c.h.bf16 %v7003_v32  ;;  %v12453_v42 = vmul.f32 %v12272_v30, %v7072_v31  ;;  %v12470_v31 = vpop.f32.mrf.mxu1 }
 0x2ba   : > { %v12410_v57 = vmul.f32 %v8427_v60, %v12247_v16  ;;  %v12424_v19 = vld [vmem:[#allocation9 + $0x8d0] sm:$0xff]  ;;  %17376 = vst [vmem:[#allocation116_spill] sm:$0xff] %v12462_v36  ;;  %17378 = vst [vmem:[#allocation172_spill] sm:$0xff] %v12470_v31  ;;  %v12487_v31 = vpop.f32.mrf.mxu0 }
 0x2bb   : > { %17365 = vst [vmem:[#allocation104_spill] sm:$0xff] %v12424_v19  ;;  %v12426_v60 = vld [vmem:[#allocation9 + $0x8f0] sm:$0xff]  ;;  %17373 = vst [vmem:[#allocation109_spill] sm:$0xff] %v12453_v42  ;;  %v12473_v28 = vmul.f32 %v12272_v30, %v7080_v0  ;;  %v12509_v0 = vmul.f32 %v12272_v30, %v7087_v13 }
 0x2bc   : > { %17361 = vst [vmem:[#allocation103_spill] sm:$0xff] %v12410_v57  ;;  %17366 = vst [vmem:[#allocation105_spill] sm:$0xff] %v12426_v60  ;;  %v12442_v57 = vld [vmem:[#allocation9 + $0xcd0] sm:$0xff]  ;;  %v7015_v60 = vld [vmem:[%s8930_s16 + $0xc0] sm:$0xff]  ;;  %v12525_v13 = vpop.f32.mrf.mxu0 }
 0x2bd   : > { %v12444_v49 = vld [vmem:[#allocation9 + $0xcf0] sm:$0xff]  ;;  %17379 = vst [vmem:[#allocation173_spill] sm:$0xff] %v12473_v28  ;;  %17381 = vst [vmem:[#allocation174_spill] sm:$0xff] %v12487_v31 }
 0x2be   : > { %17370 = vst [vmem:[#allocation107_spill] sm:$0xff] %v12444_v49  ;;  %v8429_v23 = vld [vmem:[#allocation12 + $0xc8] sm:$0xff]  ;;  %17387 = vst [vmem:[#allocation178_spill] sm:$0xff] %v12509_v0  ;;  %v17400_v0 = vcombine.low %v12104_v37, %v12117_v9 }
 0x2bf   : > { %v12459_v32 = vmul.f32 %v8429_v23, %v12247_v16  ;;  %v12465_v44 = vld [vmem:[#allocation9 + $0x890] sm:$0xff]  ;;  %v7095_v23 = vunpack.c.l.bf16 %v7011_v18  ;;  %17393 = vst [vmem:[#allocation183_spill] sm:$0xff] %v12525_v13 }
 0x2c0   : > { %v12467_v48 = vld [vmem:[#allocation9 + $0x8b0] sm:$0xff] }
 0x2c1   : > { %17375 = vst [vmem:[#allocation115_spill] sm:$0xff] %v12459_v32  ;;  %17377 = vst [vmem:[#allocation117_spill] sm:$0xff] %v12467_v48  ;;  %v12479_v36 = vld [vmem:[#allocation9 + $0xc90] sm:$0xff]  ;;  %v17380_v32 = vcombine.low %v12086_v14, %v12088_v3  ;;  %v17384_v3 = vcombine.low %v12099_v52, %v12101_v2  ;;  %v17385_v14 = vcombine.high %v12104_v37, %v12117_v9 }
 0x2c2   : > { %v12481_v42 = vld [vmem:[#allocation9 + $0xcb0] sm:$0xff]  ;;  %v17401_v9 = vcombine.low %v12119_v56, %v12121_v41  ;;  %v17402_v37 = vcombine.high %v12136_v35, %v12138_v8 }
 0x2c3   : > { %5724 = vmatpush2.bf16.msra.mxu0 %v17380_v32  ;;  %v8431_v28 = vld [vmem:[#allocation12 + $0x108] sm:$0xff]  ;;  %5837 = vmatpush2.bf16.msra.mxu1 %v17384_v3  ;;  %v12506_v32 = vpop.f32.mrf.mxu1  ;;  %v17392_v3 = vcombine.high %v12119_v56, %v12121_v41  ;;  %v8419_v41 = vpop.eup %8418  ;;  %v17406_v56 = vcombine.high %v12140_v27, %v12150_v47 }
 0x2c4   : > { %v12494_v58 = vmul.f32 %v8431_v28, %v12247_v16  ;;  %v12497_v19 = vld [vmem:[#allocation9 + $0x850] sm:$0xff]  ;;  %5725 = vmatprep.subr.bf16.mxu0 %v17385_v14  ;;  %17386 = vst [vmem:[#allocation177_spill] sm:$0xff] %v12506_v32  ;;  %v8432_v28 = vld [vmem:[#allocation12 + $0x140] sm:$0xff]  ;;  %v12528_v14 = vmul.f32 %v12272_v30, %v7088_v54  ;;  %v12539_v32 = vmul.f32 %v12272_v30, %v7095_v23  ;;  %v7096_v54 = vunpack.c.h.bf16 %v7011_v18  ;;  %v12557_v23 = vpop.f32.mrf.mxu0 }
 0x2c5   : > { %17383 = vst [vmem:[#allocation176_spill] sm:$0xff] %v12497_v19  ;;  %v12512_v61 = vmul.f32 %v8432_v28, %v12247_v16  ;;  %v12516_v31 = vld [vmem:[#allocation9 + $0x870] sm:$0xff]  ;;  %5838 = vmatprep.subr.bf16.mxu1 %v17392_v3  ;;  %v12548_v28 = vld [vmem:[%s8930_s16 + $0xe0] sm:$0xff]  ;;  %v7104_v19 = vunpack.c.h.bf16 %v7015_v60 }
 0x2c6   : > { %17382 = vst [vmem:[#allocation175_spill] sm:$0xff] %v12494_v58  ;;  %17389 = vst [vmem:[#allocation180_spill] sm:$0xff] %v12516_v31  ;;  %v12518_v2 = vld [vmem:[#allocation9 + $0xc50] sm:$0xff]  ;;  %v12578_v18 = vmul.f32 %v12272_v30, %v7096_v54  ;;  %v8436_v54 = vld [vmem:[#allocation12 + $0x1c0] sm:$0xff] }
 0x2c7   : > { %17388 = vst [vmem:[#allocation179_spill] sm:$0xff] %v12512_v61  ;;  %17390 = vst [vmem:[#allocation181_spill] sm:$0xff] %v12518_v2  ;;  %v12520_v52 = vld [vmem:[#allocation9 + $0xc70] sm:$0xff]  ;;  %v12536_v61 = vpop.f32.mrf.mxu1  ;;  %5726 = vmatpush2.bf16.msra.mxu0 %v17400_v0  ;;  %5839 = vmatpush2.bf16.msra.mxu1 %v17401_v9  ;;  %v12588_v9 = vpop.f32.mrf.mxu0 }
 0x2c8   : > { %17391 = vst [vmem:[#allocation182_spill] sm:$0xff] %v12520_v52  ;;  %17394 = vst [vmem:[#allocation184_spill] sm:$0xff] %v12528_v14  ;;  %v8433_v3 = vld [vmem:[#allocation12 + $0x148] sm:$0xff]  ;;  %v8434_v14 = vld [vmem:[#allocation12 + $0x180] sm:$0xff]  ;;  %5727 = vmatprep.subr.bf16.mxu0 %v17402_v37  ;;  %5840 = vmatprep.subr.bf16.mxu1 %v17406_v56  ;;  %v8421_v52 = vpop.eup %8420  ;;  %v2125_v56 = vxor.u32 2147483648, %v8419_v41 }
 0x2c9   : > { %17395 = vst [vmem:[#allocation185_spill] sm:$0xff] %v12536_v61  ;;  %17396 = vst [vmem:[#allocation186_spill] sm:$0xff] %v12539_v32  ;;  %v12542_v13 = vmul.f32 %v8433_v3, %v12247_v16  ;;  %v12545_v49 = vmul.f32 %v8434_v14, %v12247_v16  ;;  %v12550_v58 = vld [vmem:[#allocation9 + $0x810] sm:$0xff]  ;;  %v7103_v32 = vunpack.c.l.bf16 %v7015_v60  ;;  %v12575_v0 = vpop.f32.mrf.mxu1  ;;  %v7111_v3 = vunpack.c.l.bf16 %v12548_v28  ;;  %v12600_v60 = vld [vmem:[%s8930_s16 + $0x100] sm:$0xff] }
 0x2ca   : > { %v12552_v48 = vld [vmem:[#allocation9 + $0x830] sm:$0xff]  ;;  %17403 = vst [vmem:[#allocation190_spill] sm:$0xff] %v12575_v0  ;;  %17404 = vst [vmem:[#allocation191_spill] sm:$0xff] %v12578_v18  ;;  %v12594_v18 = vmul.f32 %v8436_v54, %v12247_v16  ;;  %v2122_v61 = vxor.u32 2147483648, %v8421_v52  ;;  %v8438_v54 = vld [vmem:[#allocation12 + $0x200] sm:$0xff] }
 0x2cb   : > { %17397 = vst [vmem:[#allocation187_spill] sm:$0xff] %v12542_v13  ;;  %17398 = vst [vmem:[#allocation188_spill] sm:$0xff] %v12545_v49  ;;  %v12565_v49 = vld [vmem:[#allocation9 + $0xc10] sm:$0xff]  ;;  %v12591_v37 = vmul.f32 %v12272_v30, %v7103_v32  ;;  %v12604_v2 = vpop.f32.mrf.mxu1  ;;  %v12607_v32 = vmul.f32 %v12272_v30, %v7104_v19  ;;  %v12625_v19 = vmul.f32 %v12272_v30, %v7111_v3 }
 0x2cc   : > { %17399 = vst [vmem:[#allocation189_spill] sm:$0xff] %v12552_v48  ;;  %v12567_v13 = vld [vmem:[#allocation9 + $0xc30] sm:$0xff]  ;;  %17407 = vst [vmem:[#allocation193_spill] sm:$0xff] %v12588_v9  ;;  %v17416_v9 = vcombine.low %v12136_v35, %v12138_v8  ;;  %v2126_v48 = vsel %vm2124_vm8, %v2125_v56, %v8421_v52  ;;  %v17419_v8 = vcombine.low %v12140_v27, %v12150_v47 }
 0x2cd   : > { %v8435_v14 = vld [vmem:[#allocation12 + $0x188] sm:$0xff]  ;;  %17408 = vst [vmem:[#allocation194_spill] sm:$0xff] %v12591_v37  ;;  %17409 = vst [vmem:[#allocation195_spill] sm:$0xff] %v12594_v18  ;;  %v17420_v35 = vcombine.high %v12152_v4, %v12154_v29  ;;  %v12640_v3 = vpop.f32.mrf.mxu1  ;;  %v2123_v52 = vsel %vm2121_vm9, %v8419_v41, %v2122_v61  ;;  %v17422_v47 = vcombine.high %v12172_v33, %v12174_v12 }
 0x2ce   : > { %v12583_v31 = vmul.f32 %v8435_v14, %v12247_v16  ;;  %17411 = vst [vmem:[#allocation197_spill] sm:$0xff] %v12604_v2  ;;  %17412 = vst [vmem:[#allocation198_spill] sm:$0xff] %v12607_v32  ;;  %v12613_v18 = vld [vmem:[#allocation9 + $0xbf0] sm:$0xff]  ;;  %5728 = vmatpush2.bf16.msra.mxu0 %v17416_v9  ;;  %v12622_v2 = vpop.f32.mrf.mxu0  ;;  %5841 = vmatpush2.bf16.msra.mxu1 %v17419_v8  ;;  %v7112_v9 = vunpack.c.h.bf16 %v12548_v28  ;;  %v7027_v8 = vld [vmem:[%s8930_s16 + $0x120] sm:$0xff]  ;;  %v2127_v61 = vsel %vm2120_vm10, %v2123_v52, %v2126_v48 }
 0x2cf   : > { %17413 = vst [vmem:[#allocation199_spill] sm:$0xff] %v12613_v18  ;;  %v12615_v14 = vld [vmem:[#allocation9 + $0xfd0] sm:$0xff]  ;;  %17417 = vst [vmem:[#allocation202_spill] sm:$0xff] %v12625_v19  ;;  %5729 = vmatprep.subr.bf16.mxu0 %v17420_v35  ;;  %v12644_v19 = vmul.f32 %v8438_v54, %v12247_v16  ;;  %5842 = vmatprep.subr.bf16.mxu1 %v17422_v47  ;;  %v12667_v41 = vpop.f32.mrf.mxu1  ;;  %v2128_v50 = vsel %vm2117_vm15, nan, %v2127_v61  ;;  %v17429_v48 = vcombine.low %v12152_v4, %v12154_v29  ;;  %v8440_v54 = vld [vmem:[#allocation12 + $0x240] sm:$0xff] }
 0x2d0   : > { %17405 = vst [vmem:[#allocation192_spill] sm:$0xff] %v12583_v31  ;;  %v12602_v31 = vld [vmem:[#allocation9 + $0xbd0] sm:$0xff]  ;;  %17414 = vst [vmem:[#allocation200_spill] sm:$0xff] %v12615_v14  ;;  %v12652_v27 = vpop.f32.mrf.mxu0  ;;  %v12670_v47 = vmul.f32 %v12272_v30, %v7112_v9  ;;  %v2136_v61 = vmul.f32 0.01, %v2128_v50  ;;  %v17433_v29 = vcombine.low %v12172_v33, %v12174_v12  ;;  %v17434_v4 = vcombine.high %v12188_v43, %v12190_v11 }
 0x2d1   : > { %17410 = vst [vmem:[#allocation196_spill] sm:$0xff] %v12602_v31  ;;  %v12617_v0 = vld [vmem:[#allocation9 + $0xff0] sm:$0xff]  ;;  %17421 = vst [vmem:[#allocation204_spill] sm:$0xff] %v12644_v19  ;;  %v17438_v12 = vcombine.high %v12205_v21, %v12207_v24 }
 0x2d2   : > { %17415 = vst [vmem:[#allocation201_spill] sm:$0xff] %v12617_v0  ;;  %v8437_v37 = vld [vmem:[#allocation12 + $0x1c8] sm:$0xff]  ;;  %17425 = vst [vmem:[#allocation207_spill] sm:$0xff] %v12670_v47  ;;  %5730 = vmatpush2.bf16.msra.mxu0 %v17429_v48  ;;  %v12686_v52 = vpop.f32.mrf.mxu0  ;;  %v12693_v47 = vmul.f32 %v8440_v54, %v12247_v16  ;;  %v7031_v0 = vld [vmem:[%s8930_s16 + $0x140] sm:$0xff]  ;;  %5843 = vmatpush2.bf16.msra.mxu1 %v17433_v29  ;;  %v12704_v48 = vpop.f32.mrf.mxu1  ;;  %v17444_v54 = vcombine.low %v12188_v43, %v12190_v11 }
 0x2d3   : > { %v12630_v32 = vmul.f32 %v8437_v37, %v12247_v16  ;;  %v7119_v37 = vunpack.c.l.bf16 %v12600_v60  ;;  %v12661_v35 = vld [vmem:[#allocation9 + $0xb90] sm:$0xff]  ;;  %5731 = vmatprep.subr.bf16.mxu0 %v17434_v4  ;;  %5844 = vmatprep.subr.bf16.mxu1 %v17438_v12  ;;  %v17447_v43 = vcombine.low %v12205_v21, %v12207_v24  ;;  %v17448_v11 = vcombine.high %v12230_v45, %v12232_v53 }
 0x2d4   : > { %17423 = vst [vmem:[#allocation205_spill] sm:$0xff] %v12661_v35  ;;  %v12663_v19 = vld [vmem:[#allocation9 + $0xbb0] sm:$0xff]  ;;  %17431 = vst [vmem:[#allocation212_spill] sm:$0xff] %v12693_v47  ;;  %v12720_v29 = vpop.f32.mrf.mxu0  ;;  %v2148_v35 = vcombine.low %v12299_v62, %v2136_v61  ;;  %v12733_v14 = vpop.f32.mrf.mxu1  ;;  %v7136_v61 = vunpack.c.h.bf16 %v7031_v0  ;;  %v17453_v24 = vcombine.high %v12249_v26, %v12251_v6 }
 0x2d5   : > { %17418 = vst [vmem:[#allocation203_spill] sm:$0xff] %v12630_v32  ;;  %17424 = vst [vmem:[#allocation206_spill] sm:$0xff] %v12663_v19  ;;  %v12673_v56 = vmul.f32 %v12272_v30, %v7119_v37  ;;  %v12677_v28 = vld [vmem:[#allocation9 + $0xf90] sm:$0xff] }
 0x2d6   : > { %17427 = vst [vmem:[#allocation209_spill] sm:$0xff] %v12677_v28  ;;  %v12679_v18 = vld [vmem:[#allocation9 + $0xfb0] sm:$0xff]  ;;  %17441 = vst [vmem:[#allocation219_spill] sm:$0xff] %v12733_v14  ;;  %5732 = vmatpush2.bf16.msra.mxu0 %v17444_v54  ;;  %5845 = vmatpush2.bf16.msra.mxu1 %v17447_v43  ;;  %v12765_v54 = vpop.f32.mrf.mxu1 }
 0x2d7   : > { %17426 = vst [vmem:[#allocation208_spill] sm:$0xff] %v12673_v56  ;;  %17428 = vst [vmem:[#allocation210_spill] sm:$0xff] %v12679_v18  ;;  %v8439_v9 = vld [vmem:[#allocation12 + $0x208] sm:$0xff]  ;;  %v7120_v56 = vunpack.c.h.bf16 %v12600_v60  ;;  %v7127_v60 = vunpack.c.l.bf16 %v7027_v8  ;;  %5927 = vmatprep.subr.bf16.mxu0 %v17448_v11  ;;  %6040 = vmatprep.subr.bf16.mxu1 %v17453_v24 }
 0x2d8   : > { %v12689_v37 = vmul.f32 %v8439_v9, %v12247_v16  ;;  %v12696_v40 = vld [vmem:[#allocation9 + $0xb50] sm:$0xff]  ;;  %v7035_v9 = vld [vmem:[%s8930_s16 + $0x160] sm:$0xff]  ;;  %17449 = vst [vmem:[#allocation224_spill] sm:$0xff] %v12765_v54  ;;  %v12793_v24 = vpop.f32.mrf.mxu1 }
 0x2d9   : > { %17432 = vst [vmem:[#allocation213_spill] sm:$0xff] %v12696_v40  ;;  %v12710_v47 = vld [vmem:[#allocation9 + $0xb70] sm:$0xff]  ;;  %v12723_v4 = vmul.f32 %v12272_v30, %v7120_v56  ;;  %v12736_v12 = vmul.f32 %v12272_v30, %v7127_v60  ;;  %v7128_v56 = vunpack.c.h.bf16 %v7027_v8  ;;  %v7143_v62 = vunpack.c.l.bf16 %v7035_v9  ;;  %5734 = vmatmul.mubr.bf16.vlgmr.msra.gmra.mxu0 %v17078_v7  ;;  %17457 = vst [vmem:[#allocation231_spill] sm:$0xff] %v12793_v24  ;;  %v17569_v24 = vld [vmem:[#allocation79_spill] sm:$0xff] }
 0x2da   : > { %17430 = vst [vmem:[#allocation211_spill] sm:$0xff] %v12689_v37  ;;  %17435 = vst [vmem:[#allocation214_spill] sm:$0xff] %v12710_v47  ;;  %v12712_v50 = vld [vmem:[#allocation9 + $0xf50] sm:$0xff]  ;;  %v12796_v47 = vmul.f32 %v12272_v30, %v7136_v61  ;;  %5847 = vmatmul.mubr.bf16.vlgmr.msra.gmra.mxu1 %v17079_v5  ;;  %v7144_v7 = vunpack.c.h.bf16 %v7035_v9  ;;  %v8446_v9 = vld [vmem:[#allocation12 + $0x300] sm:$0xff]  ;;  %5743 = vmatprep.mubr.bf16.mxu0 %v17087_v38 }
 0x2db   : > { %17436 = vst [vmem:[#allocation215_spill] sm:$0xff] %v12712_v50  ;;  %v12714_v33 = vld [vmem:[#allocation9 + $0xf70] sm:$0xff]  ;;  %17439 = vst [vmem:[#allocation217_spill] sm:$0xff] %v12723_v4  ;;  %v8442_v4 = vld [vmem:[#allocation12 + $0x280] sm:$0xff]  ;;  %v12768_v8 = vmul.f32 %v12272_v30, %v7128_v56  ;;  %v12815_v61 = vmul.f32 %v12272_v30, %v7143_v62  ;;  %v17466_v62 = vcombine.high %v12277_v1, %v12279_v25 }
 0x2dc   : > { %17437 = vst [vmem:[#allocation216_spill] sm:$0xff] %v12714_v33  ;;  %v8441_v37 = vld [vmem:[#allocation12 + $0x248] sm:$0xff]  ;;  %17442 = vst [vmem:[#allocation220_spill] sm:$0xff] %v12736_v12  ;;  %v12739_v31 = vmul.f32 %v8442_v4, %v12247_v16  ;;  %v2176_v12 = vrot.slane %v2148_v35, %v11870_v46  ;;  %v7039_v33 = vld [vmem:[%s8930_s16 + $0x180] sm:$0xff] }
 0x2dd   : > { %v12730_v19 = vmul.f32 %v8441_v37, %v12247_v16  ;;  %v12745_v37 = vpop.f32.mrf.mxu0  ;;  %v12753_v60 = vld [vmem:[#allocation9 + $0xb10] sm:$0xff]  ;;  %17450 = vst [vmem:[#allocation225_spill] sm:$0xff] %v12768_v8  ;;  %v8444_v8 = vld [vmem:[#allocation12 + $0x2c0] sm:$0xff]  ;;  %17458 = vst [vmem:[#allocation232_spill] sm:$0xff] %v12796_v47 }
 0x2de   : > { %17443 = vst [vmem:[#allocation221_spill] sm:$0xff] %v12739_v31  ;;  %17445 = vst [vmem:[#allocation222_spill] sm:$0xff] %v12753_v60  ;;  %v12755_v4 = vld [vmem:[#allocation9 + $0xb30] sm:$0xff]  ;;  %v2178_v50 = vcombine.low %v12017_v34, %v2176_v12  ;;  %v17461_v34 = vcombine.low %v12230_v45, %v12232_v53  ;;  %v17465_v45 = vcombine.low %v12249_v26, %v12251_v6 }
 0x2df   : > { %17440 = vst [vmem:[#allocation218_spill] sm:$0xff] %v12730_v19  ;;  %v7135_v19 = vunpack.c.l.bf16 %v7031_v0  ;;  %17446 = vst [vmem:[#allocation223_spill] sm:$0xff] %v12755_v4  ;;  %v12772_v35 = vld [vmem:[#allocation9 + $0xf10] sm:$0xff]  ;;  %v12779_v21 = vpop.f32.mrf.mxu0  ;;  %v12788_v0 = vmul.f32 %v8444_v8, %v12247_v16  ;;  %v17470_v26 = vcombine.high %v12295_v17, %v12297_v59 }
 0x2e0   : > { %17451 = vst [vmem:[#allocation226_spill] sm:$0xff] %v12772_v35  ;;  %v12774_v31 = vld [vmem:[#allocation9 + $0xf30] sm:$0xff]  ;;  %5928 = vmatpush1.bf16.msra.mxu0 %v17461_v34  ;;  %17462 = vst [vmem:[#allocation235_spill] sm:$0xff] %v12815_v61  ;;  %v2192_v53 = vrot.slane %v2178_v50, %v11870_v46  ;;  %6041 = vmatpush1.bf16.msra.mxu1 %v17465_v45  ;;  %v12832_v34 = vpop.f32.mrf.mxu1  ;;  %v12838_v61 = vmul.f32 %v8446_v9, %v12247_v16  ;;  %v7043_v46 = vld [vmem:[%s8930_s16 + $0x1a0] sm:$0xff]  ;;  %v7152_v9 = vunpack.c.h.bf16 %v7039_v33 }
 0x2e1   : > { %17452 = vst [vmem:[#allocation227_spill] sm:$0xff] %v12774_v31  ;;  %v12782_v43 = vmul.f32 %v12272_v30, %v7135_v19  ;;  %v8443_v11 = vld [vmem:[#allocation12 + $0x288] sm:$0xff]  ;;  %17456 = vst [vmem:[#allocation230_spill] sm:$0xff] %v12788_v0  ;;  %v12812_v12 = vpop.f32.mrf.mxu0  ;;  %5929 = vmatprep.subr.bf16.mxu0 %v17466_v62  ;;  %v7151_v31 = vunpack.c.l.bf16 %v7039_v33  ;;  %v1283_v50 = vld [vmem:[#allocation10] sm:$0xff]  ;;  %6042 = vmatprep.subr.bf16.mxu1 %v17470_v26  ;;  %v12848_v45 = vmul.f32 %v12272_v30, %v7144_v7 }
 0x2e2   : > { %v12785_v56 = vmul.f32 %v8443_v11, %v12247_v16  ;;  %v12804_v8 = vld [vmem:[#allocation9 + $0xaf0] sm:$0xff]  ;;  %17467 = vst [vmem:[#allocation238_spill] sm:$0xff] %v12832_v34  ;;  %17469 = vst [vmem:[#allocation240_spill] sm:$0xff] %v12838_v61  ;;  %v2193_v26 = vcombine.low %v11999_v63, %v2192_v53  ;;  %v17474_v35 = vld [vmem:[#allocation30_spill] sm:$0xff]  ;;  %v12860_v38 = vpop.f32.mrf.mxu1  ;;  %v17479_v63 = vcombine.low %v12277_v1, %v12279_v25 }
 0x2e3   : > { %17454 = vst [vmem:[#allocation228_spill] sm:$0xff] %v12782_v43  ;;  %v12802_v43 = vld [vmem:[#allocation9 + $0xad0] sm:$0xff]  ;;  %17460 = vst [vmem:[#allocation234_spill] sm:$0xff] %v12804_v8  ;;  %v12845_v6 = vpop.f32.mrf.mxu0  ;;  %5856 = vmatprep.mubr.bf16.mxu1 %v17474_v35  ;;  %v12863_v7 = vmul.f32 %v12272_v30, %v7151_v31  ;;  %v17485_v1 = vcombine.low %v12295_v17, %v12297_v59  ;;  %v17486_v25 = vcombine.high %v12338_v55, %v12340_v20  ;;  %v17568_v34 = vld [vmem:[#allocation158_spill] sm:$0xff] }
 0x2e4   : > { %17455 = vst [vmem:[#allocation229_spill] sm:$0xff] %v12785_v56  ;;  %17459 = vst [vmem:[#allocation233_spill] sm:$0xff] %v12802_v43  ;;  %v12821_v0 = vld [vmem:[#allocation9 + $0xed0] sm:$0xff]  ;;  %5930 = vmatpush1.bf16.msra.mxu0 %v17479_v63  ;;  %v12889_v8 = vadd.f32 %v2193_v26, %v1283_v50  ;;  %v7160_v63 = vunpack.c.h.bf16 %v7043_v46  ;;  %v17491_v59 = vcombine.high %v12358_v22, %v12360_v10 }
 0x2e5   : > { %17463 = vst [vmem:[#allocation236_spill] sm:$0xff] %v12821_v0  ;;  %v12823_v5 = vld [vmem:[#allocation9 + $0xef0] sm:$0xff]  ;;  %17471 = vst [vmem:[#allocation241_spill] sm:$0xff] %v12848_v45  ;;  %v12876_v53 = vpop.f32.mrf.mxu0  ;;  %6043 = vmatpush1.bf16.msra.mxu1 %v17485_v1  ;;  %5931 = vmatprep.subr.bf16.mxu0 %v17486_v25 }
 0x2e6   : > { %17464 = vst [vmem:[#allocation237_spill] sm:$0xff] %v12823_v5  ;;  %v8445_v19 = vld [vmem:[#allocation12 + $0x2c8] sm:$0xff]  ;;  %17475 = vst [vmem:[#allocation244_spill] sm:$0xff] %v12860_v38  ;;  %v7159_v5 = vunpack.c.l.bf16 %v7043_v46  ;;  %6044 = vmatprep.subr.bf16.mxu1 %v17491_v59  ;;  %v12938_v46 = vmul.f32 %v12272_v30, %v7160_v63 }
 0x2e7   : > { %v12835_v11 = vmul.f32 %v8445_v19, %v12247_v16  ;;  %v12854_v61 = vld [vmem:[#allocation9 + $0xa90] sm:$0xff]  ;;  %17476 = vst [vmem:[#allocation245_spill] sm:$0xff] %v12863_v7  ;;  %v12882_v7 = vmul.f32 %v12272_v30, %v7152_v9  ;;  %v8448_v19 = vld [vmem:[#allocation12 + $0x340] sm:$0xff]  ;;  %17484 = vst [vmem:[#allocation252_spill] sm:$0xff] %v12889_v8  ;;  %v12912_v26 = vpop.f32.mrf.mxu0 }
 0x2e8   : > { %17472 = vst [vmem:[#allocation242_spill] sm:$0xff] %v12854_v61  ;;  %v12869_v33 = vld [vmem:[#allocation9 + $0xe90] sm:$0xff]  ;;  %v12885_v62 = vmul.f32 %v8448_v19, %v12247_v16  ;;  %v12915_v1 = vmul.f32 %v12272_v30, %v7159_v5  ;;  %17499 = vst [vmem:[#allocation260_spill] sm:$0xff] %v12938_v46  ;;  %v17517_v30 = vld [vmem:[#allocation126_spill] sm:$0xff] }
 0x2e9   : > { %17468 = vst [vmem:[#allocation239_spill] sm:$0xff] %v12835_v11  ;;  %v12856_v11 = vld [vmem:[#allocation9 + $0xab0] sm:$0xff]  ;;  %17477 = vst [vmem:[#allocation246_spill] sm:$0xff] %v12869_v33  ;;  %v17516_v33 = vld [vmem:[#allocation121_spill] sm:$0xff] }
 0x2ea   : > { %17473 = vst [vmem:[#allocation243_spill] sm:$0xff] %v12856_v11  ;;  %v12871_v45 = vld [vmem:[#allocation9 + $0xeb0] sm:$0xff]  ;;  %17481 = vst [vmem:[#allocation249_spill] sm:$0xff] %v12882_v7 }
 0x2eb   : > { %17478 = vst [vmem:[#allocation247_spill] sm:$0xff] %v12871_v45  ;;  %v8447_v35 = vld [vmem:[#allocation12 + $0x308] sm:$0xff]  ;;  %17482 = vst [vmem:[#allocation250_spill] sm:$0xff] %v12885_v62  ;;  %v17494_v62 = vld [vmem:[#allocation61_spill] sm:$0xff] }
 0x2ec   : > { %v12879_v31 = vmul.f32 %v8447_v35, %v12247_v16  ;;  %v12887_v0 = vld [vmem:[#allocation9 + $0xa50] sm:$0xff]  ;;  %v12897_v35 = vpop.f32.mrf.mxu1  ;;  %17492 = vst [vmem:[#allocation257_spill] sm:$0xff] %v12915_v1  ;;  %v17496_v59 = vsub.s32 1, %v17494_v62  ;;  %v17497_v1 = vld [vmem:[#allocation34_spill] sm:$0xff]  ;;  %v8450_v45 = vld [vmem:[#allocation12 + $0x380] sm:$0xff] }
 0x2ed   : > { %17483 = vst [vmem:[#allocation251_spill] sm:$0xff] %v12887_v0  ;;  %17487 = vst [vmem:[#allocation253_spill] sm:$0xff] %v12897_v35  ;;  %v12903_v7 = vld [vmem:[#allocation9 + $0xa70] sm:$0xff]  ;;  %5744 = vmatmul.mubr.bf16.gmra.mxu0 %v17497_v1  ;;  %v17507_v1 = vcombine.low %v12358_v22, %v12360_v10  ;;  %v17515_v10 = vld [vmem:[#allocation119_spill] sm:$0xff] }
 0x2ee   : > { %17480 = vst [vmem:[#allocation248_spill] sm:$0xff] %v12879_v31  ;;  %17488 = vst [vmem:[#allocation254_spill] sm:$0xff] %v12903_v7  ;;  %v12905_v50 = vld [vmem:[#allocation9 + $0xe50] sm:$0xff]  ;;  %v17495_v31 = vsub.s32 0, %v17494_v62  ;;  %v12932_v5 = vrot.slane %v12889_v8, %v17496_v59  ;;  %v12935_v25 = vpop.f32.mrf.mxu1  ;;  %v17502_v62 = vcombine.low %v12338_v55, %v12340_v20  ;;  %v12950_v59 = vpop.f32.mrf.mxu0  ;;  %v17505_v20 = vld [vmem:[#allocation125_spill] sm:$0xff] }
 0x2ef   : > { %17489 = vst [vmem:[#allocation255_spill] sm:$0xff] %v12905_v50  ;;  %v12907_v17 = vld [vmem:[#allocation9 + $0xe70] sm:$0xff]  ;;  %17498 = vst [vmem:[#allocation259_spill] sm:$0xff] %v12935_v25  ;;  %6045 = vmatpush1.bf16.msra.mxu1 %v17507_v1  ;;  %v17563_v25 = vld [vmem:[#allocation105_spill] sm:$0xff] }
 0x2f0   : > { %17490 = vst [vmem:[#allocation256_spill] sm:$0xff] %v12907_v17  ;;  %v8449_v9 = vld [vmem:[#allocation12 + $0x348] sm:$0xff]  ;;  %v12927_v11 = vrot.slane %v12889_v8, %v17495_v31  ;;  %5932 = vmatpush1.bf16.msra.mxu0 %v17502_v62  ;;  %v17503_v8 = vld [vmem:[#allocation118_spill] sm:$0xff]  ;;  %v17506_v62 = vld [vmem:[#allocation127_spill] sm:$0xff]  ;;  %v12969_v63 = vpop.f32.mrf.mxu1  ;;  %v12982_v22 = vpop.f32.mrf.mxu0 }
 0x2f1   : > { %v12922_v19 = vmul.f32 %v8449_v9, %v12247_v16  ;;  %v12941_v9 = vmul.f32 %v8450_v45, %v12247_v16  ;;  %v17501_v31 = vld [vmem:[#allocation36_spill] sm:$0xff]  ;;  %17508 = vst [vmem:[#allocation118_spill] sm:$0xff] %v12969_v63  ;;  %v17509_v45 = vld [vmem:[#allocation129_spill] sm:$0xff] }
 0x2f2   : > { %5857 = vmatmul.mubr.bf16.gmra.mxu1 %v17501_v31  ;;  %v4832_v16 = vadd.f32 %v17503_v8, %v12927_v11  ;;  %v17504_v31 = vld [vmem:[#allocation120_spill] sm:$0xff]  ;;  %v4836_v55 = vadd.f32 %v17505_v20, %v12927_v11  ;;  %v4842_v7 = vadd.f32 %v17509_v45, %v12927_v11  ;;  %v17510_v8 = vld [vmem:[#allocation131_spill] sm:$0xff]  ;;  %v12999_v4 = vpop.f32.mrf.mxu1 }
 0x2f3   : > { %17493 = vst [vmem:[#allocation258_spill] sm:$0xff] %v12922_v19  ;;  %17500 = vst [vmem:[#allocation261_spill] sm:$0xff] %v12941_v9  ;;  %v12944_v19 = vstv %s12806_s9  ;;  %v4834_v46 = vadd.f32 %v17504_v31, %v12932_v5  ;;  %v4838_v9 = vadd.f32 %v17506_v62, %v12932_v5  ;;  %v4844_v0 = vadd.f32 %v17510_v8, %v12932_v5  ;;  %v17511_v31 = vld [vmem:[#allocation136_spill] sm:$0xff]  ;;  %v17512_v20 = vld [vmem:[#allocation55_spill] sm:$0xff] }
 0x2f4   : > { %v4846_v50 = vadd.f32 %v17511_v31, %v12927_v11  ;;  %v4848_v17 = vadd.f32 %v17512_v20, %v12932_v5  ;;  %v17513_v62 = vcombine.high %v12379_v15, %v12381_v39  ;;  %17514 = vst [vmem:[#allocation120_spill] sm:$0xff] %v12982_v22  ;;  %v12985_v1 = vadd.f32 %v17515_v10, %v4832_v16  ;;  %v17518_v61 = vld [vmem:[#allocation128_spill] sm:$0xff]  ;;  %v17519_v20 = vld [vmem:[#allocation98_spill] sm:$0xff] }
 0x2f5   : > { %v12988_v45 = vadd.f32 %v17516_v33, %v4834_v46  ;;  %v12991_v8 = vadd.f32 %v17517_v30, %v4836_v55  ;;  %v12994_v31 = vadd.f32 %v17518_v61, %v4838_v9  ;;  %v17520_v43 = vcombine.high %v12397_v51, %v17519_v20  ;;  %17521 = vst [vmem:[#allocation125_spill] sm:$0xff] %v12999_v4  ;;  %v17523_v16 = vld [vmem:[#allocation132_spill] sm:$0xff]  ;;  %v17524_v33 = vld [vmem:[#allocation137_spill] sm:$0xff]  ;;  %v13016_v9 = vpop.f32.mrf.mxu0 }
 0x2f6   : > { %5933 = vmatprep.subr.bf16.mxu0 %v17513_v62  ;;  %v17522_v62 = vld [vmem:[#allocation130_spill] sm:$0xff]  ;;  %v13005_v10 = vadd.f32 %v17523_v16, %v4844_v0  ;;  %v13008_v46 = vadd.f32 %v17524_v33, %v4846_v50  ;;  %v17525_v30 = vld [vmem:[#allocation56_spill] sm:$0xff]  ;;  %v17526_v61 = vcombine.low %v12379_v15, %v12381_v39  ;;  %17527 = vst [vmem:[#allocation127_spill] sm:$0xff] %v13016_v9  ;;  %v13029_v15 = vpop.f32.mrf.mxu1  ;;  %v17538_v4 = vld [vmem:[#allocation37_spill] sm:$0xff] }
 0x2f7   : > { %6046 = vmatprep.subr.bf16.mxu1 %v17520_v43  ;;  %v13002_v60 = vadd.f32 %v17522_v62, %v4842_v7  ;;  %v13011_v55 = vadd.f32 %v17525_v30, %v4848_v17  ;;  %v17528_v43 = vld [vmem:[#allocation48_spill] sm:$0xff]  ;;  %v17529_v7 = vld [vmem:[#allocation57_spill] sm:$0xff]  ;;  %v17530_v0 = vld [vmem:[#allocation62_spill] sm:$0xff]  ;;  %v17532_v17 = vcombine.low %v12397_v51, %v17519_v20  ;;  %17533 = vst [vmem:[#allocation129_spill] sm:$0xff] %v13029_v15 }
 0x2f8   : > { %5934 = vmatpush1.bf16.msra.mxu0 %v17526_v61  ;;  %v4852_v47 = vadd.f32 %v17528_v43, %v12927_v11  ;;  %v4854_v62 = vadd.f32 %v17529_v7, %v12932_v5  ;;  %v4856_v16 = vadd.f32 %v17530_v0, %v12927_v11  ;;  %v17531_v50 = vld [vmem:[#allocation68_spill] sm:$0xff]  ;;  %v17534_v39 = vld [vmem:[#allocation146_spill] sm:$0xff]  ;;  %5753 = vmatprep.mubr.bf16.mxu0 %v17538_v4  ;;  %v13055_v9 = vpop.f32.mrf.mxu1 }
 0x2f9   : > { %v4858_v33 = vadd.f32 %v17531_v50, %v12932_v5  ;;  %6047 = vmatpush1.bf16.msra.mxu1 %v17532_v17  ;;  %v4862_v30 = vadd.f32 %v17534_v39, %v12927_v11  ;;  %v17535_v61 = vld [vmem:[#allocation148_spill] sm:$0xff]  ;;  %v17536_v7 = vld [vmem:[#allocation70_spill] sm:$0xff]  ;;  %v13040_v50 = vpop.f32.mrf.mxu0  ;;  %v17541_v17 = vld [vmem:[#allocation139_spill] sm:$0xff]  ;;  %17545 = vst [vmem:[#allocation136_spill] sm:$0xff] %v13055_v9 }
 0x2fa   : > { %v4864_v43 = vadd.f32 %v17535_v61, %v12932_v5  ;;  %v4866_v56 = vadd.f32 %v17536_v7, %v12927_v11  ;;  %v17537_v0 = vld [vmem:[#allocation72_spill] sm:$0xff]  ;;  %17539 = vst [vmem:[#allocation131_spill] sm:$0xff] %v13040_v50  ;;  %v17540_v51 = vld [vmem:[#allocation138_spill] sm:$0xff]  ;;  %v13046_v15 = vadd.f32 %v17541_v17, %v4854_v62  ;;  %v17542_v39 = vld [vmem:[#allocation63_spill] sm:$0xff] }
 0x2fb   : > { %v4868_v40 = vadd.f32 %v17537_v0, %v12932_v5  ;;  %v13043_v20 = vadd.f32 %v17540_v51, %v4852_v47  ;;  %v13049_v18 = vadd.f32 %v17542_v39, %v4856_v16  ;;  %v17543_v61 = vld [vmem:[#allocation69_spill] sm:$0xff]  ;;  %v17544_v7 = vld [vmem:[#allocation38_spill] sm:$0xff]  ;;  %v17546_v0 = vld [vmem:[#allocation147_spill] sm:$0xff] }
 0x2fc   : > { %v13052_v28 = vadd.f32 %v17543_v61, %v4858_v33  ;;  %5866 = vmatprep.mubr.bf16.mxu1 %v17544_v7  ;;  %v13058_v4 = vadd.f32 %v17546_v0, %v4862_v30  ;;  %v17547_v50 = vld [vmem:[#allocation151_spill] sm:$0xff]  ;;  %v17549_v62 = vld [vmem:[#allocation153_spill] sm:$0xff]  ;;  %v17550_v16 = vld [vmem:[#allocation40_spill] sm:$0xff]  ;;  %v13070_v33 = vpop.f32.mrf.mxu0 }
 0x2fd   : > { %v13061_v22 = vadd.f32 %v17547_v50, %v4864_v43  ;;  %v17548_v47 = vld [vmem:[#allocation71_spill] sm:$0xff]  ;;  %v13067_v17 = vadd.f32 %v17549_v62, %v4868_v40  ;;  %5754 = vmatmul.mubr.bf16.gmra.mxu0 %v17550_v16  ;;  %17551 = vst [vmem:[#allocation55_spill] sm:$0xff] %v13070_v33  ;;  %v17552_v39 = vld [vmem:[#allocation50_spill] sm:$0xff]  ;;  %v17554_v0 = vld [vmem:[#allocation157_spill] sm:$0xff]  ;;  %v13081_v40 = vpop.f32.mrf.mxu1 }
 0x2fe   : > { %v13064_v51 = vadd.f32 %v17548_v47, %v4866_v56  ;;  %v4872_v61 = vadd.f32 %v17552_v39, %v12927_v11  ;;  %v17553_v7 = vld [vmem:[#allocation155_spill] sm:$0xff]  ;;  %v4876_v43 = vadd.f32 %v17554_v0, %v12927_v11  ;;  %v17555_v50 = vld [vmem:[#allocation78_spill] sm:$0xff]  ;;  %v17556_v47 = vld [vmem:[#allocation41_spill] sm:$0xff]  ;;  %17557 = vst [vmem:[#allocation119_spill] sm:$0xff] %v13081_v40 }
 0x2ff   : > { %v4874_v30 = vadd.f32 %v17553_v7, %v12932_v5  ;;  %v4878_v56 = vadd.f32 %v17555_v50, %v12932_v5  ;;  %5867 = vmatmul.mubr.bf16.gmra.mxu1 %v17556_v47  ;;  %v17558_v62 = vld [vmem:[#allocation159_spill] sm:$0xff]  ;;  %v17559_v9 = vld [vmem:[#allocation161_spill] sm:$0xff]  ;;  %v17561_v7 = vld [vmem:[#allocation80_spill] sm:$0xff]  ;;  %v13094_v50 = vpop.f32.mrf.mxu0  ;;  %v13111_v14 = vpop.f32.mrf.mxu1 }
 0x300   : > { %v4882_v16 = vadd.f32 %v17558_v62, %v12927_v11  ;;  %v4884_v33 = vadd.f32 %v17559_v9, %v12932_v5  ;;  %v17560_v39 = vld [vmem:[#allocation163_spill] sm:$0xff]  ;;  %v4888_v63 = vadd.f32 %v17561_v7, %v12932_v5  ;;  %v17562_v0 = vld [vmem:[#allocation104_spill] sm:$0xff]  ;;  %17565 = vst [vmem:[#allocation121_spill] sm:$0xff] %v13094_v50  ;;  %v17566_v47 = vld [vmem:[#allocation154_spill] sm:$0xff]  ;;  %v13103_v9 = vadd.f32 %v17568_v34, %v4876_v43 }
 0x301   : > { %v4886_v32 = vadd.f32 %v17560_v39, %v12927_v11  ;;  %v17564_v35 = vcombine.high %v17562_v0, %v17563_v25  ;;  %v13097_v40 = vadd.f32 %v17566_v47, %v4872_v61  ;;  %v17567_v38 = vld [vmem:[#allocation156_spill] sm:$0xff]  ;;  %v13106_v39 = vadd.f32 %v17569_v24, %v4878_v56  ;;  %v17570_v7 = vld [vmem:[#allocation107_spill] sm:$0xff]  ;;  %17572 = vst [vmem:[#allocation126_spill] sm:$0xff] %v13111_v14  ;;  %v17575_v61 = vld [vmem:[#allocation162_spill] sm:$0xff]  ;;  %v13128_v56 = vpop.f32.mrf.mxu0 }
 0x302   : > { %v13100_v62 = vadd.f32 %v17567_v38, %v4874_v30  ;;  %v17571_v54 = vcombine.high %v12442_v57, %v17570_v7  ;;  %v13117_v47 = vadd.f32 %v17575_v61, %v4884_v33  ;;  %v17577_v38 = vld [vmem:[#allocation164_spill] sm:$0xff]  ;;  %v17579_v34 = vld [vmem:[#allocation81_spill] sm:$0xff]  ;;  %v17581_v24 = vcombine.low %v17562_v0, %v17563_v25  ;;  %17582 = vst [vmem:[#allocation137_spill] sm:$0xff] %v13128_v56  ;;  %v13141_v25 = vpop.f32.mrf.mxu1 }
 0x303   : > { %5935 = vmatprep.subr.bf16.mxu0 %v17564_v35  ;;  %v17573_v35 = vld [vmem:[#allocation160_spill] sm:$0xff]  ;;  %v13120_v30 = vadd.f32 %v17577_v38, %v4886_v32  ;;  %v13123_v43 = vadd.f32 %v17579_v34, %v4888_v63  ;;  %v17586_v32 = vld [vmem:[#allocation171_spill] sm:$0xff]  ;;  %v17587_v63 = vcombine.low %v12442_v57, %v17570_v7  ;;  %17588 = vst [vmem:[#allocation56_spill] sm:$0xff] %v13141_v25  ;;  %v13154_v57 = vpop.f32.mrf.mxu0  ;;  %v17595_v7 = vld [vmem:[#allocation82_spill] sm:$0xff] }
 0x304   : > { %6048 = vmatprep.subr.bf16.mxu1 %v17571_v54  ;;  %v13114_v50 = vadd.f32 %v17573_v35, %v4882_v16  ;;  %17576 = vst [vmem:[#allocation98_spill] sm:$0xff] %v13117_v47  ;;  %5936 = vmatpush1.bf16.msra.mxu0 %v17581_v24  ;;  %v17583_v54 = vld [vmem:[#allocation165_spill] sm:$0xff]  ;;  %v17584_v16 = vld [vmem:[#allocation83_spill] sm:$0xff]  ;;  %v17585_v33 = vld [vmem:[#allocation168_spill] sm:$0xff]  ;;  %v4898_v38 = vadd.f32 %v17586_v32, %v12932_v5 }
 0x305   : > { %17578 = vst [vmem:[#allocation130_spill] sm:$0xff] %v13120_v30  ;;  %17580 = vst [vmem:[#allocation132_spill] sm:$0xff] %v13123_v43  ;;  %v4892_v14 = vadd.f32 %v17583_v54, %v12927_v11  ;;  %v4894_v35 = vadd.f32 %v17584_v16, %v12932_v5  ;;  %v4896_v61 = vadd.f32 %v17585_v33, %v12927_v11  ;;  %6049 = vmatpush1.bf16.msra.mxu1 %v17587_v63  ;;  %v17589_v0 = vld [vmem:[#allocation84_spill] sm:$0xff]  ;;  %v17590_v24 = vld [vmem:[#allocation89_spill] sm:$0xff] }
 0x306   : > { %17574 = vst [vmem:[#allocation128_spill] sm:$0xff] %v13114_v50  ;;  %v4902_v34 = vadd.f32 %v17589_v0, %v12927_v11  ;;  %v4904_v54 = vadd.f32 %v17590_v24, %v12932_v5  ;;  %v17591_v16 = vld [vmem:[#allocation92_spill] sm:$0xff]  ;;  %v17593_v32 = vld [vmem:[#allocation117_spill] sm:$0xff]  ;;  %v17596_v25 = vld [vmem:[#allocation166_spill] sm:$0xff] }
 0x307   : > { %v4906_v43 = vadd.f32 %v17591_v16, %v12927_v11  ;;  %v17592_v33 = vld [vmem:[#allocation24_spill] sm:$0xff]  ;;  %v17594_v56 = vcombine.high %v12465_v44, %v17593_v32  ;;  %v13157_v63 = vadd.f32 %v17595_v7, %v4892_v14  ;;  %v13160_v0 = vadd.f32 %v17596_v25, %v4894_v35  ;;  %v17597_v47 = vld [vmem:[#allocation169_spill] sm:$0xff]  ;;  %v17598_v50 = vld [vmem:[#allocation27_spill] sm:$0xff]  ;;  %v13171_v16 = vpop.f32.mrf.mxu1 }
 0x308   : > { %v4908_v30 = vadd.f32 %v17592_v33, %v12932_v5  ;;  %v13163_v24 = vadd.f32 %v17597_v47, %v4896_v61  ;;  %v13166_v11 = vadd.f32 %v17598_v50, %v4898_v38  ;;  %v17600_v5 = vcombine.high %v12479_v36, %v12481_v42  ;;  %v17602_v14 = vld [vmem:[#allocation32_spill] sm:$0xff]  ;;  %v17604_v35 = vld [vmem:[#allocation102_spill] sm:$0xff]  ;;  %v13188_v38 = vpop.f32.mrf.mxu0 }
 0x309   : > { %5937 = vmatprep.subr.bf16.mxu0 %v17594_v56  ;;  %v17601_v56 = vld [vmem:[#allocation88_spill] sm:$0xff]  ;;  %v13177_v7 = vadd.f32 %v17602_v14, %v4904_v54  ;;  %v13180_v25 = vadd.f32 %v17604_v35, %v4906_v43  ;;  %v17606_v47 = vld [vmem:[#allocation106_spill] sm:$0xff]  ;;  %v17608_v50 = vcombine.low %v12465_v44, %v17593_v32  ;;  %v17611_v54 = vld [vmem:[#allocation183_spill] sm:$0xff]  ;;  %v5064_v43 = vadd.f32 %v12557_v23, %v12994_v31  ;;  %v13201_v44 = vpop.f32.mrf.mxu1 }
 0x30a   : > { %17599 = vst [vmem:[#allocation48_spill] sm:$0xff] %v13166_v11  ;;  %6050 = vmatprep.subr.bf16.mxu1 %v17600_v5  ;;  %v13174_v33 = vadd.f32 %v17601_v56, %v4902_v34  ;;  %v13183_v61 = vadd.f32 %v17606_v47, %v4908_v30  ;;  %v17609_v5 = vld [vmem:[#allocation108_spill] sm:$0xff]  ;;  %v17610_v34 = vld [vmem:[#allocation174_spill] sm:$0xff]  ;;  %v5062_v14 = vadd.f32 %v17611_v54, %v12991_v8  ;;  %v17613_v32 = vld [vmem:[#allocation193_spill] sm:$0xff]  ;;  %v13212_v23 = vpop.f32.mrf.mxu0 }
 0x30b   : > { %17603 = vst [vmem:[#allocation57_spill] sm:$0xff] %v13177_v7  ;;  %17605 = vst [vmem:[#allocation62_spill] sm:$0xff] %v13180_v25  ;;  %5938 = vmatpush1.bf16.msra.mxu0 %v17608_v50  ;;  %v5058_v11 = vadd.f32 %v17609_v5, %v12985_v1  ;;  %v5060_v56 = vadd.f32 %v17610_v34, %v12988_v45  ;;  %v17612_v30 = vcombine.low %v12479_v36, %v12481_v42  ;;  %v17614_v47 = vld [vmem:[#allocation42_spill] sm:$0xff]  ;;  %v17615_v36 = vld [vmem:[#allocation172_spill] sm:$0xff] }
 0x30c   : > { %17607 = vst [vmem:[#allocation68_spill] sm:$0xff] %v13183_v61  ;;  %v5068_v35 = vadd.f32 %v17613_v32, %v13002_v60  ;;  %v5070_v1 = vadd.f32 %v12622_v2, %v13005_v10  ;;  %v5072_v45 = vadd.f32 %v12652_v27, %v13008_v46  ;;  %v5074_v8 = vadd.f32 %v12686_v52, %v13011_v55  ;;  %v17616_v31 = vld [vmem:[#allocation177_spill] sm:$0xff]  ;;  %v17618_v60 = vld [vmem:[#allocation190_spill] sm:$0xff]  ;;  %v13219_v2 = vpop.f32.mrf.mxu1  ;;  %v17637_v25 = vld [vmem:[#allocation103_spill] sm:$0xff] }
 0x30d   : > { %6051 = vmatpush1.bf16.msra.mxu1 %v17612_v30  ;;  %5763 = vmatprep.mubr.bf16.mxu0 %v17614_v47  ;;  %v5171_v42 = vadd.f32 %v17615_v36, %v5058_v11  ;;  %v5173_v50 = vadd.f32 %v17616_v31, %v5060_v56  ;;  %v17617_v5 = vld [vmem:[#allocation185_spill] sm:$0xff]  ;;  %v5177_v54 = vadd.f32 %v17618_v60, %v5064_v43  ;;  %v17619_v30 = vld [vmem:[#allocation43_spill] sm:$0xff]  ;;  %v17622_v32 = vld [vmem:[#allocation46_spill] sm:$0xff]  ;;  %v13226_v11 = vpop.f32.mrf.mxu0 }
 0x30e   : > { %v5175_v34 = vadd.f32 %v17617_v5, %v5062_v14  ;;  %5876 = vmatprep.mubr.bf16.mxu1 %v17619_v30  ;;  %17620 = vst [vmem:[#allocation146_spill] sm:$0xff] %v13219_v2  ;;  %v17621_v27 = vld [vmem:[#allocation197_spill] sm:$0xff]  ;;  %v5183_v52 = vadd.f32 %v12640_v3, %v5070_v1  ;;  %v5185_v46 = vadd.f32 %v12667_v41, %v5072_v45  ;;  %v17625_v45 = vld [vmem:[#allocation176_spill] sm:$0xff]  ;;  %v17628_v5 = vld [vmem:[#allocation51_spill] sm:$0xff] }
 0x30f   : > { %v5181_v10 = vadd.f32 %v17621_v27, %v5068_v35  ;;  %v5187_v55 = vadd.f32 %v12704_v48, %v5074_v8  ;;  %5764 = vmatmul.mubr.bf16.gmra.mxu0 %v17622_v32  ;;  %v6735_v56 = vmul.f32 %v12944_v19, %v5171_v42  ;;  %v6736_v14 = vmul.f32 %v12944_v19, %v5173_v50  ;;  %v17623_v31 = vld [vmem:[#allocation49_spill] sm:$0xff]  ;;  %v13233_v35 = vpop.f32.mrf.mxu1  ;;  %v17626_v8 = vld [vmem:[#allocation180_spill] sm:$0xff]  ;;  %v13242_v50 = vpop.f32.mrf.mxu0  ;;  %v17630_v27 = vld [vmem:[#allocation87_spill] sm:$0xff] }
 0x310   : > { %v6743_v43 = vmul.f32 %v12944_v19, %v5175_v34  ;;  %v6744_v36 = vmul.f32 %v12944_v19, %v5177_v54  ;;  %5877 = vmatmul.mubr.bf16.gmra.mxu1 %v17623_v31  ;;  %17624 = vst [vmem:[#allocation148_spill] sm:$0xff] %v13233_v35  ;;  %v6752_v41 = vmul.f32 %v12944_v19, %v5183_v52  ;;  %v17629_v60 = vld [vmem:[#allocation28_spill] sm:$0xff]  ;;  %v17631_v32 = vld [vmem:[#allocation33_spill] sm:$0xff]  ;;  %v17633_v52 = vld [vmem:[#allocation182_spill] sm:$0xff] }
 0x311   : > { %v6751_v3 = vmul.f32 %v12944_v19, %v5181_v10  ;;  %v6759_v48 = vmul.f32 %v12944_v19, %v5185_v46  ;;  %v6760_v1 = vmul.f32 %v12944_v19, %v5187_v55  ;;  %v17627_v42 = vcombine.high %v17625_v45, %v17626_v8  ;;  %v17632_v30 = vld [vmem:[#allocation181_spill] sm:$0xff]  ;;  %v13251_v46 = vpop.f32.mrf.mxu1  ;;  %v17639_v2 = vld [vmem:[#allocation115_spill] sm:$0xff] }
 0x312   : > { %v6863_v34 = vsub.f32 %v17628_v5, %v6735_v56  ;;  %v6864_v54 = vsub.f32 %v17629_v60, %v6736_v14  ;;  %v6871_v31 = vsub.f32 %v17630_v27, %v6743_v43  ;;  %v6872_v10 = vsub.f32 %v17631_v32, %v6744_v36  ;;  %17635 = vst [vmem:[#allocation70_spill] sm:$0xff] %v13251_v46  ;;  %v17636_v55 = vld [vmem:[#allocation93_spill] sm:$0xff]  ;;  %v13260_v43 = vpop.f32.mrf.mxu0  ;;  %v17641_v32 = vld [vmem:[#allocation26_spill] sm:$0xff]  ;;  %v17642_v5 = vld [vmem:[#allocation52_spill] sm:$0xff] }
 0x313   : > { %5939 = vmatprep.subr.bf16.mxu0 %v17627_v42  ;;  %v17634_v47 = vcombine.high %v17632_v30, %v17633_v52  ;;  %v6879_v61 = vsub.f32 %v17636_v55, %v6751_v3  ;;  %v6880_v42 = vsub.f32 %v17637_v25, %v6752_v41  ;;  %v17638_v7 = vld [vmem:[#allocation45_spill] sm:$0xff]  ;;  %v6888_v56 = vsub.f32 %v17639_v2, %v6760_v1  ;;  %v17643_v60 = vld [vmem:[#allocation90_spill] sm:$0xff]  ;;  %v17644_v46 = vld [vmem:[#allocation35_spill] sm:$0xff] }
 0x314   : > { %v6887_v35 = vsub.f32 %v17638_v7, %v6759_v48  ;;  %v17640_v14 = vcombine.low %v17625_v45, %v17626_v8  ;;  %v7312_v36 = vadd.f32 %v17641_v32, %v6863_v34  ;;  %v7320_v27 = vadd.f32 %v17643_v60, %v6871_v31  ;;  %v13269_v7 = vpop.f32.mrf.mxu1  ;;  %v17646_v2 = vld [vmem:[#allocation47_spill] sm:$0xff]  ;;  %v17647_v48 = vld [vmem:[#allocation109_spill] sm:$0xff]  ;;  %v17648_v45 = vld [vmem:[#allocation114_spill] sm:$0xff]  ;;  %v13278_v31 = vpop.f32.mrf.mxu0 }
 0x315   : > { %6052 = vmatprep.subr.bf16.mxu1 %v17634_v47  ;;  %v7313_v47 = vadd.f32 %v17642_v5, %v6864_v54  ;;  %v7321_v3 = vadd.f32 %v17644_v46, %v6872_v10  ;;  %v17645_v25 = vcombine.low %v17632_v30, %v17633_v52  ;;  %v7328_v41 = vadd.f32 %v17646_v2, %v6879_v61  ;;  %v17649_v55 = vld [vmem:[#allocation173_spill] sm:$0xff]  ;;  %v17657_v32 = vld [vmem:[#allocation238_spill] sm:$0xff] }
 0x316   : > { %5940 = vmatpush1.bf16.msra.mxu0 %v17640_v14  ;;  %v7329_v1 = vadd.f32 %v17647_v48, %v6880_v42  ;;  %v7336_v8 = vadd.f32 %v17648_v45, %v6887_v35  ;;  %v7337_v34 = vadd.f32 %v17649_v55, %v6888_v56  ;;  %v17650_v54 = vld [vmem:[#allocation189_spill] sm:$0xff]  ;;  %7440 = vst [vmem:[#allocation12] sm:$0xff] %v7312_v36  ;;  %7448 = vst [vmem:[#allocation12 + $0x40] sm:$0xff] %v7320_v27  ;;  %v13291_v46 = vpop.f32.mrf.mxu1  ;;  %v17655_v42 = vld [vmem:[#allocation224_spill] sm:$0xff] }
 0x317   : > { %6053 = vmatpush1.bf16.msra.mxu1 %v17645_v25  ;;  %v17651_v14 = vcombine.high %v12550_v58, %v17650_v54  ;;  %7441 = vst [vmem:[#allocation12 + $0x8] sm:$0xff] %v7313_v47  ;;  %7449 = vst [vmem:[#allocation12 + $0x48] sm:$0xff] %v7321_v3  ;;  %v5078_v30 = vadd.f32 %v12720_v29, %v13043_v20  ;;  %v5080_v61 = vadd.f32 %v12745_v37, %v13046_v15  ;;  %v17654_v15 = vld [vmem:[#allocation219_spill] sm:$0xff]  ;;  %v17660_v36 = vld [vmem:[#allocation253_spill] sm:$0xff] }
 0x318   : > { %v5082_v35 = vadd.f32 %v12779_v21, %v13049_v18  ;;  %v5084_v10 = vadd.f32 %v12812_v12, %v13052_v28  ;;  %v17652_v52 = vcombine.high %v12565_v49, %v12567_v13  ;;  %7456 = vst [vmem:[#allocation12 + $0x80] sm:$0xff] %v7328_v41  ;;  %7457 = vst [vmem:[#allocation12 + $0x88] sm:$0xff] %v7329_v1  ;;  %v13304_v12 = vpop.f32.mrf.mxu0  ;;  %v17662_v47 = vld [vmem:[#allocation118_spill] sm:$0xff] }
 0x319   : > { %5941 = vmatprep.subr.bf16.mxu0 %v17651_v14  ;;  %7464 = vst [vmem:[#allocation12 + $0xc0] sm:$0xff] %v7336_v8  ;;  %7465 = vst [vmem:[#allocation12 + $0xc8] sm:$0xff] %v7337_v34  ;;  %v5088_v29 = vadd.f32 %v12845_v6, %v13058_v4  ;;  %v5090_v37 = vadd.f32 %v12876_v53, %v13061_v22  ;;  %v5092_v18 = vadd.f32 %v12912_v26, %v13064_v51  ;;  %v17656_v4 = vld [vmem:[#allocation231_spill] sm:$0xff]  ;;  %v13313_v22 = vpop.f32.mrf.mxu1  ;;  %v17663_v27 = vld [vmem:[#allocation54_spill] sm:$0xff] }
 0x31a   : > { %6054 = vmatprep.subr.bf16.mxu1 %v17652_v52  ;;  %v17653_v28 = vcombine.low %v12550_v58, %v17650_v54  ;;  %v5094_v21 = vadd.f32 %v12950_v59, %v13067_v17  ;;  %v5191_v20 = vadd.f32 %v17654_v15, %v5078_v30  ;;  %v5193_v56 = vadd.f32 %v17655_v42, %v5080_v61  ;;  %v17659_v58 = vld [vmem:[#allocation244_spill] sm:$0xff]  ;;  %v17661_v17 = vld [vmem:[#allocation259_spill] sm:$0xff]  ;;  %v13320_v3 = vpop.f32.mrf.mxu0  ;;  %v17664_v41 = vld [vmem:[#allocation58_spill] sm:$0xff] }
 0x31b   : > { %v5195_v6 = vadd.f32 %v17656_v4, %v5082_v35  ;;  %v5197_v53 = vadd.f32 %v17657_v32, %v5084_v10  ;;  %v17658_v26 = vcombine.low %v12565_v49, %v12567_v13  ;;  %v5201_v51 = vadd.f32 %v17659_v58, %v5088_v29  ;;  %5773 = vmatprep.mubr.bf16.mxu0 %v17663_v27  ;;  %v13327_v48 = vpop.f32.mrf.mxu1  ;;  %v17665_v34 = vld [vmem:[#allocation59_spill] sm:$0xff]  ;;  %v17666_v14 = vld [vmem:[#allocation116_spill] sm:$0xff]  ;;  %v13879_v27 = vld [vmem:[#allocation9 + $0x398] sm:$0xff] }
 0x31c   : > { %5942 = vmatpush1.bf16.msra.mxu0 %v17653_v28  ;;  %v5203_v59 = vadd.f32 %v17660_v36, %v5090_v37  ;;  %v5205_v5 = vadd.f32 %v17661_v17, %v5092_v18  ;;  %v5207_v60 = vadd.f32 %v17662_v47, %v5094_v21  ;;  %v6767_v25 = vmul.f32 %v12944_v19, %v5191_v20  ;;  %v13334_v54 = vpop.f32.mrf.mxu0  ;;  %v17667_v61 = vld [vmem:[#allocation175_spill] sm:$0xff]  ;;  %v17670_v18 = vld [vmem:[#allocation60_spill] sm:$0xff]  ;;  %v17678_v36 = vld [vmem:[#allocation178_spill] sm:$0xff] }
 0x31d   : > { %6055 = vmatpush1.bf16.msra.mxu1 %v17658_v26  ;;  %v6768_v2 = vmul.f32 %v12944_v19, %v5193_v56  ;;  %v6775_v49 = vmul.f32 %v12944_v19, %v5195_v6  ;;  %v6776_v13 = vmul.f32 %v12944_v19, %v5197_v53  ;;  %5886 = vmatprep.mubr.bf16.mxu1 %v17664_v41  ;;  %v17668_v10 = vld [vmem:[#allocation179_spill] sm:$0xff]  ;;  %v13341_v28 = vpop.f32.mrf.mxu1  ;;  %v17671_v21 = vld [vmem:[#allocation188_spill] sm:$0xff]  ;;  %v17680_v47 = vld [vmem:[#allocation186_spill] sm:$0xff] }
 0x31e   : > { %v6783_v1 = vmul.f32 %v12944_v19, %v5201_v51  ;;  %v6784_v45 = vmul.f32 %v12944_v19, %v5203_v59  ;;  %v6791_v8 = vmul.f32 %v12944_v19, %v5205_v5  ;;  %v6792_v55 = vmul.f32 %v12944_v19, %v5207_v60  ;;  %5774 = vmatmul.mubr.bf16.gmra.mxu0 %v17665_v34  ;;  %v17669_v29 = vld [vmem:[#allocation187_spill] sm:$0xff]  ;;  %v17672_v20 = vld [vmem:[#allocation192_spill] sm:$0xff]  ;;  %v13350_v51 = vpop.f32.mrf.mxu0 }
 0x31f   : > { %v6895_v30 = vsub.f32 %v17666_v14, %v6767_v25  ;;  %v6896_v35 = vsub.f32 %v17667_v61, %v6768_v2  ;;  %v6903_v52 = vsub.f32 %v17668_v10, %v6775_v49  ;;  %v6904_v37 = vsub.f32 %v17669_v29, %v6776_v13  ;;  %5887 = vmatmul.mubr.bf16.gmra.mxu1 %v17670_v18  ;;  %v17673_v56 = vld [vmem:[#allocation195_spill] sm:$0xff]  ;;  %v17675_v53 = vld [vmem:[#allocation196_spill] sm:$0xff]  ;;  %v17683_v13 = vld [vmem:[#allocation201_spill] sm:$0xff] }
 0x320   : > { %v6911_v15 = vsub.f32 %v17671_v21, %v6783_v1  ;;  %v6912_v42 = vsub.f32 %v17672_v20, %v6784_v45  ;;  %v6919_v4 = vsub.f32 %v17673_v56, %v6791_v8  ;;  %v17674_v6 = vld [vmem:[#allocation203_spill] sm:$0xff]  ;;  %v17679_v17 = vld [vmem:[#allocation184_spill] sm:$0xff]  ;;  %v13359_v45 = vpop.f32.mrf.mxu1  ;;  %v17685_v8 = vld [vmem:[#allocation194_spill] sm:$0xff] }
 0x321   : > { %v6920_v32 = vsub.f32 %v17674_v6, %v6792_v55  ;;  %v17676_v26 = vld [vmem:[#allocation199_spill] sm:$0xff]  ;;  %v7344_v59 = vadd.f32 %v17678_v36, %v6895_v30  ;;  %v7345_v5 = vadd.f32 %v17679_v17, %v6896_v35  ;;  %v7352_v60 = vadd.f32 %v17680_v47, %v6903_v52  ;;  %v17682_v49 = vld [vmem:[#allocation200_spill] sm:$0xff]  ;;  %v17686_v14 = vld [vmem:[#allocation198_spill] sm:$0xff]  ;;  %v13368_v52 = vpop.f32.mrf.mxu0 }
 0x322   : > { %v17677_v58 = vcombine.high %v17675_v53, %v17676_v26  ;;  %v17681_v25 = vld [vmem:[#allocation191_spill] sm:$0xff]  ;;  %v17684_v1 = vcombine.high %v17682_v49, %v17683_v13  ;;  %v7360_v55 = vadd.f32 %v17685_v8, %v6911_v15  ;;  %v7361_v61 = vadd.f32 %v17686_v14, %v6912_v42  ;;  %v17687_v10 = vld [vmem:[#allocation202_spill] sm:$0xff]  ;;  %v17703_v47 = vld [vmem:[#allocation121_spill] sm:$0xff] }
 0x323   : > { %v7353_v2 = vadd.f32 %v17681_v25, %v6904_v37  ;;  %v7368_v29 = vadd.f32 %v17687_v10, %v6919_v4  ;;  %v17688_v21 = vld [vmem:[#allocation207_spill] sm:$0xff]  ;;  %v17689_v35 = vcombine.low %v17675_v53, %v17676_v26  ;;  %7472 = vst [vmem:[#allocation12 + $0x100] sm:$0xff] %v7344_v59  ;;  %7473 = vst [vmem:[#allocation12 + $0x108] sm:$0xff] %v7345_v5  ;;  %v17690_v37 = vld [vmem:[#allocation120_spill] sm:$0xff] }
 0x324   : > { %5943 = vmatprep.subr.bf16.mxu0 %v17677_v58  ;;  %6056 = vmatprep.subr.bf16.mxu1 %v17684_v1  ;;  %v7369_v30 = vadd.f32 %v17688_v21, %v6920_v32  ;;  %7480 = vst [vmem:[#allocation12 + $0x140] sm:$0xff] %v7352_v60  ;;  %v5098_v20 = vadd.f32 %v17690_v37, %v13097_v40  ;;  %v17692_v42 = vld [vmem:[#allocation127_spill] sm:$0xff]  ;;  %v17694_v32 = vld [vmem:[#allocation205_spill] sm:$0xff]  ;;  %v17695_v53 = vld [vmem:[#allocation206_spill] sm:$0xff]  ;;  %v13382_v58 = vpop.f32.mrf.mxu1 }
 0x325   : > { %5944 = vmatpush2.bf16.msra.mxu0 %v17689_v35  ;;  %7481 = vst [vmem:[#allocation12 + $0x148] sm:$0xff] %v7353_v2  ;;  %v17691_v15 = vcombine.low %v17682_v49, %v17683_v13  ;;  %v5100_v56 = vadd.f32 %v17692_v42, %v13100_v62  ;;  %v17693_v4 = vld [vmem:[#allocation131_spill] sm:$0xff]  ;;  %v17696_v26 = vcombine.high %v17694_v32, %v17695_v53  ;;  %7488 = vst [vmem:[#allocation12 + $0x180] sm:$0xff] %v7360_v55  ;;  %v17697_v40 = vld [vmem:[#allocation209_spill] sm:$0xff]  ;;  %v13394_v13 = vpop.f32.mrf.mxu0 }
 0x326   : > { %v5102_v6 = vadd.f32 %v17693_v4, %v13103_v9  ;;  %7489 = vst [vmem:[#allocation12 + $0x188] sm:$0xff] %v7361_v61  ;;  %7496 = vst [vmem:[#allocation12 + $0x1c0] sm:$0xff] %v7368_v29  ;;  %v17698_v36 = vld [vmem:[#allocation210_spill] sm:$0xff]  ;;  %v17700_v17 = vld [vmem:[#allocation55_spill] sm:$0xff]  ;;  %v17711_v35 = vcombine.low %v17694_v32, %v17695_v53 }
 0x327   : > { %6057 = vmatpush2.bf16.msra.mxu1 %v17691_v15  ;;  %5945 = vmatprep.subr.bf16.mxu0 %v17696_v26  ;;  %7497 = vst [vmem:[#allocation12 + $0x1c8] sm:$0xff] %v7369_v30  ;;  %v17699_v59 = vcombine.high %v17697_v40, %v17698_v36  ;;  %v5104_v62 = vadd.f32 %v17700_v17, %v13106_v39  ;;  %v17701_v5 = vld [vmem:[#allocation64_spill] sm:$0xff]  ;;  %v17704_v25 = vld [vmem:[#allocation98_spill] sm:$0xff]  ;;  %v17705_v2 = vld [vmem:[#allocation137_spill] sm:$0xff]  ;;  %v13402_v30 = vpop.f32.mrf.mxu1 }
 0x328   : > { %5783 = vmatprep.mubr.bf16.mxu0 %v17701_v5  ;;  %v17702_v9 = vld [vmem:[#allocation128_spill] sm:$0xff]  ;;  %v5110_v49 = vadd.f32 %v17705_v2, %v17704_v25  ;;  %v17706_v1 = vld [vmem:[#allocation125_spill] sm:$0xff]  ;;  %v17710_v21 = vld [vmem:[#allocation130_spill] sm:$0xff]  ;;  %v17716_v32 = vcombine.low %v17697_v40, %v17698_v36 }
 0x329   : > { %6058 = vmatprep.subr.bf16.mxu1 %v17699_v59  ;;  %v5108_v60 = vadd.f32 %v17703_v47, %v17702_v9  ;;  %v5211_v8 = vadd.f32 %v17706_v1, %v5098_v20  ;;  %v17707_v55 = vld [vmem:[#allocation129_spill] sm:$0xff]  ;;  %v17708_v61 = vld [vmem:[#allocation136_spill] sm:$0xff]  ;;  %v5112_v39 = vadd.f32 %v13154_v57, %v17710_v21  ;;  %5946 = vmatpush2.bf16.msra.mxu0 %v17711_v35  ;;  %v17712_v37 = vld [vmem:[#allocation119_spill] sm:$0xff]  ;;  %v13412_v59 = vpop.f32.mrf.mxu0 }
 0x32a   : > { %v5213_v14 = vadd.f32 %v17707_v55, %v5100_v56  ;;  %v5215_v10 = vadd.f32 %v17708_v61, %v5102_v6  ;;  %v17709_v29 = vld [vmem:[#allocation65_spill] sm:$0xff]  ;;  %v5217_v15 = vadd.f32 %v17712_v37, %v5104_v62  ;;  %v17713_v42 = vld [vmem:[#allocation126_spill] sm:$0xff]  ;;  %v17714_v20 = vld [vmem:[#allocation56_spill] sm:$0xff]  ;;  %v13421_v62 = vpop.f32.mrf.mxu1 }
 0x32b   : > { %5896 = vmatprep.mubr.bf16.mxu1 %v17709_v29  ;;  %v5221_v4 = vadd.f32 %v17713_v42, %v5108_v60  ;;  %v5223_v26 = vadd.f32 %v17714_v20, %v5110_v49  ;;  %v17715_v56 = vld [vmem:[#allocation132_spill] sm:$0xff]  ;;  %v6799_v17 = vmul.f32 %v12944_v19, %v5211_v8  ;;  %6059 = vmatpush2.bf16.msra.mxu1 %v17716_v32  ;;  %v17717_v53 = vld [vmem:[#allocation66_spill] sm:$0xff]  ;;  %v17718_v60 = vld [vmem:[#allocation67_spill] sm:$0xff]  ;;  %v13430_v8 = vpop.f32.mrf.mxu0 }
 0x32c   : > { %v5114_v6 = vadd.f32 %v13188_v38, %v17715_v56  ;;  %v6800_v57 = vmul.f32 %v12944_v19, %v5213_v14  ;;  %v6807_v9 = vmul.f32 %v12944_v19, %v5215_v10  ;;  %5784 = vmatmul.mubr.bf16.gmra.mxu0 %v17717_v53  ;;  %v6808_v47 = vmul.f32 %v12944_v19, %v5217_v15  ;;  %v17719_v25 = vld [vmem:[#allocation213_spill] sm:$0xff]  ;;  %v17720_v2 = vld [vmem:[#allocation214_spill] sm:$0xff]  ;;  %v17722_v40 = vld [vmem:[#allocation204_spill] sm:$0xff]  ;;  %v13439_v42 = vpop.f32.mrf.mxu1 }
 0x32d   : > { %v6815_v38 = vmul.f32 %v12944_v19, %v5221_v4  ;;  %5897 = vmatmul.mubr.bf16.gmra.mxu1 %v17718_v60  ;;  %v17721_v49 = vcombine.high %v17719_v25, %v17720_v2  ;;  %v6816_v1 = vmul.f32 %v12944_v19, %v5223_v26  ;;  %v6927_v36 = vsub.f32 %v17722_v40, %v6799_v17  ;;  %v17723_v55 = vld [vmem:[#allocation211_spill] sm:$0xff]  ;;  %v17724_v61 = vld [vmem:[#allocation212_spill] sm:$0xff]  ;;  %v17728_v4 = vld [vmem:[#allocation218_spill] sm:$0xff] }
 0x32e   : > { %v6928_v14 = vsub.f32 %v17723_v55, %v6800_v57  ;;  %v6935_v10 = vsub.f32 %v17724_v61, %v6807_v9  ;;  %v17725_v21 = vld [vmem:[#allocation215_spill] sm:$0xff]  ;;  %v17726_v35 = vld [vmem:[#allocation216_spill] sm:$0xff]  ;;  %v5225_v15 = vadd.f32 %v13171_v16, %v5112_v39  ;;  %v6936_v20 = vsub.f32 %v17728_v4, %v6808_v47  ;;  %v17729_v56 = vld [vmem:[#allocation221_spill] sm:$0xff] }
 0x32f   : > { %5947 = vmatprep.subr.bf16.mxu0 %v17721_v49  ;;  %v17727_v37 = vcombine.high %v17725_v21, %v17726_v35  ;;  %v6943_v26 = vsub.f32 %v17729_v56, %v6815_v38  ;;  %v17730_v32 = vcombine.low %v17719_v25, %v17720_v2  ;;  %v17731_v17 = vld [vmem:[#allocation229_spill] sm:$0xff]  ;;  %v5227_v9 = vadd.f32 %v13201_v44, %v5114_v6  ;;  %v13448_v49 = vpop.f32.mrf.mxu0  ;;  %v17732_v40 = vld [vmem:[#allocation208_spill] sm:$0xff]  ;;  %v13457_v25 = vpop.f32.mrf.mxu1 }
 0x330   : > { %v6944_v57 = vsub.f32 %v17731_v17, %v6816_v1  ;;  %v7376_v55 = vadd.f32 %v17732_v40, %v6927_v36  ;;  %v17733_v16 = vld [vmem:[#allocation217_spill] sm:$0xff]  ;;  %v17734_v61 = vld [vmem:[#allocation220_spill] sm:$0xff]  ;;  %v17735_v47 = vcombine.low %v17725_v21, %v17726_v35  ;;  %v6823_v38 = vmul.f32 %v12944_v19, %v5225_v15  ;;  %v17740_v36 = vld [vmem:[#allocation223_spill] sm:$0xff] }
 0x331   : > { %6060 = vmatprep.subr.bf16.mxu1 %v17727_v37  ;;  %5948 = vmatpush2.bf16.msra.mxu0 %v17730_v32  ;;  %v7377_v39 = vadd.f32 %v17733_v16, %v6928_v14  ;;  %v7384_v37 = vadd.f32 %v17734_v61, %v6935_v10  ;;  %v17736_v2 = vld [vmem:[#allocation225_spill] sm:$0xff]  ;;  %v17737_v4 = vld [vmem:[#allocation228_spill] sm:$0xff]  ;;  %v17739_v32 = vld [vmem:[#allocation222_spill] sm:$0xff]  ;;  %v13471_v35 = vpop.f32.mrf.mxu0  ;;  %v5118_v61 = vadd.f32 %v13212_v23, %v13157_v63 }
 0x332   : > { %6061 = vmatpush2.bf16.msra.mxu1 %v17735_v47  ;;  %v7385_v1 = vadd.f32 %v17736_v2, %v6936_v20  ;;  %v7392_v44 = vadd.f32 %v17737_v4, %v6943_v26  ;;  %v17738_v6 = vld [vmem:[#allocation232_spill] sm:$0xff]  ;;  %v17741_v17 = vcombine.high %v17739_v32, %v17740_v36  ;;  %v17742_v14 = vld [vmem:[#allocation226_spill] sm:$0xff]  ;;  %v17743_v10 = vld [vmem:[#allocation227_spill] sm:$0xff]  ;;  %7504 = vst [vmem:[#allocation12 + $0x200] sm:$0xff] %v7376_v55  ;;  %v13479_v47 = vpop.f32.mrf.mxu1 }
 0x333   : > { %v7393_v56 = vadd.f32 %v17738_v6, %v6944_v57  ;;  %v17744_v40 = vcombine.high %v17742_v14, %v17743_v10  ;;  %v13469_v21 = vld [vmem:[%s8930_s16 + $0x1c0] sm:$0xff]  ;;  %7505 = vst [vmem:[#allocation12 + $0x208] sm:$0xff] %v7377_v39  ;;  %7512 = vst [vmem:[#allocation12 + $0x240] sm:$0xff] %v7384_v37  ;;  %v6824_v26 = vmul.f32 %v12944_v19, %v5227_v9  ;;  %v17746_v57 = vld [vmem:[#allocation76_spill] sm:$0xff]  ;;  %v13492_v23 = vpop.f32.mrf.mxu0 }
 0x334   : > { %5949 = vmatprep.subr.bf16.mxu0 %v17741_v17  ;;  %v17745_v15 = vld [vmem:[#allocation230_spill] sm:$0xff]  ;;  %5793 = vmatprep.mubr.bf16.mxu0 %v17746_v57  ;;  %v17747_v16 = vld [vmem:[#allocation77_spill] sm:$0xff]  ;;  %7513 = vst [vmem:[#allocation12 + $0x248] sm:$0xff] %v7385_v1  ;;  %7520 = vst [vmem:[#allocation12 + $0x280] sm:$0xff] %v7392_v44  ;;  %v17748_v55 = vcombine.low %v17739_v32, %v17740_v36  ;;  %v5120_v39 = vadd.f32 %v13226_v11, %v13160_v0 }
 0x335   : > { %6062 = vmatprep.subr.bf16.mxu1 %v17744_v40  ;;  %v6951_v20 = vsub.f32 %v17745_v15, %v6823_v38  ;;  %5906 = vmatprep.mubr.bf16.mxu1 %v17747_v16  ;;  %7521 = vst [vmem:[#allocation12 + $0x288] sm:$0xff] %v7393_v56  ;;  %v5122_v9 = vadd.f32 %v13242_v50, %v13163_v24  ;;  %v17749_v37 = vld [vmem:[#allocation48_spill] sm:$0xff]  ;;  %v17750_v2 = vld [vmem:[#allocation235_spill] sm:$0xff]  ;;  %v17753_v0 = vld [vmem:[#allocation146_spill] sm:$0xff]  ;;  %v7167_v24 = vunpack.c.l.bf16 %v13469_v21  ;;  %v13502_v50 = vpop.f32.mrf.mxu1  ;;  %v13511_v15 = vpop.f32.mrf.mxu0 }
 0x336   : > { %5950 = vmatpush2.bf16.msra.mxu0 %v17748_v55  ;;  %v5124_v38 = vadd.f32 %v13260_v43, %v17749_v37  ;;  %v5128_v63 = vadd.f32 %v13278_v31, %v13174_v33  ;;  %v17751_v4 = vcombine.low %v17742_v14, %v17743_v10  ;;  %v17752_v44 = vld [vmem:[#allocation239_spill] sm:$0xff]  ;;  %v5231_v11 = vadd.f32 %v17753_v0, %v5118_v61  ;;  %v17754_v56 = vld [vmem:[#allocation21_spill] sm:$0xff]  ;;  %v17755_v33 = vld [vmem:[#allocation22_spill] sm:$0xff] }
 0x337   : > { %v7400_v1 = vadd.f32 %v17750_v2, %v6951_v20  ;;  %v6952_v6 = vsub.f32 %v17752_v44, %v6824_v26  ;;  %5794 = vmatmul.mubr.bf16.gmra.mxu0 %v17754_v56  ;;  %5907 = vmatmul.mubr.bf16.gmra.mxu1 %v17755_v33  ;;  %v17756_v43 = vld [vmem:[#allocation233_spill] sm:$0xff]  ;;  %v17757_v31 = vld [vmem:[#allocation234_spill] sm:$0xff]  ;;  %v17759_v36 = vld [vmem:[#allocation148_spill] sm:$0xff] }
 0x338   : > { %6063 = vmatpush2.bf16.msra.mxu1 %v17751_v4  ;;  %v17758_v32 = vcombine.high %v17756_v43, %v17757_v31  ;;  %v5233_v17 = vadd.f32 %v17759_v36, %v5120_v39  ;;  %v17760_v14 = vld [vmem:[#allocation70_spill] sm:$0xff]  ;;  %v5237_v40 = vadd.f32 %v13269_v7, %v5124_v38  ;;  %v17761_v20 = vld [vmem:[#allocation241_spill] sm:$0xff]  ;;  %v6831_v61 = vmul.f32 %v12944_v19, %v5231_v11  ;;  %v17762_v55 = vld [vmem:[#allocation236_spill] sm:$0xff]  ;;  %v13532_v11 = vpop.f32.mrf.mxu0 }
 0x339   : > { %v5235_v10 = vadd.f32 %v17760_v14, %v5122_v9  ;;  %7528 = vst [vmem:[#allocation12 + $0x2c0] sm:$0xff] %v7400_v1  ;;  %v7401_v26 = vadd.f32 %v17761_v20, %v6952_v6  ;;  %v17763_v37 = vld [vmem:[#allocation237_spill] sm:$0xff]  ;;  %v5241_v44 = vadd.f32 %v13291_v46, %v5128_v63  ;;  %v13521_v39 = vld [vmem:[%s8930_s16 + $0x1e0] sm:$0xff]  ;;  %v13523_v9 = vpop.f32.mrf.mxu1  ;;  %v17766_v7 = vcombine.low %v17756_v43, %v17757_v31  ;;  %v17768_v46 = vld [vmem:[#allocation240_spill] sm:$0xff] }
 0x33a   : > { %5951 = vmatprep.subr.bf16.mxu0 %v17758_v32  ;;  %v17764_v2 = vcombine.high %v17762_v55, %v17763_v37  ;;  %v17765_v4 = vld [vmem:[#allocation85_spill] sm:$0xff]  ;;  %v6832_v38 = vmul.f32 %v12944_v19, %v5233_v17  ;;  %v6840_v6 = vmul.f32 %v12944_v19, %v5237_v40  ;;  %v17767_v0 = vld [vmem:[#allocation86_spill] sm:$0xff]  ;;  %v6959_v63 = vsub.f32 %v17768_v46, %v6831_v61  ;;  %v17771_v43 = vld [vmem:[#allocation243_spill] sm:$0xff] }
 0x33b   : > { %5803 = vmatprep.mubr.bf16.mxu0 %v17765_v4  ;;  %5952 = vmatpush2.bf16.msra.mxu0 %v17766_v7  ;;  %v6839_v1 = vmul.f32 %v12944_v19, %v5235_v10  ;;  %7529 = vst [vmem:[#allocation12 + $0x2c8] sm:$0xff] %v7401_v26  ;;  %v17769_v32 = vcombine.low %v17762_v55, %v17763_v37  ;;  %v17770_v36 = vld [vmem:[#allocation242_spill] sm:$0xff]  ;;  %v7168_v40 = vunpack.c.h.bf16 %v13469_v21  ;;  %v13544_v20 = vpop.f32.mrf.mxu1  ;;  %v13553_v4 = vpop.f32.mrf.mxu0  ;;  %v17781_v33 = vld [vmem:[#allocation261_spill] sm:$0xff]  ;;  %v17782_v56 = vld [vmem:[#allocation256_spill] sm:$0xff] }
 0x33c   : > { %6064 = vmatprep.subr.bf16.mxu1 %v17764_v2  ;;  %5916 = vmatprep.mubr.bf16.mxu1 %v17767_v0  ;;  %v17772_v31 = vcombine.high %v17770_v36, %v17771_v43  ;;  %v6847_v17 = vmul.f32 %v12944_v19, %v5241_v44  ;;  %v17773_v14 = vld [vmem:[#allocation170_spill] sm:$0xff]  ;;  %v17774_v2 = vld [vmem:[#allocation248_spill] sm:$0xff]  ;;  %v17777_v0 = vld [vmem:[#allocation247_spill] sm:$0xff] }
 0x33d   : > { %6065 = vmatpush2.bf16.msra.mxu1 %v17769_v32  ;;  %v7296_v10 = vmul.f32 %v17773_v14, %v7167_v24  ;;  %v6960_v26 = vsub.f32 %v17774_v2, %v6832_v38  ;;  %v17775_v7 = vld [vmem:[#allocation250_spill] sm:$0xff]  ;;  %v17780_v44 = vld [vmem:[#allocation245_spill] sm:$0xff]  ;;  %v17783_v16 = vld [vmem:[#allocation255_spill] sm:$0xff]  ;;  %v13561_v2 = vpop.f32.mrf.mxu1  ;;  %v13570_v18 = vpop.f32.mrf.mxu0 }
 0x33e   : > { %5953 = vmatprep.subr.bf16.mxu0 %v17772_v31  ;;  %v6967_v61 = vsub.f32 %v17775_v7, %v6839_v1  ;;  %v17776_v46 = vld [vmem:[#allocation246_spill] sm:$0xff]  ;;  %v7175_v31 = vunpack.c.l.bf16 %v13521_v39  ;;  %v7408_v24 = vadd.f32 %v17780_v44, %v6959_v63  ;;  %v6975_v21 = vsub.f32 %v17781_v33, %v6847_v17  ;;  %v17784_v38 = vld [vmem:[#allocation57_spill] sm:$0xff]  ;;  %v17788_v53 = vld [vmem:[#allocation260_spill] sm:$0xff] }
 0x33f   : > { %v17778_v55 = vcombine.high %v17776_v46, %v17777_v0  ;;  %v17779_v37 = vld [vmem:[#allocation258_spill] sm:$0xff]  ;;  %v8189_v57 = vcombine.high %v17783_v16, %v17782_v56  ;;  %v5130_v1 = vadd.f32 %v13304_v12, %v17784_v38  ;;  %v17785_v7 = vld [vmem:[#allocation249_spill] sm:$0xff]  ;;  %v8451_v44 = vld [vmem:[#allocation12 + $0x388] sm:$0xff]  ;;  %v17790_v12 = vcombine.low %v17776_v46, %v17777_v0  ;;  %v13579_v38 = vpop.f32.mrf.mxu1 }
 0x340   : > { %v6968_v32 = vsub.f32 %v17779_v37, %v6840_v6  ;;  %v17786_v60 = vld [vmem:[#allocation257_spill] sm:$0xff]  ;;  %v17787_v37 = vcombine.low %v17770_v36, %v17771_v43  ;;  %v17789_v33 = vld [vmem:[#allocation167_spill] sm:$0xff]  ;;  %v1076_v29 = vld [vmem:[#allocation9 + $0xa10] sm:$0xff]  ;;  %7536 = vst [vmem:[#allocation12 + $0x300] sm:$0xff] %v7408_v24 }
 0x341   : > { %6066 = vmatprep.subr.bf16.mxu1 %v17778_v55  ;;  %v7409_v55 = vadd.f32 %v17785_v7, %v6960_v26  ;;  %v7416_v6 = vadd.f32 %v17786_v60, %v6967_v61  ;;  %v6719_v17 = vmul.f32 %v8451_v44, %v17789_v33  ;;  %v1080_v5 = vld [vmem:[#allocation9 + $0xa30] sm:$0xff]  ;;  %v7424_v26 = vadd.f32 %v7296_v10, %v6975_v21  ;;  %v17791_v60 = vld [vmem:[#allocation91_spill] sm:$0xff]  ;;  %v17792_v43 = vld [vmem:[#allocation62_spill] sm:$0xff] }
 0x342   : > { %5954 = vmatpush2.bf16.msra.mxu0 %v17787_v37  ;;  %v7417_v63 = vadd.f32 %v17788_v53, %v6968_v32  ;;  %6067 = vmatpush2.bf16.msra.mxu1 %v17790_v12  ;;  %v5243_v36 = vadd.f32 %v13313_v22, %v5130_v1  ;;  %v5132_v53 = vadd.f32 %v13320_v3, %v17792_v43  ;;  %v1204_v61 = vld [vmem:[#allocation9 + $0xe10] sm:$0xff]  ;;  %v17793_v24 = vld [vmem:[#allocation31_spill] sm:$0xff]  ;;  %v17795_v0 = vld [vmem:[#allocation254_spill] sm:$0xff]  ;;  %v7176_v22 = vunpack.c.h.bf16 %v13521_v39  ;;  %v13589_v37 = vpop.f32.mrf.mxu0  ;;  %v13596_v39 = vpop.f32.mrf.mxu1 }
 0x343   : > { %5804 = vmatmul.mubr.bf16.gmra.mxu0 %v17791_v60  ;;  %v1208_v32 = vld [vmem:[#allocation9 + $0xe30] sm:$0xff]  ;;  %7537 = vst [vmem:[#allocation12 + $0x308] sm:$0xff] %v7409_v55  ;;  %7544 = vst [vmem:[#allocation12 + $0x340] sm:$0xff] %v7416_v6  ;;  %5917 = vmatmul.mubr.bf16.gmra.mxu1 %v17793_v24  ;;  %v17794_v7 = vld [vmem:[#allocation251_spill] sm:$0xff]  ;;  %v7297_v10 = vmul.f32 %v17773_v14, %v7168_v40  ;;  %v8053_v12 = vcombine.high %v1076_v29, %v1080_v5 }
 0x344   : > { %7545 = vst [vmem:[#allocation12 + $0x348] sm:$0xff] %v7417_v63  ;;  %v17796_v46 = vcombine.high %v17794_v7, %v17795_v0  ;;  %v17797_v21 = vld [vmem:[#allocation61_spill] sm:$0xff]  ;;  %7552 = vst [vmem:[#allocation12 + $0x380] sm:$0xff] %v7424_v26  ;;  %6068 = vmatprep.subr.bf16.mxu1 %v8189_v57  ;;  %v6848_v55 = vmul.f32 %v12944_v19, %v5243_v36  ;;  %v5245_v6 = vadd.f32 %v13327_v48, %v5132_v53  ;;  %v8452_v63 = vld [vmem:[#allocation12 + $0x3c0] sm:$0xff]  ;;  %v13604_v53 = vpop.f32.mrf.mxu0 }
 0x345   : > { %v2207_v1 = vsub.s32 2, %v17797_v21  ;;  %v2211_v3 = vsub.s32 3, %v17797_v21  ;;  %v6726_v44 = vmul.f32 %v8452_v63, %v17789_v33  ;;  %v13594_v43 = vld [vmem:[#allocation9 + $0x1d8] sm:$0xff]  ;;  %v7304_v26 = vmul.f32 %v17773_v14, %v7175_v31  ;;  %v17799_v36 = vld [vmem:[#allocation68_spill] sm:$0xff]  ;;  %v17801_v31 = vld [vmem:[#allocation94_spill] sm:$0xff] }
 0x346   : > { %5955 = vmatprep.subr.bf16.mxu0 %v17796_v46  ;;  %v817_v40 = vld [vmem:[#allocation9 + $0x1f8] sm:$0xff]  ;;  %v17798_v46 = vcombine.low %v17794_v7, %v17795_v0  ;;  %v8052_v57 = vcombine.low %v1076_v29, %v1080_v5  ;;  %v8181_v21 = vcombine.high %v1204_v61, %v1208_v32  ;;  %v5134_v48 = vadd.f32 %v13334_v54, %v17799_v36  ;;  %v8453_v29 = vld [vmem:[#allocation12 + $0x3c8] sm:$0xff] }
 0x347   : > { %v17800_v63 = vcombine.low %v17783_v16, %v17782_v56  ;;  %v6976_v24 = vsub.f32 %v6719_v17, %v6848_v55  ;;  %v6855_v60 = vmul.f32 %v12944_v19, %v5245_v6  ;;  %v8180_v34 = vcombine.low %v1204_v61, %v1208_v32  ;;  %v941_v7 = vld [vmem:[#allocation9 + $0x5d8] sm:$0xff]  ;;  %5959 = vmatprep.mubr.bf16.mxu0 %v17801_v31  ;;  %v13616_v56 = vpop.f32.mrf.mxu0  ;;  %v17802_v32 = vld [vmem:[#allocation95_spill] sm:$0xff]  ;;  %v17803_v6 = vld [vmem:[#allocation252_spill] sm:$0xff] }
 0x348   : > { %5956 = vmatpush2.bf16.msra.mxu0 %v17798_v46  ;;  %v945_v0 = vld [vmem:[#allocation9 + $0x5f8] sm:$0xff]  ;;  %v13610_v46 = vpop.f32.mrf.mxu1  ;;  %v5247_v5 = vadd.f32 %v13341_v28, %v5134_v48  ;;  %v6727_v54 = vmul.f32 %v8453_v29, %v17789_v33  ;;  %v7791_v16 = vcombine.high %v13594_v43, %v817_v40  ;;  %v7305_v61 = vmul.f32 %v17773_v14, %v7176_v22 }
 0x349   : > { %6069 = vmatpush2.bf16.msra.mxu1 %v17800_v63  ;;  %5957 = vmatprep.subr.bf16.mxu0 %v8053_v12  ;;  %v7425_v17 = vadd.f32 %v7297_v10, %v6976_v24  ;;  %v6983_v55 = vsub.f32 %v6726_v44, %v6855_v60  ;;  %v13621_v12 = vrot.slane %v17803_v6, %v2207_v1  ;;  %v809_v28 = vld [vmem:[#allocation9 + $0x1b8] sm:$0xff]  ;;  %v13630_v22 = vpop.f32.mrf.mxu0 }
 0x34a   : > { %6070 = vmatprep.subr.bf16.mxu1 %v8181_v21  ;;  %6072 = vmatprep.mubr.bf16.mxu1 %v17802_v32  ;;  %v805_v21 = vld [vmem:[#allocation9 + $0x198] sm:$0xff]  ;;  %v13623_v36 = vpop.f32.mrf.mxu1  ;;  %v6856_v48 = vmul.f32 %v12944_v19, %v5247_v5  ;;  %v7790_v63 = vcombine.low %v13594_v43, %v817_v40  ;;  %v7919_v29 = vcombine.high %v941_v7, %v945_v0 }
 0x34b   : > { %v13628_v24 = vrot.slane %v17803_v6, %v2211_v3  ;;  %v933_v60 = vld [vmem:[#allocation9 + $0x598] sm:$0xff]  ;;  %7553 = vst [vmem:[#allocation12 + $0x388] sm:$0xff] %v7425_v17  ;;  %v7432_v1 = vadd.f32 %v7304_v26, %v6983_v55  ;;  %v7918_v44 = vcombine.low %v941_v7, %v945_v0  ;;  %v7783_v5 = vcombine.high %v805_v21, %v809_v28  ;;  %v13638_v3 = vpop.f32.mrf.mxu0  ;;  %v17804_v17 = vld [vmem:[#allocation96_spill] sm:$0xff] }
 0x34c   : > { %5958 = vmatpush2.bf16.msra.mxu0 %v8052_v57  ;;  %v937_v10 = vld [vmem:[#allocation9 + $0x5b8] sm:$0xff]  ;;  %v13632_v32 = vpop.f32.mrf.mxu1  ;;  %v6984_v57 = vsub.f32 %v6727_v54, %v6856_v48  ;;  %v5284_v40 = vadd.f32 %v13350_v51, %v13621_v12  ;;  %v7782_v26 = vcombine.low %v805_v21, %v809_v28  ;;  %v5294_v21 = vadd.f32 %v13430_v8, %v13621_v12 }
 0x34d   : > { %6071 = vmatpush2.bf16.msra.mxu1 %v8180_v34  ;;  %6153 = vmatprep.subr.bf16.mxu0 %v7791_v16  ;;  %v13634_v31 = vld [vmem:[#allocation9 + $0x158] sm:$0xff]  ;;  %7560 = vst [vmem:[#allocation12 + $0x3c0] sm:$0xff] %v7432_v1  ;;  %v5288_v34 = vadd.f32 %v13394_v13, %v13621_v12  ;;  %v7911_v7 = vcombine.high %v933_v60, %v937_v10  ;;  %v13652_v1 = vpop.f32.mrf.mxu0 }
 0x34e   : > { %6266 = vmatprep.subr.bf16.mxu1 %v7919_v29  ;;  %v13636_v43 = vld [vmem:[#allocation9 + $0x178] sm:$0xff]  ;;  %v13645_v16 = vpop.f32.mrf.mxu1  ;;  %v7433_v55 = vadd.f32 %v7305_v61, %v6984_v57  ;;  %v5286_v29 = vadd.f32 %v13368_v52, %v13628_v24  ;;  %v5290_v51 = vadd.f32 %v13412_v59, %v13628_v24  ;;  %v7910_v13 = vcombine.low %v933_v60, %v937_v10  ;;  %v17807_v10 = vld [vmem:[#allocation39_spill] sm:$0xff] }
 0x34f   : > { %5960 = vmatmul.mubr.bf16.vlgmr.msra.gmra.mxu0 %v17804_v17  ;;  %v925_v0 = vld [vmem:[#allocation9 + $0x558] sm:$0xff]  ;;  %v7775_v61 = vcombine.high %v13634_v31, %v13636_v43  ;;  %v13668_v60 = vadd.f32 %v13359_v45, %v5284_v40  ;;  %v13671_v8 = vadd.f32 %v13402_v30, %v5288_v34  ;;  %v7774_v45 = vcombine.low %v13634_v31, %v13636_v43 }
 0x350   : > { %v929_v54 = vld [vmem:[#allocation9 + $0x578] sm:$0xff]  ;;  %6154 = vmatpush1.bf16.msra.mxu0 %v7790_v63  ;;  %v13658_v28 = vpop.f32.mrf.mxu1  ;;  %7561 = vst [vmem:[#allocation12 + $0x3c8] sm:$0xff] %v7433_v55  ;;  %v17806_v63 = vld [vmem:[#allocation99_spill] sm:$0xff]  ;;  %v13681_v6 = vadd.f32 %v13382_v58, %v5286_v29  ;;  %v5300_v30 = vadd.f32 %v13492_v23, %v13628_v24  ;;  %v13693_v34 = vadd.f32 %v13439_v42, %v5294_v21 }
 0x351   : > { %v17805_v48 = vld [vmem:[#allocation97_spill] sm:$0xff]  ;;  %6155 = vmatprep.subr.bf16.mxu0 %v7783_v5  ;;  %5969 = vmatprep.mubr.bf16.mxu0 %v17806_v63  ;;  %v7903_v52 = vcombine.high %v925_v0, %v929_v54  ;;  %v13684_v63 = vadd.f32 %v13421_v62, %v5290_v51  ;;  %v5296_v23 = vadd.f32 %v13448_v49, %v13628_v24 }
 0x352   : > { %6073 = vmatmul.mubr.bf16.vlgmr.msra.gmra.mxu1 %v17805_v48  ;;  %v13661_v57 = vld [vmem:[#allocation9 + $0x118] sm:$0xff]  ;;  %v13678_v55 = vpop.f32.mrf.mxu1  ;;  %v5298_v31 = vadd.f32 %v13471_v35, %v13621_v12  ;;  %v13710_v43 = vadd.f32 %v13502_v50, %v5300_v30  ;;  %v5306_v35 = vadd.f32 %v13532_v11, %v13628_v24  ;;  %v5308_v50 = vadd.f32 %v13553_v4, %v13621_v12 }
 0x353   : > { %6267 = vmatpush1.bf16.msra.mxu1 %v7918_v44  ;;  %v13663_v59 = vld [vmem:[#allocation9 + $0x138] sm:$0xff]  ;;  %v13665_v44 = vpop.f32.mrf.mxu0  ;;  %6082 = vmatprep.mubr.bf16.mxu1 %v17807_v10  ;;  %v7902_v10 = vcombine.low %v925_v0, %v929_v54  ;;  %v17808_v54 = vld [vmem:[#allocation100_spill] sm:$0xff] }
 0x354   : > { %6268 = vmatprep.subr.bf16.mxu1 %v7911_v7  ;;  %v13674_v5 = vld [vmem:[#allocation9 + $0x518] sm:$0xff]  ;;  %6156 = vmatpush1.bf16.msra.mxu0 %v7782_v26  ;;  %v7767_v58 = vcombine.high %v13661_v57, %v13663_v59  ;;  %v13701_v29 = vpop.f32.mrf.mxu1  ;;  %v7766_v51 = vcombine.low %v13661_v57, %v13663_v59  ;;  %v5304_v57 = vadd.f32 %v13511_v15, %v13621_v12 }
 0x355   : > { %v13676_v7 = vld [vmem:[#allocation9 + $0x538] sm:$0xff]  ;;  %v13690_v40 = vpop.f32.mrf.mxu0  ;;  %6157 = vmatprep.subr.bf16.mxu0 %v7775_v61  ;;  %v13739_v4 = vadd.f32 %v13544_v20, %v5306_v35  ;;  %v13742_v11 = vadd.f32 %v13561_v2, %v5308_v50  ;;  %v5314_v15 = vadd.f32 %v13589_v37, %v13621_v12  ;;  %v13764_v35 = vadd.f32 %v13479_v47, %v5298_v31  ;;  %v17811_v37 = vld [vmem:[#allocation111_spill] sm:$0xff] }
 0x356   : > { %v13697_v26 = vld [vmem:[#allocation9 + $0xd8] sm:$0xff]  ;;  %v7895_v42 = vcombine.high %v13674_v5, %v13676_v7  ;;  %v13727_v61 = vpop.f32.mrf.mxu1  ;;  %v13781_v47 = vadd.f32 %v13523_v9, %v5304_v57  ;;  %v5320_v57 = vadd.f32 %v13630_v22, %v13628_v24 }
 0x357   : > { %6269 = vmatpush1.bf16.msra.mxu1 %v7910_v13  ;;  %v13699_v62 = vld [vmem:[#allocation9 + $0xf8] sm:$0xff]  ;;  %v13712_v0 = vpop.f32.mrf.mxu0  ;;  %5970 = vmatmul.mubr.bf16.gmra.mxu0 %v17808_v54  ;;  %v7894_v13 = vcombine.low %v13674_v5, %v13676_v7  ;;  %v5310_v5 = vadd.f32 %v13570_v18, %v13628_v24  ;;  %v13753_v18 = vadd.f32 %v13457_v25, %v5296_v23 }
 0x358   : > { %6270 = vmatprep.subr.bf16.mxu1 %v7903_v52  ;;  %v13719_v49 = vld [vmem:[#allocation9 + $0x4d8] sm:$0xff]  ;;  %6158 = vmatpush1.bf16.msra.mxu0 %v7774_v45  ;;  %v7759_v59 = vcombine.high %v13697_v26, %v13699_v62  ;;  %v7758_v25 = vcombine.low %v13697_v26, %v13699_v62  ;;  %v13774_v50 = vadd.f32 %v13596_v39, %v5314_v15 }
 0x359   : > { %v13721_v21 = vld [vmem:[#allocation9 + $0x4f8] sm:$0xff]  ;;  %v13736_v7 = vpop.f32.mrf.mxu0  ;;  %6159 = vmatprep.subr.bf16.mxu0 %v7767_v58  ;;  %v13759_v2 = vadd.f32 %v13579_v38, %v5310_v5  ;;  %v5316_v38 = vadd.f32 %v13604_v53, %v13628_v24  ;;  %v5318_v39 = vadd.f32 %v13616_v56, %v13621_v12 }
 0x35a   : > { %v17809_v52 = vld [vmem:[#allocation101_spill] sm:$0xff]  ;;  %v7887_v20 = vcombine.high %v13719_v49, %v13721_v21  ;;  %v7886_v31 = vcombine.low %v13719_v49, %v13721_v21  ;;  %v5336_v41 = vadd.f32 %v13736_v7, %v13628_v24 }
 0x35b   : > { %6083 = vmatmul.mubr.bf16.gmra.mxu1 %v17809_v52  ;;  %v13744_v45 = vld [vmem:[#allocation9 + $0x98] sm:$0xff]  ;;  %v13750_v52 = vpop.f32.mrf.mxu1  ;;  %v13761_v58 = vpop.f32.mrf.mxu0  ;;  %v13802_v21 = vadd.f32 %v13610_v46, %v5316_v38  ;;  %v5324_v46 = vadd.f32 %v13638_v3, %v13621_v12  ;;  %v17813_v38 = vld [vmem:[#allocation112_spill] sm:$0xff] }
 0x35c   : > { %6271 = vmatpush1.bf16.msra.mxu1 %v7902_v10  ;;  %v13746_v30 = vld [vmem:[#allocation9 + $0xb8] sm:$0xff]  ;;  %v17810_v10 = vld [vmem:[#allocation110_spill] sm:$0xff]  ;;  %6092 = vmatprep.mubr.bf16.mxu1 %v17811_v37 }
 0x35d   : > { %6272 = vmatprep.subr.bf16.mxu1 %v7895_v42  ;;  %5979 = vmatprep.mubr.bf16.mxu0 %v17810_v10  ;;  %v13769_v23 = vld [vmem:[#allocation9 + $0x498] sm:$0xff]  ;;  %v13778_v5 = vpop.f32.mrf.mxu1  ;;  %v7750_v26 = vcombine.low %v13744_v45, %v13746_v30  ;;  %v13793_v53 = vpop.f32.mrf.mxu0  ;;  %v7751_v9 = vcombine.high %v13744_v45, %v13746_v30  ;;  %v13843_v54 = vadd.f32 %v13645_v16, %v5324_v46  ;;  %v17818_v46 = vld [vmem:[#allocation44_spill] sm:$0xff] }
 0x35e   : > { %v13771_v42 = vld [vmem:[#allocation9 + $0x4b8] sm:$0xff]  ;;  %6160 = vmatpush1.bf16.msra.mxu0 %v7766_v51 }
 0x35f   : > { %v13787_v62 = vld [vmem:[#allocation9 + $0x58] sm:$0xff]  ;;  %6161 = vmatprep.subr.bf16.mxu0 %v7759_v59  ;;  %v13806_v15 = vpop.f32.mrf.mxu1  ;;  %v7878_v56 = vcombine.low %v13769_v23, %v13771_v42  ;;  %v13813_v59 = vadd.f32 %v13623_v36, %v5318_v39  ;;  %v13821_v22 = vpop.f32.mrf.mxu0  ;;  %5980 = vmatmul.mubr.bf16.gmra.mxu0 %v17813_v38  ;;  %v13831_v36 = vadd.f32 %v13632_v32, %v5320_v57 }
 0x360   : > { %v13789_v37 = vld [vmem:[#allocation9 + $0x78] sm:$0xff]  ;;  %6273 = vmatpush1.bf16.msra.mxu1 %v7894_v13  ;;  %v7879_v13 = vcombine.high %v13769_v23, %v13771_v42  ;;  %v5326_v39 = vadd.f32 %v13652_v1, %v13628_v24  ;;  %17816 = vst [vmem:[#allocation139_spill] sm:$0xff] %v13843_v54  ;;  %v5328_v1 = vadd.f32 %v13665_v44, %v13621_v12 }
 0x361   : > { %v13797_v51 = vld [vmem:[#allocation9 + $0x458] sm:$0xff]  ;;  %6274 = vmatprep.subr.bf16.mxu1 %v7887_v20  ;;  %17812 = vst [vmem:[#allocation72_spill] sm:$0xff] %v13813_v59  ;;  %v7743_v23 = vcombine.high %v13787_v62, %v13789_v37  ;;  %17814 = vst [vmem:[#allocation138_spill] sm:$0xff] %v13831_v36  ;;  %v13835_v10 = vpop.f32.mrf.mxu1  ;;  %v5345_v57 = vpop.f32.mrf.mxu0  ;;  %5989 = vmatprep.mubr.bf16.mxu0 %v17818_v46  ;;  %v5330_v38 = vadd.f32 %v13690_v40, %v13628_v24 }
 0x362   : > { %v13799_v49 = vld [vmem:[#allocation9 + $0x478] sm:$0xff]  ;;  %6162 = vmatpush1.bf16.msra.mxu0 %v7758_v25  ;;  %v5338_v54 = vadd.f32 %v13761_v58, %v13621_v12 }
 0x363   : > { %v13815_v45 = vld [vmem:[#allocation9 + $0x18] sm:$0xff]  ;;  %6163 = vmatprep.subr.bf16.mxu0 %v7751_v9  ;;  %v7871_v25 = vcombine.high %v13797_v51, %v13799_v49  ;;  %v13858_v16 = vpop.f32.mrf.mxu1  ;;  %v13868_v9 = vadd.f32 %v13678_v55, %v5328_v1  ;;  %v5334_v55 = vadd.f32 %v13712_v0, %v13621_v12 }
 0x364   : > { %v13817_v30 = vld [vmem:[#allocation9 + $0x38] sm:$0xff]  ;;  %6275 = vmatpush1.bf16.msra.mxu1 %v7886_v31  ;;  %v13917_v0 = vadd.f32 %v13778_v5, %v5338_v54  ;;  %v5344_v54 = vadd.f32 %v13821_v22, %v13621_v12  ;;  %v17826_v5 = vld [vmem:[#allocation124_spill] sm:$0xff]  ;;  %v5346_v22 = vadd.f32 %v5345_v57, %v13628_v24 }
 0x365   : > { %v13828_v42 = vld [vmem:[#allocation9 + $0x418] sm:$0xff]  ;;  %6276 = vmatprep.subr.bf16.mxu1 %v7879_v13  ;;  %v7735_v44 = vcombine.high %v13815_v45, %v13817_v30  ;;  %17819 = vst [vmem:[#allocation69_spill] sm:$0xff] %v13868_v9  ;;  %v5460_v40 = vpop.f32.mrf.mxu1  ;;  %v13892_v9 = vadd.f32 %v13701_v29, %v5330_v38  ;;  %v13903_v1 = vadd.f32 %v13727_v61, %v5334_v55  ;;  %v17825_v55 = vld [vmem:[#allocation123_spill] sm:$0xff] }
 0x366   : > { %v17815_v3 = vld [vmem:[#allocation113_spill] sm:$0xff]  ;;  %6164 = vmatpush1.bf16.msra.mxu0 %v7750_v26  ;;  %17824 = vst [vmem:[#allocation153_spill] sm:$0xff] %v13917_v0 }
 0x367   : > { %6093 = vmatmul.mubr.bf16.gmra.mxu1 %v17815_v3  ;;  %v13840_v20 = vld [vmem:[#allocation9 + $0x438] sm:$0xff]  ;;  %v13856_v3 = vadd.f32 %v13658_v28, %v5326_v39  ;;  %v5347_v28 = vpop.f32.mrf.mxu0  ;;  %v17820_v39 = vld [vmem:[#allocation122_spill] sm:$0xff]  ;;  %17821 = vst [vmem:[#allocation147_spill] sm:$0xff] %v13892_v9  ;;  %6165 = vmatprep.subr.bf16.mxu0 %v7743_v23  ;;  %17822 = vst [vmem:[#allocation151_spill] sm:$0xff] %v13903_v1  ;;  %v5462_v7 = vpop.f32.mrf.mxu1  ;;  %v13914_v23 = vadd.f32 %v13750_v52, %v5336_v41 }
 0x368   : > { %v13845_v48 = vld [vmem:[#allocation9 + $0x3d8] sm:$0xff]  ;;  %6102 = vmatprep.mubr.bf16.mxu1 %v17820_v39  ;;  %v7863_v46 = vcombine.high %v13828_v42, %v13840_v20  ;;  %6277 = vmatpush1.bf16.msra.mxu1 %v7878_v56  ;;  %v5340_v41 = vadd.f32 %v13793_v53, %v13628_v24  ;;  %v17827_v56 = vcombine.low %v13787_v62, %v13789_v37 }
 0x369   : > { %v13847_v32 = vld [vmem:[#allocation9 + $0x3f8] sm:$0xff]  ;;  %17817 = vst [vmem:[#allocation63_spill] sm:$0xff] %v13856_v3  ;;  %v5349_v36 = vpop.f32.mrf.mxu0  ;;  %6278 = vmatprep.subr.bf16.mxu1 %v7871_v25  ;;  %17823 = vst [vmem:[#allocation71_spill] sm:$0xff] %v13914_v23  ;;  %5990 = vmatmul.mubr.bf16.gmra.mxu0 %v17825_v55  ;;  %v5466_v52 = vpop.f32.mrf.mxu1  ;;  %v5348_v57 = vadd.f32 %v5347_v28, %v13621_v12 }
 0x36a   : > { %v13863_v17 = vld [vmem:[#allocation9 + $0x7d8] sm:$0xff]  ;;  %6166 = vmatpush1.bf16.msra.mxu0 %v17827_v56  ;;  %v13953_v62 = vadd.f32 %v13806_v15, %v5340_v41  ;;  %v13956_v56 = vadd.f32 %v13835_v10, %v5344_v54  ;;  %v13969_v15 = vadd.f32 %v13858_v16, %v5346_v22  ;;  %v17835_v16 = vcombine.low %v13815_v45, %v13817_v30 }
 0x36b   : > { %v13865_v31 = vld [vmem:[#allocation9 + $0x7f8] sm:$0xff]  ;;  %v5353_v61 = vpop.f32.mrf.mxu0  ;;  %6167 = vmatprep.subr.bf16.mxu0 %v7735_v44  ;;  %v5468_v9 = vpop.f32.mrf.mxu1  ;;  %v17836_v45 = vcombine.low %v13828_v42, %v13840_v20  ;;  %v17837_v30 = vcombine.high %v13845_v48, %v13847_v32 }
 0x36c   : > { %v13881_v3 = vld [vmem:[#allocation9 + $0x3b8] sm:$0xff]  ;;  %17829 = vst [vmem:[#allocation50_spill] sm:$0xff] %v13953_v62  ;;  %17830 = vst [vmem:[#allocation155_spill] sm:$0xff] %v13956_v56  ;;  %v17839_v20 = vcombine.high %v13863_v17, %v13865_v31  ;;  %v17843_v56 = vld [vmem:[#allocation135_spill] sm:$0xff] }
 0x36d   : > { %v13887_v39 = vld [vmem:[#allocation9 + $0x798] sm:$0xff]  ;;  %v5355_v23 = vpop.f32.mrf.mxu0  ;;  %17832 = vst [vmem:[#allocation157_spill] sm:$0xff] %v13969_v15  ;;  %v17857_v62 = vld [vmem:[#allocation143_spill] sm:$0xff] }
 0x36e   : > { %v13889_v13 = vld [vmem:[#allocation9 + $0x7b8] sm:$0xff]  ;;  %6168 = vmatpush1.bf16.msra.mxu0 %v17835_v16 }
 0x36f   : > { %v13905_v29 = vld [vmem:[#allocation9 + $0x358] sm:$0xff]  ;;  %6103 = vmatmul.mubr.bf16.gmra.mxu1 %v17826_v5  ;;  %v17828_v5 = vcombine.low %v13797_v51, %v13799_v49  ;;  %v5357_v10 = vpop.f32.mrf.mxu0  ;;  %v5350_v51 = vadd.f32 %v5349_v36, %v13628_v24  ;;  %v5470_v49 = vpop.f32.mrf.mxu1  ;;  %v5354_v36 = vadd.f32 %v5353_v61, %v13621_v12  ;;  %6169 = vmatprep.subr.bf16.mxu0 %v17837_v30 }
 0x370   : > { %v13907_v38 = vld [vmem:[#allocation9 + $0x378] sm:$0xff]  ;;  %v5356_v61 = vadd.f32 %v5355_v23, %v13628_v24  ;;  %v5358_v23 = vadd.f32 %v5357_v10, %v13621_v12  ;;  %v17844_v12 = vcombine.low %v13845_v48, %v13847_v32  ;;  %v17846_v48 = vcombine.low %v13863_v17, %v13865_v31  ;;  %v17850_v17 = vld [vmem:[#allocation140_spill] sm:$0xff] }
 0x371   : > { %v13924_v1 = vld [vmem:[#allocation9 + $0x758] sm:$0xff]  ;;  %6279 = vmatpush1.bf16.msra.mxu1 %v17828_v5  ;;  %v13980_v5 = vadd.f32 %v5460_v40, %v5348_v57  ;;  %v5359_v57 = vpop.f32.mrf.mxu0  ;;  %v14009_v41 = vadd.f32 %v5462_v7, %v5350_v51  ;;  %v14022_v30 = vadd.f32 %v5466_v52, %v5354_v36  ;;  %v17847_v32 = vcombine.high %v13879_v27, %v13881_v3 }
 0x372   : > { %v13926_v58 = vld [vmem:[#allocation9 + $0x778] sm:$0xff]  ;;  %6280 = vmatprep.subr.bf16.mxu1 %v7863_v46  ;;  %v5360_v52 = vadd.f32 %v5359_v57, %v13628_v24  ;;  %6170 = vmatpush2.bf16.msra.mxu0 %v17844_v12  ;;  %v14050_v42 = vadd.f32 %v5470_v49, %v5358_v23  ;;  %v17849_v10 = vcombine.high %v13887_v39, %v13889_v13 }
 0x373   : > { %v13940_v55 = vld [vmem:[#allocation9 + $0x318] sm:$0xff]  ;;  %17834 = vst [vmem:[#allocation78_spill] sm:$0xff] %v13980_v5  ;;  %17838 = vst [vmem:[#allocation159_spill] sm:$0xff] %v14009_v41  ;;  %v14013_v5 = vld [vmem:[%s8930_s16 + $0x8] sm:$0xff]  ;;  %v5509_v16 = vpop.f32.mrf.mxu0  ;;  %6171 = vmatprep.subr.bf16.mxu0 %v17847_v32  ;;  %v17853_v31 = vcombine.low %v13887_v39, %v13889_v13  ;;  %v17855_v39 = vcombine.high %v13924_v1, %v13926_v58 }
 0x374   : > { %v13942_v0 = vld [vmem:[#allocation9 + $0x338] sm:$0xff]  ;;  %17840 = vst [vmem:[#allocation161_spill] sm:$0xff] %v14022_v30  ;;  %v17841_v41 = vld [vmem:[#allocation134_spill] sm:$0xff]  ;;  %v14040_v30 = vld [vmem:[%s8930_s16 + $0x28] sm:$0xff]  ;;  %v5510_v24 = vadd.f32 %v5509_v16, %v13668_v60  ;;  %v7057_v57 = vunpack.c.l.bf16 %v14013_v5  ;;  %v7058_v16 = vunpack.c.h.bf16 %v14013_v5 }
 0x375   : > { %v13944_v53 = vld [vmem:[#allocation9 + $0x718] sm:$0xff]  ;;  %6281 = vmatpush1.bf16.msra.mxu1 %v17836_v45  ;;  %v14036_v45 = vadd.f32 %v5468_v9, %v5356_v61  ;;  %17845 = vst [vmem:[#allocation80_spill] sm:$0xff] %v14050_v42  ;;  %v7065_v5 = vunpack.c.l.bf16 %v14040_v30 }
 0x376   : > { %v13950_v37 = vld [vmem:[#allocation9 + $0x738] sm:$0xff]  ;;  %6282 = vmatprep.subr.bf16.mxu1 %v17839_v20 }
 0x377   : > { %v13958_v26 = vld [vmem:[#allocation9 + $0x2d8] sm:$0xff]  ;;  %17842 = vst [vmem:[#allocation163_spill] sm:$0xff] %v14036_v45 }
 0x378   : > { %v13960_v25 = vld [vmem:[#allocation9 + $0x2f8] sm:$0xff] }
 0x379   : > { %v17831_v59 = vld [vmem:[#allocation53_spill] sm:$0xff]  ;;  %6283 = vmatpush2.bf16.msra.mxu1 %v17846_v48 }
 0x37a   : > { %5999 = vmatprep.mubr.bf16.mxu0 %v17831_v59  ;;  %v17833_v44 = vld [vmem:[#allocation133_spill] sm:$0xff]  ;;  %v5472_v59 = vpop.f32.mrf.mxu1  ;;  %6284 = vmatprep.subr.bf16.mxu1 %v17849_v10  ;;  %v7186_v10 = vmul.f32 %v17773_v14, %v7057_v57  ;;  %v7066_v57 = vunpack.c.h.bf16 %v14040_v30  ;;  %v7187_v30 = vmul.f32 %v17773_v14, %v7058_v16 }
 0x37b   : > { %6112 = vmatprep.mubr.bf16.mxu1 %v17833_v44  ;;  %v13976_v28 = vld [vmem:[#allocation9 + $0x6d8] sm:$0xff]  ;;  %6000 = vmatmul.mubr.bf16.gmra.mxu0 %v17841_v41  ;;  %v14068_v12 = vadd.f32 %v5472_v59, %v5360_v52 }
 0x37c   : > { %v13978_v54 = vld [vmem:[#allocation9 + $0x6f8] sm:$0xff]  ;;  %v5622_v36 = vpop.f32.mrf.mxu1  ;;  %6113 = vmatmul.mubr.bf16.gmra.mxu1 %v17843_v56  ;;  %v5511_v56 = vpop.f32.mrf.mxu0  ;;  %6009 = vmatprep.mubr.bf16.mxu0 %v17850_v17 }
 0x37d   : > { %v13992_v44 = vld [vmem:[#allocation9 + $0x298] sm:$0xff]  ;;  %17848 = vst [vmem:[#allocation104_spill] sm:$0xff] %v14068_v12  ;;  %v5623_v49 = vadd.f32 %v5622_v36, %v5510_v24  ;;  %v5512_v12 = vadd.f32 %v5511_v56, %v13681_v6  ;;  %v17852_v24 = vcombine.low %v13879_v27, %v13881_v3  ;;  %6285 = vmatpush2.bf16.msra.mxu1 %v17853_v31  ;;  %v8455_v56 = vld [vmem:[#allocation12 + $0x18] sm:$0xff] }
 0x37e   : > { %v13994_v40 = vld [vmem:[#allocation9 + $0x2b8] sm:$0xff]  ;;  %v5624_v60 = vpop.f32.mrf.mxu1  ;;  %v5513_v52 = vpop.f32.mrf.mxu0  ;;  %v17854_v6 = vcombine.high %v13905_v29, %v13907_v38  ;;  %6286 = vmatprep.subr.bf16.mxu1 %v17855_v39  ;;  %v17856_v27 = vld [vmem:[#allocation142_spill] sm:$0xff] }
 0x37f   : > { %v14005_v22 = vld [vmem:[#allocation9 + $0x698] sm:$0xff]  ;;  %6172 = vmatpush2.bf16.msra.mxu0 %v17852_v24  ;;  %v5514_v17 = vadd.f32 %v5513_v52, %v13671_v8  ;;  %v5625_v3 = vadd.f32 %v5624_v60, %v5512_v12  ;;  %v14110_v8 = vld [vmem:[%s8930_s16 + $0x48] sm:$0xff] }
 0x380   : > { %v14007_v46 = vld [vmem:[#allocation9 + $0x6b8] sm:$0xff]  ;;  %v5626_v36 = vpop.f32.mrf.mxu1  ;;  %v5515_v42 = vpop.f32.mrf.mxu0  ;;  %6173 = vmatprep.subr.bf16.mxu0 %v17854_v6 }
 0x381   : > { %v14024_v7 = vld [vmem:[#allocation9 + $0x258] sm:$0xff]  ;;  %v5627_v52 = vadd.f32 %v5626_v36, %v5514_v17  ;;  %v5516_v45 = vadd.f32 %v5515_v42, %v13684_v63  ;;  %v17859_v63 = vcombine.low %v13924_v1, %v13926_v58 }
 0x382   : > { %v14026_v51 = vld [vmem:[#allocation9 + $0x278] sm:$0xff]  ;;  %v5628_v24 = vpop.f32.mrf.mxu1  ;;  %v5519_v60 = vpop.f32.mrf.mxu0 }
 0x383   : > { %v14034_v15 = vld [vmem:[#allocation9 + $0x658] sm:$0xff]  ;;  %6010 = vmatmul.mubr.bf16.gmra.mxu0 %v17856_v27  ;;  %v5520_v16 = vadd.f32 %v5519_v60, %v13693_v34  ;;  %6287 = vmatpush2.bf16.msra.mxu1 %v17859_v63  ;;  %v5629_v42 = vadd.f32 %v5628_v24, %v5516_v45  ;;  %v17861_v34 = vcombine.high %v13944_v53, %v13950_v37  ;;  %v17862_v60 = vld [vmem:[#allocation144_spill] sm:$0xff]  ;;  %v7074_v24 = vunpack.c.h.bf16 %v14110_v8 }
 0x384   : > { %v14048_v20 = vld [vmem:[#allocation9 + $0x678] sm:$0xff]  ;;  %v5632_v39 = vpop.f32.mrf.mxu1  ;;  %6019 = vmatprep.mubr.bf16.mxu0 %v17862_v60 }
 0x385   : > { %v14052_v9 = vld [vmem:[#allocation9 + $0x218] sm:$0xff]  ;;  %6288 = vmatprep.subr.bf16.mxu1 %v17861_v34  ;;  %v5633_v63 = vadd.f32 %v5632_v39, %v5520_v16  ;;  %v7195_v39 = vmul.f32 %v17773_v14, %v7066_v57  ;;  %v17866_v57 = vcombine.high %v13958_v26, %v13960_v25  ;;  %v8461_v16 = vld [vmem:[#allocation12 + $0xd8] sm:$0xff] }
 0x386   : > { %v14054_v61 = vld [vmem:[#allocation9 + $0x238] sm:$0xff] }
 0x387   : > { %v14077_v48 = vld [vmem:[#allocation9 + $0x618] sm:$0xff]  ;;  %v6753_v34 = vmul.f32 %v12944_v19, %v5633_v63 }
 0x388   : > { %v14079_v32 = vld [vmem:[#allocation9 + $0x638] sm:$0xff] }
 0x389   : > { %v8454_v23 = vld [vmem:[#allocation12 + $0x10] sm:$0xff] }
 0x38a   : > { %v6608_v59 = vmul.f32 %v8454_v23, %v17789_v33  ;;  %v17851_v41 = vld [vmem:[#allocation141_spill] sm:$0xff]  ;;  %v7194_v23 = vmul.f32 %v17773_v14, %v7065_v5  ;;  %v7073_v5 = vunpack.c.l.bf16 %v14110_v8  ;;  %v17864_v8 = vcombine.low %v13940_v55, %v13942_v0 }
 0x38b   : > { %6122 = vmatprep.mubr.bf16.mxu1 %v17851_v41  ;;  %v6737_v41 = vmul.f32 %v12944_v19, %v5623_v49  ;;  %v6609_v49 = vmul.f32 %v8455_v56, %v17789_v33  ;;  %v8456_v6 = vld [vmem:[#allocation12 + $0x50] sm:$0xff]  ;;  %v6738_v56 = vmul.f32 %v12944_v19, %v5625_v3  ;;  %v6745_v3 = vmul.f32 %v12944_v19, %v5627_v52  ;;  %v5634_v52 = vpop.f32.mrf.mxu1 }
 0x38c   : > { %v6616_v12 = vmul.f32 %v8456_v6, %v17789_v33  ;;  %6123 = vmatmul.mubr.bf16.gmra.mxu1 %v17857_v62  ;;  %v14129_v36 = vld [vmem:[#allocation9 + $0x9f8] sm:$0xff]  ;;  %v5521_v6 = vpop.f32.mrf.mxu0 }
 0x38d   : > { %v6865_v31 = vsub.f32 %v6608_v59, %v6737_v41  ;;  %v17858_v41 = vcombine.low %v13905_v29, %v13907_v38  ;;  %v14127_v59 = vld [vmem:[#allocation9 + $0x9d8] sm:$0xff]  ;;  %v17860_v29 = vcombine.high %v13940_v55, %v13942_v0  ;;  %v6866_v38 = vsub.f32 %v6609_v49, %v6738_v56 }
 0x38e   : > { %v14145_v1 = vld [vmem:[#allocation9 + $0xdd8] sm:$0xff]  ;;  %v5523_v56 = vpop.f32.mrf.mxu0 }
 0x38f   : > { %6174 = vmatpush2.bf16.msra.mxu0 %v17858_v41  ;;  %v7314_v17 = vadd.f32 %v7186_v10, %v6865_v31  ;;  %v8457_v10 = vld [vmem:[#allocation12 + $0x58] sm:$0xff]  ;;  %v14147_v58 = vld [vmem:[#allocation9 + $0xdf8] sm:$0xff]  ;;  %v6873_v41 = vsub.f32 %v6616_v12, %v6745_v3  ;;  %v6746_v12 = vmul.f32 %v12944_v19, %v5629_v42  ;;  %v5636_v3 = vpop.f32.mrf.mxu1 }
 0x390   : > { %6175 = vmatprep.subr.bf16.mxu0 %v17860_v29  ;;  %v6617_v31 = vmul.f32 %v8457_v10, %v17789_v33  ;;  %v8458_v49 = vld [vmem:[#allocation12 + $0x90] sm:$0xff]  ;;  %v14152_v29 = vld [vmem:[%s8930_s16 + $0x68] sm:$0xff] }
 0x391   : > { %7442 = vst [vmem:[#allocation12 + $0x10] sm:$0xff] %v7314_v17  ;;  %v6624_v45 = vmul.f32 %v8458_v49, %v17789_v33  ;;  %v17863_v10 = vld [vmem:[#allocation145_spill] sm:$0xff]  ;;  %v7315_v17 = vadd.f32 %v7187_v30, %v6866_v38  ;;  %v7322_v49 = vadd.f32 %v7194_v23, %v6873_v41  ;;  %v7202_v30 = vmul.f32 %v17773_v14, %v7073_v5  ;;  %v5525_v38 = vpop.f32.mrf.mxu0  ;;  %v5638_v41 = vpop.f32.mrf.mxu1 }
 0x392   : > { %6132 = vmatprep.mubr.bf16.mxu1 %v17863_v10  ;;  %v14157_v13 = vld [vmem:[#allocation9 + $0x998] sm:$0xff]  ;;  %v17865_v10 = vcombine.low %v13944_v53, %v13950_v37  ;;  %v6874_v55 = vsub.f32 %v6617_v31, %v6746_v12  ;;  %v5522_v23 = vadd.f32 %v5521_v6, %v13753_v18  ;;  %v7081_v42 = vunpack.c.l.bf16 %v14152_v29  ;;  %v14197_v37 = vld [vmem:[%s8930_s16 + $0x88] sm:$0xff]  ;;  %v17869_v53 = vld [vmem:[#allocation150_spill] sm:$0xff] }
 0x393   : > { %v14159_v60 = vld [vmem:[#allocation9 + $0x9b8] sm:$0xff]  ;;  %6176 = vmatpush2.bf16.msra.mxu0 %v17864_v8  ;;  %7443 = vst [vmem:[#allocation12 + $0x18] sm:$0xff] %v7315_v17  ;;  %v17867_v5 = vcombine.high %v13976_v28, %v13978_v54  ;;  %7450 = vst [vmem:[#allocation12 + $0x50] sm:$0xff] %v7322_v49  ;;  %v6881_v18 = vsub.f32 %v6624_v45, %v6753_v34  ;;  %v5524_v6 = vadd.f32 %v5523_v56, %v13764_v35  ;;  %v5642_v0 = vpop.f32.mrf.mxu1 }
 0x394   : > { %6289 = vmatpush2.bf16.msra.mxu1 %v17865_v10  ;;  %6177 = vmatprep.subr.bf16.mxu0 %v17866_v57  ;;  %v14187_v63 = vld [vmem:[#allocation9 + $0xd98] sm:$0xff]  ;;  %v5529_v10 = vpop.f32.mrf.mxu0  ;;  %v7323_v8 = vadd.f32 %v7195_v39, %v6874_v55  ;;  %v5635_v57 = vadd.f32 %v5634_v52, %v5522_v23  ;;  %v17870_v45 = vcombine.low %v13958_v26, %v13960_v25 }
 0x395   : > { %6290 = vmatprep.subr.bf16.mxu1 %v17867_v5  ;;  %v14189_v31 = vld [vmem:[#allocation9 + $0xdb8] sm:$0xff]  ;;  %v8459_v5 = vld [vmem:[#allocation12 + $0x98] sm:$0xff]  ;;  %6133 = vmatmul.mubr.bf16.gmra.mxu1 %v17869_v53  ;;  %v7330_v35 = vadd.f32 %v7202_v30, %v6881_v18  ;;  %v5637_v12 = vadd.f32 %v5636_v3, %v5524_v6  ;;  %v17871_v23 = vcombine.low %v13976_v28, %v13978_v54  ;;  %v7082_v30 = vunpack.c.h.bf16 %v14152_v29  ;;  %v5644_v18 = vpop.f32.mrf.mxu1 }
 0x396   : > { %v17868_v17 = vld [vmem:[#allocation149_spill] sm:$0xff]  ;;  %v6625_v49 = vmul.f32 %v8459_v5, %v17789_v33  ;;  %v5531_v55 = vpop.f32.mrf.mxu0  ;;  %v17872_v5 = vcombine.high %v13992_v44, %v13994_v40  ;;  %7451 = vst [vmem:[#allocation12 + $0x58] sm:$0xff] %v7323_v8  ;;  %v6754_v25 = vmul.f32 %v12944_v19, %v5635_v57  ;;  %v7203_v3 = vmul.f32 %v17773_v14, %v7074_v24  ;;  %v17875_v24 = vld [vmem:[#allocation152_spill] sm:$0xff] }
 0x397   : > { %6020 = vmatmul.mubr.bf16.gmra.mxu0 %v17868_v17  ;;  %v14203_v56 = vld [vmem:[#allocation9 + $0x958] sm:$0xff]  ;;  %v17873_v6 = vcombine.high %v14005_v22, %v14007_v46  ;;  %7458 = vst [vmem:[#allocation12 + $0x90] sm:$0xff] %v7330_v35  ;;  %v6761_v54 = vmul.f32 %v12944_v19, %v5637_v12  ;;  %v5526_v8 = vadd.f32 %v5525_v38, %v13710_v43  ;;  %v7089_v57 = vunpack.c.l.bf16 %v14197_v37 }
 0x398   : > { %6178 = vmatpush2.bf16.msra.mxu0 %v17870_v45  ;;  %v14205_v34 = vld [vmem:[#allocation9 + $0x978] sm:$0xff]  ;;  %6291 = vmatpush2.bf16.msra.mxu1 %v17871_v23  ;;  %v7210_v45 = vmul.f32 %v17773_v14, %v7081_v42  ;;  %v6882_v12 = vsub.f32 %v6625_v49, %v6754_v25  ;;  %v5530_v42 = vadd.f32 %v5529_v10, %v13781_v47 }
 0x399   : > { %v8460_v39 = vld [vmem:[#allocation12 + $0xd0] sm:$0xff]  ;;  %6179 = vmatprep.subr.bf16.mxu0 %v17872_v5  ;;  %6292 = vmatprep.subr.bf16.mxu1 %v17873_v6  ;;  %v5646_v6 = vpop.f32.mrf.mxu1  ;;  %v17876_v43 = vcombine.low %v13992_v44, %v13994_v40  ;;  %v8031_v38 = vcombine.high %v14203_v56, %v14205_v34  ;;  %v5639_v29 = vadd.f32 %v5638_v41, %v5526_v8 }
 0x39a   : > { %v6632_v52 = vmul.f32 %v8460_v39, %v17789_v33  ;;  %v17874_v28 = vld [vmem:[#allocation73_spill] sm:$0xff]  ;;  %v5533_v39 = vpop.f32.mrf.mxu0  ;;  %6142 = vmatprep.mubr.bf16.mxu1 %v17875_v24  ;;  %v6633_v23 = vmul.f32 %v8461_v16, %v17789_v33  ;;  %v17877_v49 = vcombine.low %v14005_v22, %v14007_v46  ;;  %v17878_v47 = vcombine.high %v14024_v7, %v14026_v51 }
 0x39b   : > { %6029 = vmatprep.mubr.bf16.mxu0 %v17874_v28  ;;  %v14232_v5 = vld [vmem:[#allocation9 + $0xd58] sm:$0xff]  ;;  %v7331_v44 = vadd.f32 %v7203_v3, %v6882_v12  ;;  %v7090_v16 = vunpack.c.h.bf16 %v14197_v37  ;;  %v14260_v8 = vpop.f32.mrf.mxu1  ;;  %v17879_v46 = vcombine.high %v14034_v15, %v14048_v20  ;;  %v6762_v12 = vmul.f32 %v12944_v19, %v5639_v29 }
 0x39c   : > { %v14234_v35 = vld [vmem:[#allocation9 + $0xd78] sm:$0xff]  ;;  %6180 = vmatpush2.bf16.msra.mxu0 %v17876_v43  ;;  %v6889_v26 = vsub.f32 %v6632_v52, %v6761_v54  ;;  %v14243_v24 = vpop.f32.mrf.mxu0  ;;  %6293 = vmatpush2.bf16.msra.mxu1 %v17877_v49  ;;  %v5643_v52 = vadd.f32 %v5642_v0, %v5530_v42  ;;  %v14258_v54 = vld [vmem:[%s8930_s16 + $0xa8] sm:$0xff]  ;;  %v7211_v0 = vmul.f32 %v17773_v14, %v7082_v30  ;;  %v17880_v43 = vld [vmem:[#allocation74_spill] sm:$0xff] }
 0x39d   : > { %6181 = vmatprep.subr.bf16.mxu0 %v17878_v47  ;;  %v14251_v40 = vld [vmem:[#allocation9 + $0x918] sm:$0xff]  ;;  %6294 = vmatprep.subr.bf16.mxu1 %v17879_v46  ;;  %v8159_v37 = vcombine.high %v14232_v5, %v14234_v35  ;;  %7459 = vst [vmem:[#allocation12 + $0x98] sm:$0xff] %v7331_v44  ;;  %v7218_v47 = vmul.f32 %v17773_v14, %v7089_v57  ;;  %v14275_v46 = vpop.f32.mrf.mxu1  ;;  %v7098_v22 = vunpack.c.h.bf16 %v14258_v54 }
 0x39e   : > { %v14253_v10 = vld [vmem:[#allocation9 + $0x938] sm:$0xff]  ;;  %v7338_v3 = vadd.f32 %v7210_v45, %v6889_v26  ;;  %v5539_v42 = vpop.f32.mrf.mxu0  ;;  %v6769_v49 = vmul.f32 %v12944_v19, %v5643_v52  ;;  %v17881_v26 = vld [vmem:[#allocation75_spill] sm:$0xff]  ;;  %v17882_v30 = vcombine.low %v14024_v7, %v14026_v51  ;;  %v6890_v29 = vsub.f32 %v6633_v23, %v6762_v12 }
 0x39f   : > { %v8462_v41 = vld [vmem:[#allocation12 + $0x110] sm:$0xff]  ;;  %6030 = vmatmul.mubr.bf16.gmra.mxu0 %v17880_v43  ;;  %6143 = vmatmul.mubr.bf16.gmra.mxu1 %v17881_v26  ;;  %v5534_v44 = vadd.f32 %v5533_v39, %v13742_v11  ;;  %v7097_v52 = vunpack.c.l.bf16 %v14258_v54  ;;  %v8463_v11 = vld [vmem:[#allocation12 + $0x118] sm:$0xff]  ;;  %v14298_v12 = vpop.f32.mrf.mxu1  ;;  %v17888_v54 = vcombine.low %v14052_v9, %v14054_v61 }
 0x3a0   : > { %v6640_v25 = vmul.f32 %v8462_v41, %v17789_v33  ;;  %v5532_v41 = vadd.f32 %v5531_v55, %v13739_v4  ;;  %6182 = vmatpush2.bf16.msra.mxu0 %v17882_v30  ;;  %7466 = vst [vmem:[#allocation12 + $0xd0] sm:$0xff] %v7338_v3  ;;  %v14285_v57 = vpop.f32.mrf.mxu0  ;;  %v17883_v4 = vcombine.low %v14034_v15, %v14048_v20  ;;  %v14293_v7 = vld [vmem:[#allocation9 + $0xd18] sm:$0xff]  ;;  %v17886_v20 = vld [vmem:[#allocation19_spill] sm:$0xff] }
 0x3a1   : > { %v17884_v55 = vcombine.high %v14052_v9, %v14054_v61  ;;  %v14295_v51 = vld [vmem:[#allocation9 + $0xd38] sm:$0xff]  ;;  %v6641_v39 = vmul.f32 %v8463_v11, %v17789_v33  ;;  %v17885_v15 = vcombine.high %v14077_v48, %v14079_v32  ;;  %6185 = vmatprep.mubr.bf16.mxu0 %v17886_v20  ;;  %v7339_v30 = vadd.f32 %v7211_v0, %v6890_v29  ;;  %v14320_v29 = vpop.f32.mrf.mxu1 }
 0x3a2   : > { %6295 = vmatpush2.bf16.msra.mxu1 %v17883_v4  ;;  %v6897_v23 = vsub.f32 %v6640_v25, %v6769_v49  ;;  %v5645_v3 = vadd.f32 %v5644_v18, %v5532_v41  ;;  %v5647_v4 = vadd.f32 %v5646_v6, %v5534_v44  ;;  %v14307_v25 = vld [vmem:[%s8930_s16 + $0xc8] sm:$0xff]  ;;  %v14309_v18 = vpop.f32.mrf.mxu0  ;;  %v17887_v49 = vld [vmem:[#allocation20_spill] sm:$0xff]  ;;  %v8023_v41 = vcombine.high %v14251_v40, %v14253_v10  ;;  %v14316_v20 = vld [vmem:[#allocation9 + $0x8f8] sm:$0xff] }
 0x3a3   : > { %6183 = vmatprep.subr.bf16.mxu0 %v17884_v55  ;;  %6296 = vmatprep.subr.bf16.mxu1 %v17885_v15  ;;  %v8464_v55 = vld [vmem:[#allocation12 + $0x150] sm:$0xff]  ;;  %v7219_v0 = vmul.f32 %v17773_v14, %v7090_v16  ;;  %7467 = vst [vmem:[#allocation12 + $0xd8] sm:$0xff] %v7339_v30  ;;  %v17889_v16 = vcombine.low %v14077_v48, %v14079_v32 }
 0x3a4   : > { %v6648_v45 = vmul.f32 %v8464_v55, %v17789_v33  ;;  %6298 = vmatprep.mubr.bf16.mxu1 %v17887_v49  ;;  %v7346_v11 = vadd.f32 %v7218_v47, %v6897_v23  ;;  %v14314_v15 = vld [vmem:[#allocation9 + $0x8d8] sm:$0xff]  ;;  %v6770_v6 = vmul.f32 %v12944_v19, %v5645_v3  ;;  %6184 = vmatpush2.bf16.msra.mxu0 %v17888_v54  ;;  %v14331_v3 = vpop.f32.mrf.mxu0  ;;  %v8465_v54 = vld [vmem:[#allocation12 + $0x158] sm:$0xff] }
 0x3a5   : > { %v6777_v47 = vmul.f32 %v12944_v19, %v5647_v4  ;;  %v7226_v23 = vmul.f32 %v17773_v14, %v7097_v52  ;;  %v5536_v55 = vadd.f32 %v14243_v24, %v13759_v2  ;;  %v17890_v9 = vcombine.high %v14127_v59, %v14129_v36  ;;  %v14343_v24 = vpop.f32.mrf.mxu1 }
 0x3a6   : > { %6297 = vmatpush2.bf16.msra.mxu1 %v17889_v16  ;;  %v8151_v61 = vcombine.high %v14293_v7, %v14295_v51  ;;  %7474 = vst [vmem:[#allocation12 + $0x110] sm:$0xff] %v7346_v11  ;;  %v6898_v30 = vsub.f32 %v6641_v39, %v6770_v6  ;;  %v5540_v52 = vadd.f32 %v5539_v42, %v13774_v50  ;;  %v7105_v2 = vunpack.c.l.bf16 %v14307_v25  ;;  %v14353_v39 = vld [vmem:[%s8930_s16 + $0xe8] sm:$0xff]  ;;  %v14355_v50 = vpop.f32.mrf.mxu0  ;;  %v14360_v16 = vld [vmem:[#allocation9 + $0xcd8] sm:$0xff] }
 0x3a7   : > { %6379 = vmatprep.subr.bf16.mxu0 %v17890_v9  ;;  %v17891_v4 = vcombine.high %v14145_v1, %v14147_v58  ;;  %v6905_v32 = vsub.f32 %v6648_v45, %v6777_v47  ;;  %v5649_v49 = vadd.f32 %v14260_v8, %v5536_v55  ;;  %v6649_v11 = vmul.f32 %v8465_v54, %v17789_v33  ;;  %v17892_v42 = vld [vmem:[#allocation23_spill] sm:$0xff]  ;;  %v14362_v9 = vld [vmem:[#allocation9 + $0xcf8] sm:$0xff]  ;;  %v14366_v55 = vpop.f32.mrf.mxu1 }
 0x3a8   : > { %6186 = vmatmul.mubr.bf16.vlgmr.msra.gmra.mxu0 %v17892_v42  ;;  %v5653_v45 = vadd.f32 %v14275_v46, %v5540_v52  ;;  %v8466_v8 = vld [vmem:[#allocation12 + $0x190] sm:$0xff]  ;;  %v17894_v42 = vcombine.low %v14127_v59, %v14129_v36  ;;  %v7227_v44 = vmul.f32 %v17773_v14, %v7098_v22  ;;  %v17895_v46 = vcombine.low %v14145_v1, %v14147_v58 }
 0x3a9   : > { %6492 = vmatprep.subr.bf16.mxu1 %v17891_v4  ;;  %v7347_v4 = vadd.f32 %v7219_v0, %v6898_v30  ;;  %v6656_v47 = vmul.f32 %v8466_v8, %v17789_v33  ;;  %v17893_v54 = vld [vmem:[#allocation25_spill] sm:$0xff]  ;;  %v7354_v48 = vadd.f32 %v7226_v23, %v6905_v32  ;;  %v6778_v6 = vmul.f32 %v12944_v19, %v5649_v49  ;;  %v14375_v30 = vpop.f32.mrf.mxu0  ;;  %v14392_v58 = vpop.f32.mrf.mxu1 }
 0x3aa   : > { %6299 = vmatmul.mubr.bf16.vlgmr.msra.gmra.mxu1 %v17893_v54  ;;  %6380 = vmatpush1.bf16.msra.mxu0 %v17894_v42  ;;  %v7106_v0 = vunpack.c.h.bf16 %v14307_v25  ;;  %v17896_v52 = vcombine.high %v14157_v13, %v14159_v60  ;;  %v14383_v59 = vld [vmem:[#allocation9 + $0x898] sm:$0xff]  ;;  %v6785_v22 = vmul.f32 %v12944_v19, %v5653_v45  ;;  %v7234_v25 = vmul.f32 %v17773_v14, %v7105_v2  ;;  %v17899_v54 = vld [vmem:[#allocation30_spill] sm:$0xff] }
 0x3ab   : > { %6493 = vmatpush1.bf16.msra.mxu1 %v17895_v46  ;;  %7475 = vst [vmem:[#allocation12 + $0x118] sm:$0xff] %v7347_v4  ;;  %v14385_v36 = vld [vmem:[#allocation9 + $0x8b8] sm:$0xff]  ;;  %v5542_v23 = vadd.f32 %v14285_v57, %v13802_v21  ;;  %v7113_v1 = vunpack.c.l.bf16 %v14353_v39  ;;  %v17897_v32 = vcombine.high %v14187_v63, %v14189_v31  ;;  %7482 = vst [vmem:[#allocation12 + $0x150] sm:$0xff] %v7354_v48  ;;  %v14404_v57 = vld [vmem:[%s8930_s16 + $0x108] sm:$0xff]  ;;  %v14406_v8 = vpop.f32.mrf.mxu0  ;;  %6308 = vmatprep.mubr.bf16.mxu1 %v17899_v54 }
 0x3ac   : > { %6381 = vmatprep.subr.bf16.mxu0 %v17896_v52  ;;  %v17898_v49 = vld [vmem:[#allocation29_spill] sm:$0xff]  ;;  %v6906_v2 = vsub.f32 %v6649_v11, %v6778_v6  ;;  %v6913_v52 = vsub.f32 %v6656_v47, %v6785_v22  ;;  %v17900_v48 = vld [vmem:[#allocation72_spill] sm:$0xff]  ;;  %v14417_v6 = vpop.f32.mrf.mxu1  ;;  %v17901_v45 = vcombine.low %v14157_v13, %v14159_v60  ;;  %v8006_v54 = vcombine.low %v14383_v59, %v14385_v36 }
 0x3ad   : > { %6494 = vmatprep.subr.bf16.mxu1 %v17897_v32  ;;  %6195 = vmatprep.mubr.bf16.mxu0 %v17898_v49  ;;  %v14409_v42 = vld [vmem:[#allocation9 + $0xc98] sm:$0xff]  ;;  %v5655_v32 = vadd.f32 %v14298_v12, %v5542_v23  ;;  %v8467_v49 = vld [vmem:[#allocation12 + $0x198] sm:$0xff]  ;;  %v5544_v11 = vadd.f32 %v14309_v18, %v17900_v48  ;;  %v7235_v47 = vmul.f32 %v17773_v14, %v7106_v0  ;;  %v14426_v23 = vpop.f32.mrf.mxu0  ;;  %v7121_v0 = vunpack.c.l.bf16 %v14404_v57 }
 0x3ae   : > { %v14411_v46 = vld [vmem:[#allocation9 + $0xcb8] sm:$0xff]  ;;  %v6657_v4 = vmul.f32 %v8467_v49, %v17789_v33  ;;  %6382 = vmatpush1.bf16.msra.mxu0 %v17901_v45  ;;  %v7355_v21 = vadd.f32 %v7227_v44, %v6906_v2  ;;  %v17902_v18 = vcombine.low %v14187_v63, %v14189_v31  ;;  %v7362_v13 = vadd.f32 %v7234_v25, %v6913_v52  ;;  %v14437_v45 = vpop.f32.mrf.mxu1  ;;  %v17904_v2 = vld [vmem:[#allocation34_spill] sm:$0xff] }
 0x3af   : > { %v8468_v22 = vld [vmem:[#allocation12 + $0x1d0] sm:$0xff]  ;;  %6383 = vmatprep.subr.bf16.mxu0 %v8031_v38  ;;  %v6786_v60 = vmul.f32 %v12944_v19, %v5655_v32  ;;  %v5657_v44 = vadd.f32 %v14320_v29, %v5544_v11  ;;  %v8007_v63 = vcombine.high %v14383_v59, %v14385_v36  ;;  %v8134_v31 = vcombine.low %v14409_v42, %v14411_v46  ;;  %v17903_v29 = vld [vmem:[#allocation138_spill] sm:$0xff]  ;;  %v17905_v11 = vld [vmem:[#allocation139_spill] sm:$0xff] }
 0x3b0   : > { %v6664_v12 = vmul.f32 %v8468_v22, %v17789_v33  ;;  %6495 = vmatpush1.bf16.msra.mxu1 %v17902_v18  ;;  %v8135_v38 = vcombine.high %v14409_v42, %v14411_v46  ;;  %7483 = vst [vmem:[#allocation12 + $0x158] sm:$0xff] %v7355_v21  ;;  %v5546_v25 = vadd.f32 %v14331_v3, %v17903_v29  ;;  %7490 = vst [vmem:[#allocation12 + $0x190] sm:$0xff] %v7362_v13  ;;  %v14451_v52 = vld [vmem:[#allocation9 + $0x858] sm:$0xff]  ;;  %v14460_v18 = vld [vmem:[%s8930_s16 + $0x128] sm:$0xff]  ;;  %v14462_v21 = vpop.f32.mrf.mxu0  ;;  %v14464_v3 = vpop.f32.mrf.mxu1 }
 0x3b1   : > { %6496 = vmatprep.subr.bf16.mxu1 %v8159_v37  ;;  %6196 = vmatmul.mubr.bf16.gmra.mxu0 %v17904_v2  ;;  %v14453_v32 = vld [vmem:[#allocation9 + $0x878] sm:$0xff]  ;;  %v6914_v37 = vsub.f32 %v6657_v4, %v6786_v60  ;;  %v6793_v49 = vmul.f32 %v12944_v19, %v5657_v44  ;;  %v7242_v48 = vmul.f32 %v17773_v14, %v7113_v1  ;;  %v17906_v29 = vld [vmem:[#allocation36_spill] sm:$0xff]  ;;  %v8469_v60 = vld [vmem:[#allocation12 + $0x1d8] sm:$0xff] }
 0x3b2   : > { %v5550_v22 = vadd.f32 %v14355_v50, %v17905_v11  ;;  %6309 = vmatmul.mubr.bf16.gmra.mxu1 %v17906_v29  ;;  %v17907_v13 = vcombine.low %v14203_v56, %v14205_v34  ;;  %v5659_v4 = vadd.f32 %v14343_v24, %v5546_v25  ;;  %v6665_v1 = vmul.f32 %v8469_v60, %v17789_v33  ;;  %v8470_v44 = vld [vmem:[#allocation12 + $0x210] sm:$0xff]  ;;  %v14487_v60 = vpop.f32.mrf.mxu1 }
 0x3b3   : > { %v6672_v50 = vmul.f32 %v8470_v44, %v17789_v33  ;;  %v17908_v2 = vcombine.low %v14232_v5, %v14234_v35  ;;  %v14479_v11 = vld [vmem:[#allocation9 + $0xc58] sm:$0xff]  ;;  %v7363_v34 = vadd.f32 %v7235_v47, %v6914_v37  ;;  %v6921_v24 = vsub.f32 %v6664_v12, %v6793_v49  ;;  %v17911_v49 = vld [vmem:[#allocation38_spill] sm:$0xff] }
 0x3b4   : > { %6384 = vmatpush1.bf16.msra.mxu0 %v17907_v13  ;;  %v14481_v56 = vld [vmem:[#allocation9 + $0xc78] sm:$0xff]  ;;  %v5663_v25 = vadd.f32 %v14366_v55, %v5550_v22  ;;  %v7122_v29 = vunpack.c.h.bf16 %v14404_v57  ;;  %v14485_v13 = vpop.f32.mrf.mxu0  ;;  %v6794_v55 = vmul.f32 %v12944_v19, %v5659_v4  ;;  %v17910_v57 = vunpack.c.h.bf16 %v14353_v39  ;;  %6318 = vmatprep.mubr.bf16.mxu1 %v17911_v49 }
 0x3b5   : > { %6497 = vmatpush1.bf16.msra.mxu1 %v17908_v2  ;;  %6385 = vmatprep.subr.bf16.mxu0 %v8023_v41  ;;  %v17909_v5 = vld [vmem:[#allocation37_spill] sm:$0xff]  ;;  %v7129_v37 = vunpack.c.l.bf16 %v14460_v18  ;;  %7491 = vst [vmem:[#allocation12 + $0x198] sm:$0xff] %v7363_v34  ;;  %v7370_v22 = vadd.f32 %v7242_v48, %v6921_v24  ;;  %v7250_v2 = vmul.f32 %v17773_v14, %v7121_v0  ;;  %v17913_v24 = vld [vmem:[#allocation63_spill] sm:$0xff] }
 0x3b6   : > { %6498 = vmatprep.subr.bf16.mxu1 %v8151_v61  ;;  %6205 = vmatprep.mubr.bf16.mxu0 %v17909_v5  ;;  %v14495_v41 = vld [vmem:[#allocation9 + $0x818] sm:$0xff]  ;;  %v7243_v12 = vmul.f32 %v17773_v14, %v17910_v57  ;;  %v7999_v61 = vcombine.high %v14451_v52, %v14453_v32  ;;  %v6801_v44 = vmul.f32 %v12944_v19, %v5663_v25  ;;  %v14509_v5 = vpop.f32.mrf.mxu0  ;;  %v14524_v25 = vpop.f32.mrf.mxu1 }
 0x3b7   : > { %v14497_v47 = vld [vmem:[#allocation9 + $0x838] sm:$0xff]  ;;  %v17912_v39 = vcombine.low %v14251_v40, %v14253_v10  ;;  %v8127_v57 = vcombine.high %v14479_v11, %v14481_v56  ;;  %v6922_v48 = vsub.f32 %v6665_v1, %v6794_v55  ;;  %v5552_v0 = vadd.f32 %v14375_v30, %v17913_v24  ;;  %7498 = vst [vmem:[#allocation12 + $0x1d0] sm:$0xff] %v7370_v22 }
 0x3b8   : > { %v14518_v49 = vld [vmem:[#allocation9 + $0xc18] sm:$0xff]  ;;  %v17914_v40 = vcombine.low %v14293_v7, %v14295_v51  ;;  %v17915_v10 = vcombine.high %v14314_v15, %v14316_v20  ;;  %v6929_v4 = vsub.f32 %v6672_v50, %v6801_v44  ;;  %v7130_v30 = vunpack.c.h.bf16 %v14460_v18  ;;  %v14537_v24 = vpop.f32.mrf.mxu0  ;;  %v14547_v44 = vld [vmem:[%s8930_s16 + $0x148] sm:$0xff] }
 0x3b9   : > { %6386 = vmatpush1.bf16.msra.mxu0 %v17912_v39  ;;  %v14520_v34 = vld [vmem:[#allocation9 + $0xc38] sm:$0xff]  ;;  %v17917_v7 = vcombine.high %v14360_v16, %v14362_v9  ;;  %v5665_v22 = vadd.f32 %v14392_v58, %v5552_v0  ;;  %v17920_v58 = vcombine.low %v14314_v15, %v14316_v20  ;;  %v17922_v15 = vcombine.low %v14360_v16, %v14362_v9  ;;  %v17923_v16 = vld [vmem:[#allocation42_spill] sm:$0xff] }
 0x3ba   : > { %6499 = vmatpush1.bf16.msra.mxu1 %v17914_v40  ;;  %6387 = vmatprep.subr.bf16.mxu0 %v17915_v10  ;;  %v17916_v1 = vld [vmem:[#allocation69_spill] sm:$0xff]  ;;  %v7371_v40 = vadd.f32 %v7243_v12, %v6922_v48  ;;  %v8471_v10 = vld [vmem:[#allocation12 + $0x218] sm:$0xff]  ;;  %v8118_v18 = vcombine.low %v14518_v49, %v14520_v34 }
 0x3bb   : > { %v5554_v55 = vadd.f32 %v14406_v8, %v17916_v1  ;;  %6500 = vmatprep.subr.bf16.mxu1 %v17917_v7  ;;  %v6673_v50 = vmul.f32 %v8471_v10, %v17789_v33  ;;  %v17918_v8 = vld [vmem:[#allocation40_spill] sm:$0xff]  ;;  %v7378_v1 = vadd.f32 %v7250_v2, %v6929_v4  ;;  %v8472_v7 = vld [vmem:[#allocation12 + $0x250] sm:$0xff]  ;;  %v6802_v0 = vmul.f32 %v12944_v19, %v5665_v22  ;;  %v17921_v4 = vld [vmem:[#allocation147_spill] sm:$0xff]  ;;  %v14568_v10 = vpop.f32.mrf.mxu0 }
 0x3bc   : > { %6206 = vmatmul.mubr.bf16.gmra.mxu0 %v17918_v8  ;;  %v6680_v35 = vmul.f32 %v8472_v7, %v17789_v33  ;;  %v17919_v51 = vld [vmem:[#allocation41_spill] sm:$0xff]  ;;  %7499 = vst [vmem:[#allocation12 + $0x1d8] sm:$0xff] %v7371_v40  ;;  %v7251_v2 = vmul.f32 %v17773_v14, %v7122_v29  ;;  %v7258_v29 = vmul.f32 %v17773_v14, %v7129_v37  ;;  %v7137_v40 = vunpack.c.l.bf16 %v14547_v44  ;;  %v17924_v8 = vld [vmem:[#allocation151_spill] sm:$0xff] }
 0x3bd   : > { %v5667_v39 = vadd.f32 %v14417_v6, %v5554_v55  ;;  %6319 = vmatmul.mubr.bf16.gmra.mxu1 %v17919_v51  ;;  %6388 = vmatpush1.bf16.msra.mxu0 %v17920_v58  ;;  %v14558_v12 = vld [vmem:[#allocation9 + $0xbd8] sm:$0xff]  ;;  %v5556_v6 = vadd.f32 %v14426_v23, %v17921_v4  ;;  %v14566_v55 = vpop.f32.mrf.mxu1  ;;  %7506 = vst [vmem:[#allocation12 + $0x210] sm:$0xff] %v7378_v1  ;;  %v8473_v51 = vld [vmem:[#allocation12 + $0x258] sm:$0xff]  ;;  %v7138_v1 = vunpack.c.h.bf16 %v14547_v44  ;;  %v14593_v7 = vld [vmem:[%s8930_s16 + $0x168] sm:$0xff] }
 0x3be   : > { %v14560_v48 = vld [vmem:[#allocation9 + $0xbf8] sm:$0xff]  ;;  %6501 = vmatpush1.bf16.msra.mxu1 %v17922_v15  ;;  %6389 = vmatprep.subr.bf16.mxu0 %v8007_v63  ;;  %v6681_v23 = vmul.f32 %v8473_v51, %v17789_v33  ;;  %v6930_v63 = vsub.f32 %v6673_v50, %v6802_v0  ;;  %v5560_v37 = vadd.f32 %v14462_v21, %v17924_v8  ;;  %v17925_v58 = vld [vmem:[#allocation43_spill] sm:$0xff] }
 0x3bf   : > { %v6809_v20 = vmul.f32 %v12944_v19, %v5667_v39  ;;  %6502 = vmatprep.subr.bf16.mxu1 %v8135_v38  ;;  %6215 = vmatprep.mubr.bf16.mxu0 %v17923_v16  ;;  %v14584_v9 = vld [vmem:[#allocation9 + $0xfd8] sm:$0xff]  ;;  %v5669_v39 = vadd.f32 %v14437_v45, %v5556_v6  ;;  %v8119_v38 = vcombine.high %v14518_v49, %v14520_v34  ;;  %v14611_v8 = vpop.f32.mrf.mxu1  ;;  %v17938_v49 = vld [vmem:[#allocation59_spill] sm:$0xff] }
 0x3c0   : > { %v14586_v22 = vld [vmem:[#allocation9 + $0xff8] sm:$0xff]  ;;  %6328 = vmatprep.mubr.bf16.mxu1 %v17925_v58  ;;  %v8110_v4 = vcombine.low %v14558_v12, %v14560_v48  ;;  %v7259_v50 = vmul.f32 %v17773_v14, %v7130_v30  ;;  %v7379_v45 = vadd.f32 %v7251_v2, %v6930_v63  ;;  %v5673_v6 = vadd.f32 %v14464_v3, %v5560_v37  ;;  %v17927_v2 = vld [vmem:[#allocation46_spill] sm:$0xff]  ;;  %v14642_v37 = vld [vmem:[%s8930_s16 + $0x188] sm:$0xff] }
 0x3c1   : > { %v6937_v15 = vsub.f32 %v6680_v35, %v6809_v20  ;;  %6390 = vmatpush1.bf16.msra.mxu0 %v8006_v54  ;;  %v14604_v21 = vld [vmem:[#allocation9 + $0xb98] sm:$0xff]  ;;  %v6810_v0 = vmul.f32 %v12944_v19, %v5669_v39  ;;  %v14613_v35 = vpop.f32.mrf.mxu0  ;;  %v8111_v59 = vcombine.high %v14558_v12, %v14560_v48  ;;  %v8238_v36 = vcombine.low %v14584_v9, %v14586_v22  ;;  %v8475_v63 = vld [vmem:[#allocation12 + $0x298] sm:$0xff] }
 0x3c2   : > { %v14606_v44 = vld [vmem:[#allocation9 + $0xbb8] sm:$0xff]  ;;  %6503 = vmatpush1.bf16.msra.mxu1 %v8134_v31  ;;  %6391 = vmatprep.subr.bf16.mxu0 %v7999_v61  ;;  %v7145_v3 = vunpack.c.l.bf16 %v14593_v7  ;;  %7507 = vst [vmem:[#allocation12 + $0x218] sm:$0xff] %v7379_v45  ;;  %v6817_v46 = vmul.f32 %v12944_v19, %v5673_v6  ;;  %v7266_v31 = vmul.f32 %v17773_v14, %v7137_v40  ;;  %v17926_v61 = vld [vmem:[#allocation71_spill] sm:$0xff] }
 0x3c3   : > { %v8474_v51 = vld [vmem:[#allocation12 + $0x290] sm:$0xff]  ;;  %v7386_v54 = vadd.f32 %v7258_v29, %v6937_v15  ;;  %6504 = vmatprep.subr.bf16.mxu1 %v8127_v57  ;;  %v6938_v42 = vsub.f32 %v6681_v23, %v6810_v0  ;;  %v5562_v30 = vadd.f32 %v14485_v13, %v17926_v61  ;;  %v8239_v20 = vcombine.high %v14584_v9, %v14586_v22 }
 0x3c4   : > { %v6688_v16 = vmul.f32 %v8474_v51, %v17789_v33  ;;  %6216 = vmatmul.mubr.bf16.gmra.mxu0 %v17927_v2  ;;  %v8102_v29 = vcombine.low %v14604_v21, %v14606_v44  ;;  %v6689_v57 = vmul.f32 %v8475_v63, %v17789_v33  ;;  %v17928_v23 = vld [vmem:[#allocation153_spill] sm:$0xff]  ;;  %v17930_v13 = vcombine.low %v14451_v52, %v14453_v32  ;;  %v14653_v51 = vpop.f32.mrf.mxu1 }
 0x3c5   : > { %7514 = vst [vmem:[#allocation12 + $0x250] sm:$0xff] %v7386_v54  ;;  %v5564_v39 = vadd.f32 %v14509_v5, %v17928_v23  ;;  %v17929_v40 = vld [vmem:[#allocation49_spill] sm:$0xff]  ;;  %v7387_v45 = vadd.f32 %v7259_v50, %v6938_v42  ;;  %v5675_v6 = vadd.f32 %v14487_v60, %v5562_v30  ;;  %v14655_v54 = vpop.f32.mrf.mxu0  ;;  %v17931_v5 = vcombine.low %v14479_v11, %v14481_v56  ;;  %v17933_v11 = vld [vmem:[#allocation54_spill] sm:$0xff] }
 0x3c6   : > { %6329 = vmatmul.mubr.bf16.gmra.mxu1 %v17929_v40  ;;  %6392 = vmatpush1.bf16.msra.mxu0 %v17930_v13  ;;  %v14648_v58 = vld [vmem:[#allocation9 + $0xf98] sm:$0xff]  ;;  %v6945_v0 = vsub.f32 %v6688_v16, %v6817_v46  ;;  %v17932_v52 = vcombine.high %v14495_v41, %v14497_v47  ;;  %v8103_v32 = vcombine.high %v14604_v21, %v14606_v44  ;;  %v7146_v46 = vunpack.c.h.bf16 %v14593_v7  ;;  %v17934_v23 = vld [vmem:[#allocation58_spill] sm:$0xff] }
 0x3c7   : > { %v14650_v15 = vld [vmem:[#allocation9 + $0xfb8] sm:$0xff]  ;;  %6505 = vmatpush1.bf16.msra.mxu1 %v17931_v5  ;;  %v5677_v60 = vadd.f32 %v14524_v25, %v5564_v39  ;;  %6225 = vmatprep.mubr.bf16.mxu0 %v17933_v11  ;;  %7515 = vst [vmem:[#allocation12 + $0x258] sm:$0xff] %v7387_v45  ;;  %v6818_v30 = vmul.f32 %v12944_v19, %v5675_v6  ;;  %v7153_v63 = vunpack.c.l.bf16 %v14642_v37  ;;  %v5686_v5 = vpop.f32.mrf.mxu1 }
 0x3c8   : > { %6393 = vmatprep.subr.bf16.mxu0 %v17932_v52  ;;  %v14665_v61 = vld [vmem:[#allocation9 + $0xb58] sm:$0xff]  ;;  %6506 = vmatprep.subr.bf16.mxu1 %v8119_v38  ;;  %v7394_v56 = vadd.f32 %v7266_v31, %v6945_v0  ;;  %v7267_v2 = vmul.f32 %v17773_v14, %v7138_v1  ;;  %v8230_v25 = vcombine.low %v14648_v58, %v14650_v15  ;;  %v17935_v38 = vld [vmem:[#allocation50_spill] sm:$0xff]  ;;  %v14696_v52 = vpop.f32.mrf.mxu0 }
 0x3c9   : > { %v14667_v50 = vld [vmem:[#allocation9 + $0xb78] sm:$0xff]  ;;  %6338 = vmatprep.mubr.bf16.mxu1 %v17934_v23  ;;  %v6825_v39 = vmul.f32 %v12944_v19, %v5677_v60  ;;  %v7274_v7 = vmul.f32 %v17773_v14, %v7145_v3  ;;  %v5566_v40 = vadd.f32 %v14537_v24, %v17935_v38  ;;  %v17936_v31 = vcombine.low %v14495_v41, %v14497_v47  ;;  %v17937_v3 = vld [vmem:[#allocation155_spill] sm:$0xff]  ;;  %v8477_v60 = vld [vmem:[#allocation12 + $0x2d8] sm:$0xff] }
 0x3ca   : > { %v8476_v16 = vld [vmem:[#allocation12 + $0x2d0] sm:$0xff]  ;;  %v8231_v1 = vcombine.high %v14648_v58, %v14650_v15  ;;  %7522 = vst [vmem:[#allocation12 + $0x290] sm:$0xff] %v7394_v56  ;;  %v8094_v13 = vcombine.low %v14665_v61, %v14667_v50  ;;  %v6946_v6 = vsub.f32 %v6689_v57, %v6818_v30  ;;  %v5570_v24 = vadd.f32 %v14568_v10, %v17937_v3  ;;  %v14708_v23 = vld [vmem:[%s8930_s16 + $0x1a8] sm:$0xff] }
 0x3cb   : > { %v6696_v42 = vmul.f32 %v8476_v16, %v17789_v33  ;;  %6394 = vmatpush1.bf16.msra.mxu0 %v17936_v31  ;;  %v14690_v45 = vld [vmem:[#allocation9 + $0xf58] sm:$0xff]  ;;  %6507 = vmatpush1.bf16.msra.mxu1 %v8118_v18  ;;  %v5679_v47 = vadd.f32 %v14566_v55, %v5566_v40  ;;  %v6697_v16 = vmul.f32 %v8477_v60, %v17789_v33  ;;  %v5688_v40 = vpop.f32.mrf.mxu1  ;;  %v5579_v31 = vpop.f32.mrf.mxu0  ;;  %v7162_v22 = vunpack.c.h.bf16 %v14708_v23 }
 0x3cc   : > { %v14692_v0 = vld [vmem:[#allocation9 + $0xf78] sm:$0xff]  ;;  %6395 = vmatprep.subr.bf16.mxu0 %v8111_v59  ;;  %6508 = vmatprep.subr.bf16.mxu1 %v8239_v20  ;;  %v8095_v57 = vcombine.high %v14665_v61, %v14667_v50  ;;  %v7395_v11 = vadd.f32 %v7267_v2, %v6946_v6  ;;  %v5683_v10 = vadd.f32 %v14611_v8, %v5570_v24  ;;  %v17939_v20 = vld [vmem:[#allocation60_spill] sm:$0xff]  ;;  %v8479_v24 = vld [vmem:[#allocation12 + $0x318] sm:$0xff] }
 0x3cd   : > { %v6953_v41 = vsub.f32 %v6696_v42, %v6825_v39  ;;  %v8478_v56 = vld [vmem:[#allocation12 + $0x310] sm:$0xff]  ;;  %6226 = vmatmul.mubr.bf16.gmra.mxu0 %v17938_v49  ;;  %v8222_v34 = vcombine.low %v14690_v45, %v14692_v0  ;;  %v6826_v55 = vmul.f32 %v12944_v19, %v5679_v47  ;;  %v7275_v59 = vmul.f32 %v17773_v14, %v7146_v46 }
 0x3ce   : > { %v6704_v30 = vmul.f32 %v8478_v56, %v17789_v33  ;;  %6339 = vmatmul.mubr.bf16.gmra.mxu1 %v17939_v20  ;;  %7523 = vst [vmem:[#allocation12 + $0x298] sm:$0xff] %v7395_v11  ;;  %v14719_v8 = vld [vmem:[#allocation9 + $0xb18] sm:$0xff]  ;;  %v6833_v2 = vmul.f32 %v12944_v19, %v5683_v10  ;;  %v7282_v39 = vmul.f32 %v17773_v14, %v7153_v63  ;;  %v7154_v46 = vunpack.c.h.bf16 %v14642_v37  ;;  %v17942_v37 = vld [vmem:[#allocation64_spill] sm:$0xff] }
 0x3cf   : > { %v7402_v18 = vadd.f32 %v7274_v7, %v6953_v41  ;;  %6396 = vmatpush2.bf16.msra.mxu0 %v8110_v4  ;;  %v14721_v42 = vld [vmem:[#allocation9 + $0xb38] sm:$0xff]  ;;  %6509 = vmatpush2.bf16.msra.mxu1 %v8238_v36  ;;  %v8223_v12 = vcombine.high %v14690_v45, %v14692_v0  ;;  %v6954_v48 = vsub.f32 %v6697_v16, %v6826_v55  ;;  %v17941_v4 = vld [vmem:[#allocation78_spill] sm:$0xff]  ;;  %v14741_v36 = vld [vmem:[%s8930_s16 + $0x1c8] sm:$0xff] }
 0x3d0   : > { %v17940_v7 = vld [vmem:[#allocation157_spill] sm:$0xff]  ;;  %6397 = vmatprep.subr.bf16.mxu0 %v8103_v32  ;;  %v5574_v63 = vadd.f32 %v14655_v54, %v17941_v4  ;;  %6510 = vmatprep.subr.bf16.mxu1 %v8231_v1  ;;  %v6961_v6 = vsub.f32 %v6704_v30, %v6833_v2  ;;  %v6705_v9 = vmul.f32 %v8479_v24, %v17789_v33  ;;  %v17946_v2 = vld [vmem:[#allocation66_spill] sm:$0xff]  ;;  %v14784_v4 = vld [vmem:[%s8930_s16 + $0x1e8] sm:$0xff] }
 0x3d1   : > { %v5572_v38 = vadd.f32 %v14613_v35, %v17940_v7  ;;  %7530 = vst [vmem:[#allocation12 + $0x2d0] sm:$0xff] %v7402_v18  ;;  %v7161_v35 = vunpack.c.l.bf16 %v14708_v23  ;;  %6235 = vmatprep.mubr.bf16.mxu0 %v17942_v37  ;;  %v17943_v32 = vld [vmem:[#allocation65_spill] sm:$0xff]  ;;  %v8086_v54 = vcombine.low %v14719_v8, %v14721_v42  ;;  %v7403_v47 = vadd.f32 %v7275_v59, %v6954_v48  ;;  %v5581_v18 = vpop.f32.mrf.mxu0 }
 0x3d2   : > { %6348 = vmatprep.mubr.bf16.mxu1 %v17943_v32  ;;  %v14746_v41 = vld [vmem:[#allocation9 + $0xf18] sm:$0xff]  ;;  %v5687_v60 = vadd.f32 %v5686_v5, %v5574_v63  ;;  %v8087_v11 = vcombine.high %v14719_v8, %v14721_v42  ;;  %v7410_v10 = vadd.f32 %v7282_v39, %v6961_v6  ;;  %v7283_v49 = vmul.f32 %v17773_v14, %v7154_v46  ;;  %v5692_v5 = vpop.f32.mrf.mxu1  ;;  %v17947_v63 = vld [vmem:[#allocation67_spill] sm:$0xff]  ;;  %v8483_v42 = vld [vmem:[#allocation12 + $0x398] sm:$0xff] }
 0x3d3   : > { %v5685_v3 = vadd.f32 %v14653_v51, %v5572_v38  ;;  %v14748_v1 = vld [vmem:[#allocation9 + $0xf38] sm:$0xff]  ;;  %6398 = vmatpush2.bf16.msra.mxu0 %v8102_v29  ;;  %6511 = vmatpush2.bf16.msra.mxu1 %v8230_v25  ;;  %7531 = vst [vmem:[#allocation12 + $0x2d8] sm:$0xff] %v7403_v47  ;;  %v7290_v44 = vmul.f32 %v17773_v14, %v7161_v35  ;;  %v17944_v29 = vld [vmem:[#allocation159_spill] sm:$0xff]  ;;  %v7169_v59 = vunpack.c.l.bf16 %v14741_v36  ;;  %v5583_v24 = vpop.f32.mrf.mxu0 }
 0x3d4   : > { %v8480_v16 = vld [vmem:[#allocation12 + $0x350] sm:$0xff]  ;;  %6399 = vmatprep.subr.bf16.mxu0 %v8095_v57  ;;  %v6841_v21 = vmul.f32 %v12944_v19, %v5687_v60  ;;  %v5576_v55 = vadd.f32 %v14696_v52, %v17944_v29  ;;  %6512 = vmatprep.subr.bf16.mxu1 %v8223_v12  ;;  %v8214_v20 = vcombine.low %v14746_v41, %v14748_v1  ;;  %v8481_v12 = vld [vmem:[#allocation12 + $0x358] sm:$0xff] }
 0x3d5   : > { %v6712_v51 = vmul.f32 %v8480_v16, %v17789_v33  ;;  %v14756_v56 = vld [vmem:[#allocation9 + $0xad8] sm:$0xff]  ;;  %v6834_v23 = vmul.f32 %v12944_v19, %v5685_v3  ;;  %v8215_v58 = vcombine.high %v14746_v41, %v14748_v1  ;;  %7538 = vst [vmem:[#allocation12 + $0x310] sm:$0xff] %v7410_v10  ;;  %6236 = vmatmul.mubr.bf16.gmra.mxu0 %v17946_v2  ;;  %v5694_v3 = vpop.f32.mrf.mxu1  ;;  %v17948_v41 = vld [vmem:[#allocation76_spill] sm:$0xff] }
 0x3d6   : > { %v14758_v30 = vld [vmem:[#allocation9 + $0xaf8] sm:$0xff]  ;;  %v5689_v46 = vadd.f32 %v5688_v40, %v5576_v55  ;;  %v6713_v48 = vmul.f32 %v8481_v12, %v17789_v33  ;;  %6349 = vmatmul.mubr.bf16.gmra.mxu1 %v17947_v63  ;;  %v7291_v50 = vmul.f32 %v17773_v14, %v7162_v22  ;;  %6245 = vmatprep.mubr.bf16.mxu0 %v17948_v41  ;;  %v17953_v12 = vld [vmem:[#allocation104_spill] sm:$0xff]  ;;  %v17956_v41 = vld [vmem:[#allocation86_spill] sm:$0xff] }
 0x3d7   : > { %v6962_v15 = vsub.f32 %v6705_v9, %v6834_v23  ;;  %v17945_v25 = vld [vmem:[#allocation161_spill] sm:$0xff]  ;;  %v8079_v39 = vcombine.high %v14756_v56, %v14758_v30  ;;  %v6969_v38 = vsub.f32 %v6712_v51, %v6841_v21  ;;  %6400 = vmatpush2.bf16.msra.mxu0 %v8094_v13  ;;  %6513 = vmatpush2.bf16.msra.mxu1 %v8222_v34  ;;  %v7170_v13 = vunpack.c.h.bf16 %v14741_v36  ;;  %v5696_v21 = vpop.f32.mrf.mxu1 }
 0x3d8   : > { %v5580_v57 = vadd.f32 %v5579_v31, %v17945_v25  ;;  %v14778_v52 = vld [vmem:[#allocation9 + $0xed8] sm:$0xff]  ;;  %6401 = vmatprep.subr.bf16.mxu0 %v8087_v11  ;;  %v6842_v61 = vmul.f32 %v12944_v19, %v5689_v46  ;;  %6514 = vmatprep.subr.bf16.mxu1 %v8215_v58  ;;  %v7298_v0 = vmul.f32 %v17773_v14, %v7169_v59  ;;  %v7177_v34 = vunpack.c.l.bf16 %v14784_v4  ;;  %v17950_v11 = vld [vmem:[#allocation163_spill] sm:$0xff] }
 0x3d9   : > { %v14780_v7 = vld [vmem:[#allocation9 + $0xef8] sm:$0xff]  ;;  %v7411_v31 = vadd.f32 %v7283_v49, %v6962_v15  ;;  %v7418_v40 = vadd.f32 %v7290_v44, %v6969_v38  ;;  %v8078_v22 = vcombine.low %v14756_v56, %v14758_v30  ;;  %v5582_v10 = vadd.f32 %v5581_v18, %v17950_v11  ;;  %v17951_v49 = vld [vmem:[#allocation80_spill] sm:$0xff]  ;;  %v5585_v44 = vpop.f32.mrf.mxu0 }
 0x3da   : > { %v5693_v35 = vadd.f32 %v5692_v5, %v5580_v57  ;;  %v8482_v37 = vld [vmem:[#allocation12 + $0x390] sm:$0xff]  ;;  %v8207_v1 = vcombine.high %v14778_v52, %v14780_v7  ;;  %v8206_v36 = vcombine.low %v14778_v52, %v14780_v7  ;;  %v6970_v51 = vsub.f32 %v6713_v48, %v6842_v61 }
 0x3db   : > { %v6720_v6 = vmul.f32 %v8482_v37, %v17789_v33  ;;  %v14794_v9 = vld [vmem:[#allocation9 + $0xa98] sm:$0xff]  ;;  %7539 = vst [vmem:[#allocation12 + $0x318] sm:$0xff] %v7411_v31  ;;  %7546 = vst [vmem:[#allocation12 + $0x350] sm:$0xff] %v7418_v40  ;;  %6402 = vmatpush2.bf16.msra.mxu0 %v8086_v54  ;;  %v5584_v5 = vadd.f32 %v5583_v24, %v17951_v49  ;;  %6515 = vmatpush2.bf16.msra.mxu1 %v8214_v20  ;;  %v7178_v59 = vunpack.c.h.bf16 %v14784_v4  ;;  %v17954_v4 = vld [vmem:[#allocation22_spill] sm:$0xff]  ;;  %v5698_v37 = vpop.f32.mrf.mxu1 }
 0x3dc   : > { %v14796_v32 = vld [vmem:[#allocation9 + $0xab8] sm:$0xff]  ;;  %v6849_v45 = vmul.f32 %v12944_v19, %v5693_v35  ;;  %6403 = vmatprep.subr.bf16.mxu0 %v8079_v39  ;;  %v7419_v29 = vadd.f32 %v7291_v50, %v6970_v51  ;;  %v5695_v8 = vadd.f32 %v5694_v3, %v5582_v10  ;;  %v6721_v54 = vmul.f32 %v8483_v42, %v17789_v33  ;;  %v8485_v24 = vld [vmem:[#allocation12 + $0x3d8] sm:$0xff] }
 0x3dd   : > { %v17949_v47 = vld [vmem:[#allocation77_spill] sm:$0xff]  ;;  %v8070_v23 = vcombine.low %v14794_v9, %v14796_v32  ;;  %v8071_v56 = vcombine.high %v14794_v9, %v14796_v32  ;;  %6516 = vmatprep.subr.bf16.mxu1 %v8207_v1  ;;  %v5697_v25 = vadd.f32 %v5696_v21, %v5584_v5  ;;  %v7299_v46 = vmul.f32 %v17773_v14, %v7170_v13  ;;  %v17959_v42 = vld [vmem:[#allocation94_spill] sm:$0xff] }
 0x3de   : > { %6358 = vmatprep.mubr.bf16.mxu1 %v17949_v47  ;;  %v14812_v60 = vld [vmem:[#allocation9 + $0xe98] sm:$0xff]  ;;  %v6977_v30 = vsub.f32 %v6720_v6, %v6849_v45  ;;  %7547 = vst [vmem:[#allocation12 + $0x358] sm:$0xff] %v7419_v29  ;;  %v6850_v38 = vmul.f32 %v12944_v19, %v5695_v8  ;;  %v5586_v48 = vadd.f32 %v5585_v44, %v17953_v12  ;;  %v17958_v44 = vld [vmem:[#allocation31_spill] sm:$0xff] }
 0x3df   : > { %v14814_v16 = vld [vmem:[#allocation9 + $0xeb8] sm:$0xff]  ;;  %6359 = vmatmul.mubr.bf16.gmra.mxu1 %v17954_v4  ;;  %6404 = vmatpush2.bf16.msra.mxu0 %v8078_v22  ;;  %v6857_v31 = vmul.f32 %v12944_v19, %v5697_v25  ;;  %v7306_v35 = vmul.f32 %v17773_v14, %v7177_v34  ;;  %v6729_v40 = vmul.f32 %v8485_v24, %v17789_v33  ;;  %v14850_v22 = vpop.f32.mrf.mxu0  ;;  %v17968_v24 = vld [vmem:[#allocation111_spill] sm:$0xff] }
 0x3e0   : > { %v14825_v55 = vld [vmem:[#allocation9 + $0xa58] sm:$0xff]  ;;  %v8199_v58 = vcombine.high %v14812_v60, %v14814_v16  ;;  %v7426_v15 = vadd.f32 %v7298_v0, %v6977_v30  ;;  %v8198_v39 = vcombine.low %v14812_v60, %v14814_v16  ;;  %6517 = vmatpush2.bf16.msra.mxu1 %v8206_v36  ;;  %6405 = vmatprep.subr.bf16.mxu0 %v8071_v56  ;;  %v14854_v16 = vpop.f32.mrf.mxu1 }
 0x3e1   : > { %v14827_v18 = vld [vmem:[#allocation9 + $0xa78] sm:$0xff]  ;;  %v6978_v6 = vsub.f32 %v6721_v54, %v6850_v38  ;;  %v5699_v3 = vadd.f32 %v5698_v37, %v5586_v48  ;;  %6368 = vmatprep.mubr.bf16.mxu1 %v17956_v41  ;;  %v7307_v47 = vmul.f32 %v17773_v14, %v7178_v59  ;;  %v14856_v56 = vpop.f32.mrf.mxu0  ;;  %v17960_v59 = vld [vmem:[#allocation95_spill] sm:$0xff] }
 0x3e2   : > { %v8484_v57 = vld [vmem:[#allocation12 + $0x3d0] sm:$0xff]  ;;  %7554 = vst [vmem:[#allocation12 + $0x390] sm:$0xff] %v7426_v15  ;;  %v8063_v63 = vcombine.high %v14825_v55, %v14827_v18  ;;  %6518 = vmatprep.subr.bf16.mxu1 %v8199_v58  ;;  %v8062_v36 = vcombine.low %v14825_v55, %v14827_v18  ;;  %v14858_v49 = vpop.f32.mrf.mxu1  ;;  %v17964_v38 = vld [vmem:[#allocation39_spill] sm:$0xff] }
 0x3e3   : > { %v6728_v20 = vmul.f32 %v8484_v57, %v17789_v33  ;;  %v17952_v2 = vld [vmem:[#allocation21_spill] sm:$0xff]  ;;  %v7427_v1 = vadd.f32 %v7299_v46, %v6978_v6  ;;  %v6858_v34 = vmul.f32 %v12944_v19, %v5699_v3  ;;  %6406 = vmatpush2.bf16.msra.mxu0 %v8070_v23  ;;  %v17957_v23 = vld [vmem:[#allocation91_spill] sm:$0xff]  ;;  %v14861_v21 = vpop.f32.mrf.mxu0  ;;  %v17967_v6 = vld [vmem:[#allocation110_spill] sm:$0xff] }
 0x3e4   : > { %6246 = vmatmul.mubr.bf16.gmra.mxu0 %v17952_v2  ;;  %v1213_v52 = vld [vmem:[#allocation9 + $0xe58] sm:$0xff]  ;;  %6519 = vmatpush2.bf16.msra.mxu1 %v8198_v39  ;;  %v14864_v55 = vpop.f32.mrf.mxu1 }
 0x3e5   : > { %v1217_v7 = vld [vmem:[#allocation9 + $0xe78] sm:$0xff]  ;;  %v6985_v61 = vsub.f32 %v6728_v20, %v6857_v31  ;;  %6407 = vmatprep.subr.bf16.mxu0 %v8063_v63  ;;  %7555 = vst [vmem:[#allocation12 + $0x398] sm:$0xff] %v7427_v1  ;;  %v6986_v10 = vsub.f32 %v6729_v40, %v6858_v34  ;;  %v14866_v8 = vpop.f32.mrf.mxu0  ;;  %v17961_v20 = vld [vmem:[#allocation96_spill] sm:$0xff]  ;;  %v17972_v1 = vld [vmem:[#allocation122_spill] sm:$0xff] }
 0x3e6   : > { %v17955_v9 = vld [vmem:[#allocation85_spill] sm:$0xff]  ;;  %v8191_v32 = vcombine.high %v1213_v52, %v1217_v7  ;;  %v8190_v51 = vcombine.low %v1213_v52, %v1217_v7  ;;  %v14869_v54 = vpop.f32.mrf.mxu1  ;;  %v17963_v52 = vld [vmem:[#allocation99_spill] sm:$0xff]  ;;  %v17965_v31 = vld [vmem:[#allocation100_spill] sm:$0xff] }
 0x3e7   : > { %6255 = vmatprep.mubr.bf16.mxu0 %v17955_v9  ;;  %v1077_v50 = vld [vmem:[#allocation9 + $0xa18] sm:$0xff]  ;;  %v7434_v60 = vadd.f32 %v7306_v35, %v6985_v61  ;;  %v7435_v5 = vadd.f32 %v7307_v47, %v6986_v10  ;;  %6369 = vmatmul.mubr.bf16.gmra.mxu1 %v17958_v44  ;;  %v14872_v58 = vpop.f32.mrf.mxu0  ;;  %v17969_v61 = vld [vmem:[#allocation112_spill] sm:$0xff] }
 0x3e8   : > { %v1081_v13 = vld [vmem:[#allocation9 + $0xa38] sm:$0xff]  ;;  %6520 = vmatprep.subr.bf16.mxu1 %v8191_v32  ;;  %6408 = vmatpush2.bf16.msra.mxu0 %v8062_v36  ;;  %v14874_v15 = vpop.f32.mrf.mxu1 }
 0x3e9   : > { %v1205_v45 = vld [vmem:[#allocation9 + $0xe18] sm:$0xff]  ;;  %v8055_v11 = vcombine.high %v1077_v50, %v1081_v13  ;;  %7562 = vst [vmem:[#allocation12 + $0x3d0] sm:$0xff] %v7434_v60  ;;  %v8054_v29 = vcombine.low %v1077_v50, %v1081_v13  ;;  %6521 = vmatpush2.bf16.msra.mxu1 %v8190_v51  ;;  %7563 = vst [vmem:[#allocation12 + $0x3d8] sm:$0xff] %v7435_v5  ;;  %6524 = vmatprep.mubr.bf16.mxu1 %v17960_v59  ;;  %v14876_v25 = vpop.f32.mrf.mxu0  ;;  %v17971_v13 = vld [vmem:[#allocation44_spill] sm:$0xff] }
 0x3ea   : > { %v1209_v0 = vld [vmem:[#allocation9 + $0xe38] sm:$0xff]  ;;  %v14878_v57 = vpop.f32.mrf.mxu1  ;;  %v17977_v60 = vld [vmem:[#allocation123_spill] sm:$0xff]  ;;  %v17978_v51 = vld [vmem:[#allocation124_spill] sm:$0xff] }
 0x3eb   : > { %v8183_v30 = vcombine.high %v1205_v45, %v1209_v0  ;;  %6409 = vmatprep.subr.bf16.mxu0 %v8055_v11  ;;  %v8182_v18 = vcombine.low %v1205_v45, %v1209_v0  ;;  %v14881_v2 = vpop.f32.mrf.mxu0  ;;  %v17962_v39 = vld [vmem:[#allocation97_spill] sm:$0xff]  ;;  %v17988_v59 = vld [vmem:[#allocation135_spill] sm:$0xff] }
 0x3ec   : > { %6256 = vmatmul.mubr.bf16.gmra.mxu0 %v17957_v23  ;;  %v14885_v7 = vpop.f32.mrf.mxu1  ;;  %v17966_v37 = vld [vmem:[#allocation101_spill] sm:$0xff] }
 0x3ed   : > { %6522 = vmatprep.subr.bf16.mxu1 %v8183_v30  ;;  %6411 = vmatprep.mubr.bf16.mxu0 %v17959_v42  ;;  %v14888_v46 = vpop.f32.mrf.mxu0  ;;  %v17970_v50 = vld [vmem:[#allocation113_spill] sm:$0xff] }
 0x3ee   : > { %6410 = vmatpush2.bf16.msra.mxu0 %v8054_v29  ;;  %6523 = vmatpush2.bf16.msra.mxu1 %v8182_v18  ;;  %v14890_v12 = vpop.f32.mrf.mxu1  ;;  %v17980_v10 = vld [vmem:[#allocation53_spill] sm:$0xff]  ;;  %v17986_v18 = vld [vmem:[#allocation134_spill] sm:$0xff] }
 0x3ef   : > { %v14892_v48 = vpop.f32.mrf.mxu0  ;;  %v17982_v23 = vld [vmem:[#allocation133_spill] sm:$0xff] }
 0x3f0   : > { %v14894_v4 = vpop.f32.mrf.mxu1 }
 0x3f1   : > { %6525 = vmatmul.mubr.bf16.vlgmr.msra.gmra.mxu1 %v17962_v39  ;;  %v14896_v63 = vpop.f32.mrf.mxu0  ;;  %v17990_v39 = vld [vmem:[#allocation140_spill] sm:$0xff] }
 0x3f2   : > { %6534 = vmatprep.mubr.bf16.mxu1 %v17964_v38  ;;  %v14899_v35 = vpop.f32.mrf.mxu1  ;;  %v17992_v38 = vld [vmem:[#allocation141_spill] sm:$0xff] }
 0x3f3   : > { %v14903_v3 = vpop.f32.mrf.mxu0 }
 0x3f4   : > { %6412 = vmatmul.mubr.bf16.vlgmr.msra.gmra.mxu0 %v17961_v20  ;;  %v14906_v40 = vpop.f32.mrf.mxu1 }
 0x3f5   : > { %6421 = vmatprep.mubr.bf16.mxu0 %v17963_v52  ;;  %v14908_v9 = vpop.f32.mrf.mxu0 }
 0x3f6   : > { %v14910_v32 = vpop.f32.mrf.mxu1 }
 0x3f7   : > { %v14915_v41 = vpop.f32.mrf.mxu0 }
 0x3f8   : > { %v14918_v45 = vpop.f32.mrf.mxu1 }
 0x3f9   : > { %6535 = vmatmul.mubr.bf16.gmra.mxu1 %v17966_v37  ;;  %17973 = vst [vmem:[#allocation105_spill] sm:$0xff] %v14918_v45  ;;  %v14920_v0 = vpop.f32.mrf.mxu0  ;;  %v8495_v45 = vld [vmem:[#allocation12 + $0x128] sm:$0xff] }
 0x3fa   : > { %6544 = vmatprep.mubr.bf16.mxu1 %v17968_v24  ;;  %v14922_v34 = vpop.f32.mrf.mxu1 }
 0x3fb   : > { %17974 = vst [vmem:[#allocation154_spill] sm:$0xff] %v14922_v34  ;;  %v14924_v47 = vpop.f32.mrf.mxu0 }
 0x3fc   : > { %6422 = vmatmul.mubr.bf16.gmra.mxu0 %v17965_v31  ;;  %17975 = vst [vmem:[#allocation156_spill] sm:$0xff] %v14924_v47  ;;  %v14926_v36 = vpop.f32.mrf.mxu1 }
 0x3fd   : > { %6431 = vmatprep.mubr.bf16.mxu0 %v17967_v6  ;;  %17976 = vst [vmem:[#allocation158_spill] sm:$0xff] %v14926_v36  ;;  %v14930_v11 = vpop.f32.mrf.mxu0 }
 0x3fe   : > { %17979 = vst [vmem:[#allocation79_spill] sm:$0xff] %v14930_v11  ;;  %v14933_v30 = vpop.f32.mrf.mxu1 }
 0x3ff   : > { %17981 = vst [vmem:[#allocation107_spill] sm:$0xff] %v14933_v30  ;;  %v14936_v5 = vpop.f32.mrf.mxu0 }
 0x400   : > { %17983 = vst [vmem:[#allocation160_spill] sm:$0xff] %v14936_v5  ;;  %v14938_v44 = vpop.f32.mrf.mxu1  ;;  %v8490_v5 = vld [vmem:[#allocation12 + $0xa0] sm:$0xff] }
 0x401   : > { %6545 = vmatmul.mubr.bf16.gmra.mxu1 %v17970_v50  ;;  %17984 = vst [vmem:[#allocation162_spill] sm:$0xff] %v14938_v44  ;;  %v14940_v29 = vpop.f32.mrf.mxu0 }
 0x402   : > { %6554 = vmatprep.mubr.bf16.mxu1 %v17972_v1  ;;  %17985 = vst [vmem:[#allocation164_spill] sm:$0xff] %v14940_v29  ;;  %v14943_v42 = vpop.f32.mrf.mxu1 }
 0x403   : > { %17987 = vst [vmem:[#allocation81_spill] sm:$0xff] %v14943_v42  ;;  %v14946_v20 = vpop.f32.mrf.mxu0 }
 0x404   : > { %6432 = vmatmul.mubr.bf16.gmra.mxu0 %v17969_v61  ;;  %17989 = vst [vmem:[#allocation165_spill] sm:$0xff] %v14946_v20  ;;  %v14949_v52 = vpop.f32.mrf.mxu1 }
 0x405   : > { %6441 = vmatprep.mubr.bf16.mxu0 %v17971_v13  ;;  %17991 = vst [vmem:[#allocation83_spill] sm:$0xff] %v14949_v52  ;;  %v14952_v31 = vpop.f32.mrf.mxu0  ;;  %v17999_v13 = vld [vmem:[#allocation144_spill] sm:$0xff] }
 0x406   : > { %17993 = vst [vmem:[#allocation168_spill] sm:$0xff] %v14952_v31  ;;  %v14954_v37 = vpop.f32.mrf.mxu1  ;;  %v15037_v52 = vld [vmem:[%s8930_s16 + $0x130] sm:$0xff] }
 0x407   : > { %17994 = vst [vmem:[#allocation171_spill] sm:$0xff] %v14954_v37  ;;  %v14956_v6 = vpop.f32.mrf.mxu0 }
 0x408   : > { %17995 = vst [vmem:[#allocation84_spill] sm:$0xff] %v14956_v6  ;;  %v14958_v24 = vpop.f32.mrf.mxu1 }
 0x409   : > { %6555 = vmatmul.mubr.bf16.gmra.mxu1 %v17978_v51  ;;  %17996 = vst [vmem:[#allocation89_spill] sm:$0xff] %v14958_v24  ;;  %v14961_v61 = vpop.f32.mrf.mxu0 }
 0x40a   : > { %6564 = vmatprep.mubr.bf16.mxu1 %v17982_v23  ;;  %17997 = vst [vmem:[#allocation92_spill] sm:$0xff] %v14961_v61  ;;  %v14964_v50 = vpop.f32.mrf.mxu1  ;;  %v15026_v61 = vld [vmem:[%s8930_s16 + $0x110] sm:$0xff] }
 0x40b   : > { %17998 = vst [vmem:[#allocation24_spill] sm:$0xff] %v14964_v50  ;;  %v14967_v1 = vpop.f32.mrf.mxu0  ;;  %v15012_v50 = vld [vmem:[%s8930_s16 + $0xd0] sm:$0xff] }
 0x40c   : > { %6442 = vmatmul.mubr.bf16.gmra.mxu0 %v17977_v60  ;;  %18000 = vst [vmem:[#allocation117_spill] sm:$0xff] %v14967_v1  ;;  %v18001_v60 = vld [vmem:[#allocation145_spill] sm:$0xff]  ;;  %v14970_v51 = vpop.f32.mrf.mxu1  ;;  %v18013_v1 = vld [vmem:[#allocation252_spill] sm:$0xff] }
 0x40d   : > { %6451 = vmatprep.mubr.bf16.mxu0 %v17980_v10  ;;  %18002 = vst [vmem:[#allocation82_spill] sm:$0xff] %v14970_v51  ;;  %v14972_v10 = vpop.f32.mrf.mxu0  ;;  %v15003_v51 = vld [vmem:[%s8930_s16 + $0x90] sm:$0xff] }
 0x40e   : > { %18003 = vst [vmem:[#allocation166_spill] sm:$0xff] %v14972_v10 }
 0x40f   : > { %v14976_v23 = vpop.f32.mrf.mxu0 }
 0x410   : > { %18005 = vst [vmem:[#allocation27_spill] sm:$0xff] %v14976_v23 }
 0x411   : > { %6565 = vmatmul.mubr.bf16.gmra.mxu1 %v17988_v59 }
 0x412   : > { %6574 = vmatprep.mubr.bf16.mxu1 %v17992_v38  ;;  %v6993_v38 = vld [vmem:[%s8930_s16 + $0x10] sm:$0xff] }
 0x414   : > { %6452 = vmatmul.mubr.bf16.gmra.mxu0 %v17986_v18  ;;  %v18007_v18 = vld [vmem:[#allocation61_spill] sm:$0xff] }
 0x415   : > { %6461 = vmatprep.mubr.bf16.mxu0 %v17990_v39  ;;  %v2215_v59 = vsub.s32 4, %v18007_v18  ;;  %v14982_v39 = vpop.f32.mrf.mxu0 }
 0x416   : > { %18008 = vst [vmem:[#allocation32_spill] sm:$0xff] %v14982_v39  ;;  %v15000_v39 = vld [vmem:[%s8930_s16 + $0x70] sm:$0xff] }
 0x417   : > { %v14996_v23 = vpop.f32.mrf.mxu0 }
 0x418   : > { %18010 = vst [vmem:[#allocation106_spill] sm:$0xff] %v14996_v23  ;;  %v15015_v23 = vrot.slane %v18013_v1, %v2215_v59  ;;  %v7083_v59 = vunpack.c.l.bf16 %v15000_v39 }
 0x419   : > { %6575 = vmatmul.mubr.bf16.gmra.mxu1 %v17857_v62  ;;  %v15017_v24 = vpop.f32.mrf.mxu0 }
 0x41a   : > { %6584 = vmatprep.mubr.bf16.mxu1 %v18001_v60  ;;  %v2219_v60 = vsub.s32 5, %v18007_v18  ;;  %v7059_v18 = vunpack.c.l.bf16 %v6993_v38  ;;  %18014 = vst [vmem:[#allocation174_spill] sm:$0xff] %v15017_v24  ;;  %v7084_v24 = vunpack.c.h.bf16 %v15000_v39 }
 0x41b   : > { %v15039_v42 = vpop.f32.mrf.mxu0 }
 0x41c   : > { %6462 = vmatmul.mubr.bf16.gmra.mxu0 %v17856_v27  ;;  %v14974_v27 = vpop.f32.mrf.mxu1  ;;  %v15029_v6 = vrot.slane %v18013_v1, %v2219_v60  ;;  %18016 = vst [vmem:[#allocation193_spill] sm:$0xff] %v15039_v42  ;;  %v15046_v1 = vld [vmem:[%s8930_s16 + $0x150] sm:$0xff]  ;;  %v8486_v42 = vld [vmem:[#allocation12 + $0x20] sm:$0xff] }
 0x41d   : > { %6471 = vmatprep.mubr.bf16.mxu0 %v17999_v13  ;;  %18004 = vst [vmem:[#allocation169_spill] sm:$0xff] %v14974_v27  ;;  %v14986_v13 = vld [vmem:[%s8930_s16 + $0x30] sm:$0xff]  ;;  %18017 = vst [vmem:[#allocation172_spill] sm:$0xff] %v15046_v1  ;;  %v15057_v44 = vpop.f32.mrf.mxu0 }
 0x41e   : > { %v14978_v62 = vpop.f32.mrf.mxu1  ;;  %18019 = vst [vmem:[#allocation185_spill] sm:$0xff] %v15057_v44  ;;  %v5738_v29 = vadd.f32 %v14856_v56, %v15029_v6  ;;  %v8488_v56 = vld [vmem:[#allocation12 + $0x60] sm:$0xff] }
 0x41f   : > { %18006 = vst [vmem:[#allocation88_spill] sm:$0xff] %v14978_v62  ;;  %v14994_v62 = vld [vmem:[%s8930_s16 + $0x50] sm:$0xff]  ;;  %v15074_v20 = vpop.f32.mrf.mxu0 }
 0x420   : > { %v14990_v27 = vpop.f32.mrf.mxu1  ;;  %v7075_v37 = vunpack.c.l.bf16 %v14994_v62  ;;  %18021 = vst [vmem:[#allocation197_spill] sm:$0xff] %v15074_v20  ;;  %v8489_v20 = vld [vmem:[#allocation12 + $0x68] sm:$0xff]  ;;  %v5851_v11 = vadd.f32 %v14858_v49, %v5738_v29  ;;  %v18028_v29 = vunpack.c.h.bf16 %v15003_v51 }
 0x421   : > { %6585 = vmatmul.mubr.bf16.gmra.mxu1 %v17869_v53  ;;  %18009 = vst [vmem:[#allocation102_spill] sm:$0xff] %v14990_v27  ;;  %v7060_v53 = vunpack.c.h.bf16 %v6993_v38  ;;  %v7067_v27 = vunpack.c.l.bf16 %v14986_v13  ;;  %v15023_v38 = vld [vmem:[%s8930_s16 + $0xf0] sm:$0xff]  ;;  %v15093_v44 = vmul.f32 %v8489_v20, %v17789_v33  ;;  %v15103_v36 = vpop.f32.mrf.mxu0 }
 0x422   : > { %v15005_v10 = vpop.f32.mrf.mxu1  ;;  %18024 = vst [vmem:[#allocation51_spill] sm:$0xff] %v15103_v36  ;;  %v8491_v20 = vld [vmem:[#allocation12 + $0xa8] sm:$0xff]  ;;  %v15129_v36 = vmul.f32 %v17773_v14, %v7083_v59  ;;  %v8496_v59 = vld [vmem:[#allocation12 + $0x160] sm:$0xff] }
 0x423   : > { %18012 = vst [vmem:[#allocation108_spill] sm:$0xff] %v15005_v10  ;;  %v7076_v10 = vunpack.c.h.bf16 %v14994_v62  ;;  %v5736_v62 = vadd.f32 %v14850_v22, %v15015_v23  ;;  %v15068_v22 = vmul.f32 %v8486_v42, %v17789_v33  ;;  %v15086_v42 = vmul.f32 %v17773_v14, %v7067_v27  ;;  %v5961_v1 = vpop.f32.mrf.mxu0 }
 0x424   : > { %6472 = vmatmul.mubr.bf16.gmra.mxu0 %v17868_v17  ;;  %v18011_v17 = vld [vmem:[#allocation152_spill] sm:$0xff]  ;;  %v15031_v31 = vpop.f32.mrf.mxu1 }
 0x425   : > { %6481 = vmatprep.mubr.bf16.mxu0 %v17874_v28  ;;  %6594 = vmatprep.mubr.bf16.mxu1 %v18011_v17  ;;  %v15009_v28 = vld [vmem:[%s8930_s16 + $0xb0] sm:$0xff]  ;;  %v7068_v17 = vunpack.c.h.bf16 %v14986_v13  ;;  %18015 = vst [vmem:[#allocation183_spill] sm:$0xff] %v15031_v31  ;;  %v7091_v13 = vunpack.c.l.bf16 %v15003_v51  ;;  %v5849_v27 = vadd.f32 %v14854_v16, %v5736_v62  ;;  %v15120_v16 = vmul.f32 %v17773_v14, %v7076_v10  ;;  %v8492_v62 = vld [vmem:[#allocation12 + $0xe0] sm:$0xff] }
 0x426   : > { %v15048_v31 = vpop.f32.mrf.mxu1  ;;  %v8497_v51 = vld [vmem:[#allocation12 + $0x168] sm:$0xff] }
 0x427   : > { %18018 = vst [vmem:[#allocation177_spill] sm:$0xff] %v15048_v31  ;;  %v8487_v31 = vld [vmem:[#allocation12 + $0x28] sm:$0xff]  ;;  %v15143_v34 = vmul.f32 %v17773_v14, %v7091_v13 }
 0x428   : > { %v15065_v30 = vpop.f32.mrf.mxu1  ;;  %v15077_v39 = vmul.f32 %v8487_v31, %v17789_v33  ;;  %v15096_v31 = vmul.f32 %v17773_v14, %v7068_v17  ;;  %v15112_v17 = vmul.f32 %v8491_v20, %v17789_v33  ;;  %v8493_v20 = vld [vmem:[#allocation12 + $0xe8] sm:$0xff] }
 0x429   : > { %6595 = vmatmul.mubr.bf16.gmra.mxu1 %v17881_v26  ;;  %18020 = vst [vmem:[#allocation190_spill] sm:$0xff] %v15065_v30  ;;  %v15080_v26 = vmul.f32 %v17773_v14, %v7060_v53  ;;  %v15083_v30 = vmul.f32 %v8488_v56, %v17789_v33  ;;  %v15100_v56 = vld [vmem:[%s8930_s16 + $0x170] sm:$0xff]  ;;  %v5742_v53 = vadd.f32 %v14866_v8, %v15029_v6  ;;  %18026 = vst [vmem:[#allocation87_spill] sm:$0xff] %v15143_v34 }
 0x42a   : > { %v15090_v60 = vpop.f32.mrf.mxu1  ;;  %18023 = vst [vmem:[#allocation180_spill] sm:$0xff] %v15100_v56  ;;  %v15132_v49 = vmul.f32 %v8493_v20, %v17789_v33  ;;  %v15135_v8 = vmul.f32 %v17773_v14, %v7084_v24  ;;  %v5746_v20 = vadd.f32 %v14872_v58, %v15015_v23  ;;  %v15149_v24 = vmul.f32 %v8495_v45, %v17789_v33 }
 0x42b   : > { %18022 = vst [vmem:[#allocation176_spill] sm:$0xff] %v15090_v60  ;;  %v15109_v60 = vmul.f32 %v17773_v14, %v7075_v37  ;;  %v15126_v37 = vld [vmem:[%s8930_s16 + $0x190] sm:$0xff]  ;;  %v5855_v13 = vadd.f32 %v14869_v54, %v5742_v53  ;;  %v15159_v56 = vmul.f32 %v8496_v59, %v17789_v33  ;;  %v18031_v58 = vunpack.c.l.bf16 %v15009_v28 }
 0x42c   : > { %6482 = vmatmul.mubr.bf16.gmra.mxu0 %v17880_v43  ;;  %v15071_v43 = vmul.f32 %v17773_v14, %v7059_v18  ;;  %v5740_v18 = vadd.f32 %v14861_v21, %v15015_v23  ;;  %v15106_v21 = vmul.f32 %v8490_v5, %v17789_v33  ;;  %v15117_v47 = vpop.f32.mrf.mxu1  ;;  %v15123_v5 = vmul.f32 %v8492_v62, %v17789_v33 }
 0x42d   : > { %18025 = vst [vmem:[#allocation28_spill] sm:$0xff] %v15117_v47  ;;  %v8494_v47 = vld [vmem:[#allocation12 + $0x120] sm:$0xff]  ;;  %18027 = vst [vmem:[#allocation33_spill] sm:$0xff] %v15149_v24  ;;  %v15164_v45 = vmul.f32 %v17773_v14, %v18031_v58  ;;  %v5963_v24 = vpop.f32.mrf.mxu0 }
 0x42e   : > { %v5853_v10 = vadd.f32 %v14864_v55, %v5740_v18  ;;  %v15140_v62 = vmul.f32 %v8494_v47, %v17789_v33  ;;  %v15154_v55 = vmul.f32 %v17773_v14, %v18028_v29  ;;  %v5962_v18 = vadd.f32 %v5961_v1, %v5849_v27  ;;  %v6074_v34 = vpop.f32.mrf.mxu1  ;;  %18030 = vst [vmem:[#allocation182_spill] sm:$0xff] %v15159_v56  ;;  %v8498_v1 = vld [vmem:[#allocation12 + $0x1a0] sm:$0xff]  ;;  %v8499_v56 = vld [vmem:[#allocation12 + $0x1a8] sm:$0xff] }
 0x42f   : > { %18032 = vst [vmem:[#allocation93_spill] sm:$0xff] %v15164_v45  ;;  %v15167_v29 = vmul.f32 %v8497_v51, %v17789_v33  ;;  %v18033_v47 = vunpack.c.h.bf16 %v15009_v28  ;;  %v15175_v53 = vmul.f32 %v8498_v1, %v17789_v33  ;;  %v18036_v27 = vunpack.c.l.bf16 %v15012_v50 }
 0x430   : > { %18029 = vst [vmem:[#allocation181_spill] sm:$0xff] %v15154_v55  ;;  %v6075_v58 = vadd.f32 %v6074_v34, %v5962_v18  ;;  %v5964_v45 = vadd.f32 %v5963_v24, %v5851_v11  ;;  %v6076_v55 = vpop.f32.mrf.mxu1  ;;  %v15183_v51 = vmul.f32 %v8499_v56, %v17789_v33  ;;  %v18037_v28 = vunpack.c.h.bf16 %v15012_v50 }
 0x431   : > { %v15172_v54 = vmul.f32 %v17773_v14, %v18033_v47  ;;  %18035 = vst [vmem:[#allocation45_spill] sm:$0xff] %v15175_v53  ;;  %v15180_v59 = vmul.f32 %v17773_v14, %v18036_v27  ;;  %v5859_v1 = vadd.f32 %v14874_v15, %v5746_v20  ;;  %v5748_v53 = vadd.f32 %v14876_v25, %v15029_v6  ;;  %v8500_v27 = vld [vmem:[#allocation12 + $0x1e0] sm:$0xff] }
 0x432   : > { %v15188_v47 = vmul.f32 %v17773_v14, %v18037_v28  ;;  %v15194_v34 = vmul.f32 %v8500_v27, %v17789_v33  ;;  %v18040_v11 = vunpack.c.l.bf16 %v15023_v38  ;;  %v6739_v50 = vmul.f32 %v12944_v19, %v6075_v58  ;;  %v6078_v28 = vpop.f32.mrf.mxu1 }
 0x433   : > { %18034 = vst [vmem:[#allocation103_spill] sm:$0xff] %v15172_v54  ;;  %v5965_v54 = vpop.f32.mrf.mxu0  ;;  %v6077_v24 = vadd.f32 %v6076_v55, %v5964_v45  ;;  %v5750_v25 = vadd.f32 %v14881_v2, %v15015_v23  ;;  %v18042_v27 = vunpack.c.h.bf16 %v15023_v38  ;;  %v5861_v38 = vadd.f32 %v14878_v57, %v5748_v53 }
 0x434   : > { %18038 = vst [vmem:[#allocation115_spill] sm:$0xff] %v15188_v47  ;;  %18039 = vst [vmem:[#allocation26_spill] sm:$0xff] %v15194_v34  ;;  %v15199_v56 = vmul.f32 %v17773_v14, %v18040_v11  ;;  %v5966_v18 = vadd.f32 %v5965_v54, %v5853_v10  ;;  %v8501_v47 = vld [vmem:[#allocation12 + $0x1e8] sm:$0xff]  ;;  %v8502_v11 = vld [vmem:[#allocation12 + $0x220] sm:$0xff]  ;;  %v18045_v10 = vunpack.c.l.bf16 %v15026_v61  ;;  %v6867_v45 = vsub.f32 %v15068_v22, %v6739_v50 }
 0x435   : > { %v15203_v15 = vmul.f32 %v8501_v47, %v17789_v33  ;;  %v5967_v20 = vpop.f32.mrf.mxu0  ;;  %v15210_v34 = vmul.f32 %v17773_v14, %v18042_v27  ;;  %v6740_v54 = vmul.f32 %v12944_v19, %v6077_v24  ;;  %v6080_v47 = vpop.f32.mrf.mxu1  ;;  %v5752_v27 = vadd.f32 %v14888_v46, %v15029_v6 }
 0x436   : > { %18041 = vst [vmem:[#allocation52_spill] sm:$0xff] %v15199_v56  ;;  %v15213_v56 = vmul.f32 %v8502_v11, %v17789_v33  ;;  %v15218_v55 = vmul.f32 %v17773_v14, %v18045_v10  ;;  %v6079_v2 = vadd.f32 %v6078_v28, %v5966_v18  ;;  %v5968_v58 = vadd.f32 %v5967_v20, %v5855_v13  ;;  %v8503_v11 = vld [vmem:[#allocation12 + $0x228] sm:$0xff] }
 0x437   : > { %18043 = vst [vmem:[#allocation90_spill] sm:$0xff] %v15210_v34  ;;  %v5971_v34 = vpop.f32.mrf.mxu0  ;;  %v7156_v10 = vunpack.c.h.bf16 %v15126_v37  ;;  %v6868_v22 = vsub.f32 %v15077_v39, %v6740_v54  ;;  %v6084_v24 = vpop.f32.mrf.mxu1  ;;  %v5863_v57 = vadd.f32 %v14885_v7, %v5750_v25  ;;  %v5756_v46 = vadd.f32 %v14892_v48, %v15015_v23 }
 0x438   : > { %18044 = vst [vmem:[#allocation35_spill] sm:$0xff] %v15213_v56  ;;  %18046 = vst [vmem:[#allocation47_spill] sm:$0xff] %v15218_v55  ;;  %v15226_v56 = vmul.f32 %v8503_v11, %v17789_v33  ;;  %v7316_v55 = vadd.f32 %v15071_v43, %v6867_v45  ;;  %v6747_v50 = vmul.f32 %v12944_v19, %v6079_v2  ;;  %v18047_v28 = vunpack.c.h.bf16 %v15026_v61 }
 0x439   : > { %v6081_v13 = vadd.f32 %v6080_v47, %v5968_v58  ;;  %v5972_v53 = vadd.f32 %v5971_v34, %v5859_v1  ;;  %v5973_v18 = vpop.f32.mrf.mxu0  ;;  %v7317_v43 = vadd.f32 %v15080_v26, %v6868_v22  ;;  %v6086_v2 = vpop.f32.mrf.mxu1  ;;  %v5865_v7 = vadd.f32 %v14890_v12, %v5752_v27  ;;  %v8504_v1 = vld [vmem:[#allocation12 + $0x260] sm:$0xff] }
 0x43a   : > { %v15238_v20 = vmul.f32 %v17773_v14, %v18047_v28  ;;  %7444 = vst [vmem:[#allocation12 + $0x20] sm:$0xff] %v7316_v55  ;;  %v6875_v39 = vsub.f32 %v15083_v30, %v6747_v50  ;;  %v5974_v54 = vadd.f32 %v5973_v18, %v5861_v38  ;;  %v15245_v34 = vmul.f32 %v8504_v1, %v17789_v33 }
 0x43b   : > { %v6748_v45 = vmul.f32 %v12944_v19, %v6081_v13  ;;  %v6085_v25 = vadd.f32 %v6084_v24, %v5972_v53  ;;  %v5975_v48 = vpop.f32.mrf.mxu0  ;;  %v18048_v61 = vunpack.c.l.bf16 %v15037_v52  ;;  %7445 = vst [vmem:[#allocation12 + $0x28] sm:$0xff] %v7317_v43  ;;  %v6088_v38 = vpop.f32.mrf.mxu1  ;;  %v5869_v12 = vadd.f32 %v14894_v4, %v5756_v46  ;;  %v8505_v53 = vld [vmem:[#allocation12 + $0x268] sm:$0xff] }
 0x43c   : > { %v7324_v30 = vadd.f32 %v15086_v42, %v6875_v39  ;;  %v6087_v58 = vadd.f32 %v6086_v2, %v5974_v54  ;;  %v5976_v47 = vadd.f32 %v5975_v48, %v5863_v57  ;;  %v5758_v27 = vadd.f32 %v14896_v63, %v15029_v6 }
 0x43d   : > { %v15250_v55 = vmul.f32 %v17773_v14, %v18048_v61  ;;  %v6876_v26 = vsub.f32 %v15093_v44, %v6748_v45  ;;  %v5760_v11 = vadd.f32 %v14903_v3, %v15015_v23  ;;  %v6755_v22 = vmul.f32 %v12944_v19, %v6085_v25  ;;  %v5977_v50 = vpop.f32.mrf.mxu0  ;;  %v6090_v57 = vpop.f32.mrf.mxu1 }
 0x43e   : > { %7452 = vst [vmem:[#allocation12 + $0x60] sm:$0xff] %v7324_v30  ;;  %v6756_v42 = vmul.f32 %v12944_v19, %v6087_v58  ;;  %v6089_v44 = vadd.f32 %v6088_v38, %v5976_v47  ;;  %v5978_v24 = vadd.f32 %v5977_v50, %v5865_v7  ;;  %v5762_v4 = vadd.f32 %v14908_v9, %v15029_v6 }
 0x43f   : > { %v7325_v13 = vadd.f32 %v15096_v31, %v6876_v26  ;;  %v6883_v46 = vsub.f32 %v15106_v21, %v6755_v22  ;;  %v5981_v63 = vpop.f32.mrf.mxu0  ;;  %v15266_v3 = vmul.f32 %v8505_v53, %v17789_v33  ;;  %v18049_v18 = vunpack.c.h.bf16 %v15037_v52  ;;  %v6094_v9 = vpop.f32.mrf.mxu1 }
 0x440   : > { %v6884_v31 = vsub.f32 %v15112_v17, %v6756_v42  ;;  %v6763_v43 = vmul.f32 %v12944_v19, %v6089_v44  ;;  %v6091_v39 = vadd.f32 %v6090_v57, %v5978_v24  ;;  %v5982_v45 = vadd.f32 %v5981_v63, %v5869_v12  ;;  %v18054_v63 = vld [vmem:[#allocation156_spill] sm:$0xff] }
 0x441   : > { %v15271_v28 = vmul.f32 %v17773_v14, %v18049_v18  ;;  %7453 = vst [vmem:[#allocation12 + $0x68] sm:$0xff] %v7325_v13  ;;  %v5871_v21 = vadd.f32 %v14899_v35, %v5758_v27  ;;  %v5873_v54 = vadd.f32 %v14906_v40, %v5760_v11  ;;  %v5766_v2 = vadd.f32 %v14915_v41, %v15015_v23  ;;  %v5983_v7 = vpop.f32.mrf.mxu0  ;;  %v6096_v61 = vpop.f32.mrf.mxu1  ;;  %v8506_v41 = vld [vmem:[#allocation12 + $0x2a0] sm:$0xff]  ;;  %v18051_v11 = vld [vmem:[#allocation172_spill] sm:$0xff] }
 0x442   : > { %v7332_v52 = vadd.f32 %v15109_v60, %v6883_v46  ;;  %v7333_v25 = vadd.f32 %v15120_v16, %v6884_v31  ;;  %v6891_v48 = vsub.f32 %v15123_v5, %v6763_v43  ;;  %v6764_v17 = vmul.f32 %v12944_v19, %v6091_v39  ;;  %v8507_v13 = vld [vmem:[#allocation12 + $0x2a8] sm:$0xff]  ;;  %v18055_v18 = vld [vmem:[#allocation79_spill] sm:$0xff] }
 0x443   : > { %v6095_v1 = vadd.f32 %v6094_v9, %v5982_v45  ;;  %v5875_v30 = vadd.f32 %v14910_v32, %v5762_v4  ;;  %v5768_v35 = vadd.f32 %v14920_v0, %v15029_v6  ;;  %v5984_v40 = vadd.f32 %v5983_v7, %v5871_v21  ;;  %v5985_v26 = vpop.f32.mrf.mxu0  ;;  %v6098_v38 = vpop.f32.mrf.mxu1  ;;  %v18050_v32 = vld [vmem:[#allocation105_spill] sm:$0xff]  ;;  %v18053_v4 = vld [vmem:[#allocation154_spill] sm:$0xff]  ;;  %v18056_v45 = vld [vmem:[#allocation87_spill] sm:$0xff] }
 0x444   : > { %7460 = vst [vmem:[#allocation12 + $0xa0] sm:$0xff] %v7332_v52  ;;  %v15287_v60 = vmul.f32 %v8506_v41, %v17789_v33  ;;  %7461 = vst [vmem:[#allocation12 + $0xa8] sm:$0xff] %v7333_v25  ;;  %v7340_v16 = vadd.f32 %v15129_v36, %v6891_v48  ;;  %v6892_v5 = vsub.f32 %v15132_v49, %v6764_v17  ;;  %v18052_v22 = vunpack.c.l.bf16 %v18051_v11  ;;  %v18058_v7 = vld [vmem:[#allocation33_spill] sm:$0xff] }
 0x445   : > { %v6771_v58 = vmul.f32 %v12944_v19, %v6095_v1  ;;  %v5986_v47 = vadd.f32 %v5985_v26, %v5873_v54  ;;  %v5879_v12 = vadd.f32 %v18050_v32, %v5766_v2  ;;  %v6097_v27 = vadd.f32 %v6096_v61, %v5984_v40  ;;  %v5987_v0 = vpop.f32.mrf.mxu0  ;;  %v6100_v57 = vpop.f32.mrf.mxu1  ;;  %v18057_v2 = vld [vmem:[#allocation160_spill] sm:$0xff]  ;;  %v8508_v61 = vld [vmem:[#allocation12 + $0x2e0] sm:$0xff] }
 0x446   : > { %v15296_v50 = vmul.f32 %v17773_v14, %v18052_v22  ;;  %v15299_v42 = vmul.f32 %v8507_v13, %v17789_v33  ;;  %7468 = vst [vmem:[#allocation12 + $0xe0] sm:$0xff] %v7340_v16  ;;  %v7341_v36 = vadd.f32 %v15135_v8, %v6892_v5  ;;  %v5988_v24 = vadd.f32 %v5987_v0, %v5875_v30  ;;  %v18064_v0 = vld [vmem:[#allocation181_spill] sm:$0xff] }
 0x447   : > { %v6899_v49 = vsub.f32 %v15140_v62, %v6771_v58  ;;  %v6099_v44 = vadd.f32 %v6098_v38, %v5986_v47  ;;  %v5881_v46 = vadd.f32 %v18053_v4, %v5768_v35  ;;  %v5770_v53 = vadd.f32 %v18054_v63, %v15015_v23  ;;  %v5991_v39 = vpop.f32.mrf.mxu0  ;;  %v6104_v54 = vpop.f32.mrf.mxu1  ;;  %v18060_v35 = vld [vmem:[#allocation182_spill] sm:$0xff]  ;;  %v18062_v38 = vld [vmem:[#allocation107_spill] sm:$0xff]  ;;  %v18065_v13 = vld [vmem:[#allocation93_spill] sm:$0xff] }
 0x448   : > { %v5772_v31 = vadd.f32 %v18055_v18, %v15029_v6  ;;  %v6772_v43 = vmul.f32 %v12944_v19, %v6097_v27  ;;  %7469 = vst [vmem:[#allocation12 + $0xe8] sm:$0xff] %v7341_v36  ;;  %v6101_v62 = vadd.f32 %v6100_v57, %v5988_v24  ;;  %v5992_v21 = vadd.f32 %v5991_v39, %v5879_v12  ;;  %v18061_v58 = vld [vmem:[#allocation158_spill] sm:$0xff]  ;;  %v18063_v12 = vld [vmem:[#allocation164_spill] sm:$0xff]  ;;  %v18067_v63 = vld [vmem:[#allocation165_spill] sm:$0xff] }
 0x449   : > { %v7348_v9 = vadd.f32 %v18056_v45, %v6899_v49  ;;  %v6779_v8 = vmul.f32 %v12944_v19, %v6099_v44  ;;  %v5776_v52 = vadd.f32 %v18057_v2, %v15015_v23  ;;  %v5993_v48 = vpop.f32.mrf.mxu0  ;;  %v18059_v17 = vunpack.c.h.bf16 %v18051_v11  ;;  %v6106_v5 = vpop.f32.mrf.mxu1  ;;  %v18066_v4 = vld [vmem:[#allocation162_spill] sm:$0xff] }
 0x44a   : > { %v6900_v25 = vsub.f32 %v18058_v7, %v6772_v43  ;;  %v15320_v30 = vmul.f32 %v8508_v61, %v17789_v33  ;;  %v6780_v26 = vmul.f32 %v12944_v19, %v6101_v62  ;;  %v6105_v41 = vadd.f32 %v6104_v54, %v5992_v21  ;;  %v18068_v43 = vld [vmem:[#allocation180_spill] sm:$0xff] }
 0x44b   : > { %v15317_v1 = vmul.f32 %v17773_v14, %v18059_v17  ;;  %7476 = vst [vmem:[#allocation12 + $0x120] sm:$0xff] %v7348_v9  ;;  %v6907_v40 = vsub.f32 %v18060_v35, %v6779_v8  ;;  %v5994_v16 = vadd.f32 %v5993_v48, %v5881_v46  ;;  %v5883_v47 = vadd.f32 %v18061_v58, %v5770_v53  ;;  %v5995_v22 = vpop.f32.mrf.mxu0  ;;  %v6108_v57 = vpop.f32.mrf.mxu1  ;;  %v18070_v9 = vld [vmem:[#allocation103_spill] sm:$0xff]  ;;  %v18071_v8 = vld [vmem:[#allocation45_spill] sm:$0xff]  ;;  %v8509_v17 = vld [vmem:[#allocation12 + $0x2e8] sm:$0xff] }
 0x44c   : > { %v5885_v32 = vadd.f32 %v18062_v38, %v5772_v31  ;;  %v5778_v27 = vadd.f32 %v18063_v12, %v15029_v6  ;;  %v7349_v11 = vadd.f32 %v18064_v0, %v6900_v25  ;;  %v6908_v49 = vsub.f32 %v15167_v29, %v6780_v26 }
 0x44d   : > { %v7356_v36 = vadd.f32 %v18065_v13, %v6907_v40  ;;  %v6787_v44 = vmul.f32 %v12944_v19, %v6105_v41  ;;  %v6107_v24 = vadd.f32 %v6106_v5, %v5994_v16  ;;  %v5889_v46 = vadd.f32 %v18066_v4, %v5776_v52  ;;  %v5997_v31 = vpop.f32.mrf.mxu0  ;;  %v6110_v2 = vpop.f32.mrf.mxu1  ;;  %v18072_v52 = vld [vmem:[#allocation81_spill] sm:$0xff]  ;;  %v18077_v13 = vld [vmem:[#allocation115_spill] sm:$0xff]  ;;  %v18079_v4 = vld [vmem:[#allocation26_spill] sm:$0xff] }
 0x44e   : > { %v5780_v53 = vadd.f32 %v18067_v63, %v15015_v23  ;;  %7477 = vst [vmem:[#allocation12 + $0x128] sm:$0xff] %v7349_v11  ;;  %v5996_v18 = vadd.f32 %v5995_v22, %v5883_v47  ;;  %v18069_v39 = vunpack.c.l.bf16 %v18068_v43  ;;  %v7357_v29 = vadd.f32 %v18070_v9, %v6908_v49  ;;  %v18074_v47 = vld [vmem:[#allocation83_spill] sm:$0xff] }
 0x44f   : > { %7484 = vst [vmem:[#allocation12 + $0x160] sm:$0xff] %v7356_v36  ;;  %v6915_v62 = vsub.f32 %v18071_v8, %v6787_v44  ;;  %v6788_v21 = vmul.f32 %v12944_v19, %v6107_v24  ;;  %v5998_v54 = vadd.f32 %v5997_v31, %v5885_v32  ;;  %v5891_v7 = vadd.f32 %v18072_v52, %v5778_v27  ;;  %v6001_v48 = vpop.f32.mrf.mxu0  ;;  %v6114_v58 = vpop.f32.mrf.mxu1  ;;  %v18075_v32 = vld [vmem:[#allocation168_spill] sm:$0xff] }
 0x450   : > { %v15338_v45 = vmul.f32 %v17773_v14, %v18069_v39  ;;  %v6109_v25 = vadd.f32 %v6108_v57, %v5996_v18  ;;  %v15345_v61 = vmul.f32 %v8509_v17, %v17789_v33  ;;  %v18073_v35 = vunpack.c.h.bf16 %v18068_v43  ;;  %7485 = vst [vmem:[#allocation12 + $0x168] sm:$0xff] %v7357_v29  ;;  %v18076_v27 = vld [vmem:[#allocation84_spill] sm:$0xff] }
 0x451   : > { %v7364_v26 = vadd.f32 %v15180_v59, %v6915_v62  ;;  %v6916_v41 = vsub.f32 %v15183_v51, %v6788_v21  ;;  %v6111_v16 = vadd.f32 %v6110_v2, %v5998_v54  ;;  %v6002_v5 = vadd.f32 %v6001_v48, %v5889_v46  ;;  %v6003_v22 = vpop.f32.mrf.mxu0  ;;  %v6116_v44 = vpop.f32.mrf.mxu1  ;;  %v18078_v24 = vld [vmem:[#allocation92_spill] sm:$0xff]  ;;  %v18081_v21 = vld [vmem:[#allocation171_spill] sm:$0xff]  ;;  %v18082_v2 = vld [vmem:[#allocation89_spill] sm:$0xff] }
 0x452   : > { %v15350_v40 = vmul.f32 %v17773_v14, %v18073_v35  ;;  %v5893_v38 = vadd.f32 %v18074_v47, %v5780_v53  ;;  %v5782_v12 = vadd.f32 %v18075_v32, %v15029_v6  ;;  %v5786_v0 = vadd.f32 %v18076_v27, %v15015_v23  ;;  %v8510_v53 = vld [vmem:[#allocation12 + $0x320] sm:$0xff]  ;;  %v18084_v48 = vld [vmem:[#allocation52_spill] sm:$0xff] }
 0x453   : > { %v6795_v11 = vmul.f32 %v12944_v19, %v6109_v25  ;;  %7492 = vst [vmem:[#allocation12 + $0x1a0] sm:$0xff] %v7364_v26  ;;  %v7365_v36 = vadd.f32 %v18077_v13, %v6916_v41  ;;  %v6796_v59 = vmul.f32 %v12944_v19, %v6111_v16  ;;  %v6115_v51 = vadd.f32 %v6114_v58, %v6002_v5  ;;  %v6005_v63 = vpop.f32.mrf.mxu0  ;;  %v6118_v62 = vpop.f32.mrf.mxu1  ;;  %v18085_v26 = vld [vmem:[#allocation90_spill] sm:$0xff]  ;;  %v18086_v16 = vld [vmem:[#allocation35_spill] sm:$0xff] }
 0x454   : > { %v6004_v49 = vadd.f32 %v6003_v22, %v5891_v7  ;;  %v5788_v57 = vadd.f32 %v18078_v24, %v15029_v6  ;;  %v15366_v18 = vmul.f32 %v8510_v53, %v17789_v33  ;;  %v18080_v31 = vunpack.c.l.bf16 %v15126_v37  ;;  %v18083_v7 = vld [vmem:[#allocation117_spill] sm:$0xff]  ;;  %v8511_v22 = vld [vmem:[#allocation12 + $0x328] sm:$0xff]  ;;  %v18092_v37 = vld [vmem:[#allocation27_spill] sm:$0xff] }
 0x455   : > { %v6923_v46 = vsub.f32 %v18079_v4, %v6795_v11  ;;  %7493 = vst [vmem:[#allocation12 + $0x1a8] sm:$0xff] %v7365_v36  ;;  %v6924_v39 = vsub.f32 %v15203_v15, %v6796_v59  ;;  %v6803_v9 = vmul.f32 %v12944_v19, %v6115_v51  ;;  %v6006_v8 = vadd.f32 %v6005_v63, %v5893_v38  ;;  %v6007_v35 = vpop.f32.mrf.mxu0  ;;  %v6120_v47 = vpop.f32.mrf.mxu1  ;;  %v18087_v38 = vld [vmem:[#allocation24_spill] sm:$0xff]  ;;  %v18089_v36 = vld [vmem:[#allocation47_spill] sm:$0xff] }
 0x456   : > { %v15371_v43 = vmul.f32 %v17773_v14, %v18080_v31  ;;  %v6117_v29 = vadd.f32 %v6116_v44, %v6004_v49  ;;  %v5895_v54 = vadd.f32 %v18081_v21, %v5782_v12  ;;  %v5899_v52 = vadd.f32 %v18082_v2, %v5786_v0  ;;  %v18088_v12 = vld [vmem:[#allocation166_spill] sm:$0xff]  ;;  %v8512_v31 = vld [vmem:[#allocation12 + $0x360] sm:$0xff]  ;;  %v15404_v21 = vld [vmem:[%s8930_s16 + $0x1b0] sm:$0xff] }
 0x457   : > { %v5790_v25 = vadd.f32 %v18083_v7, %v15015_v23  ;;  %v7372_v17 = vadd.f32 %v18084_v48, %v6923_v46  ;;  %v7373_v41 = vadd.f32 %v18085_v26, %v6924_v39  ;;  %v6931_v5 = vsub.f32 %v18086_v16, %v6803_v9  ;;  %v6011_v11 = vpop.f32.mrf.mxu0  ;;  %v6124_v24 = vpop.f32.mrf.mxu1 }
 0x458   : > { %v6804_v15 = vmul.f32 %v12944_v19, %v6117_v29  ;;  %v6119_v58 = vadd.f32 %v6118_v62, %v6006_v8  ;;  %v5901_v32 = vadd.f32 %v18087_v38, %v5788_v57  ;;  %v5792_v27 = vadd.f32 %v18088_v12, %v15029_v6  ;;  %v18090_v57 = vld [vmem:[#allocation82_spill] sm:$0xff] }
 0x459   : > { %7500 = vst [vmem:[#allocation12 + $0x1e0] sm:$0xff] %v7372_v17  ;;  %v6008_v0 = vadd.f32 %v6007_v35, %v5895_v54  ;;  %v15387_v13 = vmul.f32 %v8511_v22, %v17789_v33  ;;  %7501 = vst [vmem:[#allocation12 + $0x1e8] sm:$0xff] %v7373_v41  ;;  %v7380_v59 = vadd.f32 %v18089_v36, %v6931_v5  ;;  %v6013_v63 = vpop.f32.mrf.mxu0  ;;  %v6126_v62 = vpop.f32.mrf.mxu1  ;;  %v18091_v54 = vld [vmem:[#allocation169_spill] sm:$0xff]  ;;  %v18094_v41 = vld [vmem:[#allocation106_spill] sm:$0xff] }
 0x45a   : > { %v6932_v51 = vsub.f32 %v15226_v56, %v6804_v15  ;;  %v6811_v49 = vmul.f32 %v12944_v19, %v6119_v58  ;;  %v6012_v44 = vadd.f32 %v6011_v11, %v5899_v52  ;;  %v5903_v4 = vadd.f32 %v18090_v57, %v5790_v25  ;;  %v18093_v52 = vld [vmem:[#allocation32_spill] sm:$0xff]  ;;  %v18096_v36 = vld [vmem:[#allocation102_spill] sm:$0xff] }
 0x45b   : > { %v6121_v46 = vadd.f32 %v6120_v47, %v6008_v0  ;;  %v15396_v53 = vmul.f32 %v17773_v14, %v7156_v10  ;;  %v15399_v39 = vmul.f32 %v8512_v31, %v17789_v33  ;;  %7508 = vst [vmem:[#allocation12 + $0x220] sm:$0xff] %v7380_v59  ;;  %v6014_v8 = vadd.f32 %v6013_v63, %v5901_v32  ;;  %v6015_v48 = vpop.f32.mrf.mxu0  ;;  %v6128_v26 = vpop.f32.mrf.mxu1  ;;  %v8513_v47 = vld [vmem:[#allocation12 + $0x368] sm:$0xff] }
 0x45c   : > { %v7381_v56 = vadd.f32 %v15238_v20, %v6932_v51  ;;  %v6939_v9 = vsub.f32 %v15245_v34, %v6811_v49  ;;  %v6125_v29 = vadd.f32 %v6124_v24, %v6012_v44  ;;  %v5905_v2 = vadd.f32 %v18091_v54, %v5792_v27  ;;  %v18095_v11 = vld [vmem:[#allocation88_spill] sm:$0xff] }
 0x45d   : > { %v5796_v10 = vadd.f32 %v18092_v37, %v15015_v23  ;;  %v5798_v7 = vadd.f32 %v18093_v52, %v15029_v6  ;;  %v6812_v25 = vmul.f32 %v12944_v19, %v6121_v46  ;;  %v6127_v17 = vadd.f32 %v6126_v62, %v6014_v8  ;;  %v6017_v15 = vpop.f32.mrf.mxu0  ;;  %v6130_v0 = vpop.f32.mrf.mxu1  ;;  %v18098_v63 = vld [vmem:[#allocation108_spill] sm:$0xff]  ;;  %v18100_v37 = vld [vmem:[#allocation183_spill] sm:$0xff] }
 0x45e   : > { %7509 = vst [vmem:[#allocation12 + $0x228] sm:$0xff] %v7381_v56  ;;  %v7388_v20 = vadd.f32 %v15250_v55, %v6939_v9  ;;  %v6819_v34 = vmul.f32 %v12944_v19, %v6125_v29  ;;  %v6016_v35 = vadd.f32 %v6015_v48, %v5903_v4  ;;  %v5800_v16 = vadd.f32 %v18094_v41, %v15015_v23  ;;  %v18099_v56 = vld [vmem:[#allocation193_spill] sm:$0xff]  ;;  %v8514_v48 = vld [vmem:[#allocation12 + $0x3a0] sm:$0xff] }
 0x45f   : > { %v6940_v5 = vsub.f32 %v15266_v3, %v6812_v25  ;;  %v7163_v58 = vunpack.c.l.bf16 %v15404_v21  ;;  %v15419_v38 = vmul.f32 %v8513_v47, %v17789_v33  ;;  %v6820_v32 = vmul.f32 %v12944_v19, %v6127_v17  ;;  %v18097_v3 = vld [vmem:[#allocation174_spill] sm:$0xff]  ;;  %v6021_v44 = vpop.f32.mrf.mxu0  ;;  %v6134_v46 = vpop.f32.mrf.mxu1 }
 0x460   : > { %7516 = vst [vmem:[#allocation12 + $0x260] sm:$0xff] %v7388_v20  ;;  %v6947_v55 = vsub.f32 %v15287_v60, %v6819_v34  ;;  %v6129_v12 = vadd.f32 %v6128_v26, %v6016_v35  ;;  %v6018_v27 = vadd.f32 %v6017_v15, %v5905_v2  ;;  %v5909_v22 = vadd.f32 %v18095_v11, %v5796_v10  ;;  %v7049_v35 = vld [vmem:[%s8930_s16 + $0x1d0] sm:$0xff]  ;;  %v18101_v26 = vld [vmem:[#allocation177_spill] sm:$0xff] }
 0x461   : > { %v5911_v59 = vadd.f32 %v18096_v36, %v5798_v7  ;;  %v5802_v51 = vadd.f32 %v18097_v3, %v15029_v6  ;;  %v7389_v49 = vadd.f32 %v15271_v28, %v6940_v5  ;;  %v6948_v57 = vsub.f32 %v15299_v42, %v6820_v32  ;;  %v6023_v8 = vpop.f32.mrf.mxu0  ;;  %v6136_v2 = vpop.f32.mrf.mxu1  ;;  %v18103_v15 = vld [vmem:[#allocation197_spill] sm:$0xff] }
 0x462   : > { %v7396_v24 = vadd.f32 %v15296_v50, %v6947_v55  ;;  %v6827_v60 = vmul.f32 %v12944_v19, %v6129_v12  ;;  %v6131_v4 = vadd.f32 %v6130_v0, %v6018_v27  ;;  %v5913_v31 = vadd.f32 %v18098_v63, %v5800_v16  ;;  %v18102_v16 = vld [vmem:[#allocation185_spill] sm:$0xff]  ;;  %v18104_v0 = vld [vmem:[#allocation51_spill] sm:$0xff] }
 0x463   : > { %v5806_v9 = vadd.f32 %v18099_v56, %v15015_v23  ;;  %7517 = vst [vmem:[#allocation12 + $0x268] sm:$0xff] %v7389_v49  ;;  %v6022_v29 = vadd.f32 %v6021_v44, %v5909_v22  ;;  %v7164_v62 = vunpack.c.h.bf16 %v15404_v21  ;;  %v7397_v28 = vadd.f32 %v15317_v1, %v6948_v57  ;;  %v6025_v7 = vpop.f32.mrf.mxu0  ;;  %v6138_v17 = vpop.f32.mrf.mxu1  ;;  %v18105_v57 = vld [vmem:[#allocation190_spill] sm:$0xff] }
 0x464   : > { %7524 = vst [vmem:[#allocation12 + $0x2a0] sm:$0xff] %v7396_v24  ;;  %v6955_v50 = vsub.f32 %v15320_v30, %v6827_v60  ;;  %v6828_v42 = vmul.f32 %v12944_v19, %v6131_v4  ;;  %v6024_v54 = vadd.f32 %v6023_v8, %v5911_v59  ;;  %v5915_v10 = vadd.f32 %v18100_v37, %v5802_v51  ;;  %v7053_v24 = vld [vmem:[%s8930_s16 + $0x1f0] sm:$0xff] }
 0x465   : > { %v6135_v52 = vadd.f32 %v6134_v46, %v6022_v29  ;;  %v7292_v25 = vmul.f32 %v17773_v14, %v7163_v58  ;;  %v15441_v20 = vmul.f32 %v8514_v48, %v17789_v33  ;;  %7525 = vst [vmem:[#allocation12 + $0x2a8] sm:$0xff] %v7397_v28  ;;  %v6026_v34 = vadd.f32 %v6025_v7, %v5913_v31  ;;  %v6027_v55 = vpop.f32.mrf.mxu0  ;;  %v6140_v27 = vpop.f32.mrf.mxu1  ;;  %v18106_v4 = vld [vmem:[#allocation176_spill] sm:$0xff]  ;;  %v8516_v48 = vld [vmem:[#allocation12 + $0x3e0] sm:$0xff] }
 0x466   : > { %v7404_v1 = vadd.f32 %v15338_v45, %v6955_v50  ;;  %v6956_v30 = vsub.f32 %v15345_v61, %v6828_v42  ;;  %v6137_v21 = vadd.f32 %v6136_v2, %v6024_v54  ;;  %v5919_v41 = vadd.f32 %v18101_v26, %v5806_v9  ;;  %v18107_v8 = vld [vmem:[#allocation28_spill] sm:$0xff] }
 0x467   : > { %v5808_v5 = vadd.f32 %v18102_v16, %v15029_v6  ;;  %v5810_v58 = vadd.f32 %v18103_v15, %v15015_v23  ;;  %v6835_v47 = vmul.f32 %v12944_v19, %v6135_v52  ;;  %v6139_v32 = vadd.f32 %v6138_v17, %v6026_v34  ;;  %v6031_v36 = vpop.f32.mrf.mxu0  ;;  %v6144_v44 = vpop.f32.mrf.mxu1  ;;  %v8515_v52 = vld [vmem:[#allocation12 + $0x3a8] sm:$0xff] }
 0x468   : > { %7532 = vst [vmem:[#allocation12 + $0x2e0] sm:$0xff] %v7404_v1  ;;  %v7405_v45 = vadd.f32 %v15350_v40, %v6956_v30  ;;  %v6836_v61 = vmul.f32 %v12944_v19, %v6137_v21  ;;  %v6028_v12 = vadd.f32 %v6027_v55, %v5915_v10  ;;  %v5812_v11 = vadd.f32 %v18104_v0, %v15029_v6  ;;  %v8517_v16 = vld [vmem:[#allocation12 + $0x3e8] sm:$0xff] }
 0x469   : > { %v6963_v22 = vsub.f32 %v15366_v18, %v6835_v47  ;;  %v7171_v59 = vunpack.c.l.bf16 %v7049_v35  ;;  %v7172_v23 = vunpack.c.h.bf16 %v7049_v35  ;;  %v6843_v51 = vmul.f32 %v12944_v19, %v6139_v32  ;;  %v6033_v63 = vpop.f32.mrf.mxu0  ;;  %v6146_v29 = vpop.f32.mrf.mxu1 }
 0x46a   : > { %7533 = vst [vmem:[#allocation12 + $0x2e8] sm:$0xff] %v7405_v45  ;;  %v6964_v3 = vsub.f32 %v15387_v13, %v6836_v61  ;;  %v6141_v40 = vadd.f32 %v6140_v27, %v6028_v12  ;;  %v6032_v49 = vadd.f32 %v6031_v36, %v5919_v41  ;;  %v5921_v60 = vadd.f32 %v18105_v57, %v5808_v5 }
 0x46b   : > { %v5923_v46 = vadd.f32 %v18106_v4, %v5810_v58  ;;  %v7412_v6 = vadd.f32 %v15371_v43, %v6963_v22  ;;  %v7293_v18 = vmul.f32 %v17773_v14, %v7164_v62  ;;  %v6971_v56 = vsub.f32 %v15399_v39, %v6843_v51  ;;  %v6035_v54 = vpop.f32.mrf.mxu0  ;;  %v6148_v39 = vpop.f32.mrf.mxu1 }
 0x46c   : > { %v7413_v31 = vadd.f32 %v15396_v53, %v6964_v3  ;;  %v6844_v13 = vmul.f32 %v12944_v19, %v6141_v40  ;;  %v6145_v9 = vadd.f32 %v6144_v44, %v6032_v49  ;;  %v5925_v28 = vadd.f32 %v18107_v8, %v5812_v11 }
 0x46d   : > { %7540 = vst [vmem:[#allocation12 + $0x320] sm:$0xff] %v7412_v6  ;;  %v7300_v50 = vmul.f32 %v17773_v14, %v7171_v59  ;;  %v6034_v42 = vadd.f32 %v6033_v63, %v5921_v60  ;;  %v7179_v2 = vunpack.c.l.bf16 %v7053_v24  ;;  %v7420_v43 = vadd.f32 %v7292_v25, %v6971_v56  ;;  %v6037_v30 = vpop.f32.mrf.mxu0 }
 0x46e   : > { %7541 = vst [vmem:[#allocation12 + $0x328] sm:$0xff] %v7413_v31  ;;  %v6972_v62 = vsub.f32 %v15419_v38, %v6844_v13  ;;  %v6851_v53 = vmul.f32 %v12944_v19, %v6145_v9  ;;  %v6036_v37 = vadd.f32 %v6035_v54, %v5923_v46  ;;  %v6723_v7 = vmul.f32 %v8515_v52, %v17789_v33  ;;  %v6150_v38 = vpop.f32.mrf.mxu1 }
 0x46f   : > { %v6147_v10 = vadd.f32 %v6146_v29, %v6034_v42  ;;  %v6730_v1 = vmul.f32 %v8516_v48, %v17789_v33  ;;  %v7180_v21 = vunpack.c.h.bf16 %v7053_v24  ;;  %7548 = vst [vmem:[#allocation12 + $0x360] sm:$0xff] %v7420_v43  ;;  %v6038_v35 = vadd.f32 %v6037_v30, %v5925_v28  ;;  %v15477_v15 = vpop.f32.mrf.mxu0 }
 0x470   : > { %v7421_v34 = vadd.f32 %v7293_v18, %v6972_v62  ;;  %v6979_v17 = vsub.f32 %v15441_v20, %v6851_v53  ;;  %v6149_v25 = vadd.f32 %v6148_v39, %v6036_v37  ;;  %v7301_v41 = vmul.f32 %v17773_v14, %v7172_v23  ;;  %v15481_v20 = vpop.f32.mrf.mxu1 }
 0x471   : > { %v6852_v26 = vmul.f32 %v12944_v19, %v6147_v10  ;;  %v6731_v5 = vmul.f32 %v8517_v16, %v17789_v33  ;;  %v7308_v55 = vmul.f32 %v17773_v14, %v7179_v2  ;;  %v6151_v45 = vadd.f32 %v6150_v38, %v6038_v35  ;;  %v15483_v32 = vpop.f32.mrf.mxu0  ;;  %v6994_v16 = vld [vmem:[%s8930_s16 + $0x18] sm:$0xff] }
 0x472   : > { %7549 = vst [vmem:[#allocation12 + $0x368] sm:$0xff] %v7421_v34  ;;  %v7428_v58 = vadd.f32 %v7300_v50, %v6979_v17  ;;  %v6859_v47 = vmul.f32 %v12944_v19, %v6149_v25  ;;  %v7309_v0 = vmul.f32 %v17773_v14, %v7180_v21  ;;  %v15487_v11 = vpop.f32.mrf.mxu1 }
 0x473   : > { %v6980_v61 = vsub.f32 %v6723_v7, %v6852_v26  ;;  %v6860_v27 = vmul.f32 %v12944_v19, %v6151_v45  ;;  %v15489_v36 = vpop.f32.mrf.mxu0 }
 0x474   : > { %7556 = vst [vmem:[#allocation12 + $0x3a0] sm:$0xff] %v7428_v58  ;;  %v6987_v12 = vsub.f32 %v6730_v1, %v6859_v47  ;;  %v15491_v3 = vpop.f32.mrf.mxu1  ;;  %v18130_v58 = vld [vmem:[#allocation61_spill] sm:$0xff] }
 0x475   : > { %v7429_v22 = vadd.f32 %v7301_v41, %v6980_v61  ;;  %v6988_v23 = vsub.f32 %v6731_v5, %v6860_v27  ;;  %v15493_v51 = vpop.f32.mrf.mxu0  ;;  %v2223_v47 = vsub.s32 6, %v18130_v58  ;;  %v6998_v61 = vld [vmem:[%s8930_s16 + $0x38] sm:$0xff]  ;;  %v7061_v27 = vunpack.c.l.bf16 %v6994_v16 }
 0x476   : > { %v7436_v59 = vadd.f32 %v7308_v55, %v6987_v12  ;;  %v15495_v49 = vpop.f32.mrf.mxu1  ;;  %v2227_v55 = vsub.s32 7, %v18130_v58 }
 0x477   : > { %7557 = vst [vmem:[#allocation12 + $0x3a8] sm:$0xff] %v7429_v22  ;;  %v7437_v40 = vadd.f32 %v7309_v0, %v6988_v23  ;;  %v15497_v44 = vpop.f32.mrf.mxu0  ;;  %v7002_v0 = vld [vmem:[%s8930_s16 + $0x58] sm:$0xff] }
 0x478   : > { %7564 = vst [vmem:[#allocation12 + $0x3e0] sm:$0xff] %v7436_v59  ;;  %v15499_v24 = vpop.f32.mrf.mxu1  ;;  %v7062_v59 = vunpack.c.h.bf16 %v6994_v16  ;;  %v7006_v23 = vld [vmem:[%s8930_s16 + $0x78] sm:$0xff] }
 0x479   : > { %7565 = vst [vmem:[#allocation12 + $0x3e8] sm:$0xff] %v7437_v40  ;;  %v15501_v57 = vpop.f32.mrf.mxu0 }
 0x47a   : > { %v15503_v60 = vpop.f32.mrf.mxu1 }
 0x47b   : > { %v15505_v4 = vpop.f32.mrf.mxu0 }
 0x47c   : > { %v15507_v46 = vpop.f32.mrf.mxu1 }
 0x47d   : > { %v15509_v6 = vpop.f32.mrf.mxu0 }
 0x47e   : > { %v15511_v18 = vpop.f32.mrf.mxu1 }
 0x47f   : > { %v15513_v63 = vpop.f32.mrf.mxu0 }
 0x480   : > { %v15515_v31 = vpop.f32.mrf.mxu1 }
 0x481   : > { %v15517_v56 = vpop.f32.mrf.mxu0 }
 0x482   : > { %v15519_v13 = vpop.f32.mrf.mxu1 }
 0x483   : > { %v15521_v9 = vpop.f32.mrf.mxu0 }
 0x484   : > { %v15523_v29 = vpop.f32.mrf.mxu1 }
 0x485   : > { %v15525_v8 = vpop.f32.mrf.mxu0 }
 0x486   : > { %v15527_v28 = vpop.f32.mrf.mxu1 }
 0x487   : > { %v15529_v50 = vpop.f32.mrf.mxu0 }
 0x488   : > { %v15531_v42 = vpop.f32.mrf.mxu1 }
 0x489   : > { %18108 = vst [vmem:[#allocation109_spill] sm:$0xff] %v15531_v42  ;;  %v15533_v54 = vpop.f32.mrf.mxu0 }
 0x48a   : > { %v15535_v2 = vpop.f32.mrf.mxu1 }
 0x48b   : > { %18109 = vst [vmem:[#allocation114_spill] sm:$0xff] %v15535_v2  ;;  %v15537_v43 = vpop.f32.mrf.mxu0 }
 0x48c   : > { %18110 = vst [vmem:[#allocation173_spill] sm:$0xff] %v15537_v43  ;;  %v15539_v62 = vpop.f32.mrf.mxu1 }
 0x48d   : > { %18111 = vst [vmem:[#allocation189_spill] sm:$0xff] %v15539_v62  ;;  %v15541_v53 = vpop.f32.mrf.mxu0 }
 0x48e   : > { %18112 = vst [vmem:[#allocation219_spill] sm:$0xff] %v15541_v53  ;;  %v15543_v37 = vpop.f32.mrf.mxu1 }
 0x48f   : > { %18113 = vst [vmem:[#allocation224_spill] sm:$0xff] %v15543_v37  ;;  %v15545_v39 = vpop.f32.mrf.mxu0 }
 0x490   : > { %18114 = vst [vmem:[#allocation231_spill] sm:$0xff] %v15545_v39  ;;  %v15547_v10 = vpop.f32.mrf.mxu1  ;;  %v8525_v39 = vld [vmem:[#allocation12 + $0xf8] sm:$0xff] }
 0x491   : > { %18115 = vst [vmem:[#allocation238_spill] sm:$0xff] %v15547_v10  ;;  %v15549_v52 = vpop.f32.mrf.mxu0 }
 0x492   : > { %18116 = vst [vmem:[#allocation244_spill] sm:$0xff] %v15549_v52  ;;  %v15551_v7 = vpop.f32.mrf.mxu1  ;;  %v8524_v52 = vld [vmem:[#allocation12 + $0xf0] sm:$0xff] }
 0x493   : > { %18117 = vst [vmem:[#allocation253_spill] sm:$0xff] %v15551_v7  ;;  %v15553_v48 = vpop.f32.mrf.mxu0 }
 0x494   : > { %18118 = vst [vmem:[#allocation259_spill] sm:$0xff] %v15553_v48  ;;  %v15555_v1 = vpop.f32.mrf.mxu1 }
 0x495   : > { %18119 = vst [vmem:[#allocation118_spill] sm:$0xff] %v15555_v1  ;;  %v15557_v30 = vpop.f32.mrf.mxu0  ;;  %v7018_v1 = vld [vmem:[%s8930_s16 + $0xd8] sm:$0xff] }
 0x496   : > { %18120 = vst [vmem:[#allocation116_spill] sm:$0xff] %v15557_v30  ;;  %v15559_v21 = vpop.f32.mrf.mxu1  ;;  %v8521_v30 = vld [vmem:[#allocation12 + $0x78] sm:$0xff] }
 0x497   : > { %18121 = vst [vmem:[#allocation175_spill] sm:$0xff] %v15559_v21  ;;  %v15561_v34 = vpop.f32.mrf.mxu0 }
 0x498   : > { %18122 = vst [vmem:[#allocation179_spill] sm:$0xff] %v15561_v34  ;;  %v15563_v17 = vpop.f32.mrf.mxu1  ;;  %v7014_v34 = vld [vmem:[%s8930_s16 + $0xb8] sm:$0xff] }
 0x499   : > { %18123 = vst [vmem:[#allocation187_spill] sm:$0xff] %v15563_v17  ;;  %v15565_v25 = vpop.f32.mrf.mxu0  ;;  %v7101_v37 = vunpack.c.l.bf16 %v7014_v34 }
 0x49a   : > { %18124 = vst [vmem:[#allocation188_spill] sm:$0xff] %v15565_v25  ;;  %v15567_v35 = vpop.f32.mrf.mxu1 }
 0x49b   : > { %18125 = vst [vmem:[#allocation192_spill] sm:$0xff] %v15567_v35  ;;  %v15569_v38 = vpop.f32.mrf.mxu0 }
 0x49c   : > { %18126 = vst [vmem:[#allocation195_spill] sm:$0xff] %v15569_v38  ;;  %v15571_v26 = vpop.f32.mrf.mxu1  ;;  %v7010_v38 = vld [vmem:[%s8930_s16 + $0x98] sm:$0xff] }
 0x49d   : > { %18127 = vst [vmem:[#allocation203_spill] sm:$0xff] %v15571_v26  ;;  %v15573_v41 = vpop.f32.mrf.mxu0  ;;  %v7069_v26 = vunpack.c.l.bf16 %v6998_v61 }
 0x49e   : > { %18128 = vst [vmem:[#allocation196_spill] sm:$0xff] %v15573_v41  ;;  %v15576_v5 = vpop.f32.mrf.mxu1  ;;  %v18135_v41 = vld [vmem:[#allocation252_spill] sm:$0xff] }
 0x49f   : > { %18129 = vst [vmem:[#allocation199_spill] sm:$0xff] %v15576_v5  ;;  %v7070_v5 = vunpack.c.h.bf16 %v6998_v61  ;;  %v15592_v35 = vrot.slane %v18135_v41, %v2223_v47  ;;  %v15595_v58 = vrot.slane %v18135_v41, %v2227_v55  ;;  %v7078_v61 = vunpack.c.h.bf16 %v7002_v0  ;;  %v8519_v41 = vld [vmem:[#allocation12 + $0x38] sm:$0xff] }
 0x4a0   : > { %v15583_v12 = vpop.f32.mrf.mxu1  ;;  %v7085_v47 = vunpack.c.l.bf16 %v7006_v23  ;;  %v15611_v55 = vmul.f32 %v8519_v41, %v17789_v33 }
 0x4a1   : > { %18132 = vst [vmem:[#allocation184_spill] sm:$0xff] %v15583_v12  ;;  %v7077_v12 = vunpack.c.l.bf16 %v7002_v0  ;;  %v15623_v0 = vmul.f32 %v17773_v14, %v7069_v26  ;;  %v15629_v41 = vmul.f32 %v17773_v14, %v7070_v5  ;;  %v8523_v26 = vld [vmem:[#allocation12 + $0xb8] sm:$0xff]  ;;  %v15646_v5 = vmul.f32 %v17773_v14, %v7078_v61 }
 0x4a2   : > { %v15589_v40 = vpop.f32.mrf.mxu1  ;;  %v15641_v48 = vmul.f32 %v8523_v26, %v17789_v33  ;;  %v15658_v26 = vmul.f32 %v8525_v39, %v17789_v33  ;;  %v7102_v61 = vunpack.c.h.bf16 %v7014_v34  ;;  %v7110_v39 = vunpack.c.h.bf16 %v7018_v1 }
 0x4a3   : > { %18134 = vst [vmem:[#allocation191_spill] sm:$0xff] %v15589_v40  ;;  %v15606_v40 = vmul.f32 %v17773_v14, %v7061_v27 }
 0x4a4   : > { %v15580_v45 = vpop.f32.mrf.mxu0  ;;  %v15600_v17 = vpop.f32.mrf.mxu1 }
 0x4a5   : > { %18131 = vst [vmem:[#allocation178_spill] sm:$0xff] %v15580_v45  ;;  %18137 = vst [vmem:[#allocation201_spill] sm:$0xff] %v15600_v17  ;;  %v8520_v17 = vld [vmem:[#allocation12 + $0x70] sm:$0xff] }
 0x4a6   : > { %v15586_v22 = vpop.f32.mrf.mxu0  ;;  %v15617_v25 = vmul.f32 %v8520_v17, %v17789_v33  ;;  %v15620_v27 = vpop.f32.mrf.mxu1  ;;  %v8522_v17 = vld [vmem:[#allocation12 + $0xb0] sm:$0xff] }
 0x4a7   : > { %18133 = vst [vmem:[#allocation186_spill] sm:$0xff] %v15586_v22  ;;  %v8518_v22 = vld [vmem:[#allocation12 + $0x30] sm:$0xff]  ;;  %18139 = vst [vmem:[#allocation198_spill] sm:$0xff] %v15620_v27  ;;  %v15638_v27 = vmul.f32 %v17773_v14, %v7077_v12 }
 0x4a8   : > { %v15597_v45 = vpop.f32.mrf.mxu0  ;;  %v15603_v16 = vmul.f32 %v8518_v22, %v17789_v33  ;;  %v7086_v22 = vunpack.c.h.bf16 %v7006_v23  ;;  %v15635_v23 = vmul.f32 %v8522_v17, %v17789_v33  ;;  %v15643_v10 = vpop.f32.mrf.mxu1  ;;  %v15652_v17 = vmul.f32 %v17773_v14, %v7085_v47  ;;  %v7022_v12 = vld [vmem:[%s8930_s16 + $0xf8] sm:$0xff] }
 0x4a9   : > { %18136 = vst [vmem:[#allocation200_spill] sm:$0xff] %v15597_v45  ;;  %v15614_v45 = vmul.f32 %v17773_v14, %v7062_v59  ;;  %v7093_v59 = vunpack.c.l.bf16 %v7010_v38  ;;  %18141 = vst [vmem:[#allocation207_spill] sm:$0xff] %v15643_v10  ;;  %v7109_v10 = vunpack.c.l.bf16 %v7018_v1  ;;  %v8526_v47 = vld [vmem:[#allocation12 + $0x130] sm:$0xff]  ;;  %v7117_v42 = vunpack.c.l.bf16 %v7022_v12 }
 0x4aa   : > { %v15608_v21 = vpop.f32.mrf.mxu0  ;;  %v15665_v53 = vpop.f32.mrf.mxu1  ;;  %v15668_v43 = vmul.f32 %v8526_v47, %v17789_v33  ;;  %v7026_v47 = vld [vmem:[%s8930_s16 + $0x118] sm:$0xff]  ;;  %v15690_v1 = vmul.f32 %v17773_v14, %v7101_v37  ;;  %v8531_v37 = vld [vmem:[#allocation12 + $0x1b8] sm:$0xff] }
 0x4ab   : > { %18138 = vst [vmem:[#allocation194_spill] sm:$0xff] %v15608_v21  ;;  %v15626_v21 = vmul.f32 %v8521_v30, %v17789_v33  ;;  %v7094_v30 = vunpack.c.h.bf16 %v7010_v38  ;;  %v15661_v38 = vmul.f32 %v17773_v14, %v7086_v22  ;;  %18144 = vst [vmem:[#allocation131_spill] sm:$0xff] %v15665_v53  ;;  %v8527_v22 = vld [vmem:[#allocation12 + $0x138] sm:$0xff] }
 0x4ac   : > { %v15632_v7 = vpop.f32.mrf.mxu0 }
 0x4ad   : > { %18140 = vst [vmem:[#allocation202_spill] sm:$0xff] %v15632_v7  ;;  %v15649_v7 = vmul.f32 %v8524_v52, %v17789_v33  ;;  %18143 = vst [vmem:[#allocation127_spill] sm:$0xff] %v15661_v38  ;;  %v6188_v52 = vadd.f32 %v15477_v15, %v15592_v35  ;;  %v15676_v38 = vmul.f32 %v8527_v22, %v17789_v33  ;;  %v8528_v15 = vld [vmem:[#allocation12 + $0x170] sm:$0xff]  ;;  %v8529_v22 = vld [vmem:[#allocation12 + $0x178] sm:$0xff] }
 0x4ae   : > { %v15655_v62 = vpop.f32.mrf.mxu0  ;;  %v15679_v34 = vmul.f32 %v17773_v14, %v7094_v30  ;;  %v15682_v53 = vmul.f32 %v8528_v15, %v17789_v33  ;;  %v7118_v30 = vunpack.c.h.bf16 %v7022_v12  ;;  %v15698_v15 = vmul.f32 %v17773_v14, %v7102_v61 }
 0x4af   : > { %18142 = vst [vmem:[#allocation120_spill] sm:$0xff] %v15655_v62  ;;  %v15671_v62 = vmul.f32 %v17773_v14, %v7093_v59  ;;  %18147 = vst [vmem:[#allocation209_spill] sm:$0xff] %v15676_v38  ;;  %v6190_v59 = vadd.f32 %v15483_v32, %v15595_v58  ;;  %v15704_v32 = vmul.f32 %v17773_v14, %v7109_v10 }
 0x4b0   : > { %v15673_v2 = vpop.f32.mrf.mxu0  ;;  %18148 = vst [vmem:[#allocation210_spill] sm:$0xff] %v15679_v34  ;;  %18149 = vst [vmem:[#allocation55_spill] sm:$0xff] %v15682_v53  ;;  %v8530_v53 = vld [vmem:[#allocation12 + $0x1b0] sm:$0xff]  ;;  %v6192_v12 = vadd.f32 %v15489_v36, %v15592_v35  ;;  %v15715_v61 = vmul.f32 %v17773_v14, %v7110_v39  ;;  %v7126_v36 = vunpack.c.h.bf16 %v7026_v47  ;;  %v6194_v39 = vadd.f32 %v15493_v51, %v15595_v58 }
 0x4b1   : > { %18145 = vst [vmem:[#allocation205_spill] sm:$0xff] %v15671_v62  ;;  %18146 = vst [vmem:[#allocation206_spill] sm:$0xff] %v15673_v2  ;;  %v15687_v62 = vpop.f32.mrf.mxu1  ;;  %v15693_v2 = vmul.f32 %v8529_v22, %v17789_v33  ;;  %v15701_v38 = vmul.f32 %v8530_v53, %v17789_v33  ;;  %v6301_v22 = vadd.f32 %v15481_v20, %v6188_v52  ;;  %v7030_v53 = vld [vmem:[%s8930_s16 + $0x138] sm:$0xff] }
 0x4b2   : > { %18150 = vst [vmem:[#allocation128_spill] sm:$0xff] %v15687_v62  ;;  %v15695_v34 = vpop.f32.mrf.mxu0  ;;  %18153 = vst [vmem:[#allocation137_spill] sm:$0xff] %v15698_v15  ;;  %v15707_v62 = vmul.f32 %v8531_v37, %v17789_v33  ;;  %v7125_v15 = vunpack.c.l.bf16 %v7026_v47  ;;  %v15722_v37 = vmul.f32 %v17773_v14, %v7117_v42  ;;  %v6303_v52 = vadd.f32 %v15487_v11, %v6190_v59 }
 0x4b3   : > { %18151 = vst [vmem:[#allocation121_spill] sm:$0xff] %v15693_v2  ;;  %18152 = vst [vmem:[#allocation98_spill] sm:$0xff] %v15695_v34  ;;  %v15712_v34 = vpop.f32.mrf.mxu1  ;;  %v8532_v2 = vld [vmem:[#allocation12 + $0x1f0] sm:$0xff]  ;;  %v7133_v47 = vunpack.c.l.bf16 %v7030_v53  ;;  %v6305_v11 = vadd.f32 %v15491_v3, %v6192_v12  ;;  %v6307_v3 = vadd.f32 %v15495_v49, %v6194_v39 }
 0x4b4   : > { %18154 = vst [vmem:[#allocation125_spill] sm:$0xff] %v15701_v38  ;;  %18155 = vst [vmem:[#allocation129_spill] sm:$0xff] %v15704_v32  ;;  %v6413_v38 = vpop.f32.mrf.mxu0  ;;  %v15719_v10 = vmul.f32 %v8532_v2, %v17789_v33  ;;  %v15731_v32 = vmul.f32 %v17773_v14, %v7118_v30  ;;  %v6198_v30 = vadd.f32 %v15497_v44, %v15592_v35 }
 0x4b5   : > { %18156 = vst [vmem:[#allocation136_spill] sm:$0xff] %v15707_v62  ;;  %18157 = vst [vmem:[#allocation130_spill] sm:$0xff] %v15712_v34  ;;  %v8533_v62 = vld [vmem:[#allocation12 + $0x1f8] sm:$0xff]  ;;  %v6414_v34 = vadd.f32 %v6413_v38, %v6301_v22  ;;  %v15741_v22 = vmul.f32 %v17773_v14, %v7125_v15  ;;  %v6202_v44 = vadd.f32 %v15505_v4, %v15592_v35 }
 0x4b6   : > { %18158 = vst [vmem:[#allocation119_spill] sm:$0xff] %v15715_v61  ;;  %18159 = vst [vmem:[#allocation126_spill] sm:$0xff] %v15719_v10  ;;  %v15725_v20 = vmul.f32 %v8533_v62, %v17789_v33  ;;  %v6526_v61 = vpop.f32.mrf.mxu1  ;;  %v6415_v2 = vpop.f32.mrf.mxu0  ;;  %v8534_v10 = vld [vmem:[#allocation12 + $0x230] sm:$0xff]  ;;  %v6311_v4 = vadd.f32 %v15499_v24, %v6198_v30 }
 0x4b7   : > { %18160 = vst [vmem:[#allocation56_spill] sm:$0xff] %v15722_v37  ;;  %v15734_v42 = vmul.f32 %v8534_v10, %v17789_v33  ;;  %v8535_v37 = vld [vmem:[#allocation12 + $0x238] sm:$0xff]  ;;  %v6527_v59 = vadd.f32 %v6526_v61, %v6414_v34  ;;  %v6416_v51 = vadd.f32 %v6415_v2, %v6303_v52  ;;  %v6200_v10 = vadd.f32 %v15501_v57, %v15595_v58 }
 0x4b8   : > { %18161 = vst [vmem:[#allocation132_spill] sm:$0xff] %v15725_v20  ;;  %v15737_v62 = vmul.f32 %v8535_v37, %v17789_v33  ;;  %v7134_v20 = vunpack.c.h.bf16 %v7030_v53  ;;  %v6528_v38 = vpop.f32.mrf.mxu1  ;;  %v15748_v37 = vmul.f32 %v17773_v14, %v7126_v36  ;;  %v15758_v52 = vmul.f32 %v17773_v14, %v7133_v47  ;;  %v8537_v36 = vld [vmem:[#allocation12 + $0x278] sm:$0xff] }
 0x4b9   : > { %18162 = vst [vmem:[#allocation213_spill] sm:$0xff] %v15734_v42  ;;  %v6417_v42 = vpop.f32.mrf.mxu0  ;;  %v6741_v34 = vmul.f32 %v12944_v19, %v6527_v59  ;;  %v6529_v15 = vadd.f32 %v6528_v38, %v6416_v51  ;;  %v15761_v2 = vmul.f32 %v8537_v36, %v17789_v33  ;;  %v7034_v51 = vld [vmem:[%s8930_s16 + $0x158] sm:$0xff]  ;;  %v6313_v47 = vadd.f32 %v15503_v60, %v6200_v10 }
 0x4ba   : > { %18163 = vst [vmem:[#allocation214_spill] sm:$0xff] %v15737_v62  ;;  %v8536_v62 = vld [vmem:[#allocation12 + $0x270] sm:$0xff]  ;;  %v6418_v12 = vadd.f32 %v6417_v42, %v6305_v11  ;;  %v6530_v61 = vpop.f32.mrf.mxu1  ;;  %v6204_v38 = vadd.f32 %v15509_v6, %v15595_v58  ;;  %v6315_v24 = vadd.f32 %v15507_v46, %v6202_v44  ;;  %v6208_v60 = vadd.f32 %v15513_v63, %v15592_v35  ;;  %v8539_v46 = vld [vmem:[#allocation12 + $0x2b8] sm:$0xff] }
 0x4bb   : > { %v15751_v53 = vmul.f32 %v8536_v62, %v17789_v33  ;;  %v6419_v57 = vpop.f32.mrf.mxu0  ;;  %18164 = vst [vmem:[#allocation204_spill] sm:$0xff] %v15761_v2  ;;  %v15764_v62 = vmul.f32 %v17773_v14, %v7134_v20  ;;  %v6869_v49 = vsub.f32 %v15603_v16, %v6741_v34  ;;  %v6742_v39 = vmul.f32 %v12944_v19, %v6529_v15  ;;  %v8538_v2 = vld [vmem:[#allocation12 + $0x2b0] sm:$0xff] }
 0x4bc   : > { %v6531_v42 = vadd.f32 %v6530_v61, %v6418_v12  ;;  %v6420_v11 = vadd.f32 %v6419_v57, %v6307_v3  ;;  %v6532_v59 = vpop.f32.mrf.mxu1  ;;  %v15774_v20 = vmul.f32 %v8538_v2, %v17789_v33  ;;  %v7141_v10 = vunpack.c.l.bf16 %v7034_v51 }
 0x4bd   : > { %v6423_v36 = vpop.f32.mrf.mxu0  ;;  %v7318_v16 = vadd.f32 %v15606_v40, %v6869_v49  ;;  %v6870_v34 = vsub.f32 %v15611_v55, %v6742_v39  ;;  %v6317_v49 = vadd.f32 %v15511_v18, %v6204_v38  ;;  %v15787_v44 = vmul.f32 %v8539_v46, %v17789_v33 }
 0x4be   : > { %v6749_v3 = vmul.f32 %v12944_v19, %v6531_v42  ;;  %v6533_v15 = vadd.f32 %v6532_v59, %v6420_v11  ;;  %v6536_v12 = vpop.f32.mrf.mxu1  ;;  %v6424_v30 = vadd.f32 %v6423_v36, %v6311_v4  ;;  %v7142_v63 = vunpack.c.h.bf16 %v7034_v51 }
 0x4bf   : > { %v6425_v6 = vpop.f32.mrf.mxu0  ;;  %7446 = vst [vmem:[#allocation12 + $0x30] sm:$0xff] %v7318_v16  ;;  %v7319_v61 = vadd.f32 %v15614_v45, %v6870_v34  ;;  %v6210_v18 = vadd.f32 %v15517_v56, %v15595_v58  ;;  %v6212_v38 = vadd.f32 %v15521_v9, %v15592_v35 }
 0x4c0   : > { %v6877_v57 = vsub.f32 %v15617_v25, %v6749_v3  ;;  %v6750_v40 = vmul.f32 %v12944_v19, %v6533_v15  ;;  %v6426_v55 = vadd.f32 %v6425_v6, %v6313_v47  ;;  %v6538_v2 = vpop.f32.mrf.mxu1  ;;  %v6537_v39 = vadd.f32 %v6536_v12, %v6424_v30 }
 0x4c1   : > { %v6427_v42 = vpop.f32.mrf.mxu0  ;;  %7447 = vst [vmem:[#allocation12 + $0x38] sm:$0xff] %v7319_v61  ;;  %v6321_v47 = vadd.f32 %v15515_v31, %v6208_v60  ;;  %v6214_v31 = vadd.f32 %v15525_v8, %v15595_v58  ;;  %v15803_v12 = vmul.f32 %v17773_v14, %v7141_v10  ;;  %v15806_v9 = vmul.f32 %v17773_v14, %v7142_v63 }
 0x4c2   : > { %v7326_v11 = vadd.f32 %v15623_v0, %v6877_v57  ;;  %v6878_v45 = vsub.f32 %v15626_v21, %v6750_v40  ;;  %v6539_v59 = vadd.f32 %v6538_v2, %v6426_v55  ;;  %v6428_v25 = vadd.f32 %v6427_v42, %v6315_v24  ;;  %v6540_v4 = vpop.f32.mrf.mxu1 }
 0x4c3   : > { %v6757_v36 = vmul.f32 %v12944_v19, %v6537_v39  ;;  %v6429_v16 = vpop.f32.mrf.mxu0  ;;  %v6323_v8 = vadd.f32 %v15519_v13, %v6210_v18  ;;  %v6218_v10 = vadd.f32 %v15529_v50, %v15592_v35  ;;  %v15819_v39 = vld [vmem:[%s8930_s16 + $0x178] sm:$0xff]  ;;  %v6327_v13 = vadd.f32 %v15527_v28, %v6214_v31  ;;  %v18169_v31 = vld [vmem:[#allocation219_spill] sm:$0xff] }
 0x4c4   : > { %7454 = vst [vmem:[#allocation12 + $0x70] sm:$0xff] %v7326_v11  ;;  %v7327_v51 = vadd.f32 %v15629_v41, %v6878_v45  ;;  %v6758_v0 = vmul.f32 %v12944_v19, %v6539_v59  ;;  %v6541_v21 = vadd.f32 %v6540_v4, %v6428_v25  ;;  %v6430_v34 = vadd.f32 %v6429_v16, %v6317_v49  ;;  %v6542_v3 = vpop.f32.mrf.mxu1  ;;  %v18165_v28 = vld [vmem:[#allocation109_spill] sm:$0xff] }
 0x4c5   : > { %v6885_v15 = vsub.f32 %v15635_v23, %v6757_v36  ;;  %v6433_v56 = vpop.f32.mrf.mxu0  ;;  %v6325_v23 = vadd.f32 %v15523_v29, %v6212_v38  ;;  %v6220_v29 = vadd.f32 %v15533_v54, %v15595_v58  ;;  %v6331_v59 = vadd.f32 %v18165_v28, %v6218_v10  ;;  %v18166_v38 = vld [vmem:[#allocation127_spill] sm:$0xff]  ;;  %v18177_v28 = vld [vmem:[#allocation210_spill] sm:$0xff] }
 0x4c6   : > { %7455 = vst [vmem:[#allocation12 + $0x78] sm:$0xff] %v7327_v51  ;;  %v6886_v41 = vsub.f32 %v15641_v48, %v6758_v0  ;;  %v6765_v24 = vmul.f32 %v12944_v19, %v6541_v21  ;;  %v6543_v60 = vadd.f32 %v6542_v3, %v6430_v34  ;;  %v6434_v30 = vadd.f32 %v6433_v56, %v6321_v47  ;;  %v6546_v6 = vpop.f32.mrf.mxu1  ;;  %v8541_v47 = vld [vmem:[#allocation12 + $0x2f8] sm:$0xff]  ;;  %v18168_v34 = vld [vmem:[#allocation173_spill] sm:$0xff] }
 0x4c7   : > { %v7334_v61 = vadd.f32 %v15638_v27, %v6885_v15  ;;  %v6435_v57 = vpop.f32.mrf.mxu0  ;;  %v8540_v27 = vld [vmem:[#allocation12 + $0x2f0] sm:$0xff]  ;;  %v7149_v4 = vunpack.c.l.bf16 %v15819_v39  ;;  %v15833_v18 = vmul.f32 %v8541_v47, %v17789_v33  ;;  %v18167_v0 = vld [vmem:[#allocation114_spill] sm:$0xff]  ;;  %v6222_v3 = vadd.f32 %v18168_v34, %v15592_v35 }
 0x4c8   : > { %v7335_v40 = vadd.f32 %v15646_v5, %v6886_v41  ;;  %v6893_v55 = vsub.f32 %v15649_v7, %v6765_v24  ;;  %v6766_v48 = vmul.f32 %v12944_v19, %v6543_v60  ;;  %v6547_v2 = vadd.f32 %v6546_v6, %v6434_v30  ;;  %v6548_v49 = vpop.f32.mrf.mxu1  ;;  %v18170_v24 = vld [vmem:[#allocation205_spill] sm:$0xff] }
 0x4c9   : > { %7462 = vst [vmem:[#allocation12 + $0xb0] sm:$0xff] %v7334_v61  ;;  %v6436_v50 = vadd.f32 %v6435_v57, %v6323_v8  ;;  %v6437_v42 = vpop.f32.mrf.mxu0  ;;  %v15825_v46 = vmul.f32 %v8540_v27, %v17789_v33  ;;  %v6333_v21 = vadd.f32 %v18167_v0, %v6220_v29  ;;  %v6224_v15 = vadd.f32 %v18169_v31, %v15595_v58  ;;  %v18172_v61 = vld [vmem:[#allocation209_spill] sm:$0xff] }
 0x4ca   : > { %7463 = vst [vmem:[#allocation12 + $0xb8] sm:$0xff] %v7335_v40  ;;  %v7342_v7 = vadd.f32 %v15652_v17, %v6893_v55  ;;  %v6894_v5 = vsub.f32 %v15658_v26, %v6766_v48  ;;  %v6773_v63 = vmul.f32 %v12944_v19, %v6547_v2  ;;  %v6438_v11 = vadd.f32 %v6437_v42, %v6325_v23  ;;  %v6550_v45 = vpop.f32.mrf.mxu1  ;;  %v18171_v23 = vld [vmem:[#allocation231_spill] sm:$0xff]  ;;  %v18174_v27 = vld [vmem:[#allocation189_spill] sm:$0xff] }
 0x4cb   : > { %v6549_v25 = vadd.f32 %v6548_v49, %v6436_v50  ;;  %v6439_v54 = vpop.f32.mrf.mxu0  ;;  %v6228_v10 = vadd.f32 %v18171_v23, %v15592_v35  ;;  %v15849_v55 = vmul.f32 %v17773_v14, %v7149_v4  ;;  %v7150_v48 = vunpack.c.h.bf16 %v15819_v39  ;;  %v18173_v2 = vld [vmem:[#allocation55_spill] sm:$0xff]  ;;  %v8542_v23 = vld [vmem:[#allocation12 + $0x330] sm:$0xff] }
 0x4cc   : > { %7470 = vst [vmem:[#allocation12 + $0xf0] sm:$0xff] %v7342_v7  ;;  %v7343_v36 = vadd.f32 %v18166_v38, %v6894_v5  ;;  %v6901_v17 = vsub.f32 %v15668_v43, %v6773_v63  ;;  %v6551_v26 = vadd.f32 %v6550_v45, %v6438_v11  ;;  %v6440_v16 = vadd.f32 %v6439_v54, %v6327_v13  ;;  %v6552_v51 = vpop.f32.mrf.mxu1  ;;  %v18175_v5 = vld [vmem:[#allocation224_spill] sm:$0xff]  ;;  %v18178_v54 = vld [vmem:[#allocation121_spill] sm:$0xff] }
 0x4cd   : > { %v6774_v56 = vmul.f32 %v12944_v19, %v6549_v25  ;;  %v6443_v41 = vpop.f32.mrf.mxu0  ;;  %v6335_v7 = vadd.f32 %v18174_v27, %v6222_v3  ;;  %v6337_v63 = vadd.f32 %v18175_v5, %v6224_v15  ;;  %v18176_v11 = vld [vmem:[#allocation244_spill] sm:$0xff]  ;;  %v15869_v3 = vmul.f32 %v17773_v14, %v7150_v48  ;;  %v18182_v15 = vld [vmem:[#allocation125_spill] sm:$0xff]  ;;  %v18188_v5 = vld [vmem:[#allocation179_spill] sm:$0xff] }
 0x4ce   : > { %7471 = vst [vmem:[#allocation12 + $0xf8] sm:$0xff] %v7343_v36  ;;  %v7350_v60 = vadd.f32 %v18170_v24, %v6901_v17  ;;  %v6781_v30 = vmul.f32 %v12944_v19, %v6551_v26  ;;  %v6553_v43 = vadd.f32 %v6552_v51, %v6440_v16  ;;  %v6444_v6 = vadd.f32 %v6443_v41, %v6331_v59  ;;  %v6556_v8 = vpop.f32.mrf.mxu1  ;;  %v15863_v17 = vld [vmem:[%s8930_s16 + $0x198] sm:$0xff]  ;;  %v18179_v26 = vld [vmem:[#allocation238_spill] sm:$0xff]  ;;  %v18180_v51 = vld [vmem:[#allocation259_spill] sm:$0xff] }
 0x4cf   : > { %v6902_v57 = vsub.f32 %v18172_v61, %v6774_v56  ;;  %v6445_v40 = vpop.f32.mrf.mxu0  ;;  %v6230_v45 = vadd.f32 %v18176_v11, %v15595_v58  ;;  %v6341_v16 = vadd.f32 %v18179_v26, %v6228_v10  ;;  %v6232_v0 = vadd.f32 %v18180_v51, %v15592_v35  ;;  %v18185_v48 = vld [vmem:[#allocation136_spill] sm:$0xff]  ;;  %v8543_v51 = vld [vmem:[#allocation12 + $0x338] sm:$0xff] }
 0x4d0   : > { %7478 = vst [vmem:[#allocation12 + $0x130] sm:$0xff] %v7350_v60  ;;  %v6909_v49 = vsub.f32 %v18173_v2, %v6781_v30  ;;  %v6782_v13 = vmul.f32 %v12944_v19, %v6553_v43  ;;  %v6557_v29 = vadd.f32 %v6556_v8, %v6444_v6  ;;  %v6446_v50 = vadd.f32 %v6445_v40, %v6333_v21  ;;  %v6558_v42 = vpop.f32.mrf.mxu1  ;;  %v18183_v30 = vld [vmem:[#allocation253_spill] sm:$0xff]  ;;  %v18187_v27 = vld [vmem:[#allocation116_spill] sm:$0xff] }
 0x4d1   : > { %v7351_v59 = vadd.f32 %v18177_v28, %v6902_v57  ;;  %v6447_v25 = vpop.f32.mrf.mxu0  ;;  %v6343_v43 = vadd.f32 %v18183_v30, %v6230_v45  ;;  %v15876_v10 = vmul.f32 %v8542_v23, %v17789_v33  ;;  %v7157_v61 = vunpack.c.l.bf16 %v15863_v17  ;;  %v18184_v57 = vld [vmem:[#allocation129_spill] sm:$0xff]  ;;  %v18189_v28 = vld [vmem:[#allocation119_spill] sm:$0xff]  ;;  %v18196_v23 = vld [vmem:[#allocation56_spill] sm:$0xff] }
 0x4d2   : > { %v7358_v39 = vadd.f32 %v15690_v1, %v6909_v49  ;;  %v6910_v4 = vsub.f32 %v18178_v54, %v6782_v13  ;;  %v6789_v47 = vmul.f32 %v12944_v19, %v6557_v29  ;;  %v6559_v38 = vadd.f32 %v6558_v42, %v6446_v50  ;;  %v6560_v36 = vpop.f32.mrf.mxu1  ;;  %v18181_v1 = vld [vmem:[#allocation137_spill] sm:$0xff]  ;;  %v18186_v50 = vld [vmem:[#allocation118_spill] sm:$0xff]  ;;  %v18194_v30 = vld [vmem:[#allocation187_spill] sm:$0xff] }
 0x4d3   : > { %7479 = vst [vmem:[#allocation12 + $0x138] sm:$0xff] %v7351_v59  ;;  %v6448_v21 = vadd.f32 %v6447_v25, %v6335_v7  ;;  %v6449_v34 = vpop.f32.mrf.mxu0  ;;  %v6345_v42 = vadd.f32 %v18186_v50, %v6232_v0  ;;  %v6234_v7 = vadd.f32 %v18187_v27, %v15595_v58  ;;  %v15893_v0 = vmul.f32 %v8543_v51, %v17789_v33  ;;  %v18198_v50 = vld [vmem:[#allocation192_spill] sm:$0xff] }
 0x4d4   : > { %7486 = vst [vmem:[#allocation12 + $0x170] sm:$0xff] %v7358_v39  ;;  %v7359_v31 = vadd.f32 %v18181_v1, %v6910_v4  ;;  %v6917_v56 = vsub.f32 %v18182_v15, %v6789_v47  ;;  %v6790_v41 = vmul.f32 %v12944_v19, %v6559_v38  ;;  %v6450_v24 = vadd.f32 %v6449_v34, %v6337_v63  ;;  %v6562_v60 = vpop.f32.mrf.mxu1  ;;  %v18190_v47 = vld [vmem:[#allocation188_spill] sm:$0xff] }
 0x4d5   : > { %v6561_v6 = vadd.f32 %v6560_v36, %v6448_v21  ;;  %v6453_v8 = vpop.f32.mrf.mxu0  ;;  %v6238_v63 = vadd.f32 %v18188_v5, %v15592_v35  ;;  %v6240_v38 = vadd.f32 %v18190_v47, %v15595_v58  ;;  %v18191_v36 = vld [vmem:[#allocation126_spill] sm:$0xff]  ;;  %v7158_v21 = vunpack.c.h.bf16 %v15863_v17  ;;  %v18192_v34 = vld [vmem:[#allocation132_spill] sm:$0xff] }
 0x4d6   : > { %7487 = vst [vmem:[#allocation12 + $0x178] sm:$0xff] %v7359_v31  ;;  %v7366_v40 = vadd.f32 %v18184_v57, %v6917_v56  ;;  %v6918_v2 = vsub.f32 %v18185_v48, %v6790_v41  ;;  %v6563_v49 = vadd.f32 %v6562_v60, %v6450_v24  ;;  %v6454_v13 = vadd.f32 %v6453_v8, %v6341_v16  ;;  %v6566_v29 = vpop.f32.mrf.mxu1  ;;  %v18193_v24 = vld [vmem:[#allocation175_spill] sm:$0xff]  ;;  %v18197_v48 = vld [vmem:[#allocation213_spill] sm:$0xff]  ;;  %v18199_v27 = vld [vmem:[#allocation196_spill] sm:$0xff] }
 0x4d7   : > { %v6797_v11 = vmul.f32 %v12944_v19, %v6561_v6  ;;  %v6455_v45 = vpop.f32.mrf.mxu0  ;;  %v6347_v60 = vadd.f32 %v18193_v24, %v6234_v7  ;;  %v18195_v6 = vld [vmem:[#allocation195_spill] sm:$0xff]  ;;  %v6244_v7 = vadd.f32 %v18199_v27, %v15595_v58 }
 0x4d8   : > { %7494 = vst [vmem:[#allocation12 + $0x1b0] sm:$0xff] %v7366_v40  ;;  %v7367_v59 = vadd.f32 %v18189_v28, %v6918_v2  ;;  %v6798_v25 = vmul.f32 %v12944_v19, %v6563_v49  ;;  %v6567_v39 = vadd.f32 %v6566_v29, %v6454_v13  ;;  %v6456_v54 = vadd.f32 %v6455_v45, %v6343_v43  ;;  %v6568_v4 = vpop.f32.mrf.mxu1  ;;  %v18200_v45 = vld [vmem:[#allocation214_spill] sm:$0xff] }
 0x4d9   : > { %v6925_v26 = vsub.f32 %v18191_v36, %v6797_v11  ;;  %v6457_v16 = vpop.f32.mrf.mxu0  ;;  %v6351_v43 = vadd.f32 %v18194_v30, %v6238_v63  ;;  %v6242_v8 = vadd.f32 %v18195_v6, %v15592_v35  ;;  %v15910_v11 = vmul.f32 %v17773_v14, %v7157_v61 }
 0x4da   : > { %7495 = vst [vmem:[#allocation12 + $0x1b8] sm:$0xff] %v7367_v59  ;;  %v6926_v1 = vsub.f32 %v18192_v34, %v6798_v25  ;;  %v6805_v31 = vmul.f32 %v12944_v19, %v6567_v39  ;;  %v6569_v15 = vadd.f32 %v6568_v4, %v6456_v54  ;;  %v6458_v56 = vadd.f32 %v6457_v16, %v6345_v42  ;;  %v6570_v41 = vpop.f32.mrf.mxu1  ;;  %v18201_v54 = vld [vmem:[#allocation203_spill] sm:$0xff] }
 0x4db   : > { %v7374_v57 = vadd.f32 %v18196_v23, %v6925_v26  ;;  %v6459_v40 = vpop.f32.mrf.mxu0  ;;  %v6353_v42 = vadd.f32 %v18198_v50, %v6240_v38  ;;  %v6355_v4 = vadd.f32 %v18201_v54, %v6242_v8  ;;  %v15917_v36 = vmul.f32 %v17773_v14, %v7158_v21  ;;  %v8544_v26 = vld [vmem:[#allocation12 + $0x370] sm:$0xff]  ;;  %v18204_v21 = vld [vmem:[#allocation186_spill] sm:$0xff] }
 0x4dc   : > { %v7375_v17 = vadd.f32 %v15731_v32, %v6926_v1  ;;  %v6933_v2 = vsub.f32 %v18197_v48, %v6805_v31  ;;  %v6806_v49 = vmul.f32 %v12944_v19, %v6569_v15  ;;  %v6571_v13 = vadd.f32 %v6570_v41, %v6458_v56  ;;  %v6572_v29 = vpop.f32.mrf.mxu1  ;;  %v7046_v31 = vld [vmem:[%s8930_s16 + $0x1b8] sm:$0xff]  ;;  %v18202_v15 = vld [vmem:[#allocation199_spill] sm:$0xff]  ;;  %v18203_v41 = vld [vmem:[#allocation178_spill] sm:$0xff] }
 0x4dd   : > { %7502 = vst [vmem:[#allocation12 + $0x1f0] sm:$0xff] %v7374_v57  ;;  %v6460_v5 = vadd.f32 %v6459_v40, %v6347_v60  ;;  %v6463_v63 = vpop.f32.mrf.mxu0  ;;  %v15920_v61 = vmul.f32 %v8544_v26, %v17789_v33  ;;  %v6357_v56 = vadd.f32 %v18202_v15, %v6244_v7  ;;  %v6248_v24 = vadd.f32 %v18203_v41, %v15592_v35  ;;  %v18205_v57 = vld [vmem:[#allocation200_spill] sm:$0xff]  ;;  %v18212_v41 = vld [vmem:[#allocation198_spill] sm:$0xff] }
 0x4de   : > { %7503 = vst [vmem:[#allocation12 + $0x1f8] sm:$0xff] %v7375_v17  ;;  %v7382_v32 = vadd.f32 %v15741_v22, %v6933_v2  ;;  %v6934_v28 = vsub.f32 %v18200_v45, %v6806_v49  ;;  %v6813_v59 = vmul.f32 %v12944_v19, %v6571_v13  ;;  %v6464_v25 = vadd.f32 %v6463_v63, %v6351_v43  ;;  %v6576_v39 = vpop.f32.mrf.mxu1  ;;  %v18206_v17 = vld [vmem:[#allocation204_spill] sm:$0xff]  ;;  %v18208_v63 = vld [vmem:[#allocation191_spill] sm:$0xff]  ;;  %v18209_v45 = vld [vmem:[#allocation194_spill] sm:$0xff] }
 0x4df   : > { %v6573_v47 = vadd.f32 %v6572_v29, %v6460_v5  ;;  %v6465_v38 = vpop.f32.mrf.mxu0  ;;  %v6250_v60 = vadd.f32 %v18204_v21, %v15595_v58  ;;  %v6252_v40 = vadd.f32 %v18205_v57, %v15592_v35  ;;  %v7165_v49 = vunpack.c.l.bf16 %v7046_v31  ;;  %v18207_v7 = vld [vmem:[#allocation184_spill] sm:$0xff] }
 0x4e0   : > { %7510 = vst [vmem:[#allocation12 + $0x230] sm:$0xff] %v7382_v32  ;;  %v7383_v22 = vadd.f32 %v15748_v37, %v6934_v28  ;;  %v6941_v16 = vsub.f32 %v15751_v53, %v6813_v59  ;;  %v6577_v51 = vadd.f32 %v6576_v39, %v6464_v25  ;;  %v6466_v34 = vadd.f32 %v6465_v38, %v6353_v42  ;;  %v6578_v1 = vpop.f32.mrf.mxu1  ;;  %v18210_v38 = vld [vmem:[#allocation201_spill] sm:$0xff] }
 0x4e1   : > { %v6814_v30 = vmul.f32 %v12944_v19, %v6573_v47  ;;  %v6467_v43 = vpop.f32.mrf.mxu0  ;;  %v7166_v13 = vunpack.c.h.bf16 %v7046_v31  ;;  %v6361_v5 = vadd.f32 %v18207_v7, %v6248_v24  ;;  %v6363_v32 = vadd.f32 %v18208_v63, %v6250_v60  ;;  %v8546_v63 = vld [vmem:[#allocation12 + $0x3b0] sm:$0xff] }
 0x4e2   : > { %7511 = vst [vmem:[#allocation12 + $0x238] sm:$0xff] %v7383_v22  ;;  %v7390_v37 = vadd.f32 %v15758_v52, %v6941_v16  ;;  %v6821_v53 = vmul.f32 %v12944_v19, %v6577_v51  ;;  %v6579_v6 = vadd.f32 %v6578_v1, %v6466_v34  ;;  %v6468_v8 = vadd.f32 %v6467_v43, %v6355_v4  ;;  %v6580_v23 = vpop.f32.mrf.mxu1  ;;  %v18211_v22 = vld [vmem:[#allocation202_spill] sm:$0xff] }
 0x4e3   : > { %v6942_v48 = vsub.f32 %v18206_v17, %v6814_v30  ;;  %v6469_v2 = vpop.f32.mrf.mxu0  ;;  %v6254_v28 = vadd.f32 %v18209_v45, %v15595_v58  ;;  %v6365_v26 = vadd.f32 %v18210_v38, %v6252_v40  ;;  %v6258_v16 = vadd.f32 %v18211_v22, %v15592_v35  ;;  %v8545_v1 = vld [vmem:[#allocation12 + $0x378] sm:$0xff]  ;;  %v18214_v40 = vld [vmem:[#allocation120_spill] sm:$0xff] }
 0x4e4   : > { %7518 = vst [vmem:[#allocation12 + $0x270] sm:$0xff] %v7390_v37  ;;  %v6949_v29 = vsub.f32 %v15774_v20, %v6821_v53  ;;  %v6822_v50 = vmul.f32 %v12944_v19, %v6579_v6  ;;  %v6581_v42 = vadd.f32 %v6580_v23, %v6468_v8  ;;  %v6470_v52 = vadd.f32 %v6469_v2, %v6357_v56  ;;  %v6582_v27 = vpop.f32.mrf.mxu1  ;;  %v7050_v8 = vld [vmem:[%s8930_s16 + $0x1d8] sm:$0xff]  ;;  %v18213_v23 = vld [vmem:[#allocation207_spill] sm:$0xff] }
 0x4e5   : > { %v7391_v59 = vadd.f32 %v15764_v62, %v6942_v48  ;;  %v6473_v25 = vpop.f32.mrf.mxu0  ;;  %v15950_v62 = vmul.f32 %v8545_v1, %v17789_v33  ;;  %v6367_v24 = vadd.f32 %v18212_v41, %v6254_v28  ;;  %v7294_v30 = vmul.f32 %v17773_v14, %v7165_v49  ;;  %v18215_v48 = vld [vmem:[#allocation206_spill] sm:$0xff] }
 0x4e6   : > { %v7398_v39 = vadd.f32 %v15803_v12, %v6949_v29  ;;  %v6950_v54 = vsub.f32 %v15787_v44, %v6822_v50  ;;  %v6829_v20 = vmul.f32 %v12944_v19, %v6581_v42  ;;  %v6583_v4 = vadd.f32 %v6582_v27, %v6470_v52  ;;  %v6586_v47 = vpop.f32.mrf.mxu1  ;;  %v18216_v52 = vld [vmem:[#allocation98_spill] sm:$0xff] }
 0x4e7   : > { %7519 = vst [vmem:[#allocation12 + $0x278] sm:$0xff] %v7391_v59  ;;  %v6474_v51 = vadd.f32 %v6473_v25, %v6361_v5  ;;  %v6475_v34 = vpop.f32.mrf.mxu0  ;;  %v7295_v43 = vmul.f32 %v17773_v14, %v7166_v13  ;;  %v6371_v57 = vadd.f32 %v18213_v23, %v6258_v16  ;;  %v6260_v17 = vadd.f32 %v18214_v40, %v15595_v58 }
 0x4e8   : > { %7526 = vst [vmem:[#allocation12 + $0x2b0] sm:$0xff] %v7398_v39  ;;  %v7399_v12 = vadd.f32 %v15806_v9, %v6950_v54  ;;  %v6957_v44 = vsub.f32 %v15825_v46, %v6829_v20  ;;  %v6830_v31 = vmul.f32 %v12944_v19, %v6583_v4  ;;  %v6476_v15 = vadd.f32 %v6475_v34, %v6363_v32  ;;  %v6588_v56 = vpop.f32.mrf.mxu1  ;;  %v7054_v39 = vld [vmem:[%s8930_s16 + $0x1f8] sm:$0xff]  ;;  %v18217_v54 = vld [vmem:[#allocation131_spill] sm:$0xff]  ;;  %v18218_v4 = vld [vmem:[#allocation128_spill] sm:$0xff] }
 0x4e9   : > { %v6587_v21 = vadd.f32 %v6586_v47, %v6474_v51  ;;  %v6477_v60 = vpop.f32.mrf.mxu0  ;;  %v6262_v2 = vadd.f32 %v18215_v48, %v15592_v35  ;;  %v6264_v27 = vadd.f32 %v18216_v52, %v15595_v58  ;;  %v6724_v35 = vmul.f32 %v8546_v63, %v17789_v33  ;;  %v18219_v34 = vld [vmem:[#allocation130_spill] sm:$0xff] }
 0x4ea   : > { %7527 = vst [vmem:[#allocation12 + $0x2b8] sm:$0xff] %v7399_v12  ;;  %v7406_v37 = vadd.f32 %v15849_v55, %v6957_v44  ;;  %v6958_v9 = vsub.f32 %v15833_v18, %v6830_v31  ;;  %v6589_v53 = vadd.f32 %v6588_v56, %v6476_v15  ;;  %v6478_v6 = vadd.f32 %v6477_v60, %v6365_v26  ;;  %v6590_v46 = vpop.f32.mrf.mxu1 }
 0x4eb   : > { %v6837_v49 = vmul.f32 %v12944_v19, %v6587_v21  ;;  %v6479_v13 = vpop.f32.mrf.mxu0  ;;  %v7173_v32 = vunpack.c.l.bf16 %v7050_v8  ;;  %v6373_v20 = vadd.f32 %v18217_v54, %v6260_v17  ;;  %v6375_v58 = vadd.f32 %v18218_v4, %v6262_v2  ;;  %v8547_v21 = vld [vmem:[#allocation12 + $0x3b8] sm:$0xff] }
 0x4ec   : > { %7534 = vst [vmem:[#allocation12 + $0x2f0] sm:$0xff] %v7406_v37  ;;  %v7407_v55 = vadd.f32 %v15869_v3, %v6958_v9  ;;  %v6838_v18 = vmul.f32 %v12944_v19, %v6589_v53  ;;  %v6591_v29 = vadd.f32 %v6590_v46, %v6478_v6  ;;  %v6480_v50 = vadd.f32 %v6479_v13, %v6367_v24  ;;  %v6592_v42 = vpop.f32.mrf.mxu1  ;;  %v8548_v37 = vld [vmem:[#allocation12 + $0x3f0] sm:$0xff]  ;;  %v8549_v17 = vld [vmem:[#allocation12 + $0x3f8] sm:$0xff] }
 0x4ed   : > { %v6965_v7 = vsub.f32 %v15876_v10, %v6837_v49  ;;  %v6483_v5 = vpop.f32.mrf.mxu0  ;;  %v7174_v38 = vunpack.c.h.bf16 %v7050_v8  ;;  %v6377_v1 = vadd.f32 %v18219_v34, %v6264_v27  ;;  %v7302_v12 = vmul.f32 %v17773_v14, %v7173_v32 }
 0x4ee   : > { %7535 = vst [vmem:[#allocation12 + $0x2f8] sm:$0xff] %v7407_v55  ;;  %v6966_v45 = vsub.f32 %v15893_v0, %v6838_v18  ;;  %v6845_v3 = vmul.f32 %v12944_v19, %v6591_v29  ;;  %v6593_v28 = vadd.f32 %v6592_v42, %v6480_v50  ;;  %v6484_v59 = vadd.f32 %v6483_v5, %v6371_v57  ;;  %v6596_v25 = vpop.f32.mrf.mxu1 }
 0x4ef   : > { %v7414_v10 = vadd.f32 %v15910_v11, %v6965_v7  ;;  %v6485_v47 = vpop.f32.mrf.mxu0  ;;  %v7181_v15 = vunpack.c.l.bf16 %v7054_v39  ;;  %v6725_v60 = vmul.f32 %v8547_v21, %v17789_v33  ;;  %v6732_v9 = vmul.f32 %v8548_v37, %v17789_v33 }
 0x4f0   : > { %v7415_v26 = vadd.f32 %v15917_v36, %v6966_v45  ;;  %v6973_v22 = vsub.f32 %v15920_v61, %v6845_v3  ;;  %v6846_v0 = vmul.f32 %v12944_v19, %v6593_v28  ;;  %v6597_v16 = vadd.f32 %v6596_v25, %v6484_v59  ;;  %v6598_v51 = vpop.f32.mrf.mxu1 }
 0x4f1   : > { %7542 = vst [vmem:[#allocation12 + $0x330] sm:$0xff] %v7414_v10  ;;  %v6486_v44 = vadd.f32 %v6485_v47, %v6373_v20  ;;  %v6487_v31 = vpop.f32.mrf.mxu0  ;;  %v7182_v6 = vunpack.c.h.bf16 %v7054_v39  ;;  %v7303_v57 = vmul.f32 %v17773_v14, %v7174_v38  ;;  %v6733_v48 = vmul.f32 %v8549_v17, %v17789_v33 }
 0x4f2   : > { %7543 = vst [vmem:[#allocation12 + $0x338] sm:$0xff] %v7415_v26  ;;  %v7422_v11 = vadd.f32 %v7294_v30, %v6973_v22  ;;  %v6974_v56 = vsub.f32 %v15950_v62, %v6846_v0  ;;  %v6853_v36 = vmul.f32 %v12944_v19, %v6597_v16  ;;  %v6488_v41 = vadd.f32 %v6487_v31, %v6375_v58  ;;  %v6600_v61 = vpop.f32.mrf.mxu1 }
 0x4f3   : > { %v6599_v24 = vadd.f32 %v6598_v51, %v6486_v44  ;;  %v6489_v53 = vpop.f32.mrf.mxu0  ;;  %v7310_v13 = vmul.f32 %v17773_v14, %v7181_v15  ;;  %v7311_v50 = vmul.f32 %v17773_v14, %v7182_v6 }
 0x4f4   : > { %7550 = vst [vmem:[#allocation12 + $0x370] sm:$0xff] %v7422_v11  ;;  %v7423_v46 = vadd.f32 %v7295_v43, %v6974_v56  ;;  %v6981_v8 = vsub.f32 %v6724_v35, %v6853_v36  ;;  %v6601_v23 = vadd.f32 %v6600_v61, %v6488_v41  ;;  %v6490_v30 = vadd.f32 %v6489_v53, %v6377_v1  ;;  %v6602_v40 = vpop.f32.mrf.mxu1 }
 0x4f5   : > { %v6854_v62 = vmul.f32 %v12944_v19, %v6599_v24 }
 0x4f6   : > { %7551 = vst [vmem:[#allocation12 + $0x378] sm:$0xff] %v7423_v46  ;;  %v7430_v2 = vadd.f32 %v7302_v12, %v6981_v8  ;;  %v6861_v49 = vmul.f32 %v12944_v19, %v6601_v23  ;;  %v6603_v55 = vadd.f32 %v6602_v40, %v6490_v30 }
 0x4f7   : > { %v6982_v43 = vsub.f32 %v6725_v60, %v6854_v62 }
 0x4f8   : > { %7558 = vst [vmem:[#allocation12 + $0x3b0] sm:$0xff] %v7430_v2  ;;  %v6989_v18 = vsub.f32 %v6732_v9, %v6861_v49  ;;  %v6862_v29 = vmul.f32 %v12944_v19, %v6603_v55 }
 0x4f9   : > { %v7431_v42 = vadd.f32 %v7303_v57, %v6982_v43 }
 0x4fa   : > { %v7438_v33 = vadd.f32 %v7310_v13, %v6989_v18  ;;  %v6990_v52 = vsub.f32 %v6733_v48, %v6862_v29 }
 0x4fb   : > { %7559 = vst [vmem:[#allocation12 + $0x3b8] sm:$0xff] %v7431_v42 }
 0x4fc   : > { %7566 = vst [vmem:[#allocation12 + $0x3f0] sm:$0xff] %v7438_v33  ;;  %v7439_v27 = vadd.f32 %v7311_v50, %v6990_v52 }
 0x4fe   : > { %7567 = vst [vmem:[#allocation12 + $0x3f8] sm:$0xff] %v7439_v27 }
 0x4ff   : > { %8677 = shalt.err (!%p8674_p1)
}
 0x500   : > { %s8775_s16 = smov 1024   ;;  %s8776_s27 = smov 64  }
 0x501   : > { %8298 = dma.vmem_to_hbm [thread:$0]  (%p8322_p7), %s7579_s15, 16384, %s16030_s5, [#allocation6], %s8775_s16, %s8775_s16, %s8776_s27  }
 0x502   : > { %8731 = dma.done.wait (%p8322_p7), [#allocation6], 16384  }
 0x503   : > { %8733 = vsyncadd (%p8322_p7), [#allocation6], 4294950912 }
 0x504 PF: > { %s25_s26 = sadd.s32 1, %s8756_s26   ;;  %s18220_s21 = smov %s8740_s22 }
 0x505   : > { %p22_p13 = scmp.ge.s32.totalorder %s25_s26, 10   ;;  %s18221_s22 = smov %s8744_s23 }
 0x506   : > { %s18222_s23 = smov %s8913_s8  ;;  %s18223_s24 = smov %s8752_s25 }
 0x507   : > { %s18224_s25 = smov %s18226_s29  ;;  %24 = sbr.rel (!%p22_p13) target bundleno = 12 (0xc), region = 92 }
 0x50c   :  { %7594 = vsyncpa [#allocation5], 1 }
 0x50d   :  { %7596 = vsyncpa [#allocation5 + $0x1], 1 }
 0x50e   :  { %7597 = vsyncpa [#allocation8], 1 }
 0x50f   :  { %7599 = vsyncpa [#allocation8 + $0x1], 1 }
 0x510   :  { %7600 = vsyncpa [#allocation11], 1 }
 0x511   :  { %7601 = vsyncpa [#allocation6], 1 }
 0x512   :  { %7603 = vsyncpa [#allocation6 + $0x1], 1 }

</bundles_post_ra>
